<compile_context>
chip_gen: v7x
topology: tpu7x:2x2x1
jax: 0.10.0
libtpu: 0.0.40
codegen_flags: <defaults>
</compile_context>

<pallas_src>
import jax
import jax.numpy as jnp
from jax.experimental import pallas as pl
from jax.experimental.pallas import tpu as pltpu


# ----------------------------- Pallas kernel ------------------------------ #
def fps_knn_kernel(xyz_ref, x_ref,
                   lc_xyz_ref, lc_x_ref, knn_xyz_ref, knn_x_ref,
                   sel_ref):
    f32 = jnp.float32
    N = xyz_ref.shape[1]
    G = lc_xyz_ref.shape[0]
    K = knn_xyz_ref.shape[1]

    xyz = xyz_ref[...].astype(f32)                     # (3, N) channels-first
    feat = x_ref[...].astype(f32)                      # (N, C)

    xr, yr, zr = xyz[0:1, :], xyz[1:2, :], xyz[2:3, :]
    lane = jax.lax.broadcasted_iota(jnp.int32, (1, N), 1)

    # --- farthest point sampling: sequential G-step loop ------------------- #
    def fps_body(i, carry):
        dist, far = carry                              # (1,N) f32, (1,1) i32
        onehot = lane == far                           # one-hot of current centroid
        sel_ref[pl.ds(i, 1), :] = onehot.astype(f32)   # record selection row i
        cx = jnp.sum(jnp.where(onehot, xr, 0.0), axis=1, keepdims=True)
        cy = jnp.sum(jnp.where(onehot, yr, 0.0), axis=1, keepdims=True)
        cz = jnp.sum(jnp.where(onehot, zr, 0.0), axis=1, keepdims=True)
        dx, dy, dz = xr - cx, yr - cy, zr - cz
        dist = jnp.minimum(dist, dx * dx + dy * dy + dz * dz)
        m = jnp.max(dist, axis=1, keepdims=True)
        # next farthest point = lowest index attaining the max (matches argmax)
        far = jnp.min(jnp.where(dist >= m, lane, N), axis=1, keepdims=True)
        return dist, far

    dist0 = jnp.full((1, N), 1e10, f32)
    far0 = jnp.zeros((1, 1), jnp.int32)
    jax.lax.fori_loop(0, G, fps_body, (dist0, far0))

    # --- gather the G centers via one-hot matmuls on the MXU --------------- #
    sel = sel_ref[...]                                 # (G, N)
    lc_xyz = jax.lax.dot_general(sel, xyz, (((1,), (1,)), ((), ())),
                                 preferred_element_type=f32)       # (G, 3)
    lc_x = jnp.dot(sel, feat, preferred_element_type=f32)          # (G, C)
    lc_xyz_ref[...] = lc_xyz.astype(lc_xyz_ref.dtype)
    lc_x_ref[...] = lc_x.astype(lc_x_ref.dtype)

    # --- kNN: pairwise squared distances via 3 broadcast VPU FMAs ---------- #
    dxs = lc_xyz[:, 0:1] - xr                          # (G, N)
    dys = lc_xyz[:, 1:2] - yr
    dzs = lc_xyz[:, 2:3] - zr
    sq = dxs * dxs + dys * dys + dzs * dzs

    lane_gn = jax.lax.broadcasted_iota(jnp.int32, (G, N), 1)
    big = jnp.float32(3.0e38)
    for k in range(K):                                 # static unroll (K small)
        m = jnp.min(sq, axis=1, keepdims=True)         # (G, 1)
        idx = jnp.min(jnp.where(sq <= m, lane_gn, N), axis=1, keepdims=True)
        hit = lane_gn == idx                           # (G, N) one-hot per row
        onehot = hit.astype(f32)
        gxyz = jax.lax.dot_general(onehot, xyz, (((1,), (1,)), ((), ())),
                                   preferred_element_type=f32)     # (G, 3)
        gx = jnp.dot(onehot, feat, preferred_element_type=f32)     # (G, C)
        knn_xyz_ref[:, k, :] = gxyz.astype(knn_xyz_ref.dtype)
        knn_x_ref[:, k, :] = gx.astype(knn_x_ref.dtype)
        sq = jnp.where(hit, big, sq)                   # mask out chosen neighbour


# -------------------------------- wrapper ---------------------------------- #
def fps_knn_forward(xyz, x, group_num, k_neighbors):
    B, N, _ = xyz.shape
    C = x.shape[-1]
    G, K = group_num, k_neighbors

    # channels-first xyz: point axis on lanes; tiny tensor, cheap transpose.
    xyz_t = jnp.transpose(xyz, (0, 2, 1)).astype(jnp.float32)      # (B, 3, N)
    x_f = x.astype(jnp.float32)

    out_shape = (
        jax.ShapeDtypeStruct((B, G, 3), jnp.float32),
        jax.ShapeDtypeStruct((B, G, C), x.dtype),
        jax.ShapeDtypeStruct((B, G, K, 3), jnp.float32),
        jax.ShapeDtypeStruct((B, G, K, C), x.dtype),
    )
    out_specs = (
        pl.BlockSpec((None, G, 3), lambda b: (b, 0, 0)),
        pl.BlockSpec((None, G, C), lambda b: (b, 0, 0)),
        pl.BlockSpec((None, G, K, 3), lambda b: (b, 0, 0, 0)),
        pl.BlockSpec((None, G, K, C), lambda b: (b, 0, 0, 0)),
    )
    return pl.pallas_call(
        fps_knn_kernel,
        out_shape=out_shape,
        grid=(B,),
        in_specs=[
            pl.BlockSpec((None, 3, N), lambda b: (b, 0, 0)),   # xyz (channels-first)
            pl.BlockSpec((None, N, C), lambda b: (b, 0, 0)),   # features, natural layout
        ],
        out_specs=out_specs,
        scratch_shapes=[pltpu.VMEM((G, N), jnp.float32)],      # FPS selection matrix
        compiler_params=pltpu.CompilerParams(
            dimension_semantics=("parallel",)),
    )(xyz_t, x_f)


# ------------------------ pure-JAX reference (check) ----------------------- #
def fps_knn_reference(xyz, x, group_num, k_neighbors):
    B, N, _ = xyz.shape
    C = x.shape[-1]
    G, K = group_num, k_neighbors

    def fps_one(xb):                                   # (N, 3) -> (G,)
        def body(i, carry):
            dist, far, idxs = carry
            idxs = idxs.at[i].set(far)
            c = xb[far]
            d = jnp.sum((xb - c) ** 2, axis=-1)
            dist = jnp.minimum(dist, d)
            far = jnp.argmax(dist).astype(jnp.int32)
            return dist, far, idxs
        dist0 = jnp.full((N,), 1e10, jnp.float32)
        _, _, idxs = jax.lax.fori_loop(
            0, G, body,
            (dist0, jnp.zeros((), jnp.int32), jnp.zeros((G,), jnp.int32)))
        return idxs

    fps_idx = jax.vmap(fps_one)(xyz)                                   # (B, G)
    lc_xyz = jnp.take_along_axis(
        xyz, jnp.broadcast_to(fps_idx[..., None], (B, G, 3)), axis=1)  # (B, G, 3)
    lc_x = jnp.take_along_axis(
        x, jnp.broadcast_to(fps_idx[..., None], (B, G, C)), axis=1)    # (B, G, C)

    sq = jnp.sum((lc_xyz[:, :, None, :] - xyz[:, None, :, :]) ** 2, axis=-1)
    _, knn_idx = jax.lax.top_k(-sq, K)                                 # (B, G, K)

    xyz_e = jnp.broadcast_to(xyz[:, None, :, :], (B, G, N, 3))
    x_e = jnp.broadcast_to(x[:, None, :, :], (B, G, N, C))
    knn_xyz = jnp.take_along_axis(
        xyz_e, jnp.broadcast_to(knn_idx[..., None], (B, G, K, 3)), axis=2)
    knn_x = jnp.take_along_axis(
        x_e, jnp.broadcast_to(knn_idx[..., None], (B, G, K, C)), axis=2)
    return lc_xyz, lc_x, knn_xyz, knn_x


# ----------------------------------- main ----------------------------------- #
if __name__ == "__main__":
    B, N, C = 2, 128, 16           # small point cloud, 16 feature channels
    G, K = 32, 16                  # group_num, k_neighbors

    key = jax.random.PRNGKey(0)
    k0, k1 = jax.random.split(key)
    xyz = jax.random.normal(k0, (B, N, 3), jnp.float32)
    x = jax.random.normal(k1, (B, N, C), jnp.float32)

    outs = fps_knn_forward(xyz, x, G, K)
    outs = jax.block_until_ready(outs)
    lc_xyz, lc_x, knn_xyz, knn_x = outs

    r_lc_xyz, r_lc_x, r_knn_xyz, r_knn_x = fps_knn_reference(xyz, x, G, K)

    assert lc_xyz.shape == (B, G, 3), lc_xyz.shape
    assert lc_x.shape == (B, G, C), lc_x.shape
    assert knn_xyz.shape == (B, G, K, 3), knn_xyz.shape
    assert knn_x.shape == (B, G, K, C), knn_x.shape

    for got, ref, name in [(lc_xyz, r_lc_xyz, "lc_xyz"),
                           (lc_x, r_lc_x, "lc_x"),
                           (knn_xyz, r_knn_xyz, "knn_xyz"),
                           (knn_x, r_knn_x, "knn_x")]:
        err = float(jnp.max(jnp.abs(got - ref)))
        assert err < 1e-4, f"{name}: max abs err {err}"

    print("KERNEL_OK")
</pallas_src>

<mosaic_0001>
module attributes {stable_mosaic.version = 11 : i64} {
  func.func @fps_knn_kernel(%arg0: i32, %arg1: memref<1x3x128xf32, #tpu.memory_space<vmem>>, %arg2: memref<1x128x16xf32, #tpu.memory_space<vmem>>, %arg3: memref<1x32x3xf32, #tpu.memory_space<vmem>>, %arg4: memref<1x32x16xf32, #tpu.memory_space<vmem>>, %arg5: memref<1x32x16x3xf32, #tpu.memory_space<vmem>>, %arg6: memref<1x32x16x16xf32, #tpu.memory_space<vmem>>, %arg7: memref<32x128xf32, #tpu.memory_space<vmem>>) attributes {dimension_semantics = [#tpu.dimension_semantics<parallel>], iteration_bounds = array<i64: 2>, scalar_prefetch = 0 : i64, scratch_operands = 1 : i64, tpu.core_type = #tpu.core_type<tc>, window_params = [{transform_indices = @transform_0, window_bounds = array<i64: 1, 3, 128>}, {transform_indices = @transform_1, window_bounds = array<i64: 1, 128, 16>}, {transform_indices = @transform_2, window_bounds = array<i64: 1, 32, 3>}, {transform_indices = @transform_3, window_bounds = array<i64: 1, 32, 16>}, {transform_indices = @transform_4, window_bounds = array<i64: 1, 32, 16, 3>}, {transform_indices = @transform_5, window_bounds = array<i64: 1, 32, 16, 16>}]} {
    %c0 = arith.constant 0 : index
    %c0_0 = arith.constant 0 : index
    %c0_1 = arith.constant 0 : index
    %0 = vector.load %arg1[%c0, %c0_0, %c0_1] : memref<1x3x128xf32, #tpu.memory_space<vmem>>, vector<1x3x128xf32>
    %1 = vector.shape_cast %0 : vector<1x3x128xf32> to vector<3x128xf32>
    %c0_2 = arith.constant 0 : index
    %c0_3 = arith.constant 0 : index
    %c0_4 = arith.constant 0 : index
    %2 = vector.load %arg2[%c0_2, %c0_3, %c0_4] : memref<1x128x16xf32, #tpu.memory_space<vmem>>, vector<1x128x16xf32>
    %3 = vector.shape_cast %2 : vector<1x128x16xf32> to vector<128x16xf32>
    %4 = vector.extract_strided_slice %1 {offsets = [0, 0], sizes = [1, 128], strides = [1, 1]} : vector<3x128xf32> to vector<1x128xf32>
    %5 = vector.extract_strided_slice %1 {offsets = [1, 0], sizes = [1, 128], strides = [1, 1]} : vector<3x128xf32> to vector<1x128xf32>
    %6 = vector.extract_strided_slice %1 {offsets = [2, 0], sizes = [1, 128], strides = [1, 1]} : vector<3x128xf32> to vector<1x128xf32>
    %7 = tpu.iota {dimensions = array<i32: 1>} : vector<1x128xi32>
    %cst = arith.constant 1.000000e+10 : f32
    %8 = vector.broadcast %cst : f32 to vector<1x128xf32>
    %c0_i32 = arith.constant 0 : i32
    %9 = vector.broadcast %c0_i32 : i32 to vector<1x1xi32>
    %c0_i32_5 = arith.constant 0 : i32
    %c32_i32 = arith.constant 32 : i32
    %10 = arith.addi %c0_i32_5, %c32_i32 : i32
    %c1_i32 = arith.constant 1 : i32
    %11:2 = scf.for %arg8 = %c0_i32_5 to %10 step %c1_i32 iter_args(%arg9 = %8, %arg10 = %9) -> (vector<1x128xf32>, vector<1x1xi32>)  : i32 {
      %389 = vector.broadcast %arg10 : vector<1x1xi32> to vector<1x128xi32>
      %390 = arith.cmpi eq, %7, %389 : vector<1x128xi32>
      %391 = arith.extui %390 : vector<1x128xi1> to vector<1x128xi32>
      %392 = arith.sitofp %391 : vector<1x128xi32> to vector<1x128xf32>
      %393 = arith.index_cast %arg8 : i32 to index
      %c0_224 = arith.constant 0 : index
      %394 = vector.load %arg7[%393, %c0_224] : memref<32x128xf32, #tpu.memory_space<vmem>>, vector<1x128xf32>
      tpu.vector_store %arg7[%393, %c0_224], %392 {strides = array<i32>} : memref<32x128xf32, #tpu.memory_space<vmem>>, vector<1x128xf32>,
      %cst_225 = arith.constant 0.000000e+00 : f32
      %395 = vector.broadcast %cst_225 : f32 to vector<1x128xf32>
      %396 = arith.select %390, %4, %395 : vector<1x128xi1>, vector<1x128xf32>
      %cst_226 = arith.constant dense<0.000000e+00> : vector<1xf32>
      %397 = vector.multi_reduction <add>, %396, %cst_226 [1] : vector<1x128xf32> to vector<1xf32>
      %398 = vector.shape_cast %397 : vector<1xf32> to vector<1x1xf32>
      %cst_227 = arith.constant 0.000000e+00 : f32
      %399 = vector.broadcast %cst_227 : f32 to vector<1x128xf32>
      %400 = arith.select %390, %5, %399 : vector<1x128xi1>, vector<1x128xf32>
      %cst_228 = arith.constant dense<0.000000e+00> : vector<1xf32>
      %401 = vector.multi_reduction <add>, %400, %cst_228 [1] : vector<1x128xf32> to vector<1xf32>
      %402 = vector.shape_cast %401 : vector<1xf32> to vector<1x1xf32>
      %cst_229 = arith.constant 0.000000e+00 : f32
      %403 = vector.broadcast %cst_229 : f32 to vector<1x128xf32>
      %404 = arith.select %390, %6, %403 : vector<1x128xi1>, vector<1x128xf32>
      %cst_230 = arith.constant dense<0.000000e+00> : vector<1xf32>
      %405 = vector.multi_reduction <add>, %404, %cst_230 [1] : vector<1x128xf32> to vector<1xf32>
      %406 = vector.shape_cast %405 : vector<1xf32> to vector<1x1xf32>
      %407 = vector.broadcast %398 : vector<1x1xf32> to vector<1x128xf32>
      %408 = arith.subf %4, %407 : vector<1x128xf32>
      %409 = vector.broadcast %402 : vector<1x1xf32> to vector<1x128xf32>
      %410 = arith.subf %5, %409 : vector<1x128xf32>
      %411 = vector.broadcast %406 : vector<1x1xf32> to vector<1x128xf32>
      %412 = arith.subf %6, %411 : vector<1x128xf32>
      %413 = arith.mulf %408, %408 : vector<1x128xf32>
      %414 = arith.mulf %410, %410 : vector<1x128xf32>
      %415 = arith.addf %413, %414 : vector<1x128xf32>
      %416 = arith.mulf %412, %412 : vector<1x128xf32>
      %417 = arith.addf %415, %416 : vector<1x128xf32>
      %418 = arith.minimumf %arg9, %417 : vector<1x128xf32>
      %cst_231 = arith.constant dense<0xFF800000> : vector<1xf32>
      %419 = vector.multi_reduction <maximumf>, %418, %cst_231 [1] : vector<1x128xf32> to vector<1xf32>
      %420 = vector.shape_cast %419 : vector<1xf32> to vector<1x1xf32>
      %421 = vector.broadcast %420 : vector<1x1xf32> to vector<1x128xf32>
      %422 = arith.cmpf oge, %418, %421 : vector<1x128xf32>
      %c128_i32_232 = arith.constant 128 : i32
      %423 = vector.broadcast %c128_i32_232 : i32 to vector<1x128xi32>
      %424 = arith.select %422, %7, %423 : vector<1x128xi1>, vector<1x128xi32>
      %cst_233 = arith.constant dense<2147483647> : vector<1xi32>
      %425 = vector.multi_reduction <minsi>, %424, %cst_233 [1] : vector<1x128xi32> to vector<1xi32>
      %426 = vector.shape_cast %425 : vector<1xi32> to vector<1x1xi32>
      scf.yield %418, %426 : vector<1x128xf32>, vector<1x1xi32>
    }
    %c32_i32_6 = arith.constant 32 : i32
    %c0_7 = arith.constant 0 : index
    %c0_8 = arith.constant 0 : index
    %12 = vector.load %arg7[%c0_7, %c0_8] : memref<32x128xf32, #tpu.memory_space<vmem>>, vector<32x128xf32>
    %cst_9 = arith.constant dense<0.000000e+00> : vector<32x3xf32>
    %13 = tpu.matmul %12, %1, %cst_9 {dimension_numbers = #tpu.dot_dimension_numbers<[1], [1], [0], [0], [0, 0, 1, 0], [], []>} : vector<32x128xf32>, vector<3x128xf32>, vector<32x3xf32> -> vector<32x3xf32>
    %cst_10 = arith.constant dense<0.000000e+00> : vector<32x16xf32>
    %14 = tpu.matmul %12, %3, %cst_10 {dimension_numbers = #tpu.dot_dimension_numbers<[1], [0], [0], [1], [0, 0, 1, 1], [], []>} : vector<32x128xf32>, vector<128x16xf32>, vector<32x16xf32> -> vector<32x16xf32>
    %c0_11 = arith.constant 0 : index
    %c0_12 = arith.constant 0 : index
    %c0_13 = arith.constant 0 : index
    %15 = vector.load %arg3[%c0_11, %c0_12, %c0_13] : memref<1x32x3xf32, #tpu.memory_space<vmem>>, vector<1x32x3xf32>
    %16 = vector.shape_cast %15 : vector<1x32x3xf32> to vector<32x3xf32>
    %17 = vector.shape_cast %13 : vector<32x3xf32> to vector<1x32x3xf32>
    tpu.vector_store %arg3[%c0_11, %c0_12, %c0_13], %17 {strides = array<i32>} : memref<1x32x3xf32, #tpu.memory_space<vmem>>, vector<1x32x3xf32>,
    %c0_14 = arith.constant 0 : index
    %c0_15 = arith.constant 0 : index
    %c0_16 = arith.constant 0 : index
    %18 = vector.load %arg4[%c0_14, %c0_15, %c0_16] : memref<1x32x16xf32, #tpu.memory_space<vmem>>, vector<1x32x16xf32>
    %19 = vector.shape_cast %18 : vector<1x32x16xf32> to vector<32x16xf32>
    %20 = vector.shape_cast %14 : vector<32x16xf32> to vector<1x32x16xf32>
    tpu.vector_store %arg4[%c0_14, %c0_15, %c0_16], %20 {strides = array<i32>} : memref<1x32x16xf32, #tpu.memory_space<vmem>>, vector<1x32x16xf32>,
    %21 = vector.extract_strided_slice %13 {offsets = [0, 0], sizes = [32, 1], strides = [1, 1]} : vector<32x3xf32> to vector<32x1xf32>
    %22 = vector.broadcast %21 : vector<32x1xf32> to vector<32x128xf32>
    %23 = vector.broadcast %4 : vector<1x128xf32> to vector<32x128xf32>
    %24 = arith.subf %22, %23 : vector<32x128xf32>
    %25 = vector.extract_strided_slice %13 {offsets = [0, 1], sizes = [32, 1], strides = [1, 1]} : vector<32x3xf32> to vector<32x1xf32>
    %26 = vector.broadcast %25 : vector<32x1xf32> to vector<32x128xf32>
    %27 = vector.broadcast %5 : vector<1x128xf32> to vector<32x128xf32>
    %28 = arith.subf %26, %27 : vector<32x128xf32>
    %29 = vector.extract_strided_slice %13 {offsets = [0, 2], sizes = [32, 1], strides = [1, 1]} : vector<32x3xf32> to vector<32x1xf32>
    %30 = vector.broadcast %29 : vector<32x1xf32> to vector<32x128xf32>
    %31 = vector.broadcast %6 : vector<1x128xf32> to vector<32x128xf32>
    %32 = arith.subf %30, %31 : vector<32x128xf32>
    %33 = arith.mulf %24, %24 : vector<32x128xf32>
    %34 = arith.mulf %28, %28 : vector<32x128xf32>
    %35 = arith.addf %33, %34 : vector<32x128xf32>
    %36 = arith.mulf %32, %32 : vector<32x128xf32>
    %37 = arith.addf %35, %36 : vector<32x128xf32>
    %38 = tpu.iota {dimensions = array<i32: 1>} : vector<32x128xi32>
    %cst_17 = arith.constant dense<0x7F800000> : vector<32xf32>
    %39 = vector.multi_reduction <minimumf>, %37, %cst_17 [1] : vector<32x128xf32> to vector<32xf32>
    %40 = vector.shape_cast %39 : vector<32xf32> to vector<32x1xf32>
    %41 = vector.broadcast %40 : vector<32x1xf32> to vector<32x128xf32>
    %42 = arith.cmpf ole, %37, %41 : vector<32x128xf32>
    %c128_i32 = arith.constant 128 : i32
    %43 = vector.broadcast %c128_i32 : i32 to vector<32x128xi32>
    %44 = arith.select %42, %38, %43 : vector<32x128xi1>, vector<32x128xi32>
    %cst_18 = arith.constant dense<2147483647> : vector<32xi32>
    %45 = vector.multi_reduction <minsi>, %44, %cst_18 [1] : vector<32x128xi32> to vector<32xi32>
    %46 = vector.shape_cast %45 : vector<32xi32> to vector<32x1xi32>
    %47 = vector.broadcast %46 : vector<32x1xi32> to vector<32x128xi32>
    %48 = arith.cmpi eq, %38, %47 : vector<32x128xi32>
    %49 = arith.extui %48 : vector<32x128xi1> to vector<32x128xi32>
    %50 = arith.sitofp %49 : vector<32x128xi32> to vector<32x128xf32>
    %cst_19 = arith.constant dense<0.000000e+00> : vector<32x3xf32>
    %51 = tpu.matmul %50, %1, %cst_19 {dimension_numbers = #tpu.dot_dimension_numbers<[1], [1], [0], [0], [0, 0, 1, 0], [], []>} : vector<32x128xf32>, vector<3x128xf32>, vector<32x3xf32> -> vector<32x3xf32>
    %cst_20 = arith.constant dense<0.000000e+00> : vector<32x16xf32>
    %52 = tpu.matmul %50, %3, %cst_20 {dimension_numbers = #tpu.dot_dimension_numbers<[1], [0], [0], [1], [0, 0, 1, 1], [], []>} : vector<32x128xf32>, vector<128x16xf32>, vector<32x16xf32> -> vector<32x16xf32>
    %c0_21 = arith.constant 0 : index
    %c0_22 = arith.constant 0 : index
    %c0_23 = arith.constant 0 : index
    %c0_24 = arith.constant 0 : index
    %53 = vector.load %arg5[%c0_21, %c0_22, %c0_23, %c0_24] : memref<1x32x16x3xf32, #tpu.memory_space<vmem>>, vector<1x32x1x3xf32>
    %54 = vector.shape_cast %53 : vector<1x32x1x3xf32> to vector<32x3xf32>
    %55 = vector.shape_cast %51 : vector<32x3xf32> to vector<1x32x1x3xf32>
    tpu.vector_store %arg5[%c0_21, %c0_22, %c0_23, %c0_24], %55 {strides = array<i32>} : memref<1x32x16x3xf32, #tpu.memory_space<vmem>>, vector<1x32x1x3xf32>,
    %c0_25 = arith.constant 0 : index
    %c0_26 = arith.constant 0 : index
    %c0_27 = arith.constant 0 : index
    %c0_28 = arith.constant 0 : index
    %56 = vector.load %arg6[%c0_25, %c0_26, %c0_27, %c0_28] : memref<1x32x16x16xf32, #tpu.memory_space<vmem>>, vector<1x32x1x16xf32>
    %57 = vector.shape_cast %56 : vector<1x32x1x16xf32> to vector<32x16xf32>
    %58 = vector.shape_cast %52 : vector<32x16xf32> to vector<1x32x1x16xf32>
    tpu.vector_store %arg6[%c0_25, %c0_26, %c0_27, %c0_28], %58 {strides = array<i32>} : memref<1x32x16x16xf32, #tpu.memory_space<vmem>>, vector<1x32x1x16xf32>,
    %cst_29 = arith.constant 3.000000e+38 : f32
    %59 = vector.broadcast %cst_29 : f32 to vector<32x128xf32>
    %60 = arith.select %48, %59, %37 : vector<32x128xi1>, vector<32x128xf32>
    %cst_30 = arith.constant dense<0x7F800000> : vector<32xf32>
    %61 = vector.multi_reduction <minimumf>, %60, %cst_30 [1] : vector<32x128xf32> to vector<32xf32>
    %62 = vector.shape_cast %61 : vector<32xf32> to vector<32x1xf32>
    %63 = vector.broadcast %62 : vector<32x1xf32> to vector<32x128xf32>
    %64 = arith.cmpf ole, %60, %63 : vector<32x128xf32>
    %c128_i32_31 = arith.constant 128 : i32
    %65 = vector.broadcast %c128_i32_31 : i32 to vector<32x128xi32>
    %66 = arith.select %64, %38, %65 : vector<32x128xi1>, vector<32x128xi32>
    %cst_32 = arith.constant dense<2147483647> : vector<32xi32>
    %67 = vector.multi_reduction <minsi>, %66, %cst_32 [1] : vector<32x128xi32> to vector<32xi32>
    %68 = vector.shape_cast %67 : vector<32xi32> to vector<32x1xi32>
    %69 = vector.broadcast %68 : vector<32x1xi32> to vector<32x128xi32>
    %70 = arith.cmpi eq, %38, %69 : vector<32x128xi32>
    %71 = arith.extui %70 : vector<32x128xi1> to vector<32x128xi32>
    %72 = arith.sitofp %71 : vector<32x128xi32> to vector<32x128xf32>
    %cst_33 = arith.constant dense<0.000000e+00> : vector<32x3xf32>
    %73 = tpu.matmul %72, %1, %cst_33 {dimension_numbers = #tpu.dot_dimension_numbers<[1], [1], [0], [0], [0, 0, 1, 0], [], []>} : vector<32x128xf32>, vector<3x128xf32>, vector<32x3xf32> -> vector<32x3xf32>
    %cst_34 = arith.constant dense<0.000000e+00> : vector<32x16xf32>
    %74 = tpu.matmul %72, %3, %cst_34 {dimension_numbers = #tpu.dot_dimension_numbers<[1], [0], [0], [1], [0, 0, 1, 1], [], []>} : vector<32x128xf32>, vector<128x16xf32>, vector<32x16xf32> -> vector<32x16xf32>
    %c0_35 = arith.constant 0 : index
    %c0_36 = arith.constant 0 : index
    %c1 = arith.constant 1 : index
    %c0_37 = arith.constant 0 : index
    %75 = vector.load %arg5[%c0_35, %c0_36, %c1, %c0_37] : memref<1x32x16x3xf32, #tpu.memory_space<vmem>>, vector<1x32x1x3xf32>
    %76 = vector.shape_cast %75 : vector<1x32x1x3xf32> to vector<32x3xf32>
    %77 = vector.shape_cast %73 : vector<32x3xf32> to vector<1x32x1x3xf32>
    tpu.vector_store %arg5[%c0_35, %c0_36, %c1, %c0_37], %77 {strides = array<i32>} : memref<1x32x16x3xf32, #tpu.memory_space<vmem>>, vector<1x32x1x3xf32>,
    %c0_38 = arith.constant 0 : index
    %c0_39 = arith.constant 0 : index
    %c1_40 = arith.constant 1 : index
    %c0_41 = arith.constant 0 : index
    %78 = vector.load %arg6[%c0_38, %c0_39, %c1_40, %c0_41] : memref<1x32x16x16xf32, #tpu.memory_space<vmem>>, vector<1x32x1x16xf32>
    %79 = vector.shape_cast %78 : vector<1x32x1x16xf32> to vector<32x16xf32>
    %80 = vector.shape_cast %74 : vector<32x16xf32> to vector<1x32x1x16xf32>
    tpu.vector_store %arg6[%c0_38, %c0_39, %c1_40, %c0_41], %80 {strides = array<i32>} : memref<1x32x16x16xf32, #tpu.memory_space<vmem>>, vector<1x32x1x16xf32>,
    %cst_42 = arith.constant 3.000000e+38 : f32
    %81 = vector.broadcast %cst_42 : f32 to vector<32x128xf32>
    %82 = arith.select %70, %81, %60 : vector<32x128xi1>, vector<32x128xf32>
    %cst_43 = arith.constant dense<0x7F800000> : vector<32xf32>
    %83 = vector.multi_reduction <minimumf>, %82, %cst_43 [1] : vector<32x128xf32> to vector<32xf32>
    %84 = vector.shape_cast %83 : vector<32xf32> to vector<32x1xf32>
    %85 = vector.broadcast %84 : vector<32x1xf32> to vector<32x128xf32>
    %86 = arith.cmpf ole, %82, %85 : vector<32x128xf32>
    %c128_i32_44 = arith.constant 128 : i32
    %87 = vector.broadcast %c128_i32_44 : i32 to vector<32x128xi32>
    %88 = arith.select %86, %38, %87 : vector<32x128xi1>, vector<32x128xi32>
    %cst_45 = arith.constant dense<2147483647> : vector<32xi32>
    %89 = vector.multi_reduction <minsi>, %88, %cst_45 [1] : vector<32x128xi32> to vector<32xi32>
    %90 = vector.shape_cast %89 : vector<32xi32> to vector<32x1xi32>
    %91 = vector.broadcast %90 : vector<32x1xi32> to vector<32x128xi32>
    %92 = arith.cmpi eq, %38, %91 : vector<32x128xi32>
    %93 = arith.extui %92 : vector<32x128xi1> to vector<32x128xi32>
    %94 = arith.sitofp %93 : vector<32x128xi32> to vector<32x128xf32>
    %cst_46 = arith.constant dense<0.000000e+00> : vector<32x3xf32>
    %95 = tpu.matmul %94, %1, %cst_46 {dimension_numbers = #tpu.dot_dimension_numbers<[1], [1], [0], [0], [0, 0, 1, 0], [], []>} : vector<32x128xf32>, vector<3x128xf32>, vector<32x3xf32> -> vector<32x3xf32>
    %cst_47 = arith.constant dense<0.000000e+00> : vector<32x16xf32>
    %96 = tpu.matmul %94, %3, %cst_47 {dimension_numbers = #tpu.dot_dimension_numbers<[1], [0], [0], [1], [0, 0, 1, 1], [], []>} : vector<32x128xf32>, vector<128x16xf32>, vector<32x16xf32> -> vector<32x16xf32>
    %c0_48 = arith.constant 0 : index
    %c0_49 = arith.constant 0 : index
    %c2 = arith.constant 2 : index
    %c0_50 = arith.constant 0 : index
    %97 = vector.load %arg5[%c0_48, %c0_49, %c2, %c0_50] : memref<1x32x16x3xf32, #tpu.memory_space<vmem>>, vector<1x32x1x3xf32>
    %98 = vector.shape_cast %97 : vector<1x32x1x3xf32> to vector<32x3xf32>
    %99 = vector.shape_cast %95 : vector<32x3xf32> to vector<1x32x1x3xf32>
    tpu.vector_store %arg5[%c0_48, %c0_49, %c2, %c0_50], %99 {strides = array<i32>} : memref<1x32x16x3xf32, #tpu.memory_space<vmem>>, vector<1x32x1x3xf32>,
    %c0_51 = arith.constant 0 : index
    %c0_52 = arith.constant 0 : index
    %c2_53 = arith.constant 2 : index
    %c0_54 = arith.constant 0 : index
    %100 = vector.load %arg6[%c0_51, %c0_52, %c2_53, %c0_54] : memref<1x32x16x16xf32, #tpu.memory_space<vmem>>, vector<1x32x1x16xf32>
    %101 = vector.shape_cast %100 : vector<1x32x1x16xf32> to vector<32x16xf32>
    %102 = vector.shape_cast %96 : vector<32x16xf32> to vector<1x32x1x16xf32>
    tpu.vector_store %arg6[%c0_51, %c0_52, %c2_53, %c0_54], %102 {strides = array<i32>} : memref<1x32x16x16xf32, #tpu.memory_space<vmem>>, vector<1x32x1x16xf32>,
    %cst_55 = arith.constant 3.000000e+38 : f32
    %103 = vector.broadcast %cst_55 : f32 to vector<32x128xf32>
    %104 = arith.select %92, %103, %82 : vector<32x128xi1>, vector<32x128xf32>
    %cst_56 = arith.constant dense<0x7F800000> : vector<32xf32>
    %105 = vector.multi_reduction <minimumf>, %104, %cst_56 [1] : vector<32x128xf32> to vector<32xf32>
    %106 = vector.shape_cast %105 : vector<32xf32> to vector<32x1xf32>
    %107 = vector.broadcast %106 : vector<32x1xf32> to vector<32x128xf32>
    %108 = arith.cmpf ole, %104, %107 : vector<32x128xf32>
    %c128_i32_57 = arith.constant 128 : i32
    %109 = vector.broadcast %c128_i32_57 : i32 to vector<32x128xi32>
    %110 = arith.select %108, %38, %109 : vector<32x128xi1>, vector<32x128xi32>
    %cst_58 = arith.constant dense<2147483647> : vector<32xi32>
    %111 = vector.multi_reduction <minsi>, %110, %cst_58 [1] : vector<32x128xi32> to vector<32xi32>
    %112 = vector.shape_cast %111 : vector<32xi32> to vector<32x1xi32>
    %113 = vector.broadcast %112 : vector<32x1xi32> to vector<32x128xi32>
    %114 = arith.cmpi eq, %38, %113 : vector<32x128xi32>
    %115 = arith.extui %114 : vector<32x128xi1> to vector<32x128xi32>
    %116 = arith.sitofp %115 : vector<32x128xi32> to vector<32x128xf32>
    %cst_59 = arith.constant dense<0.000000e+00> : vector<32x3xf32>
    %117 = tpu.matmul %116, %1, %cst_59 {dimension_numbers = #tpu.dot_dimension_numbers<[1], [1], [0], [0], [0, 0, 1, 0], [], []>} : vector<32x128xf32>, vector<3x128xf32>, vector<32x3xf32> -> vector<32x3xf32>
    %cst_60 = arith.constant dense<0.000000e+00> : vector<32x16xf32>
    %118 = tpu.matmul %116, %3, %cst_60 {dimension_numbers = #tpu.dot_dimension_numbers<[1], [0], [0], [1], [0, 0, 1, 1], [], []>} : vector<32x128xf32>, vector<128x16xf32>, vector<32x16xf32> -> vector<32x16xf32>
    %c0_61 = arith.constant 0 : index
    %c0_62 = arith.constant 0 : index
    %c3 = arith.constant 3 : index
    %c0_63 = arith.constant 0 : index
    %119 = vector.load %arg5[%c0_61, %c0_62, %c3, %c0_63] : memref<1x32x16x3xf32, #tpu.memory_space<vmem>>, vector<1x32x1x3xf32>
    %120 = vector.shape_cast %119 : vector<1x32x1x3xf32> to vector<32x3xf32>
    %121 = vector.shape_cast %117 : vector<32x3xf32> to vector<1x32x1x3xf32>
    tpu.vector_store %arg5[%c0_61, %c0_62, %c3, %c0_63], %121 {strides = array<i32>} : memref<1x32x16x3xf32, #tpu.memory_space<vmem>>, vector<1x32x1x3xf32>,
    %c0_64 = arith.constant 0 : index
    %c0_65 = arith.constant 0 : index
    %c3_66 = arith.constant 3 : index
    %c0_67 = arith.constant 0 : index
    %122 = vector.load %arg6[%c0_64, %c0_65, %c3_66, %c0_67] : memref<1x32x16x16xf32, #tpu.memory_space<vmem>>, vector<1x32x1x16xf32>
    %123 = vector.shape_cast %122 : vector<1x32x1x16xf32> to vector<32x16xf32>
    %124 = vector.shape_cast %118 : vector<32x16xf32> to vector<1x32x1x16xf32>
    tpu.vector_store %arg6[%c0_64, %c0_65, %c3_66, %c0_67], %124 {strides = array<i32>} : memref<1x32x16x16xf32, #tpu.memory_space<vmem>>, vector<1x32x1x16xf32>,
    %cst_68 = arith.constant 3.000000e+38 : f32
    %125 = vector.broadcast %cst_68 : f32 to vector<32x128xf32>
    %126 = arith.select %114, %125, %104 : vector<32x128xi1>, vector<32x128xf32>
    %cst_69 = arith.constant dense<0x7F800000> : vector<32xf32>
    %127 = vector.multi_reduction <minimumf>, %126, %cst_69 [1] : vector<32x128xf32> to vector<32xf32>
    %128 = vector.shape_cast %127 : vector<32xf32> to vector<32x1xf32>
    %129 = vector.broadcast %128 : vector<32x1xf32> to vector<32x128xf32>
    %130 = arith.cmpf ole, %126, %129 : vector<32x128xf32>
    %c128_i32_70 = arith.constant 128 : i32
    %131 = vector.broadcast %c128_i32_70 : i32 to vector<32x128xi32>
    %132 = arith.select %130, %38, %131 : vector<32x128xi1>, vector<32x128xi32>
    %cst_71 = arith.constant dense<2147483647> : vector<32xi32>
    %133 = vector.multi_reduction <minsi>, %132, %cst_71 [1] : vector<32x128xi32> to vector<32xi32>
    %134 = vector.shape_cast %133 : vector<32xi32> to vector<32x1xi32>
    %135 = vector.broadcast %134 : vector<32x1xi32> to vector<32x128xi32>
    %136 = arith.cmpi eq, %38, %135 : vector<32x128xi32>
    %137 = arith.extui %136 : vector<32x128xi1> to vector<32x128xi32>
    %138 = arith.sitofp %137 : vector<32x128xi32> to vector<32x128xf32>
    %cst_72 = arith.constant dense<0.000000e+00> : vector<32x3xf32>
    %139 = tpu.matmul %138, %1, %cst_72 {dimension_numbers = #tpu.dot_dimension_numbers<[1], [1], [0], [0], [0, 0, 1, 0], [], []>} : vector<32x128xf32>, vector<3x128xf32>, vector<32x3xf32> -> vector<32x3xf32>
    %cst_73 = arith.constant dense<0.000000e+00> : vector<32x16xf32>
    %140 = tpu.matmul %138, %3, %cst_73 {dimension_numbers = #tpu.dot_dimension_numbers<[1], [0], [0], [1], [0, 0, 1, 1], [], []>} : vector<32x128xf32>, vector<128x16xf32>, vector<32x16xf32> -> vector<32x16xf32>
    %c0_74 = arith.constant 0 : index
    %c0_75 = arith.constant 0 : index
    %c4 = arith.constant 4 : index
    %c0_76 = arith.constant 0 : index
    %141 = vector.load %arg5[%c0_74, %c0_75, %c4, %c0_76] : memref<1x32x16x3xf32, #tpu.memory_space<vmem>>, vector<1x32x1x3xf32>
    %142 = vector.shape_cast %141 : vector<1x32x1x3xf32> to vector<32x3xf32>
    %143 = vector.shape_cast %139 : vector<32x3xf32> to vector<1x32x1x3xf32>
    tpu.vector_store %arg5[%c0_74, %c0_75, %c4, %c0_76], %143 {strides = array<i32>} : memref<1x32x16x3xf32, #tpu.memory_space<vmem>>, vector<1x32x1x3xf32>,
    %c0_77 = arith.constant 0 : index
    %c0_78 = arith.constant 0 : index
    %c4_79 = arith.constant 4 : index
    %c0_80 = arith.constant 0 : index
    %144 = vector.load %arg6[%c0_77, %c0_78, %c4_79, %c0_80] : memref<1x32x16x16xf32, #tpu.memory_space<vmem>>, vector<1x32x1x16xf32>
    %145 = vector.shape_cast %144 : vector<1x32x1x16xf32> to vector<32x16xf32>
    %146 = vector.shape_cast %140 : vector<32x16xf32> to vector<1x32x1x16xf32>
    tpu.vector_store %arg6[%c0_77, %c0_78, %c4_79, %c0_80], %146 {strides = array<i32>} : memref<1x32x16x16xf32, #tpu.memory_space<vmem>>, vector<1x32x1x16xf32>,
    %cst_81 = arith.constant 3.000000e+38 : f32
    %147 = vector.broadcast %cst_81 : f32 to vector<32x128xf32>
    %148 = arith.select %136, %147, %126 : vector<32x128xi1>, vector<32x128xf32>
    %cst_82 = arith.constant dense<0x7F800000> : vector<32xf32>
    %149 = vector.multi_reduction <minimumf>, %148, %cst_82 [1] : vector<32x128xf32> to vector<32xf32>
    %150 = vector.shape_cast %149 : vector<32xf32> to vector<32x1xf32>
    %151 = vector.broadcast %150 : vector<32x1xf32> to vector<32x128xf32>
    %152 = arith.cmpf ole, %148, %151 : vector<32x128xf32>
    %c128_i32_83 = arith.constant 128 : i32
    %153 = vector.broadcast %c128_i32_83 : i32 to vector<32x128xi32>
    %154 = arith.select %152, %38, %153 : vector<32x128xi1>, vector<32x128xi32>
    %cst_84 = arith.constant dense<2147483647> : vector<32xi32>
    %155 = vector.multi_reduction <minsi>, %154, %cst_84 [1] : vector<32x128xi32> to vector<32xi32>
    %156 = vector.shape_cast %155 : vector<32xi32> to vector<32x1xi32>
    %157 = vector.broadcast %156 : vector<32x1xi32> to vector<32x128xi32>
    %158 = arith.cmpi eq, %38, %157 : vector<32x128xi32>
    %159 = arith.extui %158 : vector<32x128xi1> to vector<32x128xi32>
    %160 = arith.sitofp %159 : vector<32x128xi32> to vector<32x128xf32>
    %cst_85 = arith.constant dense<0.000000e+00> : vector<32x3xf32>
    %161 = tpu.matmul %160, %1, %cst_85 {dimension_numbers = #tpu.dot_dimension_numbers<[1], [1], [0], [0], [0, 0, 1, 0], [], []>} : vector<32x128xf32>, vector<3x128xf32>, vector<32x3xf32> -> vector<32x3xf32>
    %cst_86 = arith.constant dense<0.000000e+00> : vector<32x16xf32>
    %162 = tpu.matmul %160, %3, %cst_86 {dimension_numbers = #tpu.dot_dimension_numbers<[1], [0], [0], [1], [0, 0, 1, 1], [], []>} : vector<32x128xf32>, vector<128x16xf32>, vector<32x16xf32> -> vector<32x16xf32>
    %c0_87 = arith.constant 0 : index
    %c0_88 = arith.constant 0 : index
    %c5 = arith.constant 5 : index
    %c0_89 = arith.constant 0 : index
    %163 = vector.load %arg5[%c0_87, %c0_88, %c5, %c0_89] : memref<1x32x16x3xf32, #tpu.memory_space<vmem>>, vector<1x32x1x3xf32>
    %164 = vector.shape_cast %163 : vector<1x32x1x3xf32> to vector<32x3xf32>
    %165 = vector.shape_cast %161 : vector<32x3xf32> to vector<1x32x1x3xf32>
    tpu.vector_store %arg5[%c0_87, %c0_88, %c5, %c0_89], %165 {strides = array<i32>} : memref<1x32x16x3xf32, #tpu.memory_space<vmem>>, vector<1x32x1x3xf32>,
    %c0_90 = arith.constant 0 : index
    %c0_91 = arith.constant 0 : index
    %c5_92 = arith.constant 5 : index
    %c0_93 = arith.constant 0 : index
    %166 = vector.load %arg6[%c0_90, %c0_91, %c5_92, %c0_93] : memref<1x32x16x16xf32, #tpu.memory_space<vmem>>, vector<1x32x1x16xf32>
    %167 = vector.shape_cast %166 : vector<1x32x1x16xf32> to vector<32x16xf32>
    %168 = vector.shape_cast %162 : vector<32x16xf32> to vector<1x32x1x16xf32>
    tpu.vector_store %arg6[%c0_90, %c0_91, %c5_92, %c0_93], %168 {strides = array<i32>} : memref<1x32x16x16xf32, #tpu.memory_space<vmem>>, vector<1x32x1x16xf32>,
    %cst_94 = arith.constant 3.000000e+38 : f32
    %169 = vector.broadcast %cst_94 : f32 to vector<32x128xf32>
    %170 = arith.select %158, %169, %148 : vector<32x128xi1>, vector<32x128xf32>
    %cst_95 = arith.constant dense<0x7F800000> : vector<32xf32>
    %171 = vector.multi_reduction <minimumf>, %170, %cst_95 [1] : vector<32x128xf32> to vector<32xf32>
    %172 = vector.shape_cast %171 : vector<32xf32> to vector<32x1xf32>
    %173 = vector.broadcast %172 : vector<32x1xf32> to vector<32x128xf32>
    %174 = arith.cmpf ole, %170, %173 : vector<32x128xf32>
    %c128_i32_96 = arith.constant 128 : i32
    %175 = vector.broadcast %c128_i32_96 : i32 to vector<32x128xi32>
    %176 = arith.select %174, %38, %175 : vector<32x128xi1>, vector<32x128xi32>
    %cst_97 = arith.constant dense<2147483647> : vector<32xi32>
    %177 = vector.multi_reduction <minsi>, %176, %cst_97 [1] : vector<32x128xi32> to vector<32xi32>
    %178 = vector.shape_cast %177 : vector<32xi32> to vector<32x1xi32>
    %179 = vector.broadcast %178 : vector<32x1xi32> to vector<32x128xi32>
    %180 = arith.cmpi eq, %38, %179 : vector<32x128xi32>
    %181 = arith.extui %180 : vector<32x128xi1> to vector<32x128xi32>
    %182 = arith.sitofp %181 : vector<32x128xi32> to vector<32x128xf32>
    %cst_98 = arith.constant dense<0.000000e+00> : vector<32x3xf32>
    %183 = tpu.matmul %182, %1, %cst_98 {dimension_numbers = #tpu.dot_dimension_numbers<[1], [1], [0], [0], [0, 0, 1, 0], [], []>} : vector<32x128xf32>, vector<3x128xf32>, vector<32x3xf32> -> vector<32x3xf32>
    %cst_99 = arith.constant dense<0.000000e+00> : vector<32x16xf32>
    %184 = tpu.matmul %182, %3, %cst_99 {dimension_numbers = #tpu.dot_dimension_numbers<[1], [0], [0], [1], [0, 0, 1, 1], [], []>} : vector<32x128xf32>, vector<128x16xf32>, vector<32x16xf32> -> vector<32x16xf32>
    %c0_100 = arith.constant 0 : index
    %c0_101 = arith.constant 0 : index
    %c6 = arith.constant 6 : index
    %c0_102 = arith.constant 0 : index
    %185 = vector.load %arg5[%c0_100, %c0_101, %c6, %c0_102] : memref<1x32x16x3xf32, #tpu.memory_space<vmem>>, vector<1x32x1x3xf32>
    %186 = vector.shape_cast %185 : vector<1x32x1x3xf32> to vector<32x3xf32>
    %187 = vector.shape_cast %183 : vector<32x3xf32> to vector<1x32x1x3xf32>
    tpu.vector_store %arg5[%c0_100, %c0_101, %c6, %c0_102], %187 {strides = array<i32>} : memref<1x32x16x3xf32, #tpu.memory_space<vmem>>, vector<1x32x1x3xf32>,
    %c0_103 = arith.constant 0 : index
    %c0_104 = arith.constant 0 : index
    %c6_105 = arith.constant 6 : index
    %c0_106 = arith.constant 0 : index
    %188 = vector.load %arg6[%c0_103, %c0_104, %c6_105, %c0_106] : memref<1x32x16x16xf32, #tpu.memory_space<vmem>>, vector<1x32x1x16xf32>
    %189 = vector.shape_cast %188 : vector<1x32x1x16xf32> to vector<32x16xf32>
    %190 = vector.shape_cast %184 : vector<32x16xf32> to vector<1x32x1x16xf32>
    tpu.vector_store %arg6[%c0_103, %c0_104, %c6_105, %c0_106], %190 {strides = array<i32>} : memref<1x32x16x16xf32, #tpu.memory_space<vmem>>, vector<1x32x1x16xf32>,
    %cst_107 = arith.constant 3.000000e+38 : f32
    %191 = vector.broadcast %cst_107 : f32 to vector<32x128xf32>
    %192 = arith.select %180, %191, %170 : vector<32x128xi1>, vector<32x128xf32>
    %cst_108 = arith.constant dense<0x7F800000> : vector<32xf32>
    %193 = vector.multi_reduction <minimumf>, %192, %cst_108 [1] : vector<32x128xf32> to vector<32xf32>
    %194 = vector.shape_cast %193 : vector<32xf32> to vector<32x1xf32>
    %195 = vector.broadcast %194 : vector<32x1xf32> to vector<32x128xf32>
    %196 = arith.cmpf ole, %192, %195 : vector<32x128xf32>
    %c128_i32_109 = arith.constant 128 : i32
    %197 = vector.broadcast %c128_i32_109 : i32 to vector<32x128xi32>
    %198 = arith.select %196, %38, %197 : vector<32x128xi1>, vector<32x128xi32>
    %cst_110 = arith.constant dense<2147483647> : vector<32xi32>
    %199 = vector.multi_reduction <minsi>, %198, %cst_110 [1] : vector<32x128xi32> to vector<32xi32>
    %200 = vector.shape_cast %199 : vector<32xi32> to vector<32x1xi32>
    %201 = vector.broadcast %200 : vector<32x1xi32> to vector<32x128xi32>
    %202 = arith.cmpi eq, %38, %201 : vector<32x128xi32>
    %203 = arith.extui %202 : vector<32x128xi1> to vector<32x128xi32>
    %204 = arith.sitofp %203 : vector<32x128xi32> to vector<32x128xf32>
    %cst_111 = arith.constant dense<0.000000e+00> : vector<32x3xf32>
    %205 = tpu.matmul %204, %1, %cst_111 {dimension_numbers = #tpu.dot_dimension_numbers<[1], [1], [0], [0], [0, 0, 1, 0], [], []>} : vector<32x128xf32>, vector<3x128xf32>, vector<32x3xf32> -> vector<32x3xf32>
    %cst_112 = arith.constant dense<0.000000e+00> : vector<32x16xf32>
    %206 = tpu.matmul %204, %3, %cst_112 {dimension_numbers = #tpu.dot_dimension_numbers<[1], [0], [0], [1], [0, 0, 1, 1], [], []>} : vector<32x128xf32>, vector<128x16xf32>, vector<32x16xf32> -> vector<32x16xf32>
    %c0_113 = arith.constant 0 : index
    %c0_114 = arith.constant 0 : index
    %c7 = arith.constant 7 : index
    %c0_115 = arith.constant 0 : index
    %207 = vector.load %arg5[%c0_113, %c0_114, %c7, %c0_115] : memref<1x32x16x3xf32, #tpu.memory_space<vmem>>, vector<1x32x1x3xf32>
    %208 = vector.shape_cast %207 : vector<1x32x1x3xf32> to vector<32x3xf32>
    %209 = vector.shape_cast %205 : vector<32x3xf32> to vector<1x32x1x3xf32>
    tpu.vector_store %arg5[%c0_113, %c0_114, %c7, %c0_115], %209 {strides = array<i32>} : memref<1x32x16x3xf32, #tpu.memory_space<vmem>>, vector<1x32x1x3xf32>,
    %c0_116 = arith.constant 0 : index
    %c0_117 = arith.constant 0 : index
    %c7_118 = arith.constant 7 : index
    %c0_119 = arith.constant 0 : index
    %210 = vector.load %arg6[%c0_116, %c0_117, %c7_118, %c0_119] : memref<1x32x16x16xf32, #tpu.memory_space<vmem>>, vector<1x32x1x16xf32>
    %211 = vector.shape_cast %210 : vector<1x32x1x16xf32> to vector<32x16xf32>
    %212 = vector.shape_cast %206 : vector<32x16xf32> to vector<1x32x1x16xf32>
    tpu.vector_store %arg6[%c0_116, %c0_117, %c7_118, %c0_119], %212 {strides = array<i32>} : memref<1x32x16x16xf32, #tpu.memory_space<vmem>>, vector<1x32x1x16xf32>,
    %cst_120 = arith.constant 3.000000e+38 : f32
    %213 = vector.broadcast %cst_120 : f32 to vector<32x128xf32>
    %214 = arith.select %202, %213, %192 : vector<32x128xi1>, vector<32x128xf32>
    %cst_121 = arith.constant dense<0x7F800000> : vector<32xf32>
    %215 = vector.multi_reduction <minimumf>, %214, %cst_121 [1] : vector<32x128xf32> to vector<32xf32>
    %216 = vector.shape_cast %215 : vector<32xf32> to vector<32x1xf32>
    %217 = vector.broadcast %216 : vector<32x1xf32> to vector<32x128xf32>
    %218 = arith.cmpf ole, %214, %217 : vector<32x128xf32>
    %c128_i32_122 = arith.constant 128 : i32
    %219 = vector.broadcast %c128_i32_122 : i32 to vector<32x128xi32>
    %220 = arith.select %218, %38, %219 : vector<32x128xi1>, vector<32x128xi32>
    %cst_123 = arith.constant dense<2147483647> : vector<32xi32>
    %221 = vector.multi_reduction <minsi>, %220, %cst_123 [1] : vector<32x128xi32> to vector<32xi32>
    %222 = vector.shape_cast %221 : vector<32xi32> to vector<32x1xi32>
    %223 = vector.broadcast %222 : vector<32x1xi32> to vector<32x128xi32>
    %224 = arith.cmpi eq, %38, %223 : vector<32x128xi32>
    %225 = arith.extui %224 : vector<32x128xi1> to vector<32x128xi32>
    %226 = arith.sitofp %225 : vector<32x128xi32> to vector<32x128xf32>
    %cst_124 = arith.constant dense<0.000000e+00> : vector<32x3xf32>
    %227 = tpu.matmul %226, %1, %cst_124 {dimension_numbers = #tpu.dot_dimension_numbers<[1], [1], [0], [0], [0, 0, 1, 0], [], []>} : vector<32x128xf32>, vector<3x128xf32>, vector<32x3xf32> -> vector<32x3xf32>
    %cst_125 = arith.constant dense<0.000000e+00> : vector<32x16xf32>
    %228 = tpu.matmul %226, %3, %cst_125 {dimension_numbers = #tpu.dot_dimension_numbers<[1], [0], [0], [1], [0, 0, 1, 1], [], []>} : vector<32x128xf32>, vector<128x16xf32>, vector<32x16xf32> -> vector<32x16xf32>
    %c0_126 = arith.constant 0 : index
    %c0_127 = arith.constant 0 : index
    %c8 = arith.constant 8 : index
    %c0_128 = arith.constant 0 : index
    %229 = vector.load %arg5[%c0_126, %c0_127, %c8, %c0_128] : memref<1x32x16x3xf32, #tpu.memory_space<vmem>>, vector<1x32x1x3xf32>
    %230 = vector.shape_cast %229 : vector<1x32x1x3xf32> to vector<32x3xf32>
    %231 = vector.shape_cast %227 : vector<32x3xf32> to vector<1x32x1x3xf32>
    tpu.vector_store %arg5[%c0_126, %c0_127, %c8, %c0_128], %231 {strides = array<i32>} : memref<1x32x16x3xf32, #tpu.memory_space<vmem>>, vector<1x32x1x3xf32>,
    %c0_129 = arith.constant 0 : index
    %c0_130 = arith.constant 0 : index
    %c8_131 = arith.constant 8 : index
    %c0_132 = arith.constant 0 : index
    %232 = vector.load %arg6[%c0_129, %c0_130, %c8_131, %c0_132] : memref<1x32x16x16xf32, #tpu.memory_space<vmem>>, vector<1x32x1x16xf32>
    %233 = vector.shape_cast %232 : vector<1x32x1x16xf32> to vector<32x16xf32>
    %234 = vector.shape_cast %228 : vector<32x16xf32> to vector<1x32x1x16xf32>
    tpu.vector_store %arg6[%c0_129, %c0_130, %c8_131, %c0_132], %234 {strides = array<i32>} : memref<1x32x16x16xf32, #tpu.memory_space<vmem>>, vector<1x32x1x16xf32>,
    %cst_133 = arith.constant 3.000000e+38 : f32
    %235 = vector.broadcast %cst_133 : f32 to vector<32x128xf32>
    %236 = arith.select %224, %235, %214 : vector<32x128xi1>, vector<32x128xf32>
    %cst_134 = arith.constant dense<0x7F800000> : vector<32xf32>
    %237 = vector.multi_reduction <minimumf>, %236, %cst_134 [1] : vector<32x128xf32> to vector<32xf32>
    %238 = vector.shape_cast %237 : vector<32xf32> to vector<32x1xf32>
    %239 = vector.broadcast %238 : vector<32x1xf32> to vector<32x128xf32>
    %240 = arith.cmpf ole, %236, %239 : vector<32x128xf32>
    %c128_i32_135 = arith.constant 128 : i32
    %241 = vector.broadcast %c128_i32_135 : i32 to vector<32x128xi32>
    %242 = arith.select %240, %38, %241 : vector<32x128xi1>, vector<32x128xi32>
    %cst_136 = arith.constant dense<2147483647> : vector<32xi32>
    %243 = vector.multi_reduction <minsi>, %242, %cst_136 [1] : vector<32x128xi32> to vector<32xi32>
    %244 = vector.shape_cast %243 : vector<32xi32> to vector<32x1xi32>
    %245 = vector.broadcast %244 : vector<32x1xi32> to vector<32x128xi32>
    %246 = arith.cmpi eq, %38, %245 : vector<32x128xi32>
    %247 = arith.extui %246 : vector<32x128xi1> to vector<32x128xi32>
    %248 = arith.sitofp %247 : vector<32x128xi32> to vector<32x128xf32>
    %cst_137 = arith.constant dense<0.000000e+00> : vector<32x3xf32>
    %249 = tpu.matmul %248, %1, %cst_137 {dimension_numbers = #tpu.dot_dimension_numbers<[1], [1], [0], [0], [0, 0, 1, 0], [], []>} : vector<32x128xf32>, vector<3x128xf32>, vector<32x3xf32> -> vector<32x3xf32>
    %cst_138 = arith.constant dense<0.000000e+00> : vector<32x16xf32>
    %250 = tpu.matmul %248, %3, %cst_138 {dimension_numbers = #tpu.dot_dimension_numbers<[1], [0], [0], [1], [0, 0, 1, 1], [], []>} : vector<32x128xf32>, vector<128x16xf32>, vector<32x16xf32> -> vector<32x16xf32>
    %c0_139 = arith.constant 0 : index
    %c0_140 = arith.constant 0 : index
    %c9 = arith.constant 9 : index
    %c0_141 = arith.constant 0 : index
    %251 = vector.load %arg5[%c0_139, %c0_140, %c9, %c0_141] : memref<1x32x16x3xf32, #tpu.memory_space<vmem>>, vector<1x32x1x3xf32>
    %252 = vector.shape_cast %251 : vector<1x32x1x3xf32> to vector<32x3xf32>
    %253 = vector.shape_cast %249 : vector<32x3xf32> to vector<1x32x1x3xf32>
    tpu.vector_store %arg5[%c0_139, %c0_140, %c9, %c0_141], %253 {strides = array<i32>} : memref<1x32x16x3xf32, #tpu.memory_space<vmem>>, vector<1x32x1x3xf32>,
    %c0_142 = arith.constant 0 : index
    %c0_143 = arith.constant 0 : index
    %c9_144 = arith.constant 9 : index
    %c0_145 = arith.constant 0 : index
    %254 = vector.load %arg6[%c0_142, %c0_143, %c9_144, %c0_145] : memref<1x32x16x16xf32, #tpu.memory_space<vmem>>, vector<1x32x1x16xf32>
    %255 = vector.shape_cast %254 : vector<1x32x1x16xf32> to vector<32x16xf32>
    %256 = vector.shape_cast %250 : vector<32x16xf32> to vector<1x32x1x16xf32>
    tpu.vector_store %arg6[%c0_142, %c0_143, %c9_144, %c0_145], %256 {strides = array<i32>} : memref<1x32x16x16xf32, #tpu.memory_space<vmem>>, vector<1x32x1x16xf32>,
    %cst_146 = arith.constant 3.000000e+38 : f32
    %257 = vector.broadcast %cst_146 : f32 to vector<32x128xf32>
    %258 = arith.select %246, %257, %236 : vector<32x128xi1>, vector<32x128xf32>
    %cst_147 = arith.constant dense<0x7F800000> : vector<32xf32>
    %259 = vector.multi_reduction <minimumf>, %258, %cst_147 [1] : vector<32x128xf32> to vector<32xf32>
    %260 = vector.shape_cast %259 : vector<32xf32> to vector<32x1xf32>
    %261 = vector.broadcast %260 : vector<32x1xf32> to vector<32x128xf32>
    %262 = arith.cmpf ole, %258, %261 : vector<32x128xf32>
    %c128_i32_148 = arith.constant 128 : i32
    %263 = vector.broadcast %c128_i32_148 : i32 to vector<32x128xi32>
    %264 = arith.select %262, %38, %263 : vector<32x128xi1>, vector<32x128xi32>
    %cst_149 = arith.constant dense<2147483647> : vector<32xi32>
    %265 = vector.multi_reduction <minsi>, %264, %cst_149 [1] : vector<32x128xi32> to vector<32xi32>
    %266 = vector.shape_cast %265 : vector<32xi32> to vector<32x1xi32>
    %267 = vector.broadcast %266 : vector<32x1xi32> to vector<32x128xi32>
    %268 = arith.cmpi eq, %38, %267 : vector<32x128xi32>
    %269 = arith.extui %268 : vector<32x128xi1> to vector<32x128xi32>
    %270 = arith.sitofp %269 : vector<32x128xi32> to vector<32x128xf32>
    %cst_150 = arith.constant dense<0.000000e+00> : vector<32x3xf32>
    %271 = tpu.matmul %270, %1, %cst_150 {dimension_numbers = #tpu.dot_dimension_numbers<[1], [1], [0], [0], [0, 0, 1, 0], [], []>} : vector<32x128xf32>, vector<3x128xf32>, vector<32x3xf32> -> vector<32x3xf32>
    %cst_151 = arith.constant dense<0.000000e+00> : vector<32x16xf32>
    %272 = tpu.matmul %270, %3, %cst_151 {dimension_numbers = #tpu.dot_dimension_numbers<[1], [0], [0], [1], [0, 0, 1, 1], [], []>} : vector<32x128xf32>, vector<128x16xf32>, vector<32x16xf32> -> vector<32x16xf32>
    %c0_152 = arith.constant 0 : index
    %c0_153 = arith.constant 0 : index
    %c10 = arith.constant 10 : index
    %c0_154 = arith.constant 0 : index
    %273 = vector.load %arg5[%c0_152, %c0_153, %c10, %c0_154] : memref<1x32x16x3xf32, #tpu.memory_space<vmem>>, vector<1x32x1x3xf32>
    %274 = vector.shape_cast %273 : vector<1x32x1x3xf32> to vector<32x3xf32>
    %275 = vector.shape_cast %271 : vector<32x3xf32> to vector<1x32x1x3xf32>
    tpu.vector_store %arg5[%c0_152, %c0_153, %c10, %c0_154], %275 {strides = array<i32>} : memref<1x32x16x3xf32, #tpu.memory_space<vmem>>, vector<1x32x1x3xf32>,
    %c0_155 = arith.constant 0 : index
    %c0_156 = arith.constant 0 : index
    %c10_157 = arith.constant 10 : index
    %c0_158 = arith.constant 0 : index
    %276 = vector.load %arg6[%c0_155, %c0_156, %c10_157, %c0_158] : memref<1x32x16x16xf32, #tpu.memory_space<vmem>>, vector<1x32x1x16xf32>
    %277 = vector.shape_cast %276 : vector<1x32x1x16xf32> to vector<32x16xf32>
    %278 = vector.shape_cast %272 : vector<32x16xf32> to vector<1x32x1x16xf32>
    tpu.vector_store %arg6[%c0_155, %c0_156, %c10_157, %c0_158], %278 {strides = array<i32>} : memref<1x32x16x16xf32, #tpu.memory_space<vmem>>, vector<1x32x1x16xf32>,
    %cst_159 = arith.constant 3.000000e+38 : f32
    %279 = vector.broadcast %cst_159 : f32 to vector<32x128xf32>
    %280 = arith.select %268, %279, %258 : vector<32x128xi1>, vector<32x128xf32>
    %cst_160 = arith.constant dense<0x7F800000> : vector<32xf32>
    %281 = vector.multi_reduction <minimumf>, %280, %cst_160 [1] : vector<32x128xf32> to vector<32xf32>
    %282 = vector.shape_cast %281 : vector<32xf32> to vector<32x1xf32>
    %283 = vector.broadcast %282 : vector<32x1xf32> to vector<32x128xf32>
    %284 = arith.cmpf ole, %280, %283 : vector<32x128xf32>
    %c128_i32_161 = arith.constant 128 : i32
    %285 = vector.broadcast %c128_i32_161 : i32 to vector<32x128xi32>
    %286 = arith.select %284, %38, %285 : vector<32x128xi1>, vector<32x128xi32>
    %cst_162 = arith.constant dense<2147483647> : vector<32xi32>
    %287 = vector.multi_reduction <minsi>, %286, %cst_162 [1] : vector<32x128xi32> to vector<32xi32>
    %288 = vector.shape_cast %287 : vector<32xi32> to vector<32x1xi32>
    %289 = vector.broadcast %288 : vector<32x1xi32> to vector<32x128xi32>
    %290 = arith.cmpi eq, %38, %289 : vector<32x128xi32>
    %291 = arith.extui %290 : vector<32x128xi1> to vector<32x128xi32>
    %292 = arith.sitofp %291 : vector<32x128xi32> to vector<32x128xf32>
    %cst_163 = arith.constant dense<0.000000e+00> : vector<32x3xf32>
    %293 = tpu.matmul %292, %1, %cst_163 {dimension_numbers = #tpu.dot_dimension_numbers<[1], [1], [0], [0], [0, 0, 1, 0], [], []>} : vector<32x128xf32>, vector<3x128xf32>, vector<32x3xf32> -> vector<32x3xf32>
    %cst_164 = arith.constant dense<0.000000e+00> : vector<32x16xf32>
    %294 = tpu.matmul %292, %3, %cst_164 {dimension_numbers = #tpu.dot_dimension_numbers<[1], [0], [0], [1], [0, 0, 1, 1], [], []>} : vector<32x128xf32>, vector<128x16xf32>, vector<32x16xf32> -> vector<32x16xf32>
    %c0_165 = arith.constant 0 : index
    %c0_166 = arith.constant 0 : index
    %c11 = arith.constant 11 : index
    %c0_167 = arith.constant 0 : index
    %295 = vector.load %arg5[%c0_165, %c0_166, %c11, %c0_167] : memref<1x32x16x3xf32, #tpu.memory_space<vmem>>, vector<1x32x1x3xf32>
    %296 = vector.shape_cast %295 : vector<1x32x1x3xf32> to vector<32x3xf32>
    %297 = vector.shape_cast %293 : vector<32x3xf32> to vector<1x32x1x3xf32>
    tpu.vector_store %arg5[%c0_165, %c0_166, %c11, %c0_167], %297 {strides = array<i32>} : memref<1x32x16x3xf32, #tpu.memory_space<vmem>>, vector<1x32x1x3xf32>,
    %c0_168 = arith.constant 0 : index
    %c0_169 = arith.constant 0 : index
    %c11_170 = arith.constant 11 : index
    %c0_171 = arith.constant 0 : index
    %298 = vector.load %arg6[%c0_168, %c0_169, %c11_170, %c0_171] : memref<1x32x16x16xf32, #tpu.memory_space<vmem>>, vector<1x32x1x16xf32>
    %299 = vector.shape_cast %298 : vector<1x32x1x16xf32> to vector<32x16xf32>
    %300 = vector.shape_cast %294 : vector<32x16xf32> to vector<1x32x1x16xf32>
    tpu.vector_store %arg6[%c0_168, %c0_169, %c11_170, %c0_171], %300 {strides = array<i32>} : memref<1x32x16x16xf32, #tpu.memory_space<vmem>>, vector<1x32x1x16xf32>,
    %cst_172 = arith.constant 3.000000e+38 : f32
    %301 = vector.broadcast %cst_172 : f32 to vector<32x128xf32>
    %302 = arith.select %290, %301, %280 : vector<32x128xi1>, vector<32x128xf32>
    %cst_173 = arith.constant dense<0x7F800000> : vector<32xf32>
    %303 = vector.multi_reduction <minimumf>, %302, %cst_173 [1] : vector<32x128xf32> to vector<32xf32>
    %304 = vector.shape_cast %303 : vector<32xf32> to vector<32x1xf32>
    %305 = vector.broadcast %304 : vector<32x1xf32> to vector<32x128xf32>
    %306 = arith.cmpf ole, %302, %305 : vector<32x128xf32>
    %c128_i32_174 = arith.constant 128 : i32
    %307 = vector.broadcast %c128_i32_174 : i32 to vector<32x128xi32>
    %308 = arith.select %306, %38, %307 : vector<32x128xi1>, vector<32x128xi32>
    %cst_175 = arith.constant dense<2147483647> : vector<32xi32>
    %309 = vector.multi_reduction <minsi>, %308, %cst_175 [1] : vector<32x128xi32> to vector<32xi32>
    %310 = vector.shape_cast %309 : vector<32xi32> to vector<32x1xi32>
    %311 = vector.broadcast %310 : vector<32x1xi32> to vector<32x128xi32>
    %312 = arith.cmpi eq, %38, %311 : vector<32x128xi32>
    %313 = arith.extui %312 : vector<32x128xi1> to vector<32x128xi32>
    %314 = arith.sitofp %313 : vector<32x128xi32> to vector<32x128xf32>
    %cst_176 = arith.constant dense<0.000000e+00> : vector<32x3xf32>
    %315 = tpu.matmul %314, %1, %cst_176 {dimension_numbers = #tpu.dot_dimension_numbers<[1], [1], [0], [0], [0, 0, 1, 0], [], []>} : vector<32x128xf32>, vector<3x128xf32>, vector<32x3xf32> -> vector<32x3xf32>
    %cst_177 = arith.constant dense<0.000000e+00> : vector<32x16xf32>
    %316 = tpu.matmul %314, %3, %cst_177 {dimension_numbers = #tpu.dot_dimension_numbers<[1], [0], [0], [1], [0, 0, 1, 1], [], []>} : vector<32x128xf32>, vector<128x16xf32>, vector<32x16xf32> -> vector<32x16xf32>
    %c0_178 = arith.constant 0 : index
    %c0_179 = arith.constant 0 : index
    %c12 = arith.constant 12 : index
    %c0_180 = arith.constant 0 : index
    %317 = vector.load %arg5[%c0_178, %c0_179, %c12, %c0_180] : memref<1x32x16x3xf32, #tpu.memory_space<vmem>>, vector<1x32x1x3xf32>
    %318 = vector.shape_cast %317 : vector<1x32x1x3xf32> to vector<32x3xf32>
    %319 = vector.shape_cast %315 : vector<32x3xf32> to vector<1x32x1x3xf32>
    tpu.vector_store %arg5[%c0_178, %c0_179, %c12, %c0_180], %319 {strides = array<i32>} : memref<1x32x16x3xf32, #tpu.memory_space<vmem>>, vector<1x32x1x3xf32>,
    %c0_181 = arith.constant 0 : index
    %c0_182 = arith.constant 0 : index
    %c12_183 = arith.constant 12 : index
    %c0_184 = arith.constant 0 : index
    %320 = vector.load %arg6[%c0_181, %c0_182, %c12_183, %c0_184] : memref<1x32x16x16xf32, #tpu.memory_space<vmem>>, vector<1x32x1x16xf32>
    %321 = vector.shape_cast %320 : vector<1x32x1x16xf32> to vector<32x16xf32>
    %322 = vector.shape_cast %316 : vector<32x16xf32> to vector<1x32x1x16xf32>
    tpu.vector_store %arg6[%c0_181, %c0_182, %c12_183, %c0_184], %322 {strides = array<i32>} : memref<1x32x16x16xf32, #tpu.memory_space<vmem>>, vector<1x32x1x16xf32>,
    %cst_185 = arith.constant 3.000000e+38 : f32
    %323 = vector.broadcast %cst_185 : f32 to vector<32x128xf32>
    %324 = arith.select %312, %323, %302 : vector<32x128xi1>, vector<32x128xf32>
    %cst_186 = arith.constant dense<0x7F800000> : vector<32xf32>
    %325 = vector.multi_reduction <minimumf>, %324, %cst_186 [1] : vector<32x128xf32> to vector<32xf32>
    %326 = vector.shape_cast %325 : vector<32xf32> to vector<32x1xf32>
    %327 = vector.broadcast %326 : vector<32x1xf32> to vector<32x128xf32>
    %328 = arith.cmpf ole, %324, %327 : vector<32x128xf32>
    %c128_i32_187 = arith.constant 128 : i32
    %329 = vector.broadcast %c128_i32_187 : i32 to vector<32x128xi32>
    %330 = arith.select %328, %38, %329 : vector<32x128xi1>, vector<32x128xi32>
    %cst_188 = arith.constant dense<2147483647> : vector<32xi32>
    %331 = vector.multi_reduction <minsi>, %330, %cst_188 [1] : vector<32x128xi32> to vector<32xi32>
    %332 = vector.shape_cast %331 : vector<32xi32> to vector<32x1xi32>
    %333 = vector.broadcast %332 : vector<32x1xi32> to vector<32x128xi32>
    %334 = arith.cmpi eq, %38, %333 : vector<32x128xi32>
    %335 = arith.extui %334 : vector<32x128xi1> to vector<32x128xi32>
    %336 = arith.sitofp %335 : vector<32x128xi32> to vector<32x128xf32>
    %cst_189 = arith.constant dense<0.000000e+00> : vector<32x3xf32>
    %337 = tpu.matmul %336, %1, %cst_189 {dimension_numbers = #tpu.dot_dimension_numbers<[1], [1], [0], [0], [0, 0, 1, 0], [], []>} : vector<32x128xf32>, vector<3x128xf32>, vector<32x3xf32> -> vector<32x3xf32>
    %cst_190 = arith.constant dense<0.000000e+00> : vector<32x16xf32>
    %338 = tpu.matmul %336, %3, %cst_190 {dimension_numbers = #tpu.dot_dimension_numbers<[1], [0], [0], [1], [0, 0, 1, 1], [], []>} : vector<32x128xf32>, vector<128x16xf32>, vector<32x16xf32> -> vector<32x16xf32>
    %c0_191 = arith.constant 0 : index
    %c0_192 = arith.constant 0 : index
    %c13 = arith.constant 13 : index
    %c0_193 = arith.constant 0 : index
    %339 = vector.load %arg5[%c0_191, %c0_192, %c13, %c0_193] : memref<1x32x16x3xf32, #tpu.memory_space<vmem>>, vector<1x32x1x3xf32>
    %340 = vector.shape_cast %339 : vector<1x32x1x3xf32> to vector<32x3xf32>
    %341 = vector.shape_cast %337 : vector<32x3xf32> to vector<1x32x1x3xf32>
    tpu.vector_store %arg5[%c0_191, %c0_192, %c13, %c0_193], %341 {strides = array<i32>} : memref<1x32x16x3xf32, #tpu.memory_space<vmem>>, vector<1x32x1x3xf32>,
    %c0_194 = arith.constant 0 : index
    %c0_195 = arith.constant 0 : index
    %c13_196 = arith.constant 13 : index
    %c0_197 = arith.constant 0 : index
    %342 = vector.load %arg6[%c0_194, %c0_195, %c13_196, %c0_197] : memref<1x32x16x16xf32, #tpu.memory_space<vmem>>, vector<1x32x1x16xf32>
    %343 = vector.shape_cast %342 : vector<1x32x1x16xf32> to vector<32x16xf32>
    %344 = vector.shape_cast %338 : vector<32x16xf32> to vector<1x32x1x16xf32>
    tpu.vector_store %arg6[%c0_194, %c0_195, %c13_196, %c0_197], %344 {strides = array<i32>} : memref<1x32x16x16xf32, #tpu.memory_space<vmem>>, vector<1x32x1x16xf32>,
    %cst_198 = arith.constant 3.000000e+38 : f32
    %345 = vector.broadcast %cst_198 : f32 to vector<32x128xf32>
    %346 = arith.select %334, %345, %324 : vector<32x128xi1>, vector<32x128xf32>
    %cst_199 = arith.constant dense<0x7F800000> : vector<32xf32>
    %347 = vector.multi_reduction <minimumf>, %346, %cst_199 [1] : vector<32x128xf32> to vector<32xf32>
    %348 = vector.shape_cast %347 : vector<32xf32> to vector<32x1xf32>
    %349 = vector.broadcast %348 : vector<32x1xf32> to vector<32x128xf32>
    %350 = arith.cmpf ole, %346, %349 : vector<32x128xf32>
    %c128_i32_200 = arith.constant 128 : i32
    %351 = vector.broadcast %c128_i32_200 : i32 to vector<32x128xi32>
    %352 = arith.select %350, %38, %351 : vector<32x128xi1>, vector<32x128xi32>
    %cst_201 = arith.constant dense<2147483647> : vector<32xi32>
    %353 = vector.multi_reduction <minsi>, %352, %cst_201 [1] : vector<32x128xi32> to vector<32xi32>
    %354 = vector.shape_cast %353 : vector<32xi32> to vector<32x1xi32>
    %355 = vector.broadcast %354 : vector<32x1xi32> to vector<32x128xi32>
    %356 = arith.cmpi eq, %38, %355 : vector<32x128xi32>
    %357 = arith.extui %356 : vector<32x128xi1> to vector<32x128xi32>
    %358 = arith.sitofp %357 : vector<32x128xi32> to vector<32x128xf32>
    %cst_202 = arith.constant dense<0.000000e+00> : vector<32x3xf32>
    %359 = tpu.matmul %358, %1, %cst_202 {dimension_numbers = #tpu.dot_dimension_numbers<[1], [1], [0], [0], [0, 0, 1, 0], [], []>} : vector<32x128xf32>, vector<3x128xf32>, vector<32x3xf32> -> vector<32x3xf32>
    %cst_203 = arith.constant dense<0.000000e+00> : vector<32x16xf32>
    %360 = tpu.matmul %358, %3, %cst_203 {dimension_numbers = #tpu.dot_dimension_numbers<[1], [0], [0], [1], [0, 0, 1, 1], [], []>} : vector<32x128xf32>, vector<128x16xf32>, vector<32x16xf32> -> vector<32x16xf32>
    %c0_204 = arith.constant 0 : index
    %c0_205 = arith.constant 0 : index
    %c14 = arith.constant 14 : index
    %c0_206 = arith.constant 0 : index
    %361 = vector.load %arg5[%c0_204, %c0_205, %c14, %c0_206] : memref<1x32x16x3xf32, #tpu.memory_space<vmem>>, vector<1x32x1x3xf32>
    %362 = vector.shape_cast %361 : vector<1x32x1x3xf32> to vector<32x3xf32>
    %363 = vector.shape_cast %359 : vector<32x3xf32> to vector<1x32x1x3xf32>
    tpu.vector_store %arg5[%c0_204, %c0_205, %c14, %c0_206], %363 {strides = array<i32>} : memref<1x32x16x3xf32, #tpu.memory_space<vmem>>, vector<1x32x1x3xf32>,
    %c0_207 = arith.constant 0 : index
    %c0_208 = arith.constant 0 : index
    %c14_209 = arith.constant 14 : index
    %c0_210 = arith.constant 0 : index
    %364 = vector.load %arg6[%c0_207, %c0_208, %c14_209, %c0_210] : memref<1x32x16x16xf32, #tpu.memory_space<vmem>>, vector<1x32x1x16xf32>
    %365 = vector.shape_cast %364 : vector<1x32x1x16xf32> to vector<32x16xf32>
    %366 = vector.shape_cast %360 : vector<32x16xf32> to vector<1x32x1x16xf32>
    tpu.vector_store %arg6[%c0_207, %c0_208, %c14_209, %c0_210], %366 {strides = array<i32>} : memref<1x32x16x16xf32, #tpu.memory_space<vmem>>, vector<1x32x1x16xf32>,
    %cst_211 = arith.constant 3.000000e+38 : f32
    %367 = vector.broadcast %cst_211 : f32 to vector<32x128xf32>
    %368 = arith.select %356, %367, %346 : vector<32x128xi1>, vector<32x128xf32>
    %cst_212 = arith.constant dense<0x7F800000> : vector<32xf32>
    %369 = vector.multi_reduction <minimumf>, %368, %cst_212 [1] : vector<32x128xf32> to vector<32xf32>
    %370 = vector.shape_cast %369 : vector<32xf32> to vector<32x1xf32>
    %371 = vector.broadcast %370 : vector<32x1xf32> to vector<32x128xf32>
    %372 = arith.cmpf ole, %368, %371 : vector<32x128xf32>
    %c128_i32_213 = arith.constant 128 : i32
    %373 = vector.broadcast %c128_i32_213 : i32 to vector<32x128xi32>
    %374 = arith.select %372, %38, %373 : vector<32x128xi1>, vector<32x128xi32>
    %cst_214 = arith.constant dense<2147483647> : vector<32xi32>
    %375 = vector.multi_reduction <minsi>, %374, %cst_214 [1] : vector<32x128xi32> to vector<32xi32>
    %376 = vector.shape_cast %375 : vector<32xi32> to vector<32x1xi32>
    %377 = vector.broadcast %376 : vector<32x1xi32> to vector<32x128xi32>
    %378 = arith.cmpi eq, %38, %377 : vector<32x128xi32>
    %379 = arith.extui %378 : vector<32x128xi1> to vector<32x128xi32>
    %380 = arith.sitofp %379 : vector<32x128xi32> to vector<32x128xf32>
    %cst_215 = arith.constant dense<0.000000e+00> : vector<32x3xf32>
    %381 = tpu.matmul %380, %1, %cst_215 {dimension_numbers = #tpu.dot_dimension_numbers<[1], [1], [0], [0], [0, 0, 1, 0], [], []>} : vector<32x128xf32>, vector<3x128xf32>, vector<32x3xf32> -> vector<32x3xf32>
    %cst_216 = arith.constant dense<0.000000e+00> : vector<32x16xf32>
    %382 = tpu.matmul %380, %3, %cst_216 {dimension_numbers = #tpu.dot_dimension_numbers<[1], [0], [0], [1], [0, 0, 1, 1], [], []>} : vector<32x128xf32>, vector<128x16xf32>, vector<32x16xf32> -> vector<32x16xf32>
    %c0_217 = arith.constant 0 : index
    %c0_218 = arith.constant 0 : index
    %c15 = arith.constant 15 : index
    %c0_219 = arith.constant 0 : index
    %383 = vector.load %arg5[%c0_217, %c0_218, %c15, %c0_219] : memref<1x32x16x3xf32, #tpu.memory_space<vmem>>, vector<1x32x1x3xf32>
    %384 = vector.shape_cast %383 : vector<1x32x1x3xf32> to vector<32x3xf32>
    %385 = vector.shape_cast %381 : vector<32x3xf32> to vector<1x32x1x3xf32>
    tpu.vector_store %arg5[%c0_217, %c0_218, %c15, %c0_219], %385 {strides = array<i32>} : memref<1x32x16x3xf32, #tpu.memory_space<vmem>>, vector<1x32x1x3xf32>,
    %c0_220 = arith.constant 0 : index
    %c0_221 = arith.constant 0 : index
    %c15_222 = arith.constant 15 : index
    %c0_223 = arith.constant 0 : index
    %386 = vector.load %arg6[%c0_220, %c0_221, %c15_222, %c0_223] : memref<1x32x16x16xf32, #tpu.memory_space<vmem>>, vector<1x32x1x16xf32>
    %387 = vector.shape_cast %386 : vector<1x32x1x16xf32> to vector<32x16xf32>
    %388 = vector.shape_cast %382 : vector<32x16xf32> to vector<1x32x1x16xf32>
    tpu.vector_store %arg6[%c0_220, %c0_221, %c15_222, %c0_223], %388 {strides = array<i32>} : memref<1x32x16x16xf32, #tpu.memory_space<vmem>>, vector<1x32x1x16xf32>,
    return
  }
  func.func @transform_0(%arg0: i32) -> (i32, i32, i32) {
    %c0_i32 = arith.constant 0 : i32
    %c0_i32_0 = arith.constant 0 : i32
    %c0_i32_1 = arith.constant 0 : i32
    return %arg0, %c0_i32, %c0_i32_0 : i32, i32, i32
  }
  func.func @transform_1(%arg0: i32) -> (i32, i32, i32) {
    %c0_i32 = arith.constant 0 : i32
    %c0_i32_0 = arith.constant 0 : i32
    %c0_i32_1 = arith.constant 0 : i32
    return %arg0, %c0_i32, %c0_i32_0 : i32, i32, i32
  }
  func.func @transform_2(%arg0: i32) -> (i32, i32, i32) {
    %c0_i32 = arith.constant 0 : i32
    %c0_i32_0 = arith.constant 0 : i32
    %c0_i32_1 = arith.constant 0 : i32
    return %arg0, %c0_i32, %c0_i32_0 : i32, i32, i32
  }
  func.func @transform_3(%arg0: i32) -> (i32, i32, i32) {
    %c0_i32 = arith.constant 0 : i32
    %c0_i32_0 = arith.constant 0 : i32
    %c0_i32_1 = arith.constant 0 : i32
    return %arg0, %c0_i32, %c0_i32_0 : i32, i32, i32
  }
  func.func @transform_4(%arg0: i32) -> (i32, i32, i32, i32) {
    %c0_i32 = arith.constant 0 : i32
    %c0_i32_0 = arith.constant 0 : i32
    %c0_i32_1 = arith.constant 0 : i32
    %c0_i32_2 = arith.constant 0 : i32
    return %arg0, %c0_i32, %c0_i32_0, %c0_i32_1 : i32, i32, i32, i32
  }
  func.func @transform_5(%arg0: i32) -> (i32, i32, i32, i32) {
    %c0_i32 = arith.constant 0 : i32
    %c0_i32_0 = arith.constant 0 : i32
    %c0_i32_1 = arith.constant 0 : i32
    %c0_i32_2 = arith.constant 0 : i32
    return %arg0, %c0_i32, %c0_i32_0, %c0_i32_1 : i32, i32, i32, i32
  }
}

</mosaic_0001>

<bundles_post_ra>
// kernel: tpu_custom_call.1
= control target key start
LH: loop header
LB: loop body
LE: loop exit
PB: predicated region body
PF: predicated region fallthrough
CT: control target
= control target key end

     0   :  { %s15487_s18 = smov 0   ;;  %s20079_s0 = inlined_call_operand.vmem [shape: f32[2,3,128], index: 0, kind: input, shape index: {}]   ;;  %s20080_s1 = inlined_call_operand.vmem [shape: f32[2,128,16], index: 1, kind: input, shape index: {}]   ;;  %s20081_s2 = inlined_call_operand.vmem [shape: f32[2,32,3], index: 2, kind: output, shape index: {0}]   ;;  %s20082_s3 = inlined_call_operand.vmem [shape: f32[2,32,16], index: 3, kind: output, shape index: {1}]   ;;  %s20083_s4 = inlined_call_operand.vmem [shape: f32[2,32,16,3], index: 4, kind: output, shape index: {2}]   ;;  %s20084_s5 = inlined_call_operand.vmem [shape: f32[2,32,16,16], index: 5, kind: output, shape index: {3}]  }
   0x1 LB: > { %s13402_s19 = sadd.s32 4294967295, %s15437_s18   ;;  %p13406_p0 = scmp.ge.s32.totalorder %s15437_s18, 1  ;;  %s15437_s18 = sphi %s15487_s18, %s16_s18  }
   0x2   : > { %p203_p1 = scmp.lt.s32.totalorder %s15437_s18, 3 }
   0x4   : > { %p204_p2 = pnand %p13406_p0, %p203_p1 }
   0x5   : > { %p250_p3 = scmp.lt.s32.totalorder (!%p204_p2), %s13402_s19, 1  ;;  %v296_v0 = vlaneseq (!%p204_p2)  ;;  %v15558_v19 = vmov (!%p204_p2), 0   ;;  %v15560_v20 = vmov (!%p204_p2), 1e+10   ;;  %s15562_s17 = smov (!%p204_p2), 0  }
   0x6   : > { %207 = sbr.rel (%p204_p2) target bundleno = 8267 (0x204b), region = 28 }
   0x7   : > { %v15496_v1 = vand.u32 (!%p204_p2), 127, %v296_v0 }
   0xd   : > { %s20086_s19 = smov (!%p250_p3, %s13402_s19), 1 }
   0xe   : > { %s13407_s20 = sshll.u32 %s20086_s19, 2  ;;  %s13613_s21 = sshll.u32 %s20086_s19, 7 }
   0xf   : > { %s253_s24 = scalar_lea.vmem %s20079_s0, %s13407_s20  ;;  %s258_s27 = scalar_lea.vmem %s20080_s1, %s13613_s21 }
  0x10   : > { %s13614_s28 = sshll.u32 %s20086_s19, 5  ;;  %s13616_s29 = sshll.u32 %s20086_s19, 9  ;;  %v15504_v2 = vld [vmem:[%s253_s24] sm:$0x7]  ;;  %v15508_v4 = vld [vmem:[%s258_s27 + $0x8] sm:$0xff]  ;;  %v15520_v5 = vld [vmem:[%s258_s27 + $0x10] sm:$0xff] }
  0x11   : > { %v15506_v3 = vld [vmem:[%s258_s27] sm:$0xff]  ;;  %s15513_s7 = scalar_lea.vmem %s20081_s2, %s13614_s28  ;;  %s15518_s10 = scalar_lea.vmem %s20082_s3, %s13614_s28  ;;  %v15522_v6 = vld [vmem:[%s258_s27 + $0x18] sm:$0xff]  ;;  %v15536_v8 = vld [vmem:[%s258_s27 + $0x28] sm:$0xff] }
  0x12   : > { %v15524_v7 = vld [vmem:[%s258_s27 + $0x20] sm:$0xff]  ;;  %s15529_s13 = scalar_lea.vmem %s20083_s4, %s13616_s29  ;;  %s15534_s16 = scalar_lea.vmem %s20084_s5, %s13616_s29  ;;  %v15538_v9 = vld [vmem:[%s258_s27 + $0x30] sm:$0xff]  ;;  %v15540_v10 = vld [vmem:[%s258_s27 + $0x38] sm:$0xff] }
  0x13   : > { %v15542_v11 = vld [vmem:[%s258_s27 + $0x40] sm:$0xff]  ;;  %v15544_v12 = vld [vmem:[%s258_s27 + $0x48] sm:$0xff]  ;;  %v15546_v13 = vld [vmem:[%s258_s27 + $0x50] sm:$0xff] }
  0x14   : > { %v15548_v14 = vld [vmem:[%s258_s27 + $0x58] sm:$0xff]  ;;  %v15550_v15 = vld [vmem:[%s258_s27 + $0x60] sm:$0xff]  ;;  %v15552_v16 = vld [vmem:[%s258_s27 + $0x68] sm:$0xff] }
  0x15   : > { %v15554_v17 = vld [vmem:[%s258_s27 + $0x70] sm:$0xff]  ;;  %v15556_v18 = vld [vmem:[%s258_s27 + $0x78] sm:$0xff] }
  0x16 LB: >> { %v317_v21 = vrot.slane %v15504_v2, 1  ;;  %vm312_vm0 = vcmask 1040384   ;;  %v323_v22 = vrot.slane %v15504_v2, 2  ;;  %vm306_vm1 = vcmp.eq.s32.totalorder %v15496_v1, %v15441_v19  ;;  %s309_s19 = scalar_lea.vmem [#allocation2], %s15449_s17  ;;  %s303_s17 = sadd.s32 1, %s15449_s17   ;;  %s15449_s17 = sphi %s15562_s17, %s303_s17   ;;  %v15445_v20 = vphi %v15560_v20, %v349_v20   ;;  %v15441_v19 = vphi %v15558_v19, %v369_v19  }
  0x17   : >> { %v15451_v24 = vmov 0.0   ;;  %v311_v27 = vsel %vm306_vm1, %v15504_v2, 0.0  ;;  %p300_p4 = scmp.ge.s32.totalorder %s303_s17, 32  }
  0x18   : >> { %v319_v23 = vsel %vm306_vm1, %v317_v21, 0.0  ;;  %v13418_v25 = vsel %vm306_vm1, 1.0, %v15451_v24  ;;  %v325_v26 = vsel %vm306_vm1, %v323_v22, 0.0  ;;  %v313_v29 = vsel %vm312_vm0, %v311_v27, 0.0  ;;  %14043 = vmatprep.subr.mxu0 (%p300_p4), %v15504_v2 }
  0x19   : >> { %v320_v28 = vsel %vm312_vm0, %v319_v23, 0.0  ;;  %310 = vst [vmem:[%s309_s19] sm:$0x1] %v13418_v25  ;;  %314 = vadd.xlane.f32.xlu1 %v313_v29  ;;  %v326_v30 = vsel %vm312_vm0, %v325_v26, 0.0  ;;  %14044 = vmatpush3.xpose.msra.mxu0 (%p300_p4), %v15504_v2  ;;  %v15452_v63 = vmov (%p300_p4), 0   ;;  %vm544_vm4 = vcmask (%p300_p4), 23552  }
  0x1a   : >> { %321 = vadd.xlane.f32.xlu0 %v320_v28  ;;  %15407 = vset.pattern.permute.xlu1 (%p300_p4), %v15452_v63  ;;  %v15453_v23 = vmov (%p300_p4), 1   ;;  %v15454_v25 = vmov (%p300_p4), 2   ;;  %v15608_v26 = vshrl.u32 (%p300_p4), %v296_v0, 7 }
  0x1b   : > { %15409 = vset.pattern.permute.xlu0 (%p300_p4), %v15452_v63  ;;  %14089 = vmatprep.subr.mxu0 (%p300_p4), %v15504_v2 }
  0x1c   : > { %v600_v27 = vsub.s32 (%p300_p4), 1, %v15608_v26  ;;  %v576_v28 = vsub.s32 (%p300_p4), 0, %v15608_v26 }
  0x1e   : >> { %327 = vadd.xlane.f32.xlu0 %v326_v30 }
  0x20   : > { %v370_v60 = vld [vmem:[#allocation2] sm:$0xff] (%p300_p4)  ;;  %v15592_v61 = vld [vmem:[#allocation2 + $0x8] sm:$0xff] (%p300_p4)  ;;  %v15594_v62 = vld [vmem:[#allocation2 + $0x10] sm:$0xff] (%p300_p4) }
  0x21   : > { %14045 = vmatprep.mubr.f32.mxu0 (%p300_p4), %v370_v60  ;;  %14083 = vmatprep.mubr.f32.mxu1 (%p300_p4), %v370_v60 }
  0x22   : > { %14046 = vmatmul.mubr.f32.vlgmr.msra.gmra.mrb[0].mxu0 (%p300_p4), %v15592_v61 }
  0x23   : > { %14048 = vmatprep.mubr.f32.mxu0 (%p300_p4), %v15594_v62  ;;  %14090 = vmatpush3.xpose.msra.mxu0 (%p300_p4), %v15504_v2 }
  0xa6   : >> { %v315_v32 = vpop.xlane.xlu1 %314 }
  0xa7   : >> { %v322_v31 = vpop.xlane.xlu0 %321  ;;  %v329_v35 = vsub.f32 %v15504_v2, %v315_v32  ;;  %v577_v32 = vrot.slane (%p300_p4), %v15504_v2, %v576_v28 }
  0xa8   : >> { %v331_v33 = vrot.slane %v322_v31, 7  ;;  %v601_v31 = vrot.slane (%p300_p4), %v15504_v2, %v600_v27 }
  0xa9   : >> { %v338_v41 = vmul.f32 %v329_v35, %v329_v35 }
  0xaa   : >> { %v333_v34 = vsub.f32 %v15504_v2, %v331_v33  ;;  %v624_v33 = vsub.s32 (%p300_p4), 2, %v15608_v26 }
  0xab   : >> { %v328_v36 = vpop.xlane.xlu0 %327 }
  0xac   : >> { %v339_v37 = vmul.f32 %v333_v34, %v333_v34  ;;  %v335_v38 = vrot.slane %v328_v36, 6  ;;  %v625_v0 = vrot.slane (%p300_p4), %v15504_v2, %v624_v33 }
  0xae   : >> { %v341_v39 = vrot.slane %v339_v37, 1  ;;  %v337_v40 = vsub.f32 %v15504_v2, %v335_v38 }
  0xb0   : >> { %v344_v42 = vmul.f32 %v337_v40, %v337_v40  ;;  %v343_v44 = vadd.f32 %v341_v39, %v338_v41 }
  0xb2   : >> { %v346_v43 = vrot.slane %v344_v42, 2 }
  0xb4   : >> { %v348_v45 = vadd.f32 %v346_v43, %v343_v44 }
  0xb6   : >> { %v349_v20 = vmin.f32 %v15445_v20, %v348_v45  }
  0xb8   : >> { %v350_v46 = vsel %vm312_vm0, %v349_v20, -inf }
  0xb9   : >> { %351 = vmax.xlane.f32.xlu1 %v350_v46 }
 0x146   : >> { %v352_v47 = vpop.xlane.xlu1 %351 }
 0x147   : >> { %vm353_vm2 = vcmp.ge.f32.partialorder %v349_v20, %v352_v47  ;;  %v14047_v20 = vpop.f32.mrb[0].mxu0 (%p300_p4) }
 0x148   : >> { %v354_v48 = vsel %vm353_vm2, %v15496_v1, 128  ;;  %546 = vst.msk [vmem:[%s15513_s7 + $0x8] sm:$0xff] (%p300_p4), %vm544_vm4, %v14047_v20  ;;  %v440_v21 = vpop.f32.mrb[1].mxu0 (%p300_p4) }
 0x149   : >> { %v355_v49 = vsel %vm312_vm0, %v354_v48, 2147483647  ;;  %545 = vst.msk [vmem:[%s15513_s7] sm:$0xff] (%p300_p4), %vm544_vm4, %v440_v21 }
 0x14a   : >> { %v357_v50 = vshra.s32 %v355_v49, 16  ;;  %v356_v52 = vand.u32 65535, %v355_v49 }
 0x14c   : >> { %v359_v51 = vcvt.s32.f32 %v357_v50  ;;  %v358_v54 = vcvt.s32.f32 %v356_v52 }
 0x14e   : >> { %360 = vmin.xlane.f32.xlu0 %v359_v51 }
 0x164   : > { %556 = vperm.xlu0 (%p300_p4), %15409, %v440_v21  }
 0x168   : > { %15410 = vset.pattern.permute.xlu0 (%p300_p4), %v15453_v23 }
 0x169   : > { %583 = vperm.xlu0 (%p300_p4), %15410, %v440_v21  }
 0x16d   : > { %15412 = vset.pattern.permute.xlu0 (%p300_p4), %v15454_v25 }
 0x16e   : > { %611 = vperm.xlu0 (%p300_p4), %15412, %v14047_v20  }
 0x172   : > { %15413 = vset.pattern.permute.xlu0 (%p300_p4), %v15452_v63 }
 0x1db   : >> { %v361_v53 = vpop.xlane.xlu0 %360 }
 0x1dc   : >> { %vm362_vm3 = vcmp.eq.f32.partialorder %v359_v51, %v361_v53  ;;  %v367_v56 = vcvt.f32.s32 %v361_v53 }
 0x1dd   : >> { %v363_v55 = vsel %vm362_vm3, %v358_v54, inf }
 0x1de   : >> { %364 = vmin.xlane.f32.xlu1 %v363_v55  ;;  %v368_v58 = vshll.u32 %v367_v56, 16 }
 0x1e3   : > { %v557_v30 = vpop.permute.xlu0 (%p300_p4), %556 }
 0x1e4   : > { %v578_v37 = vsub.f32 (%p300_p4), %v557_v30, %v577_v32 }
 0x1e6   : > { %v630_v43 = vmul.f32 (%p300_p4), %v578_v37, %v578_v37 }
 0x1e8   : > { %v584_v36 = vpop.permute.xlu0 (%p300_p4), %583 }
 0x1e9   : > { %v602_v38 = vsub.f32 (%p300_p4), %v584_v36, %v601_v31 }
 0x1eb   : > { %v634_v40 = vmul.f32 (%p300_p4), %v602_v38, %v602_v38 }
 0x1ed   : > { %v612_v45 = vpop.permute.xlu0 (%p300_p4), %611  ;;  %v638_v48 = vadd.f32 (%p300_p4), %v634_v40, %v630_v43 }
 0x1ee   : > { %v627_v47 = vsub.f32 (%p300_p4), %v612_v45, %v625_v0 }
 0x1ef   : > { %561 = vperm.xlu1 (%p300_p4), %15407, %v14047_v20  }
 0x1f0   : > { %v643_v51 = vmul.f32 (%p300_p4), %v627_v47, %v627_v47 }
 0x1f3   : > { %15408 = vset.pattern.permute.xlu1 (%p300_p4), %v15453_v23 }
 0x1f4   : > { %587 = vperm.xlu1 (%p300_p4), %15408, %v14047_v20  }
 0x1f8   : > { %15411 = vset.pattern.permute.xlu1 (%p300_p4), %v15454_v25 }
 0x1f9   : > { %607 = vperm.xlu1 (%p300_p4), %15411, %v440_v21  }
 0x1fd   : > { %15414 = vset.pattern.permute.xlu1 (%p300_p4), %v15453_v23 }
 0x268   : > { %302 = sbr.rel (!%p300_p4) target bundleno = 22 (0x16), region = 105 }
 0x26b   : >> { %v365_v57 = vpop.xlane.xlu1 %364 }
 0x26c   : >> { %v366_v59 = vcvt.f32.s32 %v365_v57 }
 0x26e   : >> { %v369_v19 = vadd.s32 %v368_v58, %v366_v59  }
 0x26f   : > { %v15599_v19 = vld [vmem:[#allocation2 + $0x18] sm:$0xff]  ;;  %v562_v29 = vpop.permute.xlu1 %561 }
 0x270   : > { %14049 = vmatmul.mubr.f32.gmra.mrb[2].mxu0 %v15599_v19  ;;  %v579_v39 = vsub.f32 %v562_v29, %v577_v32 }
 0x272   : > { %v631_v46 = vmul.f32 %v579_v39, %v579_v39 }
 0x273   : > { %v588_v34 = vpop.permute.xlu1 %587 }
 0x274   : > { %v603_v35 = vsub.f32 %v588_v34, %v601_v31 }
 0x276   : > { %v635_v41 = vmul.f32 %v603_v35, %v603_v35 }
 0x278   : > { %v608_v42 = vpop.permute.xlu1 %607  ;;  %v639_v50 = vadd.f32 %v635_v41, %v631_v46 }
 0x279   : > { %v626_v44 = vsub.f32 %v608_v42, %v625_v0 }
 0x27a   : > { %v15618_v56 = vadd.f32 %v643_v51, %v639_v50 }
 0x27b   : > { %v642_v49 = vmul.f32 %v626_v44, %v626_v44 }
 0x27d   : > { %v15616_v53 = vadd.f32 %v642_v49, %v638_v48 }
 0x343   : > { %v14050_v22 = vpop.f32.mrb[2].mxu0 }
 0x344   : > { %548 = vst.msk [vmem:[%s15513_s7 + $0x18] sm:$0xff] %vm544_vm4, %v14050_v22  ;;  %v450_v24 = vpop.f32.mrb[3].mxu0  ;;  %595 = vperm.xlu1 %15414, %v14050_v22   ;;  %571 = vperm.xlu0 %15413, %v14050_v22  }
 0x345   : > { %547 = vst.msk [vmem:[%s15513_s7 + $0x10] sm:$0xff] %vm544_vm4, %v450_v24 }
 0x348   : > { %15415 = vset.pattern.permute.xlu1 %v15452_v63  ;;  %15418 = vset.pattern.permute.xlu0 %v15454_v25 }
 0x349   : > { %566 = vperm.xlu1 %15415, %v450_v24   ;;  %619 = vperm.xlu0 %15418, %v14050_v22  }
 0x34d   : > { %15416 = vset.pattern.permute.xlu1 %v15453_v23 }
 0x34e   : > { %591 = vperm.xlu1 %15416, %v450_v24  }
 0x352   : > { %15417 = vset.pattern.permute.xlu1 %v15454_v25 }
 0x353   : > { %615 = vperm.xlu1 %15417, %v450_v24  }
 0x368   : > { %652 = vmin.xlane.f32.xlu0 %v15618_v56 }
 0x377   : > { %650 = vmin.xlane.f32.xlu1 %v15616_v53 }
 0x3c3   : > { %v596_v52 = vpop.permute.xlu1 %595  ;;  %v572_v55 = vpop.permute.xlu0 %571 }
 0x3c4   : > { %v605_v54 = vsub.f32 %v596_v52, %v601_v31  ;;  %v581_v57 = vsub.f32 %v572_v55, %v577_v32 }
 0x3c6   : > { %v637_v58 = vmul.f32 %v605_v54, %v605_v54  ;;  %v633_v59 = vmul.f32 %v581_v57, %v581_v57 }
 0x3c8   : > { %v567_v60 = vpop.permute.xlu1 %566  ;;  %v620_v63 = vpop.permute.xlu0 %619  ;;  %v641_v20 = vadd.f32 %v637_v58, %v633_v59 }
 0x3c9   : > { %v629_v21 = vsub.f32 %v620_v63, %v625_v0  ;;  %v580_v27 = vsub.f32 %v567_v60, %v577_v32 }
 0x3cb   : > { %v645_v22 = vmul.f32 %v629_v21, %v629_v21  ;;  %v632_v30 = vmul.f32 %v580_v27, %v580_v27  ;;  %v15649_v27 = vpack.c.bf16 %v15508_v4, %v15506_v3  ;;  %v15663_v3 = vpack.c.bf16 %v15536_v8, %v15524_v7 }
 0x3cc   : > { %v15669_v4 = vpack.c.bf16 %v15540_v10, %v15538_v9  ;;  %v15686_v7 = vpack.c.bf16 %v15552_v16, %v15550_v15  ;;  %v15692_v8 = vpack.c.bf16 %v15556_v18, %v15554_v17 }
 0x3cd   : > { %v592_v23 = vpop.permute.xlu1 %591  ;;  %v15622_v25 = vadd.f32 %v645_v22, %v641_v20  ;;  %14858 = vmatprep.subr.bf16.mxu0 %v15649_v27  ;;  %14826 = vmatprep.subr.bf16.mxu1 %v15649_v27 }
 0x3ce   : > { %v604_v24 = vsub.f32 %v592_v23, %v601_v31  ;;  %14828 = vmatpush3.bf16.msra.mxu1 %v15649_v27 }
 0x3cf   : > { %656 = vmin.xlane.f32.xlu0 %v15622_v25 }
 0x3d0   : > { %v636_v28 = vmul.f32 %v604_v24, %v604_v24 }
 0x3d2   : > { %v616_v29 = vpop.permute.xlu1 %615  ;;  %v640_v34 = vadd.f32 %v636_v28, %v632_v30 }
 0x3d3   : > { %v628_v33 = vsub.f32 %v616_v29, %v625_v0  ;;  %v15657_v29 = vpack.c.bf16 %v15522_v6, %v15520_v5  ;;  %v15675_v5 = vpack.c.bf16 %v15544_v12, %v15542_v11  ;;  %v15681_v6 = vpack.c.bf16 %v15548_v14, %v15546_v13 }
 0x3d5   : > { %v644_v35 = vmul.f32 %v628_v33, %v628_v33  ;;  %14830 = vmatprep.subr.bf16.mxu1 %v15657_v29 }
 0x3d6   : > { %14832 = vmatpush3.bf16.msra.mxu1 %v15657_v29 }
 0x3d7   : > { %v15625_v36 = vadd.f32 %v644_v35, %v640_v34  ;;  %14834 = vmatprep.subr.bf16.mxu1 %v15663_v3 }
 0x3d9   : > { %654 = vmin.xlane.f32.xlu1 %v15625_v36 }
 0x3da   : > { %14836 = vmatpush3.bf16.msra.mxu1 %v15663_v3 }
 0x3db   : > { %14838 = vmatprep.subr.bf16.mxu1 %v15669_v4 }
 0x3de   : > { %14840 = vmatpush3.bf16.msra.mxu1 %v15669_v4 }
 0x3df   : > { %14842 = vmatprep.subr.bf16.mxu1 %v15675_v5 }
 0x3e2   : > { %14844 = vmatpush3.bf16.msra.mxu1 %v15675_v5 }
 0x3e3   : > { %14846 = vmatprep.subr.bf16.mxu1 %v15681_v6 }
 0x3e6   : > { %14848 = vmatpush3.bf16.msra.mxu1 %v15681_v6 }
 0x3e7   : > { %14850 = vmatprep.subr.bf16.mxu1 %v15686_v7 }
 0x3ea   : > { %14852 = vmatpush3.bf16.msra.mxu1 %v15686_v7 }
 0x3eb   : > { %14854 = vmatprep.subr.bf16.mxu1 %v15692_v8 }
 0x3ee   : > { %14856 = vmatpush3.bf16.msra.mxu1 %v15692_v8 }
 0x3ef   : > { %14890 = vmatprep.subr.bf16.mxu1 %v15649_v27 }
 0x3f1   : > { %14084 = vmatmul.mubr.f32.vlgmr.msra.gmra.mrb[0].mxu1 %v15592_v61  ;;  %v15455_v61 = vmov 1.0  }
 0x3f2   : > { %14892 = vmatpush3.bf16.msra.mxu1 %v15649_v27  ;;  %14086 = vmatprep.mubr.f32.mxu1 %v15594_v62 }
 0x3f3   : > { %14894 = vmatprep.subr.bf16.mxu1 %v15657_v29 }
 0x3f5   : > { %v653_v38 = vpop.xlane.xlu0 %652  ;;  %14087 = vmatmul.mubr.f32.gmra.mrb[2].mxu1 %v15599_v19 }
 0x3f6   : > { %vm659_vm6 = vcmp.le.f32.partialorder %v15618_v56, %v653_v38  ;;  %14896 = vmatpush3.bf16.msra.mxu1 %v15657_v29 }
 0x3f7   : > { %v663_v32 = vsel %vm659_vm6, %v15496_v1, 128  ;;  %14898 = vmatprep.subr.bf16.mxu1 %v15663_v3  ;;  %vm1401_vm6 = vcmask 122880  }
 0x3f8   : > { %v681_v40 = vshra.s32 %v663_v32, 16  ;;  %v680_v51 = vand.u32 65535, %v663_v32 }
 0x3fa   : > { %v683_v0 = vcvt.s32.f32 %v681_v40  ;;  %v682_v57 = vcvt.s32.f32 %v680_v51  ;;  %14900 = vmatpush3.bf16.msra.mxu1 %v15663_v3 }
 0x3fb   : > { %14902 = vmatprep.subr.bf16.mxu1 %v15669_v4 }
 0x3fc   : > { %684 = vmin.xlane.f32.xlu0 %v683_v0 }
 0x3fe   : > { %14904 = vmatpush3.bf16.msra.mxu1 %v15669_v4 }
 0x3ff   : > { %14906 = vmatprep.subr.bf16.mxu1 %v15675_v5 }
 0x402   : > { %14908 = vmatpush3.bf16.msra.mxu1 %v15675_v5 }
 0x403   : > { %14910 = vmatprep.subr.bf16.mxu1 %v15681_v6 }
 0x404   : > { %v651_v37 = vpop.xlane.xlu1 %650 }
 0x405   : > { %vm658_vm5 = vcmp.le.f32.partialorder %v15616_v53, %v651_v37 }
 0x406   : > { %v662_v31 = vsel %vm658_vm5, %v15496_v1, 128  ;;  %14912 = vmatpush3.bf16.msra.mxu1 %v15681_v6  ;;  %vm1136_vm5 = vcmask 16384  }
 0x407   : > { %v667_v39 = vshra.s32 %v662_v31, 16  ;;  %v666_v50 = vand.u32 65535, %v662_v31  ;;  %14914 = vmatprep.subr.bf16.mxu1 %v15686_v7 }
 0x409   : > { %v669_v41 = vcvt.s32.f32 %v667_v39  ;;  %v668_v54 = vcvt.s32.f32 %v666_v50 }
 0x40a   : > { %14916 = vmatpush3.bf16.msra.mxu1 %v15686_v7 }
 0x40b   : > { %670 = vmin.xlane.f32.xlu1 %v669_v41  ;;  %14918 = vmatprep.subr.bf16.mxu1 %v15692_v8 }
 0x40e   : > { %14920 = vmatpush3.bf16.msra.mxu1 %v15692_v8 }
 0x40f   : > { %14954 = vmatprep.subr.bf16.mxu1 %v15649_v27 }
 0x45c   : > { %v657_v42 = vpop.xlane.xlu0 %656 }
 0x45d   : > { %vm661_vm7 = vcmp.le.f32.partialorder %v15622_v25, %v657_v42 }
 0x45e   : > { %v665_v43 = vsel %vm661_vm7, %v15496_v1, 128 }
 0x45f   : > { %v709_v44 = vshra.s32 %v665_v43, 16  ;;  %v708_v60 = vand.u32 65535, %v665_v43 }
 0x461   : > { %v711_v45 = vcvt.s32.f32 %v709_v44  ;;  %v710_v20 = vcvt.s32.f32 %v708_v60 }
 0x463   : > { %712 = vmin.xlane.f32.xlu0 %v711_v45 }
 0x466   : > { %v655_v46 = vpop.xlane.xlu1 %654 }
 0x467   : > { %vm660_vm8 = vcmp.le.f32.partialorder %v15625_v36, %v655_v46 }
 0x468   : > { %v664_v47 = vsel %vm660_vm8, %v15496_v1, 128 }
 0x469   : > { %v695_v48 = vshra.s32 %v664_v47, 16  ;;  %v694_v22 = vand.u32 65535, %v664_v47 }
 0x46b   : > { %v697_v49 = vcvt.s32.f32 %v695_v48  ;;  %v696_v24 = vcvt.s32.f32 %v694_v22 }
 0x46d   : > { %698 = vmin.xlane.f32.xlu1 %v697_v49 }
 0x489   : > { %v15638_v55 = vpop.xlane.xlu0 %684 }
 0x48a   : > { %vm686_vm10 = vcmp.eq.f32.partialorder %v683_v0, %v15638_v55  ;;  %v691_v10 = vcvt.f32.s32 %v15638_v55  ;;  %v15456_v55 = vmov 1966171168  }
 0x48b   : > { %v687_v59 = vsel %vm686_vm10, %v682_v57, inf  ;;  %v910_v57 = vunpack.c.l.s4 %v15456_v55 }
 0x48c   : > { %688 = vmin.xlane.f32.xlu0 %v687_v59  ;;  %v692_v15 = vshll.u32 %v691_v10, 16 }
 0x498   : > { %v15636_v52 = vpop.xlane.xlu1 %670 }
 0x499   : > { %vm672_vm9 = vcmp.eq.f32.partialorder %v669_v41, %v15636_v52  ;;  %v677_v9 = vcvt.f32.s32 %v15636_v52 }
 0x49a   : > { %v673_v58 = vsel %vm672_vm9, %v668_v54, inf }
 0x49b   : > { %674 = vmin.xlane.f32.xlu1 %v673_v58  ;;  %v678_v12 = vshll.u32 %v677_v9, 16  ;;  %v911_v58 = vunpack.c.0.s8 %v910_v57 }
 0x49d   : > { %v15818_v59 = vsub.s32 %v911_v58, %v15608_v26 }
 0x4f0   : > { %v15642_v63 = vpop.xlane.xlu0 %712 }
 0x4f1   : > { %vm714_vm11 = vcmp.eq.f32.partialorder %v711_v45, %v15642_v63  ;;  %v719_v30 = vcvt.f32.s32 %v15642_v63 }
 0x4f2   : > { %v715_v21 = vsel %vm714_vm11, %v710_v20, inf }
 0x4f3   : > { %716 = vmin.xlane.f32.xlu0 %v715_v21  ;;  %v720_v33 = vshll.u32 %v719_v30, 16 }
 0x4fa   : > { %v15645_v23 = vpop.xlane.xlu1 %698 }
 0x4fb   : > { %vm700_vm12 = vcmp.eq.f32.partialorder %v697_v49, %v15645_v23 }
 0x4fc   : > { %v701_v28 = vsel %vm700_vm12, %v696_v24, inf }
 0x4fd   : > { %702 = vmin.xlane.f32.xlu1 %v701_v28 }
 0x519   : > { %v689_v14 = vpop.xlane.xlu0 %688 }
 0x51a   : > { %v690_v16 = vcvt.f32.s32 %v689_v14 }
 0x51c   : > { %v693_v18 = vadd.s32 %v692_v15, %v690_v16 }
 0x51e   : > { %vm723_vm14 = vcmp.eq.s32.totalorder %v15496_v1, %v693_v18 }
 0x51f   : > { %v15736_v19 = vsel %vm723_vm14, 3e+38, %v15618_v56  ;;  %v705_v56 = vcvt.f32.s32 %v15645_v23 }
 0x520   : > { %1440 = vmin.xlane.f32.xlu0 %v15736_v19 }
 0x521   : > { %v706_v31 = vshll.u32 %v705_v56, 16 }
 0x528   : > { %v675_v11 = vpop.xlane.xlu1 %674 }
 0x529   : > { %v676_v13 = vcvt.f32.s32 %v675_v11 }
 0x52b   : > { %v679_v17 = vadd.s32 %v678_v12, %v676_v13 }
 0x52d   : > { %vm722_vm13 = vcmp.eq.s32.totalorder %v15496_v1, %v679_v17 }
 0x52e   : > { %14091 = vmatprep.mubr.msk.f32.mxu0 %vm722_vm13, %v15455_v61  ;;  %v15727_v62 = vsel %vm722_vm13, 3e+38, %v15616_v53 }
 0x52f   : > { %1438 = vmin.xlane.f32.xlu1 %v15727_v62  ;;  %14092 = vmatmul.mubr.msk.f32.vlgmr.msra.gmra.mrb[4].mxu0 %vm723_vm14, %v15455_v61 }
 0x530   : > { %14860 = vmatpush3.bf16.msra.mxu0 %v15649_v27 }
 0x531   : > { %14862 = vmatprep.subr.bf16.mxu0 %v15657_v29 }
 0x534   : > { %14864 = vmatpush3.bf16.msra.mxu0 %v15657_v29 }
 0x535   : > { %14866 = vmatprep.subr.bf16.mxu0 %v15663_v3 }
 0x538   : > { %14868 = vmatpush3.bf16.msra.mxu0 %v15663_v3 }
 0x539   : > { %14870 = vmatprep.subr.bf16.mxu0 %v15669_v4 }
 0x53c   : > { %14872 = vmatpush3.bf16.msra.mxu0 %v15669_v4 }
 0x53d   : > { %14874 = vmatprep.subr.bf16.mxu0 %v15675_v5 }
 0x540   : > { %14876 = vmatpush3.bf16.msra.mxu0 %v15675_v5 }
 0x541   : > { %14878 = vmatprep.subr.bf16.mxu0 %v15681_v6 }
 0x544   : > { %14880 = vmatpush3.bf16.msra.mxu0 %v15681_v6 }
 0x545   : > { %14882 = vmatprep.subr.bf16.mxu0 %v15686_v7 }
 0x548   : > { %14884 = vmatpush3.bf16.msra.mxu0 %v15686_v7 }
 0x549   : > { %14886 = vmatprep.subr.bf16.mxu0 %v15692_v8 }
 0x54c   : > { %14888 = vmatpush3.bf16.msra.mxu0 %v15692_v8 }
 0x54d   : > { %14135 = vmatprep.subr.mxu0 %v15504_v2 }
 0x580   : > { %v717_v53 = vpop.xlane.xlu0 %716 }
 0x581   : > { %v718_v34 = vcvt.f32.s32 %v717_v53 }
 0x583   : > { %v721_v35 = vadd.s32 %v720_v33, %v718_v34 }
 0x585   : > { %vm725_vm15 = vcmp.eq.s32.totalorder %v15496_v1, %v721_v35 }
 0x586   : > { %v15750_v37 = vsel %vm725_vm15, 3e+38, %v15622_v25 }
 0x587   : > { %1444 = vmin.xlane.f32.xlu0 %v15750_v37 }
 0x58a   : > { %v703_v38 = vpop.xlane.xlu1 %702 }
 0x58b   : > { %v704_v32 = vcvt.f32.s32 %v703_v38 }
 0x58d   : > { %v707_v39 = vadd.s32 %v706_v31, %v704_v32 }
 0x58f   : > { %vm724_vm0 = vcmp.eq.s32.totalorder %v15496_v1, %v707_v39 }
 0x590   : > { %14094 = vmatprep.mubr.msk.f32.mxu0 %vm724_vm0, %v15455_v61  ;;  %v15761_v25 = vsel %vm724_vm0, 3e+38, %v15625_v36 }
 0x591   : > { %1442 = vmin.xlane.f32.xlu1 %v15761_v25  ;;  %14095 = vmatmul.mubr.msk.f32.gmra.mrb[6].mxu0 %vm725_vm15, %v15455_v61 }
 0x592   : > { %14129 = vmatprep.mubr.msk.f32.mxu0 %vm722_vm13, %v15455_v61 }
 0x595   : > { %14130 = vmatmul.mubr.msk.f32.vlgmr.msra.gmra.mrb[8].mxu0 %vm723_vm14, %v15455_v61 }
 0x596   : > { %14132 = vmatprep.mubr.msk.f32.mxu0 %vm724_vm0, %v15455_v61  ;;  %14136 = vmatpush3.xpose.msra.mxu0 %v15504_v2 }
 0x597   : > { %14181 = vmatprep.subr.mxu0 %v15504_v2 }
 0x599   : > { %14133 = vmatmul.mubr.msk.f32.gmra.mrb[10].mxu0 %vm725_vm15, %v15455_v61  ;;  %vm549_vm15 = vcmask 130048  }
 0x5ad   : > { %v1441_v40 = vpop.xlane.xlu0 %1440 }
 0x5ae   : > { %vm1447_vm2 = vcmp.le.f32.partialorder %v15736_v19, %v1441_v40 }
 0x5af   : > { %v15791_v0 = vsel %vm1447_vm2, %v15496_v1, 128 }
 0x5b0   : > { %v1469_v43 = vshra.s32 %v15791_v0, 16 }
 0x5b2   : > { %v15797_v45 = vcvt.s32.f32 %v1469_v43 }
 0x5b4   : > { %1472 = vmin.xlane.f32.xlu0 %v15797_v45 }
 0x5bc   : > { %v1439_v36 = vpop.xlane.xlu1 %1438 }
 0x5bd   : > { %vm1446_vm1 = vcmp.le.f32.partialorder %v15727_v62, %v1439_v36 }
 0x5be   : > { %v15787_v41 = vsel %vm1446_vm1, %v15496_v1, 128 }
 0x5bf   : > { %v1455_v42 = vshra.s32 %v15787_v41, 16 }
 0x5c1   : > { %v15795_v44 = vcvt.s32.f32 %v1455_v42 }
 0x5c3   : > { %1458 = vmin.xlane.f32.xlu1 %v15795_v44 }
 0x602   : > { %v14093_v60 = vpop.f32.mrb[4].mxu0 }
 0x603   : > { %v957_v63 = vcombine.high %v14093_v60, %v14093_v60  ;;  %v964_v20 = vrot.slane %v14093_v60, %v15818_v59  ;;  %v800_v21 = vpop.f32.mrb[5].mxu0 }
 0x604   : > { %v908_v22 = vcombine.high %v800_v21, %v800_v21  ;;  %v915_v23 = vrot.slane %v800_v21, %v15818_v59 }
 0x605   : > { %v971_v24 = vrot.slane %v957_v63, %v15818_v59  ;;  %v972_v28 = vcombine.high %v964_v20, %v964_v20  ;;  %v980_v9 = vrot.slane %v964_v20, %v15818_v59 }
 0x606   : > { %v922_v10 = vrot.slane %v908_v22, %v15818_v59  ;;  %v923_v26 = vcombine.high %v915_v23, %v915_v23  ;;  %v931_v11 = vrot.slane %v915_v23, %v15818_v59 }
 0x607   : > { %v973_v12 = vcombine.high %v971_v24, %v971_v24  ;;  %v987_v13 = vrot.slane %v971_v24, %v15818_v59  ;;  %v994_v14 = vrot.slane %v972_v28, %v15818_v59  ;;  %v1002_v15 = vcombine.high %v980_v9, %v980_v9  ;;  %1145 = vst.msk [vmem:[%s15529_s13 + $0x80] sm:$0x1] %vm1136_vm5, %v980_v9 }
 0x608   : > { %v924_v16 = vcombine.high %v922_v10, %v922_v10  ;;  %v938_v17 = vrot.slane %v922_v10, %v15818_v59  ;;  %v945_v18 = vrot.slane %v923_v26, %v15818_v59  ;;  %v953_v30 = vcombine.high %v931_v11, %v931_v11  ;;  %1137 = vst.msk [vmem:[%s15529_s13] sm:$0x1] %vm1136_vm5, %v931_v11 }
 0x609   : > { %v1001_v53 = vrot.slane %v973_v12, %v15818_v59  ;;  %v1003_v33 = vcombine.high %v987_v13, %v987_v13  ;;  %v1004_v34 = vcombine.high %v994_v14, %v994_v14  ;;  %1146 = vst.msk [vmem:[%s15529_s13 + $0x90] sm:$0x1] %vm1136_vm5, %v994_v14  ;;  %1147 = vst.msk [vmem:[%s15529_s13 + $0xa0] sm:$0x1] %vm1136_vm5, %v1002_v15 }
 0x60a   : > { %1149 = vst.msk [vmem:[%s15529_s13 + $0xc0] sm:$0x1] %vm1136_vm5, %v987_v13  ;;  %v952_v35 = vrot.slane %v924_v16, %v15818_v59  ;;  %v954_v56 = vcombine.high %v938_v17, %v938_v17  ;;  %v955_v38 = vcombine.high %v945_v18, %v945_v18  ;;  %1138 = vst.msk [vmem:[%s15529_s13 + $0x10] sm:$0x1] %vm1136_vm5, %v945_v18 }
 0x60b   : > { %1139 = vst.msk [vmem:[%s15529_s13 + $0x20] sm:$0x1] %vm1136_vm5, %v953_v30  ;;  %1141 = vst.msk [vmem:[%s15529_s13 + $0x40] sm:$0x1] %vm1136_vm5, %v938_v17  ;;  %v1005_v31 = vcombine.high %v1001_v53, %v1001_v53 }
 0x60c   : > { %1148 = vst.msk [vmem:[%s15529_s13 + $0xb0] sm:$0x1] %vm1136_vm5, %v1004_v34  ;;  %1150 = vst.msk [vmem:[%s15529_s13 + $0xd0] sm:$0x1] %vm1136_vm5, %v1001_v53  ;;  %v956_v32 = vcombine.high %v952_v35, %v952_v35 }
 0x60d   : > { %1151 = vst.msk [vmem:[%s15529_s13 + $0xe0] sm:$0x1] %vm1136_vm5, %v1003_v33  ;;  %1140 = vst.msk [vmem:[%s15529_s13 + $0x30] sm:$0x1] %vm1136_vm5, %v955_v38 }
 0x60e   : > { %1142 = vst.msk [vmem:[%s15529_s13 + $0x50] sm:$0x1] %vm1136_vm5, %v952_v35  ;;  %1143 = vst.msk [vmem:[%s15529_s13 + $0x60] sm:$0x1] %vm1136_vm5, %v954_v56 }
 0x60f   : > { %1152 = vst.msk [vmem:[%s15529_s13 + $0xf0] sm:$0x1] %vm1136_vm5, %v1005_v31  ;;  %1144 = vst.msk [vmem:[%s15529_s13 + $0x70] sm:$0x1] %vm1136_vm5, %v956_v32 }
 0x614   : > { %v1445_v46 = vpop.xlane.xlu0 %1444 }
 0x615   : > { %vm1449_vm3 = vcmp.le.f32.partialorder %v15750_v37, %v1445_v46 }
 0x616   : > { %v15803_v47 = vsel %vm1449_vm3, %v15496_v1, 128 }
 0x617   : > { %v1497_v48 = vshra.s32 %v15803_v47, 16 }
 0x619   : > { %v15806_v49 = vcvt.s32.f32 %v1497_v48 }
 0x61b   : > { %1500 = vmin.xlane.f32.xlu0 %v15806_v49 }
 0x61e   : > { %v1443_v50 = vpop.xlane.xlu1 %1442 }
 0x61f   : > { %vm1448_vm4 = vcmp.le.f32.partialorder %v15761_v25, %v1443_v50 }
 0x620   : > { %v15811_v51 = vsel %vm1448_vm4, %v15496_v1, 128 }
 0x621   : > { %v1483_v52 = vshra.s32 %v15811_v51, 16 }
 0x623   : > { %v15814_v54 = vcvt.s32.f32 %v1483_v52 }
 0x625   : > { %1486 = vmin.xlane.f32.xlu1 %v15814_v54 }
 0x664   : > { %v14096_v39 = vpop.f32.mrb[6].mxu0 }
 0x665   : > { %v1055_v36 = vcombine.high %v14096_v39, %v14096_v39  ;;  %v1062_v40 = vrot.slane %v14096_v39, %v15818_v59  ;;  %v810_v42 = vpop.f32.mrb[7].mxu0 }
 0x666   : > { %v1006_v43 = vcombine.high %v810_v42, %v810_v42  ;;  %v1013_v46 = vrot.slane %v810_v42, %v15818_v59 }
 0x667   : > { %v1069_v48 = vrot.slane %v1055_v36, %v15818_v59  ;;  %v1070_v50 = vcombine.high %v1062_v40, %v1062_v40  ;;  %v1078_v52 = vrot.slane %v1062_v40, %v15818_v59 }
 0x668   : > { %v1020_v55 = vrot.slane %v1006_v43, %v15818_v59  ;;  %v1021_v57 = vcombine.high %v1013_v46, %v1013_v46  ;;  %v1029_v58 = vrot.slane %v1013_v46, %v15818_v59  ;;  %v14131_v16 = vpop.f32.mrb[8].mxu0 }
 0x669   : > { %v1071_v60 = vcombine.high %v1069_v48, %v1069_v48  ;;  %v1085_v63 = vrot.slane %v1069_v48, %v15818_v59  ;;  %v1092_v20 = vrot.slane %v1070_v50, %v15818_v59  ;;  %v1100_v21 = vcombine.high %v1078_v52, %v1078_v52  ;;  %1161 = vst.msk [vmem:[%s15529_s13 + $0x180] sm:$0x1] %vm1136_vm5, %v1078_v52  ;;  %v885_v30 = vpop.f32.mrb[9].mxu0 }
 0x66a   : > { %v1022_v22 = vcombine.high %v1020_v55, %v1020_v55  ;;  %v1036_v23 = vrot.slane %v1020_v55, %v15818_v59  ;;  %v1043_v24 = vrot.slane %v1021_v57, %v15818_v59  ;;  %v1051_v28 = vcombine.high %v1029_v58, %v1029_v58  ;;  %1153 = vst.msk [vmem:[%s15529_s13 + $0x100] sm:$0x1] %vm1136_vm5, %v1029_v58 }
 0x66b   : > { %v1099_v9 = vrot.slane %v1071_v60, %v15818_v59  ;;  %v1101_v10 = vcombine.high %v1085_v63, %v1085_v63  ;;  %v1102_v26 = vcombine.high %v1092_v20, %v1092_v20  ;;  %1162 = vst.msk [vmem:[%s15529_s13 + $0x190] sm:$0x1] %vm1136_vm5, %v1092_v20  ;;  %1163 = vst.msk [vmem:[%s15529_s13 + $0x1a0] sm:$0x1] %vm1136_vm5, %v1100_v21 }
 0x66c   : > { %1165 = vst.msk [vmem:[%s15529_s13 + $0x1c0] sm:$0x1] %vm1136_vm5, %v1085_v63  ;;  %v1050_v11 = vrot.slane %v1022_v22, %v15818_v59  ;;  %v1052_v12 = vcombine.high %v1036_v23, %v1036_v23  ;;  %v1053_v13 = vcombine.high %v1043_v24, %v1043_v24  ;;  %1154 = vst.msk [vmem:[%s15529_s13 + $0x110] sm:$0x1] %vm1136_vm5, %v1043_v24  ;;  %v14134_v39 = vpop.f32.mrb[10].mxu0 }
 0x66d   : > { %1155 = vst.msk [vmem:[%s15529_s13 + $0x120] sm:$0x1] %vm1136_vm5, %v1051_v28  ;;  %1157 = vst.msk [vmem:[%s15529_s13 + $0x140] sm:$0x1] %vm1136_vm5, %v1036_v23  ;;  %v1103_v14 = vcombine.high %v1099_v9, %v1099_v9  ;;  %v1222_v17 = vcombine.high %v14131_v16, %v14131_v16  ;;  %v1229_v18 = vrot.slane %v14131_v16, %v15818_v59  ;;  %v895_v46 = vpop.f32.mrb[11].mxu0 }
 0x66e   : > { %1164 = vst.msk [vmem:[%s15529_s13 + $0x1b0] sm:$0x1] %vm1136_vm5, %v1102_v26  ;;  %1166 = vst.msk [vmem:[%s15529_s13 + $0x1d0] sm:$0x1] %vm1136_vm5, %v1099_v9  ;;  %v1054_v15 = vcombine.high %v1050_v11, %v1050_v11  ;;  %v1173_v53 = vcombine.high %v885_v30, %v885_v30  ;;  %v1180_v33 = vrot.slane %v885_v30, %v15818_v59 }
 0x66f   : > { %1167 = vst.msk [vmem:[%s15529_s13 + $0x1e0] sm:$0x1] %vm1136_vm5, %v1101_v10  ;;  %1156 = vst.msk [vmem:[%s15529_s13 + $0x130] sm:$0x1] %vm1136_vm5, %v1053_v13  ;;  %v1236_v34 = vrot.slane %v1222_v17, %v15818_v59  ;;  %v1237_v35 = vcombine.high %v1229_v18, %v1229_v18  ;;  %v1245_v56 = vrot.slane %v1229_v18, %v15818_v59 }
 0x670   : > { %1158 = vst.msk [vmem:[%s15529_s13 + $0x150] sm:$0x1] %vm1136_vm5, %v1050_v11  ;;  %1159 = vst.msk [vmem:[%s15529_s13 + $0x160] sm:$0x1] %vm1136_vm5, %v1052_v12  ;;  %v1187_v38 = vrot.slane %v1173_v53, %v15818_v59  ;;  %v1188_v31 = vcombine.high %v1180_v33, %v1180_v33  ;;  %v1196_v32 = vrot.slane %v1180_v33, %v15818_v59 }
 0x671   : > { %1168 = vst.msk [vmem:[%s15529_s13 + $0x1f0] sm:$0x1] %vm1136_vm5, %v1103_v14  ;;  %1160 = vst.msk [vmem:[%s15529_s13 + $0x170] sm:$0x1] %vm1136_vm5, %v1054_v15  ;;  %v1238_v36 = vcombine.high %v1236_v34, %v1236_v34  ;;  %v1252_v40 = vrot.slane %v1236_v34, %v15818_v59  ;;  %v1259_v42 = vrot.slane %v1237_v35, %v15818_v59 }
 0x672   : > { %v1267_v43 = vcombine.high %v1245_v56, %v1245_v56  ;;  %1410 = vst.msk [vmem:[%s15534_s16 + $0x80] sm:$0x1] %vm1401_vm6, %v1245_v56  ;;  %v1189_v48 = vcombine.high %v1187_v38, %v1187_v38  ;;  %v1203_v50 = vrot.slane %v1187_v38, %v15818_v59  ;;  %v1210_v52 = vrot.slane %v1188_v31, %v15818_v59 }
 0x673   : > { %v1218_v55 = vcombine.high %v1196_v32, %v1196_v32  ;;  %1402 = vst.msk [vmem:[%s15534_s16] sm:$0x1] %vm1401_vm6, %v1196_v32  ;;  %v1266_v57 = vrot.slane %v1238_v36, %v15818_v59  ;;  %v1268_v58 = vcombine.high %v1252_v40, %v1252_v40  ;;  %v1269_v60 = vcombine.high %v1259_v42, %v1259_v42 }
 0x674   : > { %1411 = vst.msk [vmem:[%s15534_s16 + $0x90] sm:$0x1] %vm1401_vm6, %v1259_v42  ;;  %1412 = vst.msk [vmem:[%s15534_s16 + $0xa0] sm:$0x1] %vm1401_vm6, %v1267_v43  ;;  %v1320_v63 = vcombine.high %v14134_v39, %v14134_v39  ;;  %v1217_v20 = vrot.slane %v1189_v48, %v15818_v59  ;;  %v1219_v21 = vcombine.high %v1203_v50, %v1203_v50  ;;  %v1454_v43 = vand.u32 65535, %v15787_v41  ;;  %v1459_v48 = vpop.xlane.xlu1 %1458 }
 0x675   : > { %1414 = vst.msk [vmem:[%s15534_s16 + $0xc0] sm:$0x1] %vm1401_vm6, %v1252_v40  ;;  %v1220_v22 = vcombine.high %v1210_v52, %v1210_v52  ;;  %1403 = vst.msk [vmem:[%s15534_s16 + $0x10] sm:$0x1] %vm1401_vm6, %v1210_v52  ;;  %v1327_v23 = vrot.slane %v14134_v39, %v15818_v59  ;;  %v1270_v24 = vcombine.high %v1266_v57, %v1266_v57  ;;  %v1473_v52 = vpop.xlane.xlu0 %1472 }
 0x676   : > { %1404 = vst.msk [vmem:[%s15534_s16 + $0x20] sm:$0x1] %vm1401_vm6, %v1218_v55  ;;  %1406 = vst.msk [vmem:[%s15534_s16 + $0x40] sm:$0x1] %vm1401_vm6, %v1203_v50  ;;  %v1334_v28 = vrot.slane %v1320_v63, %v15818_v59  ;;  %v1271_v9 = vcombine.high %v895_v46, %v895_v46  ;;  %v1278_v10 = vrot.slane %v895_v46, %v15818_v59  ;;  %v1468_v46 = vand.u32 65535, %v15791_v0 }
 0x677   : > { %1413 = vst.msk [vmem:[%s15534_s16 + $0xb0] sm:$0x1] %vm1401_vm6, %v1269_v60  ;;  %1415 = vst.msk [vmem:[%s15534_s16 + $0xd0] sm:$0x1] %vm1401_vm6, %v1266_v57  ;;  %v1221_v26 = vcombine.high %v1217_v20, %v1217_v20  ;;  %v1335_v11 = vcombine.high %v1327_v23, %v1327_v23  ;;  %v1343_v12 = vrot.slane %v1327_v23, %v15818_v59  ;;  %v1456_v50 = vcvt.s32.f32 %v1454_v43 }
 0x678   : > { %1416 = vst.msk [vmem:[%s15534_s16 + $0xe0] sm:$0x1] %vm1401_vm6, %v1268_v58  ;;  %1405 = vst.msk [vmem:[%s15534_s16 + $0x30] sm:$0x1] %vm1401_vm6, %v1220_v22  ;;  %v1336_v13 = vcombine.high %v1334_v28, %v1334_v28  ;;  %v1350_v14 = vrot.slane %v1334_v28, %v15818_v59  ;;  %v1285_v15 = vrot.slane %v1271_v9, %v15818_v59  ;;  %v1470_v55 = vcvt.s32.f32 %v1468_v46 }
 0x679   : > { %1407 = vst.msk [vmem:[%s15534_s16 + $0x50] sm:$0x1] %vm1401_vm6, %v1217_v20  ;;  %1408 = vst.msk [vmem:[%s15534_s16 + $0x60] sm:$0x1] %vm1401_vm6, %v1219_v21  ;;  %v1286_v16 = vcombine.high %v1278_v10, %v1278_v10  ;;  %v1357_v17 = vrot.slane %v1335_v11, %v15818_v59  ;;  %v1365_v18 = vcombine.high %v1343_v12, %v1343_v12  ;;  %v1496_v60 = vand.u32 65535, %v15803_v47 }
 0x67a   : > { %1417 = vst.msk [vmem:[%s15534_s16 + $0xf0] sm:$0x1] %vm1401_vm6, %v1270_v24  ;;  %1409 = vst.msk [vmem:[%s15534_s16 + $0x70] sm:$0x1] %vm1401_vm6, %v1221_v26  ;;  %v1294_v30 = vrot.slane %v1278_v10, %v15818_v59  ;;  %v1364_v53 = vrot.slane %v1336_v13, %v15818_v59  ;;  %v1366_v33 = vcombine.high %v1350_v14, %v1350_v14  ;;  %v1482_v0 = vand.u32 65535, %v15811_v51 }
 0x67b   : > { %1426 = vst.msk [vmem:[%s15534_s16 + $0x180] sm:$0x1] %vm1401_vm6, %v1343_v12  ;;  %1430 = vst.msk [vmem:[%s15534_s16 + $0x1c0] sm:$0x1] %vm1401_vm6, %v1350_v14  ;;  %v1287_v34 = vcombine.high %v1285_v15, %v1285_v15  ;;  %v1301_v35 = vrot.slane %v1285_v15, %v15818_v59  ;;  %v1367_v56 = vcombine.high %v1357_v17, %v1357_v17  ;;  %v1498_v20 = vcvt.s32.f32 %v1496_v60 }
 0x67c   : > { %1427 = vst.msk [vmem:[%s15534_s16 + $0x190] sm:$0x1] %vm1401_vm6, %v1357_v17  ;;  %1428 = vst.msk [vmem:[%s15534_s16 + $0x1a0] sm:$0x1] %vm1401_vm6, %v1365_v18  ;;  %v1308_v38 = vrot.slane %v1286_v16, %v15818_v59  ;;  %v1316_v31 = vcombine.high %v1294_v30, %v1294_v30  ;;  %v1368_v32 = vcombine.high %v1364_v53, %v1364_v53  ;;  %v1484_v22 = vcvt.s32.f32 %v1482_v0 }
 0x67d   : > { %1418 = vst.msk [vmem:[%s15534_s16 + $0x100] sm:$0x1] %vm1401_vm6, %v1294_v30  ;;  %1431 = vst.msk [vmem:[%s15534_s16 + $0x1d0] sm:$0x1] %vm1401_vm6, %v1364_v53  ;;  %v1315_v39 = vrot.slane %v1287_v34, %v15818_v59  ;;  %v1317_v36 = vcombine.high %v1301_v35, %v1301_v35  ;;  %vm1460_vm7 = vcmp.eq.f32.partialorder %v15795_v44, %v1459_v48  ;;  %v1479_v23 = vcvt.f32.s32 %v1473_v52 }
 0x67e   : > { %1432 = vst.msk [vmem:[%s15534_s16 + $0x1e0] sm:$0x1] %vm1401_vm6, %v1366_v33  ;;  %1422 = vst.msk [vmem:[%s15534_s16 + $0x140] sm:$0x1] %vm1401_vm6, %v1301_v35  ;;  %v1318_v40 = vcombine.high %v1308_v38, %v1308_v38  ;;  %v1461_v57 = vsel %vm1460_vm7, %v1456_v50, inf  ;;  %vm1474_vm8 = vcmp.eq.f32.partialorder %v15797_v45, %v1473_v52  ;;  %v1465_v45 = vcvt.f32.s32 %v1459_v48 }
 0x67f   : > { %1429 = vst.msk [vmem:[%s15534_s16 + $0x1b0] sm:$0x1] %vm1401_vm6, %v1367_v56  ;;  %1419 = vst.msk [vmem:[%s15534_s16 + $0x110] sm:$0x1] %vm1401_vm6, %v1308_v38  ;;  %v1319_v42 = vcombine.high %v1315_v39, %v1315_v39  ;;  %1462 = vmin.xlane.f32.xlu1 %v1461_v57  ;;  %v1475_v58 = vsel %vm1474_vm8, %v1470_v55, inf  ;;  %v1480_v10 = vshll.u32 %v1479_v23, 16 }
 0x680   : > { %1420 = vst.msk [vmem:[%s15534_s16 + $0x120] sm:$0x1] %vm1401_vm6, %v1316_v31  ;;  %1433 = vst.msk [vmem:[%s15534_s16 + $0x1f0] sm:$0x1] %vm1401_vm6, %v1368_v32  ;;  %1476 = vmin.xlane.f32.xlu0 %v1475_v58  ;;  %v1466_v28 = vshll.u32 %v1465_v45, 16 }
 0x681   : > { %1423 = vst.msk [vmem:[%s15534_s16 + $0x150] sm:$0x1] %vm1401_vm6, %v1315_v39  ;;  %1424 = vst.msk [vmem:[%s15534_s16 + $0x160] sm:$0x1] %vm1401_vm6, %v1317_v36 }
 0x682   : > { %1421 = vst.msk [vmem:[%s15534_s16 + $0x130] sm:$0x1] %vm1401_vm6, %v1318_v40  ;;  %1425 = vst.msk [vmem:[%s15534_s16 + $0x170] sm:$0x1] %vm1401_vm6, %v1319_v42 }
 0x6a8   : > { %v1501_v63 = vpop.xlane.xlu0 %1500 }
 0x6a9   : > { %vm1502_vm9 = vcmp.eq.f32.partialorder %v15806_v49, %v1501_v63  ;;  %v1507_v12 = vcvt.f32.s32 %v1501_v63 }
 0x6aa   : > { %v1503_v41 = vsel %vm1502_vm9, %v1498_v20, inf }
 0x6ab   : > { %1504 = vmin.xlane.f32.xlu0 %v1503_v41  ;;  %v1508_v13 = vshll.u32 %v1507_v12, 16 }
 0x6b2   : > { %v1487_v21 = vpop.xlane.xlu1 %1486 }
 0x6b3   : > { %vm1488_vm10 = vcmp.eq.f32.partialorder %v15814_v54, %v1487_v21  ;;  %v1493_v15 = vcvt.f32.s32 %v1487_v21 }
 0x6b4   : > { %v1489_v44 = vsel %vm1488_vm10, %v1484_v22, inf }
 0x6b5   : > { %1490 = vmin.xlane.f32.xlu1 %v1489_v44  ;;  %v1494_v18 = vshll.u32 %v1493_v15, 16 }
 0x70c   : > { %v1463_v24 = vpop.xlane.xlu1 %1462 }
 0x70d   : > { %v1464_v9 = vcvt.f32.s32 %v1463_v24  ;;  %v1477_v47 = vpop.xlane.xlu0 %1476 }
 0x70e   : > { %v1478_v26 = vcvt.f32.s32 %v1477_v47 }
 0x70f   : > { %v1467_v11 = vadd.s32 %v1466_v28, %v1464_v9 }
 0x710   : > { %v1481_v49 = vadd.s32 %v1480_v10, %v1478_v26 }
 0x711   : > { %vm1510_vm11 = vcmp.eq.s32.totalorder %v15496_v1, %v1467_v11 }
 0x712   : > { %vm1511_vm12 = vcmp.eq.s32.totalorder %v15496_v1, %v1481_v49  ;;  %14137 = vmatprep.mubr.msk.f32.mxu0 %vm1510_vm11, %v15455_v61  ;;  %14175 = vmatprep.mubr.msk.f32.mxu1 %vm1510_vm11, %v15455_v61  ;;  %v16009_v51 = vsel %vm1510_vm11, 3e+38, %v15727_v62 }
 0x713   : > { %2224 = vmin.xlane.f32.xlu1 %v16009_v51  ;;  %14138 = vmatmul.mubr.msk.f32.vlgmr.msra.gmra.mrb[12].mxu0 %vm1511_vm12, %v15455_v61  ;;  %v16014_v54 = vsel %vm1511_vm12, 3e+38, %v15736_v19 }
 0x714   : > { %14176 = vmatmul.mubr.msk.f32.vlgmr.msra.gmra.mrb[4].mxu1 %vm1511_vm12, %v15455_v61  ;;  %2226 = vmin.xlane.f32.xlu0 %v16014_v54 }
 0x715   : > { %14182 = vmatpush3.xpose.msra.mxu0 %v15504_v2  ;;  %14956 = vmatpush3.bf16.msra.mxu1 %v15649_v27 }
 0x716   : > { %14922 = vmatprep.subr.bf16.mxu0 %v15649_v27  ;;  %14958 = vmatprep.subr.bf16.mxu1 %v15657_v29 }
 0x719   : > { %14960 = vmatpush3.bf16.msra.mxu1 %v15657_v29 }
 0x71a   : > { %14962 = vmatprep.subr.bf16.mxu1 %v15663_v3 }
 0x71d   : > { %14964 = vmatpush3.bf16.msra.mxu1 %v15663_v3 }
 0x71e   : > { %14966 = vmatprep.subr.bf16.mxu1 %v15669_v4 }
 0x721   : > { %14968 = vmatpush3.bf16.msra.mxu1 %v15669_v4 }
 0x722   : > { %14970 = vmatprep.subr.bf16.mxu1 %v15675_v5 }
 0x725   : > { %14972 = vmatpush3.bf16.msra.mxu1 %v15675_v5 }
 0x726   : > { %14974 = vmatprep.subr.bf16.mxu1 %v15681_v6 }
 0x729   : > { %14976 = vmatpush3.bf16.msra.mxu1 %v15681_v6 }
 0x72a   : > { %14978 = vmatprep.subr.bf16.mxu1 %v15686_v7 }
 0x72d   : > { %14980 = vmatpush3.bf16.msra.mxu1 %v15686_v7 }
 0x72e   : > { %14982 = vmatprep.subr.bf16.mxu1 %v15692_v8 }
 0x731   : > { %14984 = vmatpush3.bf16.msra.mxu1 %v15692_v8 }
 0x732   : > { %14319 = vmatprep.subr.mxu1 %v15504_v2 }
 0x738   : > { %v1505_v62 = vpop.xlane.xlu0 %1504 }
 0x739   : > { %v1506_v14 = vcvt.f32.s32 %v1505_v62 }
 0x73b   : > { %v1509_v19 = vadd.s32 %v1508_v13, %v1506_v14 }
 0x73d   : > { %vm1513_vm13 = vcmp.eq.s32.totalorder %v15496_v1, %v1509_v19 }
 0x73e   : > { %v16028_v16 = vsel %vm1513_vm13, 3e+38, %v15750_v37 }
 0x73f   : > { %2230 = vmin.xlane.f32.xlu0 %v16028_v16 }
 0x742   : > { %v1491_v17 = vpop.xlane.xlu1 %1490 }
 0x743   : > { %v1492_v30 = vcvt.f32.s32 %v1491_v17 }
 0x745   : > { %v1495_v53 = vadd.s32 %v1494_v18, %v1492_v30 }
 0x747   : > { %vm1512_vm14 = vcmp.eq.s32.totalorder %v15496_v1, %v1495_v53 }
 0x748   : > { %14140 = vmatprep.mubr.msk.f32.mxu0 %vm1512_vm14, %v15455_v61  ;;  %14178 = vmatprep.mubr.msk.f32.mxu1 %vm1512_vm14, %v15455_v61  ;;  %v16040_v37 = vsel %vm1512_vm14, 3e+38, %v15761_v25  ;;  %v14085_v25 = vpop.f32.mrb[0].mxu1 }
 0x749   : > { %2228 = vmin.xlane.f32.xlu1 %v16040_v37  ;;  %14141 = vmatmul.mubr.msk.f32.gmra.mrb[14].mxu0 %vm1513_vm13, %v15455_v61  ;;  %551 = vst.msk [vmem:[%s15518_s10 + $0x8] sm:$0xff] %vm549_vm15, %v14085_v25  ;;  %v525_v33 = vpop.f32.mrb[1].mxu1 }
 0x74a   : > { %14179 = vmatmul.mubr.msk.f32.gmra.mrb[6].mxu1 %vm1513_vm13, %v15455_v61  ;;  %550 = vst.msk [vmem:[%s15518_s10] sm:$0xff] %vm549_vm15, %v525_v33  ;;  %v14088_v34 = vpop.f32.mrb[2].mxu1 }
 0x74b   : > { %553 = vst.msk [vmem:[%s15518_s10 + $0x18] sm:$0xff] %vm549_vm15, %v14088_v34  ;;  %v535_v35 = vpop.f32.mrb[3].mxu1 }
 0x74c   : > { %552 = vst.msk [vmem:[%s15518_s10 + $0x10] sm:$0xff] %vm549_vm15, %v535_v35 }
 0x7a0   : > { %v2225_v56 = vpop.xlane.xlu1 %2224 }
 0x7a1   : > { %vm2232_vm0 = vcmp.le.f32.partialorder %v16009_v51, %v2225_v56  ;;  %v2227_v38 = vpop.xlane.xlu0 %2226 }
 0x7a2   : > { %v16062_v31 = vsel %vm2232_vm0, %v15496_v1, 128  ;;  %vm2233_vm1 = vcmp.le.f32.partialorder %v16014_v54, %v2227_v38 }
 0x7a3   : > { %v16066_v32 = vsel %vm2233_vm1, %v15496_v1, 128  ;;  %v2241_v39 = vshra.s32 %v16062_v31, 16 }
 0x7a4   : > { %v2255_v36 = vshra.s32 %v16066_v32, 16 }
 0x7a5   : > { %v16070_v40 = vcvt.s32.f32 %v2241_v39 }
 0x7a6   : > { %v16072_v42 = vcvt.s32.f32 %v2255_v36 }
 0x7a7   : > { %2244 = vmin.xlane.f32.xlu1 %v16070_v40 }
 0x7a8   : > { %2258 = vmin.xlane.f32.xlu0 %v16072_v42 }
 0x7cc   : > { %v2231_v43 = vpop.xlane.xlu0 %2230 }
 0x7cd   : > { %vm2235_vm2 = vcmp.le.f32.partialorder %v16028_v16, %v2231_v43 }
 0x7ce   : > { %v16078_v46 = vsel %vm2235_vm2, %v15496_v1, 128 }
 0x7cf   : > { %v2283_v48 = vshra.s32 %v16078_v46, 16 }
 0x7d1   : > { %v16081_v50 = vcvt.s32.f32 %v2283_v48 }
 0x7d3   : > { %2286 = vmin.xlane.f32.xlu0 %v16081_v50 }
 0x7d6   : > { %v2229_v52 = vpop.xlane.xlu1 %2228 }
 0x7d7   : > { %vm2234_vm3 = vcmp.le.f32.partialorder %v16040_v37, %v2229_v52 }
 0x7d8   : > { %v16086_v55 = vsel %vm2234_vm3, %v15496_v1, 128 }
 0x7d9   : > { %v2269_v57 = vshra.s32 %v16086_v55, 16 }
 0x7db   : > { %v16089_v58 = vcvt.s32.f32 %v2269_v57 }
 0x7dd   : > { %2272 = vmin.xlane.f32.xlu1 %v16089_v58 }
 0x7e6   : > { %v14139_v60 = vpop.f32.mrb[12].mxu0 }
 0x7e7   : > { %v1745_v63 = vcombine.high %v14139_v60, %v14139_v60  ;;  %v1752_v20 = vrot.slane %v14139_v60, %v15818_v59  ;;  %v14177_v41 = vpop.f32.mrb[4].mxu1  ;;  %v1588_v0 = vpop.f32.mrb[13].mxu0 }
 0x7e8   : > { %v2009_v21 = vcombine.high %v14177_v41, %v14177_v41  ;;  %v2016_v22 = vrot.slane %v14177_v41, %v15818_v59  ;;  %v1696_v44 = vcombine.high %v1588_v0, %v1588_v0  ;;  %v1703_v45 = vrot.slane %v1588_v0, %v15818_v59  ;;  %v1673_v23 = vpop.f32.mrb[5].mxu1 }
 0x7e9   : > { %v1759_v24 = vrot.slane %v1745_v63, %v15818_v59  ;;  %v1760_v28 = vcombine.high %v1752_v20, %v1752_v20  ;;  %v1768_v9 = vrot.slane %v1752_v20, %v15818_v59  ;;  %v1960_v47 = vcombine.high %v1673_v23, %v1673_v23 }
 0x7ea   : > { %v2023_v10 = vrot.slane %v2009_v21, %v15818_v59  ;;  %v2024_v26 = vcombine.high %v2016_v22, %v2016_v22  ;;  %v2032_v11 = vrot.slane %v2016_v22, %v15818_v59  ;;  %v1710_v49 = vrot.slane %v1696_v44, %v15818_v59 }
 0x7eb   : > { %v1761_v12 = vcombine.high %v1759_v24, %v1759_v24  ;;  %v1775_v62 = vrot.slane %v1759_v24, %v15818_v59  ;;  %v1782_v13 = vrot.slane %v1760_v28, %v15818_v59  ;;  %v1790_v14 = vcombine.high %v1768_v9, %v1768_v9  ;;  %1932 = vst.msk [vmem:[%s15529_s13 + $0x81] sm:$0x1] %vm1136_vm5, %v1768_v9 }
 0x7ec   : > { %v2025_v19 = vcombine.high %v2023_v10, %v2023_v10  ;;  %v2039_v15 = vrot.slane %v2023_v10, %v15818_v59  ;;  %v2046_v17 = vrot.slane %v2024_v26, %v15818_v59  ;;  %v2054_v18 = vcombine.high %v2032_v11, %v2032_v11  ;;  %2196 = vst.msk [vmem:[%s15534_s16 + $0x81] sm:$0x1] %vm1401_vm6, %v2032_v11 }
 0x7ed   : > { %v1789_v30 = vrot.slane %v1761_v12, %v15818_v59  ;;  %v1791_v53 = vcombine.high %v1775_v62, %v1775_v62  ;;  %v1792_v25 = vcombine.high %v1782_v13, %v1782_v13  ;;  %1933 = vst.msk [vmem:[%s15529_s13 + $0x91] sm:$0x1] %vm1136_vm5, %v1782_v13  ;;  %1934 = vst.msk [vmem:[%s15529_s13 + $0xa1] sm:$0x1] %vm1136_vm5, %v1790_v14 }
 0x7ee   : > { %1936 = vst.msk [vmem:[%s15529_s13 + $0xc1] sm:$0x1] %vm1136_vm5, %v1775_v62  ;;  %v1711_v33 = vcombine.high %v1703_v45, %v1703_v45  ;;  %v2053_v34 = vrot.slane %v2025_v19, %v15818_v59  ;;  %v2055_v35 = vcombine.high %v2039_v15, %v2039_v15  ;;  %v2056_v56 = vcombine.high %v2046_v17, %v2046_v17 }
 0x7ef   : > { %2197 = vst.msk [vmem:[%s15534_s16 + $0x91] sm:$0x1] %vm1401_vm6, %v2046_v17  ;;  %2198 = vst.msk [vmem:[%s15534_s16 + $0xa1] sm:$0x1] %vm1401_vm6, %v2054_v18  ;;  %v1712_v38 = vcombine.high %v1710_v49, %v1710_v49  ;;  %v1793_v39 = vcombine.high %v1789_v30, %v1789_v30  ;;  %v1719_v36 = vrot.slane %v1703_v45, %v15818_v59 }
 0x7f0   : > { %2200 = vst.msk [vmem:[%s15534_s16 + $0xc1] sm:$0x1] %vm1401_vm6, %v2039_v15  ;;  %v1726_v43 = vrot.slane %v1710_v49, %v15818_v59  ;;  %v1733_v48 = vrot.slane %v1711_v33, %v15818_v59  ;;  %v2057_v52 = vcombine.high %v2053_v34, %v2053_v34  ;;  %2199 = vst.msk [vmem:[%s15534_s16 + $0xb1] sm:$0x1] %vm1401_vm6, %v2056_v56 }
 0x7f1   : > { %1935 = vst.msk [vmem:[%s15529_s13 + $0xb1] sm:$0x1] %vm1136_vm5, %v1792_v25  ;;  %1937 = vst.msk [vmem:[%s15529_s13 + $0xd1] sm:$0x1] %vm1136_vm5, %v1789_v30  ;;  %v1740_v57 = vrot.slane %v1712_v38, %v15818_v59  ;;  %v1967_v60 = vrot.slane %v1673_v23, %v15818_v59  ;;  %v1974_v63 = vrot.slane %v1960_v47, %v15818_v59 }
 0x7f2   : > { %1938 = vst.msk [vmem:[%s15529_s13 + $0xe1] sm:$0x1] %vm1136_vm5, %v1791_v53  ;;  %1939 = vst.msk [vmem:[%s15529_s13 + $0xf1] sm:$0x1] %vm1136_vm5, %v1793_v39  ;;  %v1741_v20 = vcombine.high %v1719_v36, %v1719_v36  ;;  %v1742_v41 = vcombine.high %v1726_v43, %v1726_v43  ;;  %v1743_v0 = vcombine.high %v1733_v48, %v1733_v48 }
 0x7f3   : > { %2201 = vst.msk [vmem:[%s15534_s16 + $0xd1] sm:$0x1] %vm1401_vm6, %v2053_v34  ;;  %2202 = vst.msk [vmem:[%s15534_s16 + $0xe1] sm:$0x1] %vm1401_vm6, %v2055_v35  ;;  %v1744_v21 = vcombine.high %v1740_v57, %v1740_v57  ;;  %v1975_v22 = vcombine.high %v1967_v60, %v1967_v60  ;;  %v1976_v44 = vcombine.high %v1974_v63, %v1974_v63 }
 0x7f4   : > { %1924 = vst.msk [vmem:[%s15529_s13 + $0x1] sm:$0x1] %vm1136_vm5, %v1719_v36  ;;  %1925 = vst.msk [vmem:[%s15529_s13 + $0x11] sm:$0x1] %vm1136_vm5, %v1733_v48  ;;  %v1983_v45 = vrot.slane %v1967_v60, %v15818_v59  ;;  %v1990_v23 = vrot.slane %v1974_v63, %v15818_v59 }
 0x7f5   : > { %1928 = vst.msk [vmem:[%s15529_s13 + $0x41] sm:$0x1] %vm1136_vm5, %v1726_v43  ;;  %1929 = vst.msk [vmem:[%s15529_s13 + $0x51] sm:$0x1] %vm1136_vm5, %v1740_v57  ;;  %v1997_v24 = vrot.slane %v1975_v22, %v15818_v59  ;;  %v2004_v28 = vrot.slane %v1976_v44, %v15818_v59 }
 0x7f6   : > { %2203 = vst.msk [vmem:[%s15534_s16 + $0xf1] sm:$0x1] %vm1401_vm6, %v2057_v52  ;;  %v2005_v9 = vcombine.high %v1983_v45, %v1983_v45  ;;  %2188 = vst.msk [vmem:[%s15534_s16 + $0x1] sm:$0x1] %vm1401_vm6, %v1983_v45  ;;  %v2006_v47 = vcombine.high %v1990_v23, %v1990_v23 }
 0x7f7   : > { %1926 = vst.msk [vmem:[%s15529_s13 + $0x21] sm:$0x1] %vm1136_vm5, %v1741_v20  ;;  %1927 = vst.msk [vmem:[%s15529_s13 + $0x31] sm:$0x1] %vm1136_vm5, %v1743_v0  ;;  %v2007_v10 = vcombine.high %v1997_v24, %v1997_v24  ;;  %v2008_v26 = vcombine.high %v2004_v28, %v2004_v28 }
 0x7f8   : > { %1930 = vst.msk [vmem:[%s15529_s13 + $0x61] sm:$0x1] %vm1136_vm5, %v1742_v41  ;;  %1931 = vst.msk [vmem:[%s15529_s13 + $0x71] sm:$0x1] %vm1136_vm5, %v1744_v21 }
 0x7f9   : > { %2192 = vst.msk [vmem:[%s15534_s16 + $0x41] sm:$0x1] %vm1401_vm6, %v1990_v23  ;;  %2189 = vst.msk [vmem:[%s15534_s16 + $0x11] sm:$0x1] %vm1401_vm6, %v1997_v24 }
 0x7fa   : > { %2190 = vst.msk [vmem:[%s15534_s16 + $0x21] sm:$0x1] %vm1401_vm6, %v2005_v9  ;;  %2193 = vst.msk [vmem:[%s15534_s16 + $0x51] sm:$0x1] %vm1401_vm6, %v2004_v28 }
 0x7fb   : > { %2194 = vst.msk [vmem:[%s15534_s16 + $0x61] sm:$0x1] %vm1401_vm6, %v2006_v47  ;;  %2191 = vst.msk [vmem:[%s15534_s16 + $0x31] sm:$0x1] %vm1401_vm6, %v2007_v10 }
 0x7fc   : > { %2195 = vst.msk [vmem:[%s15534_s16 + $0x71] sm:$0x1] %vm1401_vm6, %v2008_v26 }
 0x81c   : > { %v14142_v11 = vpop.f32.mrb[14].mxu0 }
 0x81d   : > { %v1843_v49 = vcombine.high %v14142_v11, %v14142_v11  ;;  %v1850_v12 = vrot.slane %v14142_v11, %v15818_v59  ;;  %v14180_v62 = vpop.f32.mrb[6].mxu1  ;;  %v1598_v13 = vpop.f32.mrb[15].mxu0 }
 0x81e   : > { %v2107_v14 = vcombine.high %v14180_v62, %v14180_v62  ;;  %v2114_v19 = vrot.slane %v14180_v62, %v15818_v59  ;;  %v1794_v15 = vcombine.high %v1598_v13, %v1598_v13  ;;  %v1801_v17 = vrot.slane %v1598_v13, %v15818_v59  ;;  %v1683_v18 = vpop.f32.mrb[7].mxu1 }
 0x81f   : > { %v1857_v30 = vrot.slane %v1843_v49, %v15818_v59  ;;  %v1858_v53 = vcombine.high %v1850_v12, %v1850_v12  ;;  %v1866_v25 = vrot.slane %v1850_v12, %v15818_v59  ;;  %v2058_v33 = vcombine.high %v1683_v18, %v1683_v18 }
 0x820   : > { %v2121_v34 = vrot.slane %v2107_v14, %v15818_v59  ;;  %v2122_v35 = vcombine.high %v2114_v19, %v2114_v19  ;;  %v2130_v56 = vrot.slane %v2114_v19, %v15818_v59  ;;  %v1808_v38 = vrot.slane %v1794_v15, %v15818_v59 }
 0x821   : > { %v1859_v39 = vcombine.high %v1857_v30, %v1857_v30  ;;  %v1873_v36 = vrot.slane %v1857_v30, %v15818_v59  ;;  %v1880_v43 = vrot.slane %v1858_v53, %v15818_v59  ;;  %v1888_v48 = vcombine.high %v1866_v25, %v1866_v25  ;;  %1948 = vst.msk [vmem:[%s15529_s13 + $0x181] sm:$0x1] %vm1136_vm5, %v1866_v25 }
 0x822   : > { %v2123_v52 = vcombine.high %v2121_v34, %v2121_v34  ;;  %v2137_v57 = vrot.slane %v2121_v34, %v15818_v59  ;;  %v2144_v60 = vrot.slane %v2122_v35, %v15818_v59  ;;  %v2152_v63 = vcombine.high %v2130_v56, %v2130_v56  ;;  %2212 = vst.msk [vmem:[%s15534_s16 + $0x181] sm:$0x1] %vm1401_vm6, %v2130_v56 }
 0x823   : > { %v1887_v20 = vrot.slane %v1859_v39, %v15818_v59  ;;  %v1889_v41 = vcombine.high %v1873_v36, %v1873_v36  ;;  %v1890_v0 = vcombine.high %v1880_v43, %v1880_v43  ;;  %1949 = vst.msk [vmem:[%s15529_s13 + $0x191] sm:$0x1] %vm1136_vm5, %v1880_v43  ;;  %1950 = vst.msk [vmem:[%s15529_s13 + $0x1a1] sm:$0x1] %vm1136_vm5, %v1888_v48  ;;  %v2240_v56 = vand.u32 65535, %v16062_v31 }
 0x824   : > { %1952 = vst.msk [vmem:[%s15529_s13 + $0x1c1] sm:$0x1] %vm1136_vm5, %v1873_v36  ;;  %v1809_v21 = vcombine.high %v1801_v17, %v1801_v17  ;;  %v2151_v22 = vrot.slane %v2123_v52, %v15818_v59  ;;  %v2153_v44 = vcombine.high %v2137_v57, %v2137_v57  ;;  %v2154_v45 = vcombine.high %v2144_v60, %v2144_v60 }
 0x825   : > { %2213 = vst.msk [vmem:[%s15534_s16 + $0x191] sm:$0x1] %vm1401_vm6, %v2144_v60  ;;  %2214 = vst.msk [vmem:[%s15534_s16 + $0x1a1] sm:$0x1] %vm1401_vm6, %v2152_v63  ;;  %v1810_v23 = vcombine.high %v1808_v38, %v1808_v38  ;;  %v1891_v24 = vcombine.high %v1887_v20, %v1887_v20  ;;  %v1817_v28 = vrot.slane %v1801_v17, %v15818_v59  ;;  %v2242_v36 = vcvt.s32.f32 %v2240_v56 }
 0x826   : > { %2216 = vst.msk [vmem:[%s15534_s16 + $0x1c1] sm:$0x1] %vm1401_vm6, %v2137_v57  ;;  %v1824_v9 = vrot.slane %v1808_v38, %v15818_v59  ;;  %v1831_v47 = vrot.slane %v1809_v21, %v15818_v59  ;;  %v2155_v10 = vcombine.high %v2151_v22, %v2151_v22  ;;  %2215 = vst.msk [vmem:[%s15534_s16 + $0x1b1] sm:$0x1] %vm1401_vm6, %v2154_v45  ;;  %v2254_v38 = vand.u32 65535, %v16066_v32 }
 0x827   : > { %1951 = vst.msk [vmem:[%s15529_s13 + $0x1b1] sm:$0x1] %vm1136_vm5, %v1890_v0  ;;  %1953 = vst.msk [vmem:[%s15529_s13 + $0x1d1] sm:$0x1] %vm1136_vm5, %v1887_v20  ;;  %v1838_v26 = vrot.slane %v1810_v23, %v15818_v59  ;;  %v2065_v11 = vrot.slane %v1683_v18, %v15818_v59  ;;  %v2072_v49 = vrot.slane %v2058_v33, %v15818_v59  ;;  %v2282_v60 = vand.u32 65535, %v16078_v46 }
 0x828   : > { %1954 = vst.msk [vmem:[%s15529_s13 + $0x1e1] sm:$0x1] %vm1136_vm5, %v1889_v41  ;;  %1955 = vst.msk [vmem:[%s15529_s13 + $0x1f1] sm:$0x1] %vm1136_vm5, %v1891_v24  ;;  %v1839_v12 = vcombine.high %v1817_v28, %v1817_v28  ;;  %v1840_v62 = vcombine.high %v1824_v9, %v1824_v9  ;;  %v1841_v13 = vcombine.high %v1831_v47, %v1831_v47  ;;  %v2256_v48 = vcvt.s32.f32 %v2254_v38 }
 0x829   : > { %2217 = vst.msk [vmem:[%s15534_s16 + $0x1d1] sm:$0x1] %vm1401_vm6, %v2151_v22  ;;  %2218 = vst.msk [vmem:[%s15534_s16 + $0x1e1] sm:$0x1] %vm1401_vm6, %v2153_v44  ;;  %v1842_v14 = vcombine.high %v1838_v26, %v1838_v26  ;;  %v2073_v19 = vcombine.high %v2065_v11, %v2065_v11  ;;  %v2074_v15 = vcombine.high %v2072_v49, %v2072_v49  ;;  %v2284_v20 = vcvt.s32.f32 %v2282_v60 }
 0x82a   : > { %1940 = vst.msk [vmem:[%s15529_s13 + $0x101] sm:$0x1] %vm1136_vm5, %v1817_v28  ;;  %1941 = vst.msk [vmem:[%s15529_s13 + $0x111] sm:$0x1] %vm1136_vm5, %v1831_v47  ;;  %v2081_v17 = vrot.slane %v2065_v11, %v15818_v59  ;;  %v2088_v18 = vrot.slane %v2072_v49, %v15818_v59  ;;  %v2268_v32 = vand.u32 65535, %v16086_v55 }
 0x82b   : > { %1944 = vst.msk [vmem:[%s15529_s13 + $0x141] sm:$0x1] %vm1136_vm5, %v1824_v9  ;;  %1945 = vst.msk [vmem:[%s15529_s13 + $0x151] sm:$0x1] %vm1136_vm5, %v1838_v26  ;;  %v2095_v30 = vrot.slane %v2073_v19, %v15818_v59  ;;  %v2102_v53 = vrot.slane %v2074_v15, %v15818_v59 }
 0x82c   : > { %2219 = vst.msk [vmem:[%s15534_s16 + $0x1f1] sm:$0x1] %vm1401_vm6, %v2155_v10  ;;  %v2103_v25 = vcombine.high %v2081_v17, %v2081_v17  ;;  %2204 = vst.msk [vmem:[%s15534_s16 + $0x101] sm:$0x1] %vm1401_vm6, %v2081_v17  ;;  %v2104_v33 = vcombine.high %v2088_v18, %v2088_v18  ;;  %v2270_v0 = vcvt.s32.f32 %v2268_v32 }
 0x82d   : > { %1942 = vst.msk [vmem:[%s15529_s13 + $0x121] sm:$0x1] %vm1136_vm5, %v1839_v12  ;;  %1943 = vst.msk [vmem:[%s15529_s13 + $0x131] sm:$0x1] %vm1136_vm5, %v1841_v13  ;;  %v2105_v34 = vcombine.high %v2095_v30, %v2095_v30  ;;  %v2106_v35 = vcombine.high %v2102_v53, %v2102_v53 }
 0x82e   : > { %1946 = vst.msk [vmem:[%s15529_s13 + $0x161] sm:$0x1] %vm1136_vm5, %v1840_v62  ;;  %1947 = vst.msk [vmem:[%s15529_s13 + $0x171] sm:$0x1] %vm1136_vm5, %v1842_v14 }
 0x82f   : > { %2208 = vst.msk [vmem:[%s15534_s16 + $0x141] sm:$0x1] %vm1401_vm6, %v2088_v18  ;;  %2205 = vst.msk [vmem:[%s15534_s16 + $0x111] sm:$0x1] %vm1401_vm6, %v2095_v30 }
 0x830   : > { %2206 = vst.msk [vmem:[%s15534_s16 + $0x121] sm:$0x1] %vm1401_vm6, %v2103_v25  ;;  %2209 = vst.msk [vmem:[%s15534_s16 + $0x151] sm:$0x1] %vm1401_vm6, %v2102_v53 }
 0x831   : > { %2210 = vst.msk [vmem:[%s15534_s16 + $0x161] sm:$0x1] %vm1401_vm6, %v2104_v33  ;;  %2207 = vst.msk [vmem:[%s15534_s16 + $0x131] sm:$0x1] %vm1401_vm6, %v2105_v34 }
 0x832   : > { %2211 = vst.msk [vmem:[%s15534_s16 + $0x171] sm:$0x1] %vm1401_vm6, %v2106_v35 }
 0x834   : > { %v2245_v39 = vpop.xlane.xlu1 %2244 }
 0x835   : > { %v2259_v43 = vpop.xlane.xlu0 %2258  ;;  %vm2246_vm4 = vcmp.eq.f32.partialorder %v16070_v40, %v2245_v39 }
 0x836   : > { %v2247_v52 = vsel %vm2246_vm4, %v2242_v36, inf  ;;  %vm2260_vm7 = vcmp.eq.f32.partialorder %v16072_v42, %v2259_v43  ;;  %v2251_v42 = vcvt.f32.s32 %v2245_v39  ;;  %v2265_v21 = vcvt.f32.s32 %v2259_v43 }
 0x837   : > { %2248 = vmin.xlane.f32.xlu1 %v2247_v52  ;;  %v2261_v57 = vsel %vm2260_vm7, %v2256_v48, inf }
 0x838   : > { %2262 = vmin.xlane.f32.xlu0 %v2261_v57  ;;  %v2252_v44 = vshll.u32 %v2251_v42, 16  ;;  %v2266_v23 = vshll.u32 %v2265_v21, 16 }
 0x860   : > { %v2287_v63 = vpop.xlane.xlu0 %2286 }
 0x861   : > { %vm2288_vm8 = vcmp.eq.f32.partialorder %v16081_v50, %v2287_v63  ;;  %v2293_v9 = vcvt.f32.s32 %v2287_v63 }
 0x862   : > { %v2289_v31 = vsel %vm2288_vm8, %v2284_v20, inf }
 0x863   : > { %2290 = vmin.xlane.f32.xlu0 %v2289_v31  ;;  %v2294_v47 = vshll.u32 %v2293_v9, 16 }
 0x86a   : > { %v2273_v41 = vpop.xlane.xlu1 %2272 }
 0x86b   : > { %vm2274_vm9 = vcmp.eq.f32.partialorder %v16089_v58, %v2273_v41 }
 0x86c   : > { %v2275_v40 = vsel %vm2274_vm9, %v2270_v0, inf }
 0x86d   : > { %2276 = vmin.xlane.f32.xlu1 %v2275_v40 }
 0x8c4   : > { %v2249_v22 = vpop.xlane.xlu1 %2248 }
 0x8c5   : > { %v2250_v45 = vcvt.f32.s32 %v2249_v22  ;;  %v2263_v46 = vpop.xlane.xlu0 %2262 }
 0x8c6   : > { %v2264_v24 = vcvt.f32.s32 %v2263_v46 }
 0x8c7   : > { %v2253_v28 = vadd.s32 %v2252_v44, %v2250_v45 }
 0x8c8   : > { %v2267_v50 = vadd.s32 %v2266_v23, %v2264_v24 }
 0x8c9   : > { %vm2296_vm10 = vcmp.eq.s32.totalorder %v15496_v1, %v2253_v28 }
 0x8ca   : > { %vm2297_vm11 = vcmp.eq.s32.totalorder %v15496_v1, %v2267_v50  ;;  %14183 = vmatprep.mubr.msk.f32.mxu0 %vm2296_vm10, %v15455_v61  ;;  %v16284_v55 = vsel %vm2296_vm10, 3e+38, %v16009_v51 }
 0x8cb   : > { %3010 = vmin.xlane.f32.xlu1 %v16284_v55  ;;  %14184 = vmatmul.mubr.msk.f32.vlgmr.msra.gmra.mrb[16].mxu0 %vm2297_vm11, %v15455_v61  ;;  %v16293_v58 = vsel %vm2297_vm11, 3e+38, %v16014_v54  ;;  %v2279_v54 = vcvt.f32.s32 %v2273_v41 }
 0x8cc   : > { %14924 = vmatpush3.bf16.msra.mxu0 %v15649_v27  ;;  %3012 = vmin.xlane.f32.xlu0 %v16293_v58 }
 0x8cd   : > { %14926 = vmatprep.subr.bf16.mxu0 %v15657_v29  ;;  %v2280_v12 = vshll.u32 %v2279_v54, 16 }
 0x8d0   : > { %14928 = vmatpush3.bf16.msra.mxu0 %v15657_v29 }
 0x8d1   : > { %14930 = vmatprep.subr.bf16.mxu0 %v15663_v3 }
 0x8d4   : > { %14932 = vmatpush3.bf16.msra.mxu0 %v15663_v3 }
 0x8d5   : > { %14934 = vmatprep.subr.bf16.mxu0 %v15669_v4 }
 0x8d8   : > { %14936 = vmatpush3.bf16.msra.mxu0 %v15669_v4 }
 0x8d9   : > { %14938 = vmatprep.subr.bf16.mxu0 %v15675_v5 }
 0x8dc   : > { %14940 = vmatpush3.bf16.msra.mxu0 %v15675_v5 }
 0x8dd   : > { %14942 = vmatprep.subr.bf16.mxu0 %v15681_v6 }
 0x8e0   : > { %14944 = vmatpush3.bf16.msra.mxu0 %v15681_v6 }
 0x8e1   : > { %14946 = vmatprep.subr.bf16.mxu0 %v15686_v7 }
 0x8e4   : > { %14948 = vmatpush3.bf16.msra.mxu0 %v15686_v7 }
 0x8e5   : > { %14950 = vmatprep.subr.bf16.mxu0 %v15692_v8 }
 0x8e8   : > { %14952 = vmatpush3.bf16.msra.mxu0 %v15692_v8 }
 0x8e9   : > { %14227 = vmatprep.subr.mxu0 %v15504_v2 }
 0x8f0   : > { %v2291_v51 = vpop.xlane.xlu0 %2290 }
 0x8f1   : > { %v2292_v10 = vcvt.f32.s32 %v2291_v51 }
 0x8f3   : > { %v2295_v26 = vadd.s32 %v2294_v47, %v2292_v10 }
 0x8f5   : > { %vm2299_vm12 = vcmp.eq.s32.totalorder %v15496_v1, %v2295_v26 }
 0x8f6   : > { %v16305_v11 = vsel %vm2299_vm12, 3e+38, %v16028_v16 }
 0x8f7   : > { %3016 = vmin.xlane.f32.xlu0 %v16305_v11 }
 0x8fa   : > { %v2277_v49 = vpop.xlane.xlu1 %2276 }
 0x8fb   : > { %v2278_v62 = vcvt.f32.s32 %v2277_v49 }
 0x8fd   : > { %v2281_v13 = vadd.s32 %v2280_v12, %v2278_v62 }
 0x8ff   : > { %vm2298_vm13 = vcmp.eq.s32.totalorder %v15496_v1, %v2281_v13 }
 0x900   : > { %14186 = vmatprep.mubr.msk.f32.mxu0 %vm2298_vm13, %v15455_v61  ;;  %v16316_v16 = vsel %vm2298_vm13, 3e+38, %v16040_v37 }
 0x901   : > { %3014 = vmin.xlane.f32.xlu1 %v16316_v16  ;;  %14187 = vmatmul.mubr.msk.f32.gmra.mrb[18].mxu0 %vm2299_vm12, %v15455_v61 }
 0x902   : > { %14221 = vmatprep.mubr.msk.f32.mxu0 %vm2296_vm10, %v15455_v61 }
 0x905   : > { %14222 = vmatmul.mubr.msk.f32.vlgmr.msra.gmra.mrb[20].mxu0 %vm2297_vm11, %v15455_v61 }
 0x906   : > { %14224 = vmatprep.mubr.msk.f32.mxu0 %vm2298_vm13, %v15455_v61  ;;  %14228 = vmatpush3.xpose.msra.mxu0 %v15504_v2 }
 0x907   : > { %14273 = vmatprep.subr.mxu0 %v15504_v2 }
 0x909   : > { %14225 = vmatmul.mubr.msk.f32.gmra.mrb[22].mxu0 %vm2299_vm12, %v15455_v61 }
 0x958   : > { %v3011_v37 = vpop.xlane.xlu1 %3010 }
 0x959   : > { %vm3018_vm14 = vcmp.le.f32.partialorder %v16284_v55, %v3011_v37  ;;  %v3013_v14 = vpop.xlane.xlu0 %3012 }
 0x95a   : > { %v16342_v19 = vsel %vm3018_vm14, %v15496_v1, 128  ;;  %vm3019_vm15 = vcmp.le.f32.partialorder %v16293_v58, %v3013_v14 }
 0x95b   : > { %v16346_v15 = vsel %vm3019_vm15, %v15496_v1, 128  ;;  %v3027_v17 = vshra.s32 %v16342_v19, 16 }
 0x95c   : > { %v3041_v18 = vshra.s32 %v16346_v15, 16 }
 0x95d   : > { %v16350_v30 = vcvt.s32.f32 %v3027_v17 }
 0x95e   : > { %v16352_v53 = vcvt.s32.f32 %v3041_v18 }
 0x95f   : > { %3030 = vmin.xlane.f32.xlu1 %v16350_v30 }
 0x960   : > { %3044 = vmin.xlane.f32.xlu0 %v16352_v53 }
 0x984   : > { %v3017_v25 = vpop.xlane.xlu0 %3016 }
 0x985   : > { %vm3021_vm0 = vcmp.le.f32.partialorder %v16305_v11, %v3017_v25 }
 0x986   : > { %v16358_v33 = vsel %vm3021_vm0, %v15496_v1, 128 }
 0x987   : > { %v3069_v34 = vshra.s32 %v16358_v33, 16 }
 0x989   : > { %v16361_v35 = vcvt.s32.f32 %v3069_v34 }
 0x98b   : > { %3072 = vmin.xlane.f32.xlu0 %v16361_v35 }
 0x98e   : > { %v3015_v56 = vpop.xlane.xlu1 %3014 }
 0x98f   : > { %vm3020_vm1 = vcmp.le.f32.partialorder %v16316_v16, %v3015_v56 }
 0x990   : > { %v16366_v38 = vsel %vm3020_vm1, %v15496_v1, 128 }
 0x991   : > { %v3055_v39 = vshra.s32 %v16366_v38, 16 }
 0x993   : > { %v16369_v36 = vcvt.s32.f32 %v3055_v39 }
 0x995   : > { %3058 = vmin.xlane.f32.xlu1 %v16369_v36 }
 0x99e   : > { %v14185_v43 = vpop.f32.mrb[16].mxu0 }
 0x99f   : > { %v2531_v48 = vcombine.high %v14185_v43, %v14185_v43  ;;  %v2538_v52 = vrot.slane %v14185_v43, %v15818_v59  ;;  %v2374_v57 = vpop.f32.mrb[17].mxu0 }
 0x9a0   : > { %v2482_v60 = vcombine.high %v2374_v57, %v2374_v57  ;;  %v2489_v63 = vrot.slane %v2374_v57, %v15818_v59 }
 0x9a1   : > { %v2545_v20 = vrot.slane %v2531_v48, %v15818_v59  ;;  %v2546_v31 = vcombine.high %v2538_v52, %v2538_v52  ;;  %v2554_v32 = vrot.slane %v2538_v52, %v15818_v59 }
 0x9a2   : > { %v2496_v41 = vrot.slane %v2482_v60, %v15818_v59  ;;  %v2497_v0 = vcombine.high %v2489_v63, %v2489_v63  ;;  %v2505_v40 = vrot.slane %v2489_v63, %v15818_v59 }
 0x9a3   : > { %v2547_v42 = vcombine.high %v2545_v20, %v2545_v20  ;;  %v2561_v21 = vrot.slane %v2545_v20, %v15818_v59  ;;  %v2568_v22 = vrot.slane %v2546_v31, %v15818_v59  ;;  %v2576_v44 = vcombine.high %v2554_v32, %v2554_v32  ;;  %2718 = vst.msk [vmem:[%s15529_s13 + $0x82] sm:$0x1] %vm1136_vm5, %v2554_v32 }
 0x9a4   : > { %v2498_v45 = vcombine.high %v2496_v41, %v2496_v41  ;;  %v2512_v46 = vrot.slane %v2496_v41, %v15818_v59  ;;  %v2519_v23 = vrot.slane %v2497_v0, %v15818_v59  ;;  %v2527_v24 = vcombine.high %v2505_v40, %v2505_v40  ;;  %2710 = vst.msk [vmem:[%s15529_s13 + $0x2] sm:$0x1] %vm1136_vm5, %v2505_v40 }
 0x9a5   : > { %v2575_v28 = vrot.slane %v2547_v42, %v15818_v59  ;;  %v2577_v50 = vcombine.high %v2561_v21, %v2561_v21  ;;  %v2578_v9 = vcombine.high %v2568_v22, %v2568_v22  ;;  %2719 = vst.msk [vmem:[%s15529_s13 + $0x92] sm:$0x1] %vm1136_vm5, %v2568_v22  ;;  %2720 = vst.msk [vmem:[%s15529_s13 + $0xa2] sm:$0x1] %vm1136_vm5, %v2576_v44 }
 0x9a6   : > { %2722 = vst.msk [vmem:[%s15529_s13 + $0xc2] sm:$0x1] %vm1136_vm5, %v2561_v21  ;;  %v2526_v51 = vrot.slane %v2498_v45, %v15818_v59  ;;  %v2528_v47 = vcombine.high %v2512_v46, %v2512_v46  ;;  %v2529_v10 = vcombine.high %v2519_v23, %v2519_v23  ;;  %2711 = vst.msk [vmem:[%s15529_s13 + $0x12] sm:$0x1] %vm1136_vm5, %v2519_v23 }
 0x9a7   : > { %2712 = vst.msk [vmem:[%s15529_s13 + $0x22] sm:$0x1] %vm1136_vm5, %v2527_v24  ;;  %2714 = vst.msk [vmem:[%s15529_s13 + $0x42] sm:$0x1] %vm1136_vm5, %v2512_v46  ;;  %v2579_v26 = vcombine.high %v2575_v28, %v2575_v28 }
 0x9a8   : > { %2721 = vst.msk [vmem:[%s15529_s13 + $0xb2] sm:$0x1] %vm1136_vm5, %v2578_v9  ;;  %2723 = vst.msk [vmem:[%s15529_s13 + $0xd2] sm:$0x1] %vm1136_vm5, %v2575_v28  ;;  %v2530_v54 = vcombine.high %v2526_v51, %v2526_v51 }
 0x9a9   : > { %2724 = vst.msk [vmem:[%s15529_s13 + $0xe2] sm:$0x1] %vm1136_vm5, %v2577_v50  ;;  %2713 = vst.msk [vmem:[%s15529_s13 + $0x32] sm:$0x1] %vm1136_vm5, %v2529_v10 }
 0x9aa   : > { %2715 = vst.msk [vmem:[%s15529_s13 + $0x52] sm:$0x1] %vm1136_vm5, %v2526_v51  ;;  %2716 = vst.msk [vmem:[%s15529_s13 + $0x62] sm:$0x1] %vm1136_vm5, %v2528_v47 }
 0x9ab   : > { %2725 = vst.msk [vmem:[%s15529_s13 + $0xf2] sm:$0x1] %vm1136_vm5, %v2579_v26  ;;  %2717 = vst.msk [vmem:[%s15529_s13 + $0x72] sm:$0x1] %vm1136_vm5, %v2530_v54 }
 0x9d4   : > { %v14188_v49 = vpop.f32.mrb[18].mxu0 }
 0x9d5   : > { %v2629_v12 = vcombine.high %v14188_v49, %v14188_v49  ;;  %v2636_v62 = vrot.slane %v14188_v49, %v15818_v59  ;;  %v2384_v13 = vpop.f32.mrb[19].mxu0 }
 0x9d6   : > { %v2580_v37 = vcombine.high %v2384_v13, %v2384_v13  ;;  %v2587_v14 = vrot.slane %v2384_v13, %v15818_v59 }
 0x9d7   : > { %v2643_v17 = vrot.slane %v2629_v12, %v15818_v59  ;;  %v2644_v18 = vcombine.high %v2636_v62, %v2636_v62  ;;  %v2652_v25 = vrot.slane %v2636_v62, %v15818_v59 }
 0x9d8   : > { %v2594_v34 = vrot.slane %v2580_v37, %v15818_v59  ;;  %v2595_v56 = vcombine.high %v2587_v14, %v2587_v14  ;;  %v2603_v39 = vrot.slane %v2587_v14, %v15818_v59  ;;  %v14223_v45 = vpop.f32.mrb[20].mxu0 }
 0x9d9   : > { %v2645_v43 = vcombine.high %v2643_v17, %v2643_v17  ;;  %v2659_v48 = vrot.slane %v2643_v17, %v15818_v59  ;;  %v2666_v52 = vrot.slane %v2644_v18, %v15818_v59  ;;  %v2674_v57 = vcombine.high %v2652_v25, %v2652_v25  ;;  %2734 = vst.msk [vmem:[%s15529_s13 + $0x182] sm:$0x1] %vm1136_vm5, %v2652_v25  ;;  %v2459_v24 = vpop.f32.mrb[21].mxu0 }
 0x9da   : > { %v2596_v60 = vcombine.high %v2594_v34, %v2594_v34  ;;  %v2610_v63 = vrot.slane %v2594_v34, %v15818_v59  ;;  %v2617_v20 = vrot.slane %v2595_v56, %v15818_v59  ;;  %v2625_v31 = vcombine.high %v2603_v39, %v2603_v39  ;;  %2726 = vst.msk [vmem:[%s15529_s13 + $0x102] sm:$0x1] %vm1136_vm5, %v2603_v39 }
 0x9db   : > { %v2673_v32 = vrot.slane %v2645_v43, %v15818_v59  ;;  %v2675_v41 = vcombine.high %v2659_v48, %v2659_v48  ;;  %v2676_v0 = vcombine.high %v2666_v52, %v2666_v52  ;;  %2735 = vst.msk [vmem:[%s15529_s13 + $0x192] sm:$0x1] %vm1136_vm5, %v2666_v52  ;;  %2736 = vst.msk [vmem:[%s15529_s13 + $0x1a2] sm:$0x1] %vm1136_vm5, %v2674_v57 }
 0x9dc   : > { %2738 = vst.msk [vmem:[%s15529_s13 + $0x1c2] sm:$0x1] %vm1136_vm5, %v2659_v48  ;;  %v2624_v40 = vrot.slane %v2596_v60, %v15818_v59  ;;  %v2626_v42 = vcombine.high %v2610_v63, %v2610_v63  ;;  %v2627_v21 = vcombine.high %v2617_v20, %v2617_v20  ;;  %2727 = vst.msk [vmem:[%s15529_s13 + $0x112] sm:$0x1] %vm1136_vm5, %v2617_v20  ;;  %v14226_v49 = vpop.f32.mrb[22].mxu0 }
 0x9dd   : > { %2728 = vst.msk [vmem:[%s15529_s13 + $0x122] sm:$0x1] %vm1136_vm5, %v2625_v31  ;;  %2730 = vst.msk [vmem:[%s15529_s13 + $0x142] sm:$0x1] %vm1136_vm5, %v2610_v63  ;;  %v2677_v22 = vcombine.high %v2673_v32, %v2673_v32  ;;  %v2795_v46 = vcombine.high %v14223_v45, %v14223_v45  ;;  %v2802_v23 = vrot.slane %v14223_v45, %v15818_v59  ;;  %v2469_v14 = vpop.f32.mrb[23].mxu0 }
 0x9de   : > { %2737 = vst.msk [vmem:[%s15529_s13 + $0x1b2] sm:$0x1] %vm1136_vm5, %v2676_v0  ;;  %2739 = vst.msk [vmem:[%s15529_s13 + $0x1d2] sm:$0x1] %vm1136_vm5, %v2673_v32  ;;  %v2628_v44 = vcombine.high %v2624_v40, %v2624_v40  ;;  %v2746_v28 = vcombine.high %v2459_v24, %v2459_v24  ;;  %v2753_v50 = vrot.slane %v2459_v24, %v15818_v59 }
 0x9df   : > { %2740 = vst.msk [vmem:[%s15529_s13 + $0x1e2] sm:$0x1] %vm1136_vm5, %v2675_v41  ;;  %2729 = vst.msk [vmem:[%s15529_s13 + $0x132] sm:$0x1] %vm1136_vm5, %v2627_v21  ;;  %v2809_v9 = vrot.slane %v2795_v46, %v15818_v59  ;;  %v2810_v51 = vcombine.high %v2802_v23, %v2802_v23  ;;  %v2818_v47 = vrot.slane %v2802_v23, %v15818_v59 }
 0x9e0   : > { %2731 = vst.msk [vmem:[%s15529_s13 + $0x152] sm:$0x1] %vm1136_vm5, %v2624_v40  ;;  %2732 = vst.msk [vmem:[%s15529_s13 + $0x162] sm:$0x1] %vm1136_vm5, %v2626_v42  ;;  %v2760_v10 = vrot.slane %v2746_v28, %v15818_v59  ;;  %v2761_v26 = vcombine.high %v2753_v50, %v2753_v50  ;;  %v2769_v54 = vrot.slane %v2753_v50, %v15818_v59 }
 0x9e1   : > { %2741 = vst.msk [vmem:[%s15529_s13 + $0x1f2] sm:$0x1] %vm1136_vm5, %v2677_v22  ;;  %2733 = vst.msk [vmem:[%s15529_s13 + $0x172] sm:$0x1] %vm1136_vm5, %v2628_v44  ;;  %v2811_v12 = vcombine.high %v2809_v9, %v2809_v9  ;;  %v2825_v62 = vrot.slane %v2809_v9, %v15818_v59  ;;  %v2832_v13 = vrot.slane %v2810_v51, %v15818_v59 }
 0x9e2   : > { %v2840_v37 = vcombine.high %v2818_v47, %v2818_v47  ;;  %2982 = vst.msk [vmem:[%s15534_s16 + $0x82] sm:$0x1] %vm1401_vm6, %v2818_v47  ;;  %v2762_v17 = vcombine.high %v2760_v10, %v2760_v10  ;;  %v2776_v18 = vrot.slane %v2760_v10, %v15818_v59  ;;  %v2783_v25 = vrot.slane %v2761_v26, %v15818_v59 }
 0x9e3   : > { %v2791_v34 = vcombine.high %v2769_v54, %v2769_v54  ;;  %2974 = vst.msk [vmem:[%s15534_s16 + $0x2] sm:$0x1] %vm1401_vm6, %v2769_v54  ;;  %v2839_v56 = vrot.slane %v2811_v12, %v15818_v59  ;;  %v2841_v39 = vcombine.high %v2825_v62, %v2825_v62  ;;  %v2842_v43 = vcombine.high %v2832_v13, %v2832_v13 }
 0x9e4   : > { %2983 = vst.msk [vmem:[%s15534_s16 + $0x92] sm:$0x1] %vm1401_vm6, %v2832_v13  ;;  %2984 = vst.msk [vmem:[%s15534_s16 + $0xa2] sm:$0x1] %vm1401_vm6, %v2840_v37  ;;  %v2893_v48 = vcombine.high %v14226_v49, %v14226_v49  ;;  %v2790_v52 = vrot.slane %v2762_v17, %v15818_v59  ;;  %v2792_v57 = vcombine.high %v2776_v18, %v2776_v18  ;;  %v3026_v37 = vand.u32 65535, %v16342_v19 }
 0x9e5   : > { %2986 = vst.msk [vmem:[%s15534_s16 + $0xc2] sm:$0x1] %vm1401_vm6, %v2825_v62  ;;  %v2793_v60 = vcombine.high %v2783_v25, %v2783_v25  ;;  %2975 = vst.msk [vmem:[%s15534_s16 + $0x12] sm:$0x1] %vm1401_vm6, %v2783_v25  ;;  %v2900_v63 = vrot.slane %v14226_v49, %v15818_v59  ;;  %v2843_v20 = vcombine.high %v2839_v56, %v2839_v56 }
 0x9e6   : > { %2976 = vst.msk [vmem:[%s15534_s16 + $0x22] sm:$0x1] %vm1401_vm6, %v2791_v34  ;;  %2978 = vst.msk [vmem:[%s15534_s16 + $0x42] sm:$0x1] %vm1401_vm6, %v2776_v18  ;;  %v2907_v31 = vrot.slane %v2893_v48, %v15818_v59  ;;  %v2844_v32 = vcombine.high %v2469_v14, %v2469_v14  ;;  %v2851_v41 = vrot.slane %v2469_v14, %v15818_v59  ;;  %v3040_v14 = vand.u32 65535, %v16346_v15 }
 0x9e7   : > { %2985 = vst.msk [vmem:[%s15534_s16 + $0xb2] sm:$0x1] %vm1401_vm6, %v2842_v43  ;;  %2987 = vst.msk [vmem:[%s15534_s16 + $0xd2] sm:$0x1] %vm1401_vm6, %v2839_v56  ;;  %v2794_v0 = vcombine.high %v2790_v52, %v2790_v52  ;;  %v2908_v40 = vcombine.high %v2900_v63, %v2900_v63  ;;  %v2916_v42 = vrot.slane %v2900_v63, %v15818_v59  ;;  %v3028_v18 = vcvt.s32.f32 %v3026_v37 }
 0x9e8   : > { %2988 = vst.msk [vmem:[%s15534_s16 + $0xe2] sm:$0x1] %vm1401_vm6, %v2841_v39  ;;  %2977 = vst.msk [vmem:[%s15534_s16 + $0x32] sm:$0x1] %vm1401_vm6, %v2793_v60  ;;  %v2909_v21 = vcombine.high %v2907_v31, %v2907_v31  ;;  %v2923_v22 = vrot.slane %v2907_v31, %v15818_v59  ;;  %v2858_v44 = vrot.slane %v2844_v32, %v15818_v59  ;;  %v3042_v34 = vcvt.s32.f32 %v3040_v14 }
 0x9e9   : > { %2979 = vst.msk [vmem:[%s15534_s16 + $0x52] sm:$0x1] %vm1401_vm6, %v2790_v52  ;;  %2980 = vst.msk [vmem:[%s15534_s16 + $0x62] sm:$0x1] %vm1401_vm6, %v2792_v57  ;;  %v2859_v45 = vcombine.high %v2851_v41, %v2851_v41  ;;  %v2930_v46 = vrot.slane %v2908_v40, %v15818_v59  ;;  %v2938_v23 = vcombine.high %v2916_v42, %v2916_v42  ;;  %v3068_v43 = vand.u32 65535, %v16358_v33 }
 0x9ea   : > { %2989 = vst.msk [vmem:[%s15534_s16 + $0xf2] sm:$0x1] %vm1401_vm6, %v2843_v20  ;;  %2981 = vst.msk [vmem:[%s15534_s16 + $0x72] sm:$0x1] %vm1401_vm6, %v2794_v0  ;;  %v2867_v24 = vrot.slane %v2851_v41, %v15818_v59  ;;  %v2937_v28 = vrot.slane %v2909_v21, %v15818_v59  ;;  %v2939_v50 = vcombine.high %v2923_v22, %v2923_v22  ;;  %v3054_v15 = vand.u32 65535, %v16366_v38 }
 0x9eb   : > { %2998 = vst.msk [vmem:[%s15534_s16 + $0x182] sm:$0x1] %vm1401_vm6, %v2916_v42  ;;  %3002 = vst.msk [vmem:[%s15534_s16 + $0x1c2] sm:$0x1] %vm1401_vm6, %v2923_v22  ;;  %v2860_v9 = vcombine.high %v2858_v44, %v2858_v44  ;;  %v2874_v51 = vrot.slane %v2858_v44, %v15818_v59  ;;  %v2940_v47 = vcombine.high %v2930_v46, %v2930_v46  ;;  %v3070_v52 = vcvt.s32.f32 %v3068_v43 }
 0x9ec   : > { %2999 = vst.msk [vmem:[%s15534_s16 + $0x192] sm:$0x1] %vm1401_vm6, %v2930_v46  ;;  %3000 = vst.msk [vmem:[%s15534_s16 + $0x1a2] sm:$0x1] %vm1401_vm6, %v2938_v23  ;;  %v2881_v10 = vrot.slane %v2859_v45, %v15818_v59  ;;  %v2889_v26 = vcombine.high %v2867_v24, %v2867_v24  ;;  %v2941_v54 = vcombine.high %v2937_v28, %v2937_v28  ;;  %v3031_v17 = vpop.xlane.xlu1 %3030  ;;  %v3056_v60 = vcvt.s32.f32 %v3054_v15 }
 0x9ed   : > { %2990 = vst.msk [vmem:[%s15534_s16 + $0x102] sm:$0x1] %vm1401_vm6, %v2867_v24  ;;  %3003 = vst.msk [vmem:[%s15534_s16 + $0x1d2] sm:$0x1] %vm1401_vm6, %v2937_v28  ;;  %v2888_v49 = vrot.slane %v2860_v9, %v15818_v59  ;;  %v2890_v12 = vcombine.high %v2874_v51, %v2874_v51  ;;  %v3045_v25 = vpop.xlane.xlu0 %3044  ;;  %vm3032_vm2 = vcmp.eq.f32.partialorder %v16350_v30, %v3031_v17 }
 0x9ee   : > { %3004 = vst.msk [vmem:[%s15534_s16 + $0x1e2] sm:$0x1] %vm1401_vm6, %v2939_v50  ;;  %2994 = vst.msk [vmem:[%s15534_s16 + $0x142] sm:$0x1] %vm1401_vm6, %v2874_v51  ;;  %v2891_v62 = vcombine.high %v2881_v10, %v2881_v10  ;;  %v3033_v56 = vsel %vm3032_vm2, %v3028_v18, inf  ;;  %vm3046_vm3 = vcmp.eq.f32.partialorder %v16352_v53, %v3045_v25  ;;  %v3037_v53 = vcvt.f32.s32 %v3031_v17 }
 0x9ef   : > { %3001 = vst.msk [vmem:[%s15534_s16 + $0x1b2] sm:$0x1] %vm1401_vm6, %v2940_v47  ;;  %2991 = vst.msk [vmem:[%s15534_s16 + $0x112] sm:$0x1] %vm1401_vm6, %v2881_v10  ;;  %v2892_v13 = vcombine.high %v2888_v49, %v2888_v49  ;;  %3034 = vmin.xlane.f32.xlu1 %v3033_v56  ;;  %v3047_v39 = vsel %vm3046_vm3, %v3042_v34, inf  ;;  %v3051_v63 = vcvt.f32.s32 %v3045_v25 }
 0x9f0   : > { %2992 = vst.msk [vmem:[%s15534_s16 + $0x122] sm:$0x1] %vm1401_vm6, %v2889_v26  ;;  %3005 = vst.msk [vmem:[%s15534_s16 + $0x1f2] sm:$0x1] %vm1401_vm6, %v2941_v54  ;;  %3048 = vmin.xlane.f32.xlu0 %v3047_v39  ;;  %v3038_v31 = vshll.u32 %v3037_v53, 16 }
 0x9f1   : > { %2995 = vst.msk [vmem:[%s15534_s16 + $0x152] sm:$0x1] %vm1401_vm6, %v2888_v49  ;;  %2996 = vst.msk [vmem:[%s15534_s16 + $0x162] sm:$0x1] %vm1401_vm6, %v2890_v12  ;;  %v3052_v41 = vshll.u32 %v3051_v63, 16 }
 0x9f2   : > { %2993 = vst.msk [vmem:[%s15534_s16 + $0x132] sm:$0x1] %vm1401_vm6, %v2891_v62  ;;  %2997 = vst.msk [vmem:[%s15534_s16 + $0x172] sm:$0x1] %vm1401_vm6, %v2892_v13 }
 0xa18   : > { %v3073_v48 = vpop.xlane.xlu0 %3072 }
 0xa19   : > { %vm3074_vm4 = vcmp.eq.f32.partialorder %v16361_v35, %v3073_v48  ;;  %v3079_v42 = vcvt.f32.s32 %v3073_v48 }
 0xa1a   : > { %v3075_v19 = vsel %vm3074_vm4, %v3070_v52, inf }
 0xa1b   : > { %3076 = vmin.xlane.f32.xlu0 %v3075_v19  ;;  %v3080_v21 = vshll.u32 %v3079_v42, 16 }
 0xa22   : > { %v3059_v57 = vpop.xlane.xlu1 %3058 }
 0xa23   : > { %vm3060_vm7 = vcmp.eq.f32.partialorder %v16369_v36, %v3059_v57 }
 0xa24   : > { %v3061_v30 = vsel %vm3060_vm7, %v3056_v60, inf }
 0xa25   : > { %3062 = vmin.xlane.f32.xlu1 %v3061_v30 }
 0xa7c   : > { %v3035_v20 = vpop.xlane.xlu1 %3034 }
 0xa7d   : > { %v3036_v32 = vcvt.f32.s32 %v3035_v20  ;;  %v3049_v33 = vpop.xlane.xlu0 %3048 }
 0xa7e   : > { %v3050_v0 = vcvt.f32.s32 %v3049_v33 }
 0xa7f   : > { %v3039_v40 = vadd.s32 %v3038_v31, %v3036_v32 }
 0xa80   : > { %v3053_v35 = vadd.s32 %v3052_v41, %v3050_v0 }
 0xa81   : > { %vm3082_vm8 = vcmp.eq.s32.totalorder %v15496_v1, %v3039_v40 }
 0xa82   : > { %vm3083_vm9 = vcmp.eq.s32.totalorder %v15496_v1, %v3053_v35  ;;  %14229 = vmatprep.mubr.msk.f32.mxu0 %vm3082_vm8, %v15455_v61  ;;  %14267 = vmatprep.mubr.msk.f32.mxu1 %vm3082_vm8, %v15455_v61  ;;  %v16561_v38 = vsel %vm3082_vm8, 3e+38, %v16284_v55 }
 0xa83   : > { %3796 = vmin.xlane.f32.xlu1 %v16561_v38  ;;  %14230 = vmatmul.mubr.msk.f32.vlgmr.msra.gmra.mrb[24].mxu0 %vm3083_vm9, %v15455_v61  ;;  %v16566_v36 = vsel %vm3083_vm9, 3e+38, %v16293_v58  ;;  %v3065_v58 = vcvt.f32.s32 %v3059_v57 }
 0xa84   : > { %14268 = vmatmul.mubr.msk.f32.vlgmr.msra.gmra.mrb[8].mxu1 %vm3083_vm9, %v15455_v61  ;;  %3798 = vmin.xlane.f32.xlu0 %v16566_v36 }
 0xa85   : > { %14274 = vmatpush3.xpose.msra.mxu0 %v15504_v2  ;;  %14320 = vmatpush3.xpose.msra.mxu1 %v15504_v2  ;;  %v3066_v23 = vshll.u32 %v3065_v58, 16 }
 0xa86   : > { %14986 = vmatprep.subr.bf16.mxu0 %v15649_v27  ;;  %15018 = vmatprep.subr.bf16.mxu1 %v15649_v27 }
 0xaa8   : > { %v3077_v55 = vpop.xlane.xlu0 %3076 }
 0xaa9   : > { %v3078_v22 = vcvt.f32.s32 %v3077_v55 }
 0xaab   : > { %v3081_v44 = vadd.s32 %v3080_v21, %v3078_v22 }
 0xaad   : > { %vm3085_vm10 = vcmp.eq.s32.totalorder %v15496_v1, %v3081_v44 }
 0xaae   : > { %v16576_v45 = vsel %vm3085_vm10, 3e+38, %v16305_v11 }
 0xaaf   : > { %3802 = vmin.xlane.f32.xlu0 %v16576_v45 }
 0xab2   : > { %v3063_v46 = vpop.xlane.xlu1 %3062 }
 0xab3   : > { %v3064_v24 = vcvt.f32.s32 %v3063_v46 }
 0xab5   : > { %v3067_v28 = vadd.s32 %v3066_v23, %v3064_v24 }
 0xab7   : > { %vm3084_vm11 = vcmp.eq.s32.totalorder %v15496_v1, %v3067_v28 }
 0xab8   : > { %14232 = vmatprep.mubr.msk.f32.mxu0 %vm3084_vm11, %v15455_v61  ;;  %14270 = vmatprep.mubr.msk.f32.mxu1 %vm3084_vm11, %v15455_v61  ;;  %v16583_v50 = vsel %vm3084_vm11, 3e+38, %v16316_v16 }
 0xab9   : > { %3800 = vmin.xlane.f32.xlu1 %v16583_v50  ;;  %14233 = vmatmul.mubr.msk.f32.gmra.mrb[26].mxu0 %vm3085_vm10, %v15455_v61 }
 0xaba   : > { %14271 = vmatmul.mubr.msk.f32.gmra.mrb[10].mxu1 %vm3085_vm10, %v15455_v61 }
 0xb10   : > { %v3797_v11 = vpop.xlane.xlu1 %3796 }
 0xb11   : > { %vm3804_vm12 = vcmp.le.f32.partialorder %v16561_v38, %v3797_v11  ;;  %v3799_v9 = vpop.xlane.xlu0 %3798 }
 0xb12   : > { %v16590_v51 = vsel %vm3804_vm12, %v15496_v1, 128  ;;  %vm3805_vm13 = vcmp.le.f32.partialorder %v16566_v36, %v3799_v9 }
 0xb13   : > { %v16594_v47 = vsel %vm3805_vm13, %v15496_v1, 128  ;;  %v3813_v16 = vshra.s32 %v16590_v51, 16 }
 0xb14   : > { %v3827_v10 = vshra.s32 %v16594_v47, 16 }
 0xb15   : > { %v16598_v26 = vcvt.s32.f32 %v3813_v16 }
 0xb16   : > { %v16600_v54 = vcvt.s32.f32 %v3827_v10 }
 0xb17   : > { %3816 = vmin.xlane.f32.xlu1 %v16598_v26 }
 0xb18   : > { %3830 = vmin.xlane.f32.xlu0 %v16600_v54 }
 0xb3c   : > { %v3803_v49 = vpop.xlane.xlu0 %3802 }
 0xb3d   : > { %vm3807_vm14 = vcmp.le.f32.partialorder %v16576_v45, %v3803_v49 }
 0xb3e   : > { %v16606_v12 = vsel %vm3807_vm14, %v15496_v1, 128 }
 0xb3f   : > { %v3855_v62 = vshra.s32 %v16606_v12, 16 }
 0xb41   : > { %v16609_v13 = vcvt.s32.f32 %v3855_v62 }
 0xb43   : > { %3858 = vmin.xlane.f32.xlu0 %v16609_v13 }
 0xb46   : > { %v3801_v37 = vpop.xlane.xlu1 %3800 }
 0xb47   : > { %vm3806_vm15 = vcmp.le.f32.partialorder %v16583_v50, %v3801_v37 }
 0xb48   : > { %v16614_v14 = vsel %vm3806_vm15, %v15496_v1, 128 }
 0xb49   : > { %v3841_v17 = vshra.s32 %v16614_v14, 16 }
 0xb4b   : > { %v16617_v18 = vcvt.s32.f32 %v3841_v17 }
 0xb4d   : > { %3844 = vmin.xlane.f32.xlu1 %v16617_v18 }
 0xb56   : > { %v14231_v25 = vpop.f32.mrb[24].mxu0 }
 0xb57   : > { %v3317_v34 = vcombine.high %v14231_v25, %v14231_v25  ;;  %v3324_v56 = vrot.slane %v14231_v25, %v15818_v59  ;;  %v14269_v39 = vpop.f32.mrb[8].mxu1  ;;  %v3160_v43 = vpop.f32.mrb[25].mxu0 }
 0xb58   : > { %v3581_v48 = vcombine.high %v14269_v39, %v14269_v39  ;;  %v3588_v52 = vrot.slane %v14269_v39, %v15818_v59  ;;  %v3268_v19 = vcombine.high %v3160_v43, %v3160_v43  ;;  %v3275_v15 = vrot.slane %v3160_v43, %v15818_v59  ;;  %v3245_v57 = vpop.f32.mrb[9].mxu1 }
 0xb59   : > { %v3331_v60 = vrot.slane %v3317_v34, %v15818_v59  ;;  %v3332_v30 = vcombine.high %v3324_v56, %v3324_v56  ;;  %v3340_v53 = vrot.slane %v3324_v56, %v15818_v59  ;;  %v3532_v63 = vcombine.high %v3245_v57, %v3245_v57 }
 0xb5a   : > { %v3595_v20 = vrot.slane %v3581_v48, %v15818_v59  ;;  %v3596_v31 = vcombine.high %v3588_v52, %v3588_v52  ;;  %v3604_v32 = vrot.slane %v3588_v52, %v15818_v59  ;;  %v3282_v33 = vrot.slane %v3268_v19, %v15818_v59 }
 0xb5b   : > { %v3333_v41 = vcombine.high %v3331_v60, %v3331_v60  ;;  %v3347_v0 = vrot.slane %v3331_v60, %v15818_v59  ;;  %v3354_v40 = vrot.slane %v3332_v30, %v15818_v59  ;;  %v3362_v35 = vcombine.high %v3340_v53, %v3340_v53  ;;  %3504 = vst.msk [vmem:[%s15529_s13 + $0x83] sm:$0x1] %vm1136_vm5, %v3340_v53 }
 0xb5c   : > { %v3597_v42 = vcombine.high %v3595_v20, %v3595_v20  ;;  %v3611_v55 = vrot.slane %v3595_v20, %v15818_v59  ;;  %v3618_v21 = vrot.slane %v3596_v31, %v15818_v59  ;;  %v3626_v22 = vcombine.high %v3604_v32, %v3604_v32  ;;  %3768 = vst.msk [vmem:[%s15534_s16 + $0x83] sm:$0x1] %vm1401_vm6, %v3604_v32 }
 0xb5d   : > { %v3361_v44 = vrot.slane %v3333_v41, %v15818_v59  ;;  %v3363_v58 = vcombine.high %v3347_v0, %v3347_v0  ;;  %v3364_v46 = vcombine.high %v3354_v40, %v3354_v40  ;;  %3505 = vst.msk [vmem:[%s15529_s13 + $0x93] sm:$0x1] %vm1136_vm5, %v3354_v40  ;;  %3506 = vst.msk [vmem:[%s15529_s13 + $0xa3] sm:$0x1] %vm1136_vm5, %v3362_v35 }
 0xb5e   : > { %3508 = vst.msk [vmem:[%s15529_s13 + $0xc3] sm:$0x1] %vm1136_vm5, %v3347_v0  ;;  %v3283_v23 = vcombine.high %v3275_v15, %v3275_v15  ;;  %v3625_v24 = vrot.slane %v3597_v42, %v15818_v59  ;;  %v3627_v28 = vcombine.high %v3611_v55, %v3611_v55  ;;  %v3628_v11 = vcombine.high %v3618_v21, %v3618_v21 }
 0xb5f   : > { %3769 = vst.msk [vmem:[%s15534_s16 + $0x93] sm:$0x1] %vm1401_vm6, %v3618_v21  ;;  %3770 = vst.msk [vmem:[%s15534_s16 + $0xa3] sm:$0x1] %vm1401_vm6, %v3626_v22  ;;  %v3284_v9 = vcombine.high %v3282_v33, %v3282_v33  ;;  %v3365_v16 = vcombine.high %v3361_v44, %v3361_v44  ;;  %v3291_v10 = vrot.slane %v3275_v15, %v15818_v59 }
 0xb60   : > { %3772 = vst.msk [vmem:[%s15534_s16 + $0xc3] sm:$0x1] %vm1401_vm6, %v3611_v55  ;;  %v3298_v49 = vrot.slane %v3282_v33, %v15818_v59  ;;  %v3305_v62 = vrot.slane %v3283_v23, %v15818_v59  ;;  %v3629_v37 = vcombine.high %v3625_v24, %v3625_v24  ;;  %3771 = vst.msk [vmem:[%s15534_s16 + $0xb3] sm:$0x1] %vm1401_vm6, %v3628_v11 }
 0xb61   : > { %3507 = vst.msk [vmem:[%s15529_s13 + $0xb3] sm:$0x1] %vm1136_vm5, %v3364_v46  ;;  %3509 = vst.msk [vmem:[%s15529_s13 + $0xd3] sm:$0x1] %vm1136_vm5, %v3361_v44  ;;  %v3312_v17 = vrot.slane %v3284_v9, %v15818_v59  ;;  %v3539_v25 = vrot.slane %v3245_v57, %v15818_v59  ;;  %v3546_v34 = vrot.slane %v3532_v63, %v15818_v59 }
 0xb62   : > { %3510 = vst.msk [vmem:[%s15529_s13 + $0xe3] sm:$0x1] %vm1136_vm5, %v3363_v58  ;;  %3511 = vst.msk [vmem:[%s15529_s13 + $0xf3] sm:$0x1] %vm1136_vm5, %v3365_v16  ;;  %v3313_v56 = vcombine.high %v3291_v10, %v3291_v10  ;;  %v3314_v39 = vcombine.high %v3298_v49, %v3298_v49  ;;  %v3315_v43 = vcombine.high %v3305_v62, %v3305_v62 }
 0xb63   : > { %3773 = vst.msk [vmem:[%s15534_s16 + $0xd3] sm:$0x1] %vm1401_vm6, %v3625_v24  ;;  %3774 = vst.msk [vmem:[%s15534_s16 + $0xe3] sm:$0x1] %vm1401_vm6, %v3627_v28  ;;  %v3316_v48 = vcombine.high %v3312_v17, %v3312_v17  ;;  %v3547_v52 = vcombine.high %v3539_v25, %v3539_v25  ;;  %v3548_v19 = vcombine.high %v3546_v34, %v3546_v34 }
 0xb64   : > { %3496 = vst.msk [vmem:[%s15529_s13 + $0x3] sm:$0x1] %vm1136_vm5, %v3291_v10  ;;  %3497 = vst.msk [vmem:[%s15529_s13 + $0x13] sm:$0x1] %vm1136_vm5, %v3305_v62  ;;  %v3555_v15 = vrot.slane %v3539_v25, %v15818_v59  ;;  %v3562_v57 = vrot.slane %v3546_v34, %v15818_v59 }
 0xb65   : > { %3500 = vst.msk [vmem:[%s15529_s13 + $0x43] sm:$0x1] %vm1136_vm5, %v3298_v49  ;;  %3501 = vst.msk [vmem:[%s15529_s13 + $0x53] sm:$0x1] %vm1136_vm5, %v3312_v17  ;;  %v3569_v60 = vrot.slane %v3547_v52, %v15818_v59  ;;  %v3576_v30 = vrot.slane %v3548_v19, %v15818_v59 }
 0xb66   : > { %3775 = vst.msk [vmem:[%s15534_s16 + $0xf3] sm:$0x1] %vm1401_vm6, %v3629_v37  ;;  %v3577_v53 = vcombine.high %v3555_v15, %v3555_v15  ;;  %3760 = vst.msk [vmem:[%s15534_s16 + $0x3] sm:$0x1] %vm1401_vm6, %v3555_v15  ;;  %v3578_v63 = vcombine.high %v3562_v57, %v3562_v57 }
 0xb67   : > { %3498 = vst.msk [vmem:[%s15529_s13 + $0x23] sm:$0x1] %vm1136_vm5, %v3313_v56  ;;  %3499 = vst.msk [vmem:[%s15529_s13 + $0x33] sm:$0x1] %vm1136_vm5, %v3315_v43  ;;  %v3579_v20 = vcombine.high %v3569_v60, %v3569_v60  ;;  %v3580_v31 = vcombine.high %v3576_v30, %v3576_v30 }
 0xb68   : > { %3502 = vst.msk [vmem:[%s15529_s13 + $0x63] sm:$0x1] %vm1136_vm5, %v3314_v39  ;;  %3503 = vst.msk [vmem:[%s15529_s13 + $0x73] sm:$0x1] %vm1136_vm5, %v3316_v48 }
 0xb69   : > { %3764 = vst.msk [vmem:[%s15534_s16 + $0x43] sm:$0x1] %vm1401_vm6, %v3562_v57  ;;  %3761 = vst.msk [vmem:[%s15534_s16 + $0x13] sm:$0x1] %vm1401_vm6, %v3569_v60 }
 0xb6a   : > { %3762 = vst.msk [vmem:[%s15534_s16 + $0x23] sm:$0x1] %vm1401_vm6, %v3577_v53  ;;  %3765 = vst.msk [vmem:[%s15534_s16 + $0x53] sm:$0x1] %vm1401_vm6, %v3576_v30 }
 0xb6b   : > { %3766 = vst.msk [vmem:[%s15534_s16 + $0x63] sm:$0x1] %vm1401_vm6, %v3578_v63  ;;  %3763 = vst.msk [vmem:[%s15534_s16 + $0x33] sm:$0x1] %vm1401_vm6, %v3579_v20 }
 0xb6c   : > { %3767 = vst.msk [vmem:[%s15534_s16 + $0x73] sm:$0x1] %vm1401_vm6, %v3580_v31 }
 0xb8c   : > { %v14234_v32 = vpop.f32.mrb[26].mxu0 }
 0xb8d   : > { %v3415_v33 = vcombine.high %v14234_v32, %v14234_v32  ;;  %v3422_v41 = vrot.slane %v14234_v32, %v15818_v59  ;;  %v14272_v0 = vpop.f32.mrb[10].mxu1  ;;  %v3170_v40 = vpop.f32.mrb[27].mxu0 }
 0xb8e   : > { %v3679_v35 = vcombine.high %v14272_v0, %v14272_v0  ;;  %v3686_v42 = vrot.slane %v14272_v0, %v15818_v59  ;;  %v3366_v55 = vcombine.high %v3170_v40, %v3170_v40  ;;  %v3373_v21 = vrot.slane %v3170_v40, %v15818_v59  ;;  %v3255_v22 = vpop.f32.mrb[11].mxu1 }
 0xb8f   : > { %v3429_v44 = vrot.slane %v3415_v33, %v15818_v59  ;;  %v3430_v58 = vcombine.high %v3422_v41, %v3422_v41  ;;  %v3438_v46 = vrot.slane %v3422_v41, %v15818_v59  ;;  %v3630_v23 = vcombine.high %v3255_v22, %v3255_v22 }
 0xb90   : > { %v3693_v24 = vrot.slane %v3679_v35, %v15818_v59  ;;  %v3694_v28 = vcombine.high %v3686_v42, %v3686_v42  ;;  %v3702_v11 = vrot.slane %v3686_v42, %v15818_v59  ;;  %v3380_v9 = vrot.slane %v3366_v55, %v15818_v59 }
 0xb91   : > { %v3431_v16 = vcombine.high %v3429_v44, %v3429_v44  ;;  %v3445_v10 = vrot.slane %v3429_v44, %v15818_v59  ;;  %v3452_v49 = vrot.slane %v3430_v58, %v15818_v59  ;;  %v3460_v62 = vcombine.high %v3438_v46, %v3438_v46  ;;  %3520 = vst.msk [vmem:[%s15529_s13 + $0x183] sm:$0x1] %vm1136_vm5, %v3438_v46 }
 0xb92   : > { %v3695_v37 = vcombine.high %v3693_v24, %v3693_v24  ;;  %v3709_v17 = vrot.slane %v3693_v24, %v15818_v59  ;;  %v3716_v25 = vrot.slane %v3694_v28, %v15818_v59  ;;  %v3724_v34 = vcombine.high %v3702_v11, %v3702_v11  ;;  %3784 = vst.msk [vmem:[%s15534_s16 + $0x183] sm:$0x1] %vm1401_vm6, %v3702_v11 }
 0xb93   : > { %v3459_v56 = vrot.slane %v3431_v16, %v15818_v59  ;;  %v3461_v39 = vcombine.high %v3445_v10, %v3445_v10  ;;  %v3462_v43 = vcombine.high %v3452_v49, %v3452_v49  ;;  %3521 = vst.msk [vmem:[%s15529_s13 + $0x193] sm:$0x1] %vm1136_vm5, %v3452_v49  ;;  %3522 = vst.msk [vmem:[%s15529_s13 + $0x1a3] sm:$0x1] %vm1136_vm5, %v3460_v62  ;;  %v3812_v11 = vand.u32 65535, %v16590_v51 }
 0xb94   : > { %3524 = vst.msk [vmem:[%s15529_s13 + $0x1c3] sm:$0x1] %vm1136_vm5, %v3445_v10  ;;  %v3381_v48 = vcombine.high %v3373_v21, %v3373_v21  ;;  %v3723_v52 = vrot.slane %v3695_v37, %v15818_v59  ;;  %v3725_v19 = vcombine.high %v3709_v17, %v3709_v17  ;;  %v3726_v15 = vcombine.high %v3716_v25, %v3716_v25 }
 0xb95   : > { %3785 = vst.msk [vmem:[%s15534_s16 + $0x193] sm:$0x1] %vm1401_vm6, %v3716_v25  ;;  %3786 = vst.msk [vmem:[%s15534_s16 + $0x1a3] sm:$0x1] %vm1401_vm6, %v3724_v34  ;;  %v3382_v57 = vcombine.high %v3380_v9, %v3380_v9  ;;  %v3463_v60 = vcombine.high %v3459_v56, %v3459_v56  ;;  %v3389_v30 = vrot.slane %v3373_v21, %v15818_v59  ;;  %v3814_v10 = vcvt.s32.f32 %v3812_v11 }
 0xb96   : > { %3788 = vst.msk [vmem:[%s15534_s16 + $0x1c3] sm:$0x1] %vm1401_vm6, %v3709_v17  ;;  %v3396_v53 = vrot.slane %v3380_v9, %v15818_v59  ;;  %v3403_v63 = vrot.slane %v3381_v48, %v15818_v59  ;;  %v3727_v20 = vcombine.high %v3723_v52, %v3723_v52  ;;  %3787 = vst.msk [vmem:[%s15534_s16 + $0x1b3] sm:$0x1] %vm1401_vm6, %v3726_v15  ;;  %v3826_v9 = vand.u32 65535, %v16594_v47 }
 0xb97   : > { %3523 = vst.msk [vmem:[%s15529_s13 + $0x1b3] sm:$0x1] %vm1136_vm5, %v3462_v43  ;;  %3525 = vst.msk [vmem:[%s15529_s13 + $0x1d3] sm:$0x1] %vm1136_vm5, %v3459_v56  ;;  %v3410_v31 = vrot.slane %v3382_v57, %v15818_v59  ;;  %v3637_v32 = vrot.slane %v3255_v22, %v15818_v59  ;;  %v3644_v33 = vrot.slane %v3630_v23, %v15818_v59  ;;  %v3854_v25 = vand.u32 65535, %v16606_v12 }
 0xb98   : > { %3526 = vst.msk [vmem:[%s15529_s13 + $0x1e3] sm:$0x1] %vm1136_vm5, %v3461_v39  ;;  %3527 = vst.msk [vmem:[%s15529_s13 + $0x1f3] sm:$0x1] %vm1136_vm5, %v3463_v60  ;;  %v3411_v41 = vcombine.high %v3389_v30, %v3389_v30  ;;  %v3412_v0 = vcombine.high %v3396_v53, %v3396_v53  ;;  %v3413_v40 = vcombine.high %v3403_v63, %v3403_v63  ;;  %v3828_v62 = vcvt.s32.f32 %v3826_v9 }
 0xb99   : > { %3789 = vst.msk [vmem:[%s15534_s16 + $0x1d3] sm:$0x1] %vm1401_vm6, %v3723_v52  ;;  %3790 = vst.msk [vmem:[%s15534_s16 + $0x1e3] sm:$0x1] %vm1401_vm6, %v3725_v19  ;;  %v3414_v35 = vcombine.high %v3410_v31, %v3410_v31  ;;  %v3645_v42 = vcombine.high %v3637_v32, %v3637_v32  ;;  %v3646_v55 = vcombine.high %v3644_v33, %v3644_v33  ;;  %v3856_v56 = vcvt.s32.f32 %v3854_v25 }
 0xb9a   : > { %3512 = vst.msk [vmem:[%s15529_s13 + $0x103] sm:$0x1] %vm1136_vm5, %v3389_v30  ;;  %3513 = vst.msk [vmem:[%s15529_s13 + $0x113] sm:$0x1] %vm1136_vm5, %v3403_v63  ;;  %v3653_v21 = vrot.slane %v3637_v32, %v15818_v59  ;;  %v3660_v22 = vrot.slane %v3644_v33, %v15818_v59  ;;  %v3840_v47 = vand.u32 65535, %v16614_v14 }
 0xb9b   : > { %3516 = vst.msk [vmem:[%s15529_s13 + $0x143] sm:$0x1] %vm1136_vm5, %v3396_v53  ;;  %3517 = vst.msk [vmem:[%s15529_s13 + $0x153] sm:$0x1] %vm1136_vm5, %v3410_v31  ;;  %v3667_v44 = vrot.slane %v3645_v42, %v15818_v59  ;;  %v3674_v58 = vrot.slane %v3646_v55, %v15818_v59 }
 0xb9c   : > { %3791 = vst.msk [vmem:[%s15534_s16 + $0x1f3] sm:$0x1] %vm1401_vm6, %v3727_v20  ;;  %v3675_v46 = vcombine.high %v3653_v21, %v3653_v21  ;;  %3776 = vst.msk [vmem:[%s15534_s16 + $0x103] sm:$0x1] %vm1401_vm6, %v3653_v21  ;;  %v3676_v23 = vcombine.high %v3660_v22, %v3660_v22  ;;  %v3842_v43 = vcvt.s32.f32 %v3840_v47 }
 0xb9d   : > { %3514 = vst.msk [vmem:[%s15529_s13 + $0x123] sm:$0x1] %vm1136_vm5, %v3411_v41  ;;  %3515 = vst.msk [vmem:[%s15529_s13 + $0x133] sm:$0x1] %vm1136_vm5, %v3413_v40  ;;  %v3677_v24 = vcombine.high %v3667_v44, %v3667_v44  ;;  %v3678_v28 = vcombine.high %v3674_v58, %v3674_v58 }
 0xb9e   : > { %3518 = vst.msk [vmem:[%s15529_s13 + $0x163] sm:$0x1] %vm1136_vm5, %v3412_v0  ;;  %3519 = vst.msk [vmem:[%s15529_s13 + $0x173] sm:$0x1] %vm1136_vm5, %v3414_v35 }
 0xb9f   : > { %3780 = vst.msk [vmem:[%s15534_s16 + $0x143] sm:$0x1] %vm1401_vm6, %v3660_v22  ;;  %3777 = vst.msk [vmem:[%s15534_s16 + $0x113] sm:$0x1] %vm1401_vm6, %v3667_v44 }
 0xba0   : > { %3778 = vst.msk [vmem:[%s15534_s16 + $0x123] sm:$0x1] %vm1401_vm6, %v3675_v46  ;;  %3781 = vst.msk [vmem:[%s15534_s16 + $0x153] sm:$0x1] %vm1401_vm6, %v3674_v58 }
 0xba1   : > { %3782 = vst.msk [vmem:[%s15534_s16 + $0x163] sm:$0x1] %vm1401_vm6, %v3676_v23  ;;  %3779 = vst.msk [vmem:[%s15534_s16 + $0x133] sm:$0x1] %vm1401_vm6, %v3677_v24 }
 0xba2   : > { %3783 = vst.msk [vmem:[%s15534_s16 + $0x173] sm:$0x1] %vm1401_vm6, %v3678_v28 }
 0xba4   : > { %v3817_v16 = vpop.xlane.xlu1 %3816 }
 0xba5   : > { %v3831_v49 = vpop.xlane.xlu0 %3830  ;;  %vm3818_vm0 = vcmp.eq.f32.partialorder %v16598_v26, %v3817_v16 }
 0xba6   : > { %v3819_v37 = vsel %vm3818_vm0, %v3814_v10, inf  ;;  %vm3832_vm1 = vcmp.eq.f32.partialorder %v16600_v54, %v3831_v49  ;;  %v3823_v54 = vcvt.f32.s32 %v3817_v16  ;;  %v3837_v48 = vcvt.f32.s32 %v3831_v49 }
 0xba7   : > { %3820 = vmin.xlane.f32.xlu1 %v3819_v37  ;;  %v3833_v17 = vsel %vm3832_vm1, %v3828_v62, inf }
 0xba8   : > { %3834 = vmin.xlane.f32.xlu0 %v3833_v17  ;;  %v3824_v19 = vshll.u32 %v3823_v54, 16  ;;  %v3838_v57 = vshll.u32 %v3837_v48, 16 }
 0xbd0   : > { %v3859_v34 = vpop.xlane.xlu0 %3858 }
 0xbd1   : > { %vm3860_vm2 = vcmp.eq.f32.partialorder %v16609_v13, %v3859_v34  ;;  %v3865_v53 = vcvt.f32.s32 %v3859_v34 }
 0xbd2   : > { %v3861_v51 = vsel %vm3860_vm2, %v3856_v56, inf }
 0xbd3   : > { %3862 = vmin.xlane.f32.xlu0 %v3861_v51  ;;  %v3866_v63 = vshll.u32 %v3865_v53, 16 }
 0xbda   : > { %v3845_v39 = vpop.xlane.xlu1 %3844 }
 0xbdb   : > { %vm3846_vm3 = vcmp.eq.f32.partialorder %v16617_v18, %v3845_v39 }
 0xbdc   : > { %v3847_v26 = vsel %vm3846_vm3, %v3842_v43, inf }
 0xbdd   : > { %3848 = vmin.xlane.f32.xlu1 %v3847_v26 }
 0xc34   : > { %v3821_v52 = vpop.xlane.xlu1 %3820 }
 0xc35   : > { %v3822_v15 = vcvt.f32.s32 %v3821_v52  ;;  %v3835_v12 = vpop.xlane.xlu0 %3834 }
 0xc36   : > { %v3836_v60 = vcvt.f32.s32 %v3835_v12 }
 0xc37   : > { %v3825_v30 = vadd.s32 %v3824_v19, %v3822_v15 }
 0xc38   : > { %v3839_v13 = vadd.s32 %v3838_v57, %v3836_v60 }
 0xc39   : > { %vm3868_vm4 = vcmp.eq.s32.totalorder %v15496_v1, %v3825_v30 }
 0xc3a   : > { %vm3869_vm7 = vcmp.eq.s32.totalorder %v15496_v1, %v3839_v13  ;;  %14275 = vmatprep.mubr.msk.f32.mxu0 %vm3868_vm4, %v15455_v61  ;;  %v16812_v14 = vsel %vm3868_vm4, 3e+38, %v16561_v38 }
 0xc3b   : > { %4582 = vmin.xlane.f32.xlu1 %v16812_v14  ;;  %14276 = vmatmul.mubr.msk.f32.vlgmr.msra.gmra.mrb[28].mxu0 %vm3869_vm7, %v15455_v61  ;;  %v16821_v18 = vsel %vm3869_vm7, 3e+38, %v16566_v36  ;;  %v3851_v36 = vcvt.f32.s32 %v3845_v39 }
 0xc3c   : > { %14988 = vmatpush3.bf16.msra.mxu0 %v15649_v27  ;;  %4584 = vmin.xlane.f32.xlu0 %v16821_v18 }
 0xc3d   : > { %14990 = vmatprep.subr.bf16.mxu0 %v15657_v29  ;;  %v3852_v41 = vshll.u32 %v3851_v36, 16 }
 0xc40   : > { %14992 = vmatpush3.bf16.msra.mxu0 %v15657_v29 }
 0xc41   : > { %14994 = vmatprep.subr.bf16.mxu0 %v15663_v3 }
 0xc44   : > { %14996 = vmatpush3.bf16.msra.mxu0 %v15663_v3 }
 0xc45   : > { %14998 = vmatprep.subr.bf16.mxu0 %v15669_v4 }
 0xc48   : > { %15000 = vmatpush3.bf16.msra.mxu0 %v15669_v4 }
 0xc49   : > { %15002 = vmatprep.subr.bf16.mxu0 %v15675_v5 }
 0xc4c   : > { %15004 = vmatpush3.bf16.msra.mxu0 %v15675_v5 }
 0xc4d   : > { %15006 = vmatprep.subr.bf16.mxu0 %v15681_v6 }
 0xc50   : > { %15008 = vmatpush3.bf16.msra.mxu0 %v15681_v6 }
 0xc51   : > { %15010 = vmatprep.subr.bf16.mxu0 %v15686_v7 }
 0xc54   : > { %15012 = vmatpush3.bf16.msra.mxu0 %v15686_v7 }
 0xc55   : > { %15014 = vmatprep.subr.bf16.mxu0 %v15692_v8 }
 0xc58   : > { %15016 = vmatpush3.bf16.msra.mxu0 %v15692_v8 }
 0xc59   : > { %14365 = vmatprep.subr.mxu0 %v15504_v2 }
 0xc60   : > { %v3863_v38 = vpop.xlane.xlu0 %3862 }
 0xc61   : > { %v3864_v20 = vcvt.f32.s32 %v3863_v38 }
 0xc63   : > { %v3867_v31 = vadd.s32 %v3866_v63, %v3864_v20 }
 0xc65   : > { %vm3871_vm8 = vcmp.eq.s32.totalorder %v15496_v1, %v3867_v31 }
 0xc66   : > { %v16833_v32 = vsel %vm3871_vm8, 3e+38, %v16576_v45 }
 0xc67   : > { %4588 = vmin.xlane.f32.xlu0 %v16833_v32 }
 0xc6a   : > { %v3849_v33 = vpop.xlane.xlu1 %3848 }
 0xc6b   : > { %v3850_v0 = vcvt.f32.s32 %v3849_v33 }
 0xc6d   : > { %v3853_v40 = vadd.s32 %v3852_v41, %v3850_v0 }
 0xc6f   : > { %vm3870_vm9 = vcmp.eq.s32.totalorder %v15496_v1, %v3853_v40 }
 0xc70   : > { %14278 = vmatprep.mubr.msk.f32.mxu0 %vm3870_vm9, %v15455_v61  ;;  %v16844_v45 = vsel %vm3870_vm9, 3e+38, %v16583_v50 }
 0xc71   : > { %4586 = vmin.xlane.f32.xlu1 %v16844_v45  ;;  %14279 = vmatmul.mubr.msk.f32.gmra.mrb[30].mxu0 %vm3871_vm8, %v15455_v61 }
 0xc72   : > { %14313 = vmatprep.mubr.msk.f32.mxu0 %vm3868_vm4, %v15455_v61 }
 0xc75   : > { %14314 = vmatmul.mubr.msk.f32.vlgmr.msra.gmra.mrb[32].mxu0 %vm3869_vm7, %v15455_v61 }
 0xc76   : > { %14316 = vmatprep.mubr.msk.f32.mxu0 %vm3870_vm9, %v15455_v61  ;;  %14366 = vmatpush3.xpose.msra.mxu0 %v15504_v2 }
 0xc77   : > { %15050 = vmatprep.subr.bf16.mxu0 %v15649_v27 }
 0xc79   : > { %14317 = vmatmul.mubr.msk.f32.gmra.mrb[34].mxu0 %vm3871_vm8, %v15455_v61 }
 0xcc8   : > { %v4583_v50 = vpop.xlane.xlu1 %4582 }
 0xcc9   : > { %vm4590_vm10 = vcmp.le.f32.partialorder %v16812_v14, %v4583_v50  ;;  %v4585_v35 = vpop.xlane.xlu0 %4584 }
 0xcca   : > { %v16870_v42 = vsel %vm4590_vm10, %v15496_v1, 128  ;;  %vm4591_vm11 = vcmp.le.f32.partialorder %v16821_v18, %v4585_v35 }
 0xccb   : > { %v16874_v55 = vsel %vm4591_vm11, %v15496_v1, 128  ;;  %v4599_v21 = vshra.s32 %v16870_v42, 16 }
 0xccc   : > { %v4613_v22 = vshra.s32 %v16874_v55, 16 }
 0xccd   : > { %v16878_v44 = vcvt.s32.f32 %v4599_v21 }
 0xcce   : > { %v16880_v58 = vcvt.s32.f32 %v4613_v22 }
 0xccf   : > { %4602 = vmin.xlane.f32.xlu1 %v16878_v44 }
 0xcd0   : > { %4616 = vmin.xlane.f32.xlu0 %v16880_v58 }
 0xcf4   : > { %v4589_v46 = vpop.xlane.xlu0 %4588 }
 0xcf5   : > { %vm4593_vm12 = vcmp.le.f32.partialorder %v16833_v32, %v4589_v46 }
 0xcf6   : > { %v16886_v23 = vsel %vm4593_vm12, %v15496_v1, 128 }
 0xcf7   : > { %v4641_v24 = vshra.s32 %v16886_v23, 16 }
 0xcf9   : > { %v16889_v28 = vcvt.s32.f32 %v4641_v24 }
 0xcfb   : > { %4644 = vmin.xlane.f32.xlu0 %v16889_v28 }
 0xcfe   : > { %v4587_v11 = vpop.xlane.xlu1 %4586 }
 0xcff   : > { %vm4592_vm13 = vcmp.le.f32.partialorder %v16844_v45, %v4587_v11 }
 0xd00   : > { %v16894_v9 = vsel %vm4592_vm13, %v15496_v1, 128 }
 0xd01   : > { %v4627_v16 = vshra.s32 %v16894_v9, 16 }
 0xd03   : > { %v16897_v10 = vcvt.s32.f32 %v4627_v16 }
 0xd05   : > { %4630 = vmin.xlane.f32.xlu1 %v16897_v10 }
 0xd0e   : > { %v14277_v49 = vpop.f32.mrb[28].mxu0 }
 0xd0f   : > { %v4103_v62 = vcombine.high %v14277_v49, %v14277_v49  ;;  %v4110_v37 = vrot.slane %v14277_v49, %v15818_v59  ;;  %v3946_v17 = vpop.f32.mrb[29].mxu0 }
 0xd10   : > { %v4054_v25 = vcombine.high %v3946_v17, %v3946_v17  ;;  %v4061_v34 = vrot.slane %v3946_v17, %v15818_v59 }
 0xd11   : > { %v4117_v56 = vrot.slane %v4103_v62, %v15818_v59  ;;  %v4118_v51 = vcombine.high %v4110_v37, %v4110_v37  ;;  %v4126_v47 = vrot.slane %v4110_v37, %v15818_v59 }
 0xd12   : > { %v4068_v39 = vrot.slane %v4054_v25, %v15818_v59  ;;  %v4069_v43 = vcombine.high %v4061_v34, %v4061_v34  ;;  %v4077_v26 = vrot.slane %v4061_v34, %v15818_v59 }
 0xd13   : > { %v4119_v54 = vcombine.high %v4117_v56, %v4117_v56  ;;  %v4133_v48 = vrot.slane %v4117_v56, %v15818_v59  ;;  %v4140_v52 = vrot.slane %v4118_v51, %v15818_v59  ;;  %v4148_v19 = vcombine.high %v4126_v47, %v4126_v47  ;;  %4290 = vst.msk [vmem:[%s15529_s13 + $0x84] sm:$0x1] %vm1136_vm5, %v4126_v47 }
 0xd14   : > { %v4070_v15 = vcombine.high %v4068_v39, %v4068_v39  ;;  %v4084_v12 = vrot.slane %v4068_v39, %v15818_v59  ;;  %v4091_v57 = vrot.slane %v4069_v43, %v15818_v59  ;;  %v4099_v60 = vcombine.high %v4077_v26, %v4077_v26  ;;  %4282 = vst.msk [vmem:[%s15529_s13 + $0x4] sm:$0x1] %vm1136_vm5, %v4077_v26 }
 0xd15   : > { %v4147_v30 = vrot.slane %v4119_v54, %v15818_v59  ;;  %v4149_v13 = vcombine.high %v4133_v48, %v4133_v48  ;;  %v4150_v53 = vcombine.high %v4140_v52, %v4140_v52  ;;  %4291 = vst.msk [vmem:[%s15529_s13 + $0x94] sm:$0x1] %vm1136_vm5, %v4140_v52  ;;  %4292 = vst.msk [vmem:[%s15529_s13 + $0xa4] sm:$0x1] %vm1136_vm5, %v4148_v19 }
 0xd16   : > { %4294 = vst.msk [vmem:[%s15529_s13 + $0xc4] sm:$0x1] %vm1136_vm5, %v4133_v48  ;;  %v4098_v38 = vrot.slane %v4070_v15, %v15818_v59  ;;  %v4100_v63 = vcombine.high %v4084_v12, %v4084_v12  ;;  %v4101_v20 = vcombine.high %v4091_v57, %v4091_v57  ;;  %4283 = vst.msk [vmem:[%s15529_s13 + $0x14] sm:$0x1] %vm1136_vm5, %v4091_v57 }
 0xd17   : > { %4284 = vst.msk [vmem:[%s15529_s13 + $0x24] sm:$0x1] %vm1136_vm5, %v4099_v60  ;;  %4286 = vst.msk [vmem:[%s15529_s13 + $0x44] sm:$0x1] %vm1136_vm5, %v4084_v12  ;;  %v4151_v31 = vcombine.high %v4147_v30, %v4147_v30 }
 0xd18   : > { %4293 = vst.msk [vmem:[%s15529_s13 + $0xb4] sm:$0x1] %vm1136_vm5, %v4150_v53  ;;  %4295 = vst.msk [vmem:[%s15529_s13 + $0xd4] sm:$0x1] %vm1136_vm5, %v4147_v30  ;;  %v4102_v36 = vcombine.high %v4098_v38, %v4098_v38 }
 0xd19   : > { %4296 = vst.msk [vmem:[%s15529_s13 + $0xe4] sm:$0x1] %vm1136_vm5, %v4149_v13  ;;  %4285 = vst.msk [vmem:[%s15529_s13 + $0x34] sm:$0x1] %vm1136_vm5, %v4101_v20 }
 0xd1a   : > { %4287 = vst.msk [vmem:[%s15529_s13 + $0x54] sm:$0x1] %vm1136_vm5, %v4098_v38  ;;  %4288 = vst.msk [vmem:[%s15529_s13 + $0x64] sm:$0x1] %vm1136_vm5, %v4100_v63 }
 0xd1b   : > { %4297 = vst.msk [vmem:[%s15529_s13 + $0xf4] sm:$0x1] %vm1136_vm5, %v4151_v31  ;;  %4289 = vst.msk [vmem:[%s15529_s13 + $0x74] sm:$0x1] %vm1136_vm5, %v4102_v36 }
 0xd44   : > { %v14280_v33 = vpop.f32.mrb[30].mxu0 }
 0xd45   : > { %v4201_v41 = vcombine.high %v14280_v33, %v14280_v33  ;;  %v4208_v0 = vrot.slane %v14280_v33, %v15818_v59  ;;  %v3956_v40 = vpop.f32.mrb[31].mxu0 }
 0xd46   : > { %v4152_v50 = vcombine.high %v3956_v40, %v3956_v40  ;;  %v4159_v35 = vrot.slane %v3956_v40, %v15818_v59 }
 0xd47   : > { %v4215_v21 = vrot.slane %v4201_v41, %v15818_v59  ;;  %v4216_v22 = vcombine.high %v4208_v0, %v4208_v0  ;;  %v4224_v46 = vrot.slane %v4208_v0, %v15818_v59 }
 0xd48   : > { %v4166_v24 = vrot.slane %v4152_v50, %v15818_v59  ;;  %v4167_v11 = vcombine.high %v4159_v35, %v4159_v35  ;;  %v4175_v16 = vrot.slane %v4159_v35, %v15818_v59  ;;  %v14315_v15 = vpop.f32.mrb[32].mxu0 }
 0xd49   : > { %v4217_v49 = vcombine.high %v4215_v21, %v4215_v21  ;;  %v4231_v62 = vrot.slane %v4215_v21, %v15818_v59  ;;  %v4238_v37 = vrot.slane %v4216_v22, %v15818_v59  ;;  %v4246_v17 = vcombine.high %v4224_v46, %v4224_v46  ;;  %4306 = vst.msk [vmem:[%s15529_s13 + $0x184] sm:$0x1] %vm1136_vm5, %v4224_v46  ;;  %v4031_v60 = vpop.f32.mrb[33].mxu0 }
 0xd4a   : > { %v4168_v25 = vcombine.high %v4166_v24, %v4166_v24  ;;  %v4182_v34 = vrot.slane %v4166_v24, %v15818_v59  ;;  %v4189_v56 = vrot.slane %v4167_v11, %v15818_v59  ;;  %v4197_v51 = vcombine.high %v4175_v16, %v4175_v16  ;;  %4298 = vst.msk [vmem:[%s15529_s13 + $0x104] sm:$0x1] %vm1136_vm5, %v4175_v16 }
 0xd4b   : > { %v4245_v47 = vrot.slane %v4217_v49, %v15818_v59  ;;  %v4247_v39 = vcombine.high %v4231_v62, %v4231_v62  ;;  %v4248_v43 = vcombine.high %v4238_v37, %v4238_v37  ;;  %4307 = vst.msk [vmem:[%s15529_s13 + $0x194] sm:$0x1] %vm1136_vm5, %v4238_v37  ;;  %4308 = vst.msk [vmem:[%s15529_s13 + $0x1a4] sm:$0x1] %vm1136_vm5, %v4246_v17 }
 0xd4c   : > { %4310 = vst.msk [vmem:[%s15529_s13 + $0x1c4] sm:$0x1] %vm1136_vm5, %v4231_v62  ;;  %v4196_v26 = vrot.slane %v4168_v25, %v15818_v59  ;;  %v4198_v54 = vcombine.high %v4182_v34, %v4182_v34  ;;  %v4199_v48 = vcombine.high %v4189_v56, %v4189_v56  ;;  %4299 = vst.msk [vmem:[%s15529_s13 + $0x114] sm:$0x1] %vm1136_vm5, %v4189_v56  ;;  %v14318_v33 = vpop.f32.mrb[34].mxu0 }
 0xd4d   : > { %4300 = vst.msk [vmem:[%s15529_s13 + $0x124] sm:$0x1] %vm1136_vm5, %v4197_v51  ;;  %4302 = vst.msk [vmem:[%s15529_s13 + $0x144] sm:$0x1] %vm1136_vm5, %v4182_v34  ;;  %v4249_v52 = vcombine.high %v4245_v47, %v4245_v47  ;;  %v4367_v12 = vcombine.high %v14315_v15, %v14315_v15  ;;  %v4374_v57 = vrot.slane %v14315_v15, %v15818_v59  ;;  %v4041_v35 = vpop.f32.mrb[35].mxu0 }
 0xd4e   : > { %4309 = vst.msk [vmem:[%s15529_s13 + $0x1b4] sm:$0x1] %vm1136_vm5, %v4248_v43  ;;  %4311 = vst.msk [vmem:[%s15529_s13 + $0x1d4] sm:$0x1] %vm1136_vm5, %v4245_v47  ;;  %v4200_v19 = vcombine.high %v4196_v26, %v4196_v26  ;;  %v4318_v30 = vcombine.high %v4031_v60, %v4031_v60  ;;  %v4325_v13 = vrot.slane %v4031_v60, %v15818_v59 }
 0xd4f   : > { %4312 = vst.msk [vmem:[%s15529_s13 + $0x1e4] sm:$0x1] %vm1136_vm5, %v4247_v39  ;;  %4301 = vst.msk [vmem:[%s15529_s13 + $0x134] sm:$0x1] %vm1136_vm5, %v4199_v48  ;;  %v4381_v53 = vrot.slane %v4367_v12, %v15818_v59  ;;  %v4382_v38 = vcombine.high %v4374_v57, %v4374_v57  ;;  %v4390_v63 = vrot.slane %v4374_v57, %v15818_v59 }
 0xd50   : > { %4303 = vst.msk [vmem:[%s15529_s13 + $0x154] sm:$0x1] %vm1136_vm5, %v4196_v26  ;;  %4304 = vst.msk [vmem:[%s15529_s13 + $0x164] sm:$0x1] %vm1136_vm5, %v4198_v54  ;;  %v4332_v20 = vrot.slane %v4318_v30, %v15818_v59  ;;  %v4333_v31 = vcombine.high %v4325_v13, %v4325_v13  ;;  %v4341_v36 = vrot.slane %v4325_v13, %v15818_v59 }
 0xd51   : > { %4313 = vst.msk [vmem:[%s15529_s13 + $0x1f4] sm:$0x1] %vm1136_vm5, %v4249_v52  ;;  %4305 = vst.msk [vmem:[%s15529_s13 + $0x174] sm:$0x1] %vm1136_vm5, %v4200_v19  ;;  %v4383_v41 = vcombine.high %v4381_v53, %v4381_v53  ;;  %v4397_v0 = vrot.slane %v4381_v53, %v15818_v59  ;;  %v4404_v40 = vrot.slane %v4382_v38, %v15818_v59 }
 0xd52   : > { %v4412_v50 = vcombine.high %v4390_v63, %v4390_v63  ;;  %4554 = vst.msk [vmem:[%s15534_s16 + $0x84] sm:$0x1] %vm1401_vm6, %v4390_v63  ;;  %v4334_v21 = vcombine.high %v4332_v20, %v4332_v20  ;;  %v4348_v22 = vrot.slane %v4332_v20, %v15818_v59  ;;  %v4355_v46 = vrot.slane %v4333_v31, %v15818_v59 }
 0xd53   : > { %v4363_v24 = vcombine.high %v4341_v36, %v4341_v36  ;;  %4546 = vst.msk [vmem:[%s15534_s16 + $0x4] sm:$0x1] %vm1401_vm6, %v4341_v36  ;;  %v4411_v11 = vrot.slane %v4383_v41, %v15818_v59  ;;  %v4413_v16 = vcombine.high %v4397_v0, %v4397_v0  ;;  %v4414_v49 = vcombine.high %v4404_v40, %v4404_v40 }
 0xd54   : > { %4555 = vst.msk [vmem:[%s15534_s16 + $0x94] sm:$0x1] %vm1401_vm6, %v4404_v40  ;;  %4556 = vst.msk [vmem:[%s15534_s16 + $0xa4] sm:$0x1] %vm1401_vm6, %v4412_v50  ;;  %v4465_v62 = vcombine.high %v14318_v33, %v14318_v33  ;;  %v4362_v37 = vrot.slane %v4334_v21, %v15818_v59  ;;  %v4364_v17 = vcombine.high %v4348_v22, %v4348_v22  ;;  %v4598_v50 = vand.u32 65535, %v16870_v42 }
 0xd55   : > { %4558 = vst.msk [vmem:[%s15534_s16 + $0xc4] sm:$0x1] %vm1401_vm6, %v4397_v0  ;;  %v4365_v25 = vcombine.high %v4355_v46, %v4355_v46  ;;  %4547 = vst.msk [vmem:[%s15534_s16 + $0x14] sm:$0x1] %vm1401_vm6, %v4355_v46  ;;  %v4472_v34 = vrot.slane %v14318_v33, %v15818_v59  ;;  %v4415_v56 = vcombine.high %v4411_v11, %v4411_v11 }
 0xd56   : > { %4548 = vst.msk [vmem:[%s15534_s16 + $0x24] sm:$0x1] %vm1401_vm6, %v4363_v24  ;;  %4550 = vst.msk [vmem:[%s15534_s16 + $0x44] sm:$0x1] %vm1401_vm6, %v4348_v22  ;;  %v4479_v51 = vrot.slane %v4465_v62, %v15818_v59  ;;  %v4416_v47 = vcombine.high %v4041_v35, %v4041_v35  ;;  %v4423_v39 = vrot.slane %v4041_v35, %v15818_v59  ;;  %v4612_v35 = vand.u32 65535, %v16874_v55 }
 0xd57   : > { %4557 = vst.msk [vmem:[%s15534_s16 + $0xb4] sm:$0x1] %vm1401_vm6, %v4414_v49  ;;  %4559 = vst.msk [vmem:[%s15534_s16 + $0xd4] sm:$0x1] %vm1401_vm6, %v4411_v11  ;;  %v4366_v43 = vcombine.high %v4362_v37, %v4362_v37  ;;  %v4480_v26 = vcombine.high %v4472_v34, %v4472_v34  ;;  %v4488_v54 = vrot.slane %v4472_v34, %v15818_v59  ;;  %v4600_v22 = vcvt.s32.f32 %v4598_v50 }
 0xd58   : > { %4560 = vst.msk [vmem:[%s15534_s16 + $0xe4] sm:$0x1] %vm1401_vm6, %v4413_v16  ;;  %4549 = vst.msk [vmem:[%s15534_s16 + $0x34] sm:$0x1] %vm1401_vm6, %v4365_v25  ;;  %v4481_v48 = vcombine.high %v4479_v51, %v4479_v51  ;;  %v4495_v52 = vrot.slane %v4479_v51, %v15818_v59  ;;  %v4430_v19 = vrot.slane %v4416_v47, %v15818_v59  ;;  %v4614_v24 = vcvt.s32.f32 %v4612_v35 }
 0xd59   : > { %4551 = vst.msk [vmem:[%s15534_s16 + $0x54] sm:$0x1] %vm1401_vm6, %v4362_v37  ;;  %4552 = vst.msk [vmem:[%s15534_s16 + $0x64] sm:$0x1] %vm1401_vm6, %v4364_v17  ;;  %v4431_v15 = vcombine.high %v4423_v39, %v4423_v39  ;;  %v4502_v12 = vrot.slane %v4480_v26, %v15818_v59  ;;  %v4510_v57 = vcombine.high %v4488_v54, %v4488_v54  ;;  %v4640_v49 = vand.u32 65535, %v16886_v23 }
 0xd5a   : > { %4561 = vst.msk [vmem:[%s15534_s16 + $0xf4] sm:$0x1] %vm1401_vm6, %v4415_v56  ;;  %4553 = vst.msk [vmem:[%s15534_s16 + $0x74] sm:$0x1] %vm1401_vm6, %v4366_v43  ;;  %v4439_v60 = vrot.slane %v4423_v39, %v15818_v59  ;;  %v4509_v30 = vrot.slane %v4481_v48, %v15818_v59  ;;  %v4511_v13 = vcombine.high %v4495_v52, %v4495_v52  ;;  %v4626_v55 = vand.u32 65535, %v16894_v9 }
 0xd5b   : > { %4570 = vst.msk [vmem:[%s15534_s16 + $0x184] sm:$0x1] %vm1401_vm6, %v4488_v54  ;;  %4574 = vst.msk [vmem:[%s15534_s16 + $0x1c4] sm:$0x1] %vm1401_vm6, %v4495_v52  ;;  %v4432_v53 = vcombine.high %v4430_v19, %v4430_v19  ;;  %v4446_v38 = vrot.slane %v4430_v19, %v15818_v59  ;;  %v4512_v63 = vcombine.high %v4502_v12, %v4502_v12  ;;  %v4642_v37 = vcvt.s32.f32 %v4640_v49 }
 0xd5c   : > { %4571 = vst.msk [vmem:[%s15534_s16 + $0x194] sm:$0x1] %vm1401_vm6, %v4502_v12  ;;  %4572 = vst.msk [vmem:[%s15534_s16 + $0x1a4] sm:$0x1] %vm1401_vm6, %v4510_v57  ;;  %v4453_v20 = vrot.slane %v4431_v15, %v15818_v59  ;;  %v4461_v31 = vcombine.high %v4439_v60, %v4439_v60  ;;  %v4513_v36 = vcombine.high %v4509_v30, %v4509_v30  ;;  %v4603_v21 = vpop.xlane.xlu1 %4602  ;;  %v4628_v25 = vcvt.s32.f32 %v4626_v55 }
 0xd5d   : > { %4562 = vst.msk [vmem:[%s15534_s16 + $0x104] sm:$0x1] %vm1401_vm6, %v4439_v60  ;;  %4575 = vst.msk [vmem:[%s15534_s16 + $0x1d4] sm:$0x1] %vm1401_vm6, %v4509_v30  ;;  %v4460_v33 = vrot.slane %v4432_v53, %v15818_v59  ;;  %v4462_v41 = vcombine.high %v4446_v38, %v4446_v38  ;;  %v4617_v46 = vpop.xlane.xlu0 %4616  ;;  %vm4604_vm14 = vcmp.eq.f32.partialorder %v16878_v44, %v4603_v21 }
 0xd5e   : > { %4576 = vst.msk [vmem:[%s15534_s16 + $0x1e4] sm:$0x1] %vm1401_vm6, %v4511_v13  ;;  %4566 = vst.msk [vmem:[%s15534_s16 + $0x144] sm:$0x1] %vm1401_vm6, %v4446_v38  ;;  %v4463_v0 = vcombine.high %v4453_v20, %v4453_v20  ;;  %v4605_v11 = vsel %vm4604_vm14, %v4600_v22, inf  ;;  %vm4618_vm15 = vcmp.eq.f32.partialorder %v16880_v58, %v4617_v46  ;;  %v4609_v58 = vcvt.f32.s32 %v4603_v21 }
 0xd5f   : > { %4573 = vst.msk [vmem:[%s15534_s16 + $0x1b4] sm:$0x1] %vm1401_vm6, %v4512_v63  ;;  %4563 = vst.msk [vmem:[%s15534_s16 + $0x114] sm:$0x1] %vm1401_vm6, %v4453_v20  ;;  %v4464_v40 = vcombine.high %v4460_v33, %v4460_v33  ;;  %4606 = vmin.xlane.f32.xlu1 %v4605_v11  ;;  %v4619_v16 = vsel %vm4618_vm15, %v4614_v24, inf  ;;  %v4623_v34 = vcvt.f32.s32 %v4617_v46 }
 0xd60   : > { %4564 = vst.msk [vmem:[%s15534_s16 + $0x124] sm:$0x1] %vm1401_vm6, %v4461_v31  ;;  %4577 = vst.msk [vmem:[%s15534_s16 + $0x1f4] sm:$0x1] %vm1401_vm6, %v4513_v36  ;;  %4620 = vmin.xlane.f32.xlu0 %v4619_v16  ;;  %v4610_v51 = vshll.u32 %v4609_v58, 16 }
 0xd61   : > { %4567 = vst.msk [vmem:[%s15534_s16 + $0x154] sm:$0x1] %vm1401_vm6, %v4460_v33  ;;  %4568 = vst.msk [vmem:[%s15534_s16 + $0x164] sm:$0x1] %vm1401_vm6, %v4462_v41  ;;  %v4624_v39 = vshll.u32 %v4623_v34, 16 }
 0xd62   : > { %4565 = vst.msk [vmem:[%s15534_s16 + $0x134] sm:$0x1] %vm1401_vm6, %v4463_v0  ;;  %4569 = vst.msk [vmem:[%s15534_s16 + $0x174] sm:$0x1] %vm1401_vm6, %v4464_v40 }
 0xd88   : > { %v4645_v62 = vpop.xlane.xlu0 %4644 }
 0xd89   : > { %vm4646_vm0 = vcmp.eq.f32.partialorder %v16889_v28, %v4645_v62  ;;  %v4651_v54 = vcvt.f32.s32 %v4645_v62 }
 0xd8a   : > { %v4647_v42 = vsel %vm4646_vm0, %v4642_v37, inf }
 0xd8b   : > { %4648 = vmin.xlane.f32.xlu0 %v4647_v42  ;;  %v4652_v48 = vshll.u32 %v4651_v54, 16 }
 0xd92   : > { %v4631_v17 = vpop.xlane.xlu1 %4630 }
 0xd93   : > { %vm4632_vm1 = vcmp.eq.f32.partialorder %v16897_v10, %v4631_v17 }
 0xd94   : > { %v4633_v44 = vsel %vm4632_vm1, %v4628_v25, inf }
 0xd95   : > { %4634 = vmin.xlane.f32.xlu1 %v4633_v44 }
 0xdec   : > { %v4607_v56 = vpop.xlane.xlu1 %4606 }
 0xded   : > { %v4608_v47 = vcvt.f32.s32 %v4607_v56  ;;  %v4621_v23 = vpop.xlane.xlu0 %4620 }
 0xdee   : > { %v4622_v43 = vcvt.f32.s32 %v4621_v23 }
 0xdef   : > { %v4611_v26 = vadd.s32 %v4610_v51, %v4608_v47 }
 0xdf0   : > { %v4625_v28 = vadd.s32 %v4624_v39, %v4622_v43 }
 0xdf1   : > { %vm4654_vm2 = vcmp.eq.s32.totalorder %v15496_v1, %v4611_v26 }
 0xdf2   : > { %vm4655_vm3 = vcmp.eq.s32.totalorder %v15496_v1, %v4625_v28  ;;  %14321 = vmatprep.mubr.msk.f32.mxu1 %vm4654_vm2, %v15455_v61  ;;  %v17092_v9 = vsel %vm4654_vm2, 3e+38, %v16812_v14 }
 0xdf3   : > { %5368 = vmin.xlane.f32.xlu1 %v17092_v9  ;;  %14322 = vmatmul.mubr.msk.f32.vlgmr.msra.gmra.mrb[12].mxu1 %vm4655_vm3, %v15455_v61  ;;  %v17101_v10 = vsel %vm4655_vm3, 3e+38, %v16821_v18  ;;  %v4637_v18 = vcvt.f32.s32 %v4631_v17 }
 0xdf4   : > { %15020 = vmatpush3.bf16.msra.mxu1 %v15649_v27  ;;  %5370 = vmin.xlane.f32.xlu0 %v17101_v10 }
 0xdf5   : > { %15022 = vmatprep.subr.bf16.mxu1 %v15657_v29  ;;  %v4638_v57 = vshll.u32 %v4637_v18, 16 }
 0xdf8   : > { %15024 = vmatpush3.bf16.msra.mxu1 %v15657_v29 }
 0xdf9   : > { %15026 = vmatprep.subr.bf16.mxu1 %v15663_v3 }
 0xdfc   : > { %15028 = vmatpush3.bf16.msra.mxu1 %v15663_v3 }
 0xdfd   : > { %15030 = vmatprep.subr.bf16.mxu1 %v15669_v4 }
 0xe00   : > { %15032 = vmatpush3.bf16.msra.mxu1 %v15669_v4 }
 0xe01   : > { %15034 = vmatprep.subr.bf16.mxu1 %v15675_v5 }
 0xe04   : > { %15036 = vmatpush3.bf16.msra.mxu1 %v15675_v5 }
 0xe05   : > { %15038 = vmatprep.subr.bf16.mxu1 %v15681_v6 }
 0xe08   : > { %15040 = vmatpush3.bf16.msra.mxu1 %v15681_v6 }
 0xe09   : > { %15042 = vmatprep.subr.bf16.mxu1 %v15686_v7 }
 0xe0c   : > { %15044 = vmatpush3.bf16.msra.mxu1 %v15686_v7 }
 0xe0d   : > { %15046 = vmatprep.subr.bf16.mxu1 %v15692_v8 }
 0xe10   : > { %15048 = vmatpush3.bf16.msra.mxu1 %v15692_v8 }
 0xe11   : > { %14411 = vmatprep.subr.mxu1 %v15504_v2 }
 0xe18   : > { %v4649_v14 = vpop.xlane.xlu0 %4648 }
 0xe19   : > { %v4650_v52 = vcvt.f32.s32 %v4649_v14 }
 0xe1b   : > { %v4653_v19 = vadd.s32 %v4652_v48, %v4650_v52 }
 0xe1d   : > { %vm4657_vm4 = vcmp.eq.s32.totalorder %v15496_v1, %v4653_v19 }
 0xe1e   : > { %v17113_v15 = vsel %vm4657_vm4, 3e+38, %v16833_v32 }
 0xe1f   : > { %5374 = vmin.xlane.f32.xlu0 %v17113_v15 }
 0xe22   : > { %v4635_v12 = vpop.xlane.xlu1 %4634 }
 0xe23   : > { %v4636_v60 = vcvt.f32.s32 %v4635_v12 }
 0xe25   : > { %v4639_v30 = vadd.s32 %v4638_v57, %v4636_v60 }
 0xe27   : > { %vm4656_vm7 = vcmp.eq.s32.totalorder %v15496_v1, %v4639_v30 }
 0xe28   : > { %14324 = vmatprep.mubr.msk.f32.mxu1 %vm4656_vm7, %v15455_v61  ;;  %v17124_v32 = vsel %vm4656_vm7, 3e+38, %v16844_v45 }
 0xe29   : > { %5372 = vmin.xlane.f32.xlu1 %v17124_v32  ;;  %14325 = vmatmul.mubr.msk.f32.gmra.mrb[14].mxu1 %vm4657_vm4, %v15455_v61 }
 0xe2a   : > { %14359 = vmatprep.mubr.msk.f32.mxu1 %vm4654_vm2, %v15455_v61 }
 0xe2d   : > { %14360 = vmatmul.mubr.msk.f32.vlgmr.msra.gmra.mrb[16].mxu1 %vm4655_vm3, %v15455_v61 }
 0xe2e   : > { %14362 = vmatprep.mubr.msk.f32.mxu1 %vm4656_vm7, %v15455_v61  ;;  %14412 = vmatpush3.xpose.msra.mxu1 %v15504_v2 }
 0xe2f   : > { %15082 = vmatprep.subr.bf16.mxu1 %v15649_v27 }
 0xe31   : > { %14363 = vmatmul.mubr.msk.f32.gmra.mrb[18].mxu1 %vm4657_vm4, %v15455_v61 }
 0xe80   : > { %v5369_v45 = vpop.xlane.xlu1 %5368 }
 0xe81   : > { %vm5376_vm8 = vcmp.le.f32.partialorder %v17092_v9, %v5369_v45  ;;  %v5371_v13 = vpop.xlane.xlu0 %5370 }
 0xe82   : > { %v17150_v53 = vsel %vm5376_vm8, %v15496_v1, 128  ;;  %vm5377_vm9 = vcmp.le.f32.partialorder %v17101_v10, %v5371_v13 }
 0xe83   : > { %v17154_v38 = vsel %vm5377_vm9, %v15496_v1, 128  ;;  %v5385_v63 = vshra.s32 %v17150_v53, 16 }
 0xe84   : > { %v5399_v20 = vshra.s32 %v17154_v38, 16 }
 0xe85   : > { %v17158_v31 = vcvt.s32.f32 %v5385_v63 }
 0xe86   : > { %v17160_v36 = vcvt.s32.f32 %v5399_v20 }
 0xe87   : > { %5388 = vmin.xlane.f32.xlu1 %v17158_v31 }
 0xe88   : > { %5402 = vmin.xlane.f32.xlu0 %v17160_v36 }
 0xeac   : > { %v5375_v33 = vpop.xlane.xlu0 %5374 }
 0xead   : > { %vm5379_vm10 = vcmp.le.f32.partialorder %v17113_v15, %v5375_v33 }
 0xeae   : > { %v17166_v41 = vsel %vm5379_vm10, %v15496_v1, 128 }
 0xeaf   : > { %v5427_v0 = vshra.s32 %v17166_v41, 16 }
 0xeb1   : > { %v17169_v40 = vcvt.s32.f32 %v5427_v0 }
 0xeb3   : > { %5430 = vmin.xlane.f32.xlu0 %v17169_v40 }
 0xeb6   : > { %v5373_v50 = vpop.xlane.xlu1 %5372 }
 0xeb7   : > { %vm5378_vm11 = vcmp.le.f32.partialorder %v17124_v32, %v5373_v50 }
 0xeb8   : > { %v17174_v35 = vsel %vm5378_vm11, %v15496_v1, 128 }
 0xeb9   : > { %v5413_v21 = vshra.s32 %v17174_v35, 16 }
 0xebb   : > { %v17177_v22 = vcvt.s32.f32 %v5413_v21 }
 0xebd   : > { %5416 = vmin.xlane.f32.xlu1 %v17177_v22 }
 0xec6   : > { %v14323_v46 = vpop.f32.mrb[12].mxu1 }
 0xec7   : > { %v4889_v24 = vcombine.high %v14323_v46, %v14323_v46  ;;  %v4896_v11 = vrot.slane %v14323_v46, %v15818_v59  ;;  %v4732_v16 = vpop.f32.mrb[13].mxu1 }
 0xec8   : > { %v4840_v49 = vcombine.high %v4732_v16, %v4732_v16  ;;  %v4847_v62 = vrot.slane %v4732_v16, %v15818_v59 }
 0xec9   : > { %v4903_v37 = vrot.slane %v4889_v24, %v15818_v59  ;;  %v4904_v42 = vcombine.high %v4896_v11, %v4896_v11  ;;  %v4912_v55 = vrot.slane %v4896_v11, %v15818_v59 }
 0xeca   : > { %v4854_v17 = vrot.slane %v4840_v49, %v15818_v59  ;;  %v4855_v25 = vcombine.high %v4847_v62, %v4847_v62  ;;  %v4863_v44 = vrot.slane %v4847_v62, %v15818_v59 }
 0xecb   : > { %v4905_v58 = vcombine.high %v4903_v37, %v4903_v37  ;;  %v4919_v34 = vrot.slane %v4903_v37, %v15818_v59  ;;  %v4926_v56 = vrot.slane %v4904_v42, %v15818_v59  ;;  %v4934_v51 = vcombine.high %v4912_v55, %v4912_v55  ;;  %5076 = vst.msk [vmem:[%s15529_s13 + $0x85] sm:$0x1] %vm1136_vm5, %v4912_v55 }
 0xecc   : > { %v4856_v47 = vcombine.high %v4854_v17, %v4854_v17  ;;  %v4870_v23 = vrot.slane %v4854_v17, %v15818_v59  ;;  %v4877_v39 = vrot.slane %v4855_v25, %v15818_v59  ;;  %v4885_v43 = vcombine.high %v4863_v44, %v4863_v44  ;;  %5068 = vst.msk [vmem:[%s15529_s13 + $0x5] sm:$0x1] %vm1136_vm5, %v4863_v44 }
 0xecd   : > { %v4933_v26 = vrot.slane %v4905_v58, %v15818_v59  ;;  %v4935_v28 = vcombine.high %v4919_v34, %v4919_v34  ;;  %v4936_v54 = vcombine.high %v4926_v56, %v4926_v56  ;;  %5077 = vst.msk [vmem:[%s15529_s13 + $0x95] sm:$0x1] %vm1136_vm5, %v4926_v56  ;;  %5078 = vst.msk [vmem:[%s15529_s13 + $0xa5] sm:$0x1] %vm1136_vm5, %v4934_v51 }
 0xece   : > { %5080 = vst.msk [vmem:[%s15529_s13 + $0xc5] sm:$0x1] %vm1136_vm5, %v4919_v34  ;;  %v4884_v14 = vrot.slane %v4856_v47, %v15818_v59  ;;  %v4886_v48 = vcombine.high %v4870_v23, %v4870_v23  ;;  %v4887_v52 = vcombine.high %v4877_v39, %v4877_v39  ;;  %5069 = vst.msk [vmem:[%s15529_s13 + $0x15] sm:$0x1] %vm1136_vm5, %v4877_v39 }
 0xecf   : > { %5070 = vst.msk [vmem:[%s15529_s13 + $0x25] sm:$0x1] %vm1136_vm5, %v4885_v43  ;;  %5072 = vst.msk [vmem:[%s15529_s13 + $0x45] sm:$0x1] %vm1136_vm5, %v4870_v23  ;;  %v4937_v19 = vcombine.high %v4933_v26, %v4933_v26 }
 0xed0   : > { %5079 = vst.msk [vmem:[%s15529_s13 + $0xb5] sm:$0x1] %vm1136_vm5, %v4936_v54  ;;  %5081 = vst.msk [vmem:[%s15529_s13 + $0xd5] sm:$0x1] %vm1136_vm5, %v4933_v26  ;;  %v4888_v18 = vcombine.high %v4884_v14, %v4884_v14 }
 0xed1   : > { %5082 = vst.msk [vmem:[%s15529_s13 + $0xe5] sm:$0x1] %vm1136_vm5, %v4935_v28  ;;  %5071 = vst.msk [vmem:[%s15529_s13 + $0x35] sm:$0x1] %vm1136_vm5, %v4887_v52 }
 0xed2   : > { %5073 = vst.msk [vmem:[%s15529_s13 + $0x55] sm:$0x1] %vm1136_vm5, %v4884_v14  ;;  %5074 = vst.msk [vmem:[%s15529_s13 + $0x65] sm:$0x1] %vm1136_vm5, %v4886_v48 }
 0xed3   : > { %5083 = vst.msk [vmem:[%s15529_s13 + $0xf5] sm:$0x1] %vm1136_vm5, %v4937_v19  ;;  %5075 = vst.msk [vmem:[%s15529_s13 + $0x75] sm:$0x1] %vm1136_vm5, %v4888_v18 }
 0xefc   : > { %v14326_v12 = vpop.f32.mrb[14].mxu1 }
 0xefd   : > { %v4987_v57 = vcombine.high %v14326_v12, %v14326_v12  ;;  %v4994_v60 = vrot.slane %v14326_v12, %v15818_v59  ;;  %v4742_v30 = vpop.f32.mrb[15].mxu1 }
 0xefe   : > { %v4938_v45 = vcombine.high %v4742_v30, %v4742_v30  ;;  %v4945_v13 = vrot.slane %v4742_v30, %v15818_v59 }
 0xeff   : > { %v5001_v63 = vrot.slane %v4987_v57, %v15818_v59  ;;  %v5002_v20 = vcombine.high %v4994_v60, %v4994_v60  ;;  %v5010_v33 = vrot.slane %v4994_v60, %v15818_v59 }
 0xf00   : > { %v4952_v0 = vrot.slane %v4938_v45, %v15818_v59  ;;  %v4953_v50 = vcombine.high %v4945_v13, %v4945_v13  ;;  %v4961_v21 = vrot.slane %v4945_v13, %v15818_v59  ;;  %v14361_v47 = vpop.f32.mrb[16].mxu1 }
 0xf01   : > { %v5003_v46 = vcombine.high %v5001_v63, %v5001_v63  ;;  %v5017_v24 = vrot.slane %v5001_v63, %v15818_v59  ;;  %v5024_v11 = vrot.slane %v5002_v20, %v15818_v59  ;;  %v5032_v16 = vcombine.high %v5010_v33, %v5010_v33  ;;  %5092 = vst.msk [vmem:[%s15529_s13 + $0x185] sm:$0x1] %vm1136_vm5, %v5010_v33  ;;  %v4817_v43 = vpop.f32.mrb[17].mxu1 }
 0xf02   : > { %v4954_v49 = vcombine.high %v4952_v0, %v4952_v0  ;;  %v4968_v62 = vrot.slane %v4952_v0, %v15818_v59  ;;  %v4975_v37 = vrot.slane %v4953_v50, %v15818_v59  ;;  %v4983_v42 = vcombine.high %v4961_v21, %v4961_v21  ;;  %5084 = vst.msk [vmem:[%s15529_s13 + $0x105] sm:$0x1] %vm1136_vm5, %v4961_v21 }
 0xf03   : > { %v5031_v55 = vrot.slane %v5003_v46, %v15818_v59  ;;  %v5033_v17 = vcombine.high %v5017_v24, %v5017_v24  ;;  %v5034_v25 = vcombine.high %v5024_v11, %v5024_v11  ;;  %5093 = vst.msk [vmem:[%s15529_s13 + $0x195] sm:$0x1] %vm1136_vm5, %v5024_v11  ;;  %5094 = vst.msk [vmem:[%s15529_s13 + $0x1a5] sm:$0x1] %vm1136_vm5, %v5032_v16 }
 0xf04   : > { %5096 = vst.msk [vmem:[%s15529_s13 + $0x1c5] sm:$0x1] %vm1136_vm5, %v5017_v24  ;;  %v4982_v44 = vrot.slane %v4954_v49, %v15818_v59  ;;  %v4984_v58 = vcombine.high %v4968_v62, %v4968_v62  ;;  %v4985_v34 = vcombine.high %v4975_v37, %v4975_v37  ;;  %5085 = vst.msk [vmem:[%s15529_s13 + $0x115] sm:$0x1] %vm1136_vm5, %v4975_v37  ;;  %v14364_v12 = vpop.f32.mrb[18].mxu1 }
 0xf05   : > { %5086 = vst.msk [vmem:[%s15529_s13 + $0x125] sm:$0x1] %vm1136_vm5, %v4983_v42  ;;  %5088 = vst.msk [vmem:[%s15529_s13 + $0x145] sm:$0x1] %vm1136_vm5, %v4968_v62  ;;  %v5035_v56 = vcombine.high %v5031_v55, %v5031_v55  ;;  %v5153_v23 = vcombine.high %v14361_v47, %v14361_v47  ;;  %v5160_v39 = vrot.slane %v14361_v47, %v15818_v59  ;;  %v4827_v13 = vpop.f32.mrb[19].mxu1 }
 0xf06   : > { %5095 = vst.msk [vmem:[%s15529_s13 + $0x1b5] sm:$0x1] %vm1136_vm5, %v5034_v25  ;;  %5097 = vst.msk [vmem:[%s15529_s13 + $0x1d5] sm:$0x1] %vm1136_vm5, %v5031_v55  ;;  %v4986_v51 = vcombine.high %v4982_v44, %v4982_v44  ;;  %v5104_v26 = vcombine.high %v4817_v43, %v4817_v43  ;;  %v5111_v28 = vrot.slane %v4817_v43, %v15818_v59 }
 0xf07   : > { %5098 = vst.msk [vmem:[%s15529_s13 + $0x1e5] sm:$0x1] %vm1136_vm5, %v5033_v17  ;;  %5087 = vst.msk [vmem:[%s15529_s13 + $0x135] sm:$0x1] %vm1136_vm5, %v4985_v34  ;;  %v5167_v54 = vrot.slane %v5153_v23, %v15818_v59  ;;  %v5168_v14 = vcombine.high %v5160_v39, %v5160_v39  ;;  %v5176_v48 = vrot.slane %v5160_v39, %v15818_v59 }
 0xf08   : > { %5089 = vst.msk [vmem:[%s15529_s13 + $0x155] sm:$0x1] %vm1136_vm5, %v4982_v44  ;;  %5090 = vst.msk [vmem:[%s15529_s13 + $0x165] sm:$0x1] %vm1136_vm5, %v4984_v58  ;;  %v5118_v52 = vrot.slane %v5104_v26, %v15818_v59  ;;  %v5119_v19 = vcombine.high %v5111_v28, %v5111_v28  ;;  %v5127_v18 = vrot.slane %v5111_v28, %v15818_v59 }
 0xf09   : > { %5099 = vst.msk [vmem:[%s15529_s13 + $0x1f5] sm:$0x1] %vm1136_vm5, %v5035_v56  ;;  %5091 = vst.msk [vmem:[%s15529_s13 + $0x175] sm:$0x1] %vm1136_vm5, %v4986_v51  ;;  %v5169_v57 = vcombine.high %v5167_v54, %v5167_v54  ;;  %v5183_v60 = vrot.slane %v5167_v54, %v15818_v59  ;;  %v5190_v30 = vrot.slane %v5168_v14, %v15818_v59 }
 0xf0a   : > { %v5198_v45 = vcombine.high %v5176_v48, %v5176_v48  ;;  %5340 = vst.msk [vmem:[%s15534_s16 + $0x85] sm:$0x1] %vm1401_vm6, %v5176_v48  ;;  %v5120_v63 = vcombine.high %v5118_v52, %v5118_v52  ;;  %v5134_v20 = vrot.slane %v5118_v52, %v15818_v59  ;;  %v5141_v33 = vrot.slane %v5119_v19, %v15818_v59 }
 0xf0b   : > { %v5149_v0 = vcombine.high %v5127_v18, %v5127_v18  ;;  %5332 = vst.msk [vmem:[%s15534_s16 + $0x5] sm:$0x1] %vm1401_vm6, %v5127_v18  ;;  %v5197_v50 = vrot.slane %v5169_v57, %v15818_v59  ;;  %v5199_v21 = vcombine.high %v5183_v60, %v5183_v60  ;;  %v5200_v46 = vcombine.high %v5190_v30, %v5190_v30 }
 0xf0c   : > { %5341 = vst.msk [vmem:[%s15534_s16 + $0x95] sm:$0x1] %vm1401_vm6, %v5190_v30  ;;  %5342 = vst.msk [vmem:[%s15534_s16 + $0xa5] sm:$0x1] %vm1401_vm6, %v5198_v45  ;;  %v5251_v24 = vcombine.high %v14364_v12, %v14364_v12  ;;  %v5148_v11 = vrot.slane %v5120_v63, %v15818_v59  ;;  %v5150_v16 = vcombine.high %v5134_v20, %v5134_v20  ;;  %v5384_v45 = vand.u32 65535, %v17150_v53 }
 0xf0d   : > { %5344 = vst.msk [vmem:[%s15534_s16 + $0xc5] sm:$0x1] %vm1401_vm6, %v5183_v60  ;;  %v5151_v49 = vcombine.high %v5141_v33, %v5141_v33  ;;  %5333 = vst.msk [vmem:[%s15534_s16 + $0x15] sm:$0x1] %vm1401_vm6, %v5141_v33  ;;  %v5258_v62 = vrot.slane %v14364_v12, %v15818_v59  ;;  %v5201_v37 = vcombine.high %v5197_v50, %v5197_v50 }
 0xf0e   : > { %5334 = vst.msk [vmem:[%s15534_s16 + $0x25] sm:$0x1] %vm1401_vm6, %v5149_v0  ;;  %5336 = vst.msk [vmem:[%s15534_s16 + $0x45] sm:$0x1] %vm1401_vm6, %v5134_v20  ;;  %v5265_v42 = vrot.slane %v5251_v24, %v15818_v59  ;;  %v5202_v55 = vcombine.high %v4827_v13, %v4827_v13  ;;  %v5209_v17 = vrot.slane %v4827_v13, %v15818_v59  ;;  %v5398_v13 = vand.u32 65535, %v17154_v38 }
 0xf0f   : > { %5343 = vst.msk [vmem:[%s15534_s16 + $0xb5] sm:$0x1] %vm1401_vm6, %v5200_v46  ;;  %5345 = vst.msk [vmem:[%s15534_s16 + $0xd5] sm:$0x1] %vm1401_vm6, %v5197_v50  ;;  %v5152_v25 = vcombine.high %v5148_v11, %v5148_v11  ;;  %v5266_v44 = vcombine.high %v5258_v62, %v5258_v62  ;;  %v5274_v58 = vrot.slane %v5258_v62, %v15818_v59  ;;  %v5386_v20 = vcvt.s32.f32 %v5384_v45 }
 0xf10   : > { %5346 = vst.msk [vmem:[%s15534_s16 + $0xe5] sm:$0x1] %vm1401_vm6, %v5199_v21  ;;  %5335 = vst.msk [vmem:[%s15534_s16 + $0x35] sm:$0x1] %vm1401_vm6, %v5151_v49  ;;  %v5267_v34 = vcombine.high %v5265_v42, %v5265_v42  ;;  %v5281_v56 = vrot.slane %v5265_v42, %v15818_v59  ;;  %v5216_v51 = vrot.slane %v5202_v55, %v15818_v59  ;;  %v5400_v0 = vcvt.s32.f32 %v5398_v13 }
 0xf11   : > { %5337 = vst.msk [vmem:[%s15534_s16 + $0x55] sm:$0x1] %vm1401_vm6, %v5148_v11  ;;  %5338 = vst.msk [vmem:[%s15534_s16 + $0x65] sm:$0x1] %vm1401_vm6, %v5150_v16  ;;  %v5217_v47 = vcombine.high %v5209_v17, %v5209_v17  ;;  %v5288_v23 = vrot.slane %v5266_v44, %v15818_v59  ;;  %v5296_v39 = vcombine.high %v5274_v58, %v5274_v58  ;;  %v5426_v46 = vand.u32 65535, %v17166_v41 }
 0xf12   : > { %5347 = vst.msk [vmem:[%s15534_s16 + $0xf5] sm:$0x1] %vm1401_vm6, %v5201_v37  ;;  %5339 = vst.msk [vmem:[%s15534_s16 + $0x75] sm:$0x1] %vm1401_vm6, %v5152_v25  ;;  %v5225_v43 = vrot.slane %v5209_v17, %v15818_v59  ;;  %v5295_v26 = vrot.slane %v5267_v34, %v15818_v59  ;;  %v5297_v28 = vcombine.high %v5281_v56, %v5281_v56  ;;  %v5412_v38 = vand.u32 65535, %v17174_v35 }
 0xf13   : > { %5356 = vst.msk [vmem:[%s15534_s16 + $0x185] sm:$0x1] %vm1401_vm6, %v5274_v58  ;;  %5360 = vst.msk [vmem:[%s15534_s16 + $0x1c5] sm:$0x1] %vm1401_vm6, %v5281_v56  ;;  %v5218_v54 = vcombine.high %v5216_v51, %v5216_v51  ;;  %v5232_v14 = vrot.slane %v5216_v51, %v15818_v59  ;;  %v5298_v48 = vcombine.high %v5288_v23, %v5288_v23  ;;  %v5428_v11 = vcvt.s32.f32 %v5426_v46 }
 0xf14   : > { %5357 = vst.msk [vmem:[%s15534_s16 + $0x195] sm:$0x1] %vm1401_vm6, %v5288_v23  ;;  %5358 = vst.msk [vmem:[%s15534_s16 + $0x1a5] sm:$0x1] %vm1401_vm6, %v5296_v39  ;;  %v5239_v52 = vrot.slane %v5217_v47, %v15818_v59  ;;  %v5247_v19 = vcombine.high %v5225_v43, %v5225_v43  ;;  %v5299_v18 = vcombine.high %v5295_v26, %v5295_v26  ;;  %v5389_v63 = vpop.xlane.xlu1 %5388  ;;  %v5414_v49 = vcvt.s32.f32 %v5412_v38 }
 0xf15   : > { %5348 = vst.msk [vmem:[%s15534_s16 + $0x105] sm:$0x1] %vm1401_vm6, %v5225_v43  ;;  %5361 = vst.msk [vmem:[%s15534_s16 + $0x1d5] sm:$0x1] %vm1401_vm6, %v5295_v26  ;;  %v5246_v12 = vrot.slane %v5218_v54, %v15818_v59  ;;  %v5248_v57 = vcombine.high %v5232_v14, %v5232_v14  ;;  %v5403_v33 = vpop.xlane.xlu0 %5402  ;;  %vm5390_vm12 = vcmp.eq.f32.partialorder %v17158_v31, %v5389_v63 }
 0xf16   : > { %5362 = vst.msk [vmem:[%s15534_s16 + $0x1e5] sm:$0x1] %vm1401_vm6, %v5297_v28  ;;  %5352 = vst.msk [vmem:[%s15534_s16 + $0x145] sm:$0x1] %vm1401_vm6, %v5232_v14  ;;  %v5249_v60 = vcombine.high %v5239_v52, %v5239_v52  ;;  %v5391_v50 = vsel %vm5390_vm12, %v5386_v20, inf  ;;  %vm5404_vm13 = vcmp.eq.f32.partialorder %v17160_v36, %v5403_v33  ;;  %v5395_v36 = vcvt.f32.s32 %v5389_v63 }
 0xf17   : > { %5359 = vst.msk [vmem:[%s15534_s16 + $0x1b5] sm:$0x1] %vm1401_vm6, %v5298_v48  ;;  %5349 = vst.msk [vmem:[%s15534_s16 + $0x115] sm:$0x1] %vm1401_vm6, %v5239_v52  ;;  %v5250_v30 = vcombine.high %v5246_v12, %v5246_v12  ;;  %5392 = vmin.xlane.f32.xlu1 %v5391_v50  ;;  %v5405_v21 = vsel %vm5404_vm13, %v5400_v0, inf  ;;  %v5409_v62 = vcvt.f32.s32 %v5403_v33 }
 0xf18   : > { %5350 = vst.msk [vmem:[%s15534_s16 + $0x125] sm:$0x1] %vm1401_vm6, %v5247_v19  ;;  %5363 = vst.msk [vmem:[%s15534_s16 + $0x1f5] sm:$0x1] %vm1401_vm6, %v5299_v18  ;;  %5406 = vmin.xlane.f32.xlu0 %v5405_v21  ;;  %v5396_v42 = vshll.u32 %v5395_v36, 16 }
 0xf19   : > { %5353 = vst.msk [vmem:[%s15534_s16 + $0x155] sm:$0x1] %vm1401_vm6, %v5246_v12  ;;  %5354 = vst.msk [vmem:[%s15534_s16 + $0x165] sm:$0x1] %vm1401_vm6, %v5248_v57  ;;  %v5410_v17 = vshll.u32 %v5409_v62, 16 }
 0xf1a   : > { %5351 = vst.msk [vmem:[%s15534_s16 + $0x135] sm:$0x1] %vm1401_vm6, %v5249_v60  ;;  %5355 = vst.msk [vmem:[%s15534_s16 + $0x175] sm:$0x1] %vm1401_vm6, %v5250_v30 }
 0xf40   : > { %v5431_v24 = vpop.xlane.xlu0 %5430 }
 0xf41   : > { %vm5432_vm14 = vcmp.eq.f32.partialorder %v17169_v40, %v5431_v24  ;;  %v5437_v58 = vcvt.f32.s32 %v5431_v24 }
 0xf42   : > { %v5433_v53 = vsel %vm5432_vm14, %v5428_v11, inf }
 0xf43   : > { %5434 = vmin.xlane.f32.xlu0 %v5433_v53  ;;  %v5438_v34 = vshll.u32 %v5437_v58, 16 }
 0xf4a   : > { %v5417_v16 = vpop.xlane.xlu1 %5416 }
 0xf4b   : > { %vm5418_vm15 = vcmp.eq.f32.partialorder %v17177_v22, %v5417_v16 }
 0xf4c   : > { %v5419_v31 = vsel %vm5418_vm15, %v5414_v49, inf }
 0xf4d   : > { %5420 = vmin.xlane.f32.xlu1 %v5419_v31 }
 0xfa4   : > { %v5393_v37 = vpop.xlane.xlu1 %5392 }
 0xfa5   : > { %v5394_v55 = vcvt.f32.s32 %v5393_v37  ;;  %v5407_v41 = vpop.xlane.xlu0 %5406 }
 0xfa6   : > { %v5408_v25 = vcvt.f32.s32 %v5407_v41 }
 0xfa7   : > { %v5397_v44 = vadd.s32 %v5396_v42, %v5394_v55 }
 0xfa8   : > { %v5411_v40 = vadd.s32 %v5410_v17, %v5408_v25 }
 0xfa9   : > { %vm5440_vm0 = vcmp.eq.s32.totalorder %v15496_v1, %v5397_v44 }
 0xfaa   : > { %vm5441_vm1 = vcmp.eq.s32.totalorder %v15496_v1, %v5411_v40  ;;  %14367 = vmatprep.mubr.msk.f32.mxu0 %vm5440_vm0, %v15455_v61  ;;  %v17372_v35 = vsel %vm5440_vm0, 3e+38, %v17092_v9 }
 0xfab   : > { %6154 = vmin.xlane.f32.xlu1 %v17372_v35  ;;  %14368 = vmatmul.mubr.msk.f32.vlgmr.msra.gmra.mrb[36].mxu0 %vm5441_vm1, %v15455_v61  ;;  %v17381_v22 = vsel %vm5441_vm1, 3e+38, %v17101_v10  ;;  %v5423_v10 = vcvt.f32.s32 %v5417_v16 }
 0xfac   : > { %15052 = vmatpush3.bf16.msra.mxu0 %v15649_v27  ;;  %6156 = vmin.xlane.f32.xlu0 %v17381_v22 }
 0xfad   : > { %15054 = vmatprep.subr.bf16.mxu0 %v15657_v29  ;;  %v5424_v39 = vshll.u32 %v5423_v10, 16 }
 0xfb0   : > { %15056 = vmatpush3.bf16.msra.mxu0 %v15657_v29 }
 0xfb1   : > { %15058 = vmatprep.subr.bf16.mxu0 %v15663_v3 }
 0xfb4   : > { %15060 = vmatpush3.bf16.msra.mxu0 %v15663_v3 }
 0xfb5   : > { %15062 = vmatprep.subr.bf16.mxu0 %v15669_v4 }
 0xfb8   : > { %15064 = vmatpush3.bf16.msra.mxu0 %v15669_v4 }
 0xfb9   : > { %15066 = vmatprep.subr.bf16.mxu0 %v15675_v5 }
 0xfbc   : > { %15068 = vmatpush3.bf16.msra.mxu0 %v15675_v5 }
 0xfbd   : > { %15070 = vmatprep.subr.bf16.mxu0 %v15681_v6 }
 0xfc0   : > { %15072 = vmatpush3.bf16.msra.mxu0 %v15681_v6 }
 0xfc1   : > { %15074 = vmatprep.subr.bf16.mxu0 %v15686_v7 }
 0xfc4   : > { %15076 = vmatpush3.bf16.msra.mxu0 %v15686_v7 }
 0xfc5   : > { %15078 = vmatprep.subr.bf16.mxu0 %v15692_v8 }
 0xfc8   : > { %15080 = vmatpush3.bf16.msra.mxu0 %v15692_v8 }
 0xfc9   : > { %14457 = vmatprep.subr.mxu0 %v15504_v2 }
 0xfd0   : > { %v5435_v9 = vpop.xlane.xlu0 %5434 }
 0xfd1   : > { %v5436_v56 = vcvt.f32.s32 %v5435_v9 }
 0xfd3   : > { %v5439_v51 = vadd.s32 %v5438_v34, %v5436_v56 }
 0xfd5   : > { %vm5443_vm2 = vcmp.eq.s32.totalorder %v15496_v1, %v5439_v51 }
 0xfd6   : > { %v17393_v47 = vsel %vm5443_vm2, 3e+38, %v17113_v15 }
 0xfd7   : > { %6160 = vmin.xlane.f32.xlu0 %v17393_v47 }
 0xfda   : > { %v5421_v23 = vpop.xlane.xlu1 %5420 }
 0xfdb   : > { %v5422_v43 = vcvt.f32.s32 %v5421_v23 }
 0xfdd   : > { %v5425_v26 = vadd.s32 %v5424_v39, %v5422_v43 }
 0xfdf   : > { %vm5442_vm3 = vcmp.eq.s32.totalorder %v15496_v1, %v5425_v26 }
 0xfe0   : > { %14370 = vmatprep.mubr.msk.f32.mxu0 %vm5442_vm3, %v15455_v61  ;;  %v17404_v15 = vsel %vm5442_vm3, 3e+38, %v17124_v32 }
 0xfe1   : > { %6158 = vmin.xlane.f32.xlu1 %v17404_v15  ;;  %14371 = vmatmul.mubr.msk.f32.gmra.mrb[38].mxu0 %vm5443_vm2, %v15455_v61 }
 0xfe2   : > { %14405 = vmatprep.mubr.msk.f32.mxu0 %vm5440_vm0, %v15455_v61 }
 0xfe5   : > { %14406 = vmatmul.mubr.msk.f32.vlgmr.msra.gmra.mrb[40].mxu0 %vm5441_vm1, %v15455_v61 }
 0xfe6   : > { %14408 = vmatprep.mubr.msk.f32.mxu0 %vm5442_vm3, %v15455_v61  ;;  %14458 = vmatpush3.xpose.msra.mxu0 %v15504_v2 }
 0xfe7   : > { %15114 = vmatprep.subr.bf16.mxu0 %v15649_v27 }
 0xfe9   : > { %14409 = vmatmul.mubr.msk.f32.gmra.mrb[42].mxu0 %vm5443_vm2, %v15455_v61 }
0x1038   : > { %v6155_v32 = vpop.xlane.xlu1 %6154 }
0x1039   : > { %vm6162_vm4 = vcmp.le.f32.partialorder %v17372_v35, %v6155_v32  ;;  %v6157_v28 = vpop.xlane.xlu0 %6156 }
0x103a   : > { %v17430_v54 = vsel %vm6162_vm4, %v15496_v1, 128  ;;  %vm6163_vm7 = vcmp.le.f32.partialorder %v17381_v22, %v6157_v28 }
0x103b   : > { %v6171_v14 = vshra.s32 %v17430_v54, 16  ;;  %v17435_v48 = vsel %vm6163_vm7, %v15496_v1, 128 }
0x103c   : > { %v6185_v52 = vshra.s32 %v17435_v48, 16 }
0x103d   : > { %v17438_v19 = vcvt.s32.f32 %v6171_v14 }
0x103e   : > { %v17440_v18 = vcvt.s32.f32 %v6185_v52 }
0x103f   : > { %6174 = vmin.xlane.f32.xlu1 %v17438_v19 }
0x1040   : > { %6188 = vmin.xlane.f32.xlu0 %v17440_v18 }
0x1064   : > { %v6161_v12 = vpop.xlane.xlu0 %6160 }
0x1065   : > { %vm6165_vm8 = vcmp.le.f32.partialorder %v17393_v47, %v6161_v12 }
0x1066   : > { %v17446_v57 = vsel %vm6165_vm8, %v15496_v1, 128 }
0x1067   : > { %v6213_v60 = vshra.s32 %v17446_v57, 16 }
0x1069   : > { %v17449_v30 = vcvt.s32.f32 %v6213_v60 }
0x106b   : > { %6216 = vmin.xlane.f32.xlu0 %v17449_v30 }
0x106e   : > { %v6159_v45 = vpop.xlane.xlu1 %6158 }
0x106f   : > { %vm6164_vm9 = vcmp.le.f32.partialorder %v17404_v15, %v6159_v45 }
0x1070   : > { %v17454_v13 = vsel %vm6164_vm9, %v15496_v1, 128 }
0x1071   : > { %v6199_v63 = vshra.s32 %v17454_v13, 16 }
0x1073   : > { %v17457_v20 = vcvt.s32.f32 %v6199_v63 }
0x1075   : > { %6202 = vmin.xlane.f32.xlu1 %v17457_v20 }
0x107e   : > { %v14369_v33 = vpop.f32.mrb[36].mxu0 }
0x107f   : > { %v5675_v0 = vcombine.high %v14369_v33, %v14369_v33  ;;  %v5682_v50 = vrot.slane %v14369_v33, %v15818_v59  ;;  %v5518_v21 = vpop.f32.mrb[37].mxu0 }
0x1080   : > { %v5626_v46 = vcombine.high %v5518_v21, %v5518_v21  ;;  %v5633_v24 = vrot.slane %v5518_v21, %v15818_v59 }
0x1081   : > { %v5689_v11 = vrot.slane %v5675_v0, %v15818_v59  ;;  %v5690_v53 = vcombine.high %v5682_v50, %v5682_v50  ;;  %v5698_v38 = vrot.slane %v5682_v50, %v15818_v59 }
0x1082   : > { %v5640_v16 = vrot.slane %v5626_v46, %v15818_v59  ;;  %v5641_v49 = vcombine.high %v5633_v24, %v5633_v24  ;;  %v5649_v31 = vrot.slane %v5633_v24, %v15818_v59 }
0x1083   : > { %v5691_v36 = vcombine.high %v5689_v11, %v5689_v11  ;;  %v5705_v62 = vrot.slane %v5689_v11, %v15818_v59  ;;  %v5712_v37 = vrot.slane %v5690_v53, %v15818_v59  ;;  %v5720_v42 = vcombine.high %v5698_v38, %v5698_v38  ;;  %5862 = vst.msk [vmem:[%s15529_s13 + $0x86] sm:$0x1] %vm1136_vm5, %v5698_v38 }
0x1084   : > { %v5642_v55 = vcombine.high %v5640_v16, %v5640_v16  ;;  %v5656_v41 = vrot.slane %v5640_v16, %v15818_v59  ;;  %v5663_v17 = vrot.slane %v5641_v49, %v15818_v59  ;;  %v5671_v25 = vcombine.high %v5649_v31, %v5649_v31  ;;  %5854 = vst.msk [vmem:[%s15529_s13 + $0x6] sm:$0x1] %vm1136_vm5, %v5649_v31 }
0x1085   : > { %v5719_v44 = vrot.slane %v5691_v36, %v15818_v59  ;;  %v5721_v40 = vcombine.high %v5705_v62, %v5705_v62  ;;  %v5722_v58 = vcombine.high %v5712_v37, %v5712_v37  ;;  %5863 = vst.msk [vmem:[%s15529_s13 + $0x96] sm:$0x1] %vm1136_vm5, %v5712_v37  ;;  %5864 = vst.msk [vmem:[%s15529_s13 + $0xa6] sm:$0x1] %vm1136_vm5, %v5720_v42 }
0x1086   : > { %5866 = vst.msk [vmem:[%s15529_s13 + $0xc6] sm:$0x1] %vm1136_vm5, %v5705_v62  ;;  %v5670_v9 = vrot.slane %v5642_v55, %v15818_v59  ;;  %v5672_v34 = vcombine.high %v5656_v41, %v5656_v41  ;;  %v5673_v56 = vcombine.high %v5663_v17, %v5663_v17  ;;  %5855 = vst.msk [vmem:[%s15529_s13 + $0x16] sm:$0x1] %vm1136_vm5, %v5663_v17 }
0x1087   : > { %5856 = vst.msk [vmem:[%s15529_s13 + $0x26] sm:$0x1] %vm1136_vm5, %v5671_v25  ;;  %5858 = vst.msk [vmem:[%s15529_s13 + $0x46] sm:$0x1] %vm1136_vm5, %v5656_v41  ;;  %v5723_v51 = vcombine.high %v5719_v44, %v5719_v44 }
0x1088   : > { %5865 = vst.msk [vmem:[%s15529_s13 + $0xb6] sm:$0x1] %vm1136_vm5, %v5722_v58  ;;  %5867 = vst.msk [vmem:[%s15529_s13 + $0xd6] sm:$0x1] %vm1136_vm5, %v5719_v44  ;;  %v5674_v10 = vcombine.high %v5670_v9, %v5670_v9 }
0x1089   : > { %5868 = vst.msk [vmem:[%s15529_s13 + $0xe6] sm:$0x1] %vm1136_vm5, %v5721_v40  ;;  %5857 = vst.msk [vmem:[%s15529_s13 + $0x36] sm:$0x1] %vm1136_vm5, %v5673_v56 }
0x108a   : > { %5859 = vst.msk [vmem:[%s15529_s13 + $0x56] sm:$0x1] %vm1136_vm5, %v5670_v9  ;;  %5860 = vst.msk [vmem:[%s15529_s13 + $0x66] sm:$0x1] %vm1136_vm5, %v5672_v34 }
0x108b   : > { %5869 = vst.msk [vmem:[%s15529_s13 + $0xf6] sm:$0x1] %vm1136_vm5, %v5723_v51  ;;  %5861 = vst.msk [vmem:[%s15529_s13 + $0x76] sm:$0x1] %vm1136_vm5, %v5674_v10 }
0x10b4   : > { %v14372_v23 = vpop.f32.mrb[38].mxu0 }
0x10b5   : > { %v5773_v39 = vcombine.high %v14372_v23, %v14372_v23  ;;  %v5780_v43 = vrot.slane %v14372_v23, %v15818_v59  ;;  %v5528_v26 = vpop.f32.mrb[39].mxu0 }
0x10b6   : > { %v5724_v32 = vcombine.high %v5528_v26, %v5528_v26  ;;  %v5731_v28 = vrot.slane %v5528_v26, %v15818_v59 }
0x10b7   : > { %v5787_v14 = vrot.slane %v5773_v39, %v15818_v59  ;;  %v5788_v52 = vcombine.high %v5780_v43, %v5780_v43  ;;  %v5796_v12 = vrot.slane %v5780_v43, %v15818_v59 }
0x10b8   : > { %v5738_v60 = vrot.slane %v5724_v32, %v15818_v59  ;;  %v5739_v45 = vcombine.high %v5731_v28, %v5731_v28  ;;  %v5747_v63 = vrot.slane %v5731_v28, %v15818_v59  ;;  %v14407_v55 = vpop.f32.mrb[40].mxu0 }
0x10b9   : > { %v5789_v33 = vcombine.high %v5787_v14, %v5787_v14  ;;  %v5803_v0 = vrot.slane %v5787_v14, %v15818_v59  ;;  %v5810_v50 = vrot.slane %v5788_v52, %v15818_v59  ;;  %v5818_v21 = vcombine.high %v5796_v12, %v5796_v12  ;;  %5878 = vst.msk [vmem:[%s15529_s13 + $0x186] sm:$0x1] %vm1136_vm5, %v5796_v12  ;;  %v5603_v25 = vpop.f32.mrb[41].mxu0 }
0x10ba   : > { %v5740_v46 = vcombine.high %v5738_v60, %v5738_v60  ;;  %v5754_v24 = vrot.slane %v5738_v60, %v15818_v59  ;;  %v5761_v11 = vrot.slane %v5739_v45, %v15818_v59  ;;  %v5769_v53 = vcombine.high %v5747_v63, %v5747_v63  ;;  %5870 = vst.msk [vmem:[%s15529_s13 + $0x106] sm:$0x1] %vm1136_vm5, %v5747_v63 }
0x10bb   : > { %v5817_v38 = vrot.slane %v5789_v33, %v15818_v59  ;;  %v5819_v16 = vcombine.high %v5803_v0, %v5803_v0  ;;  %v5820_v49 = vcombine.high %v5810_v50, %v5810_v50  ;;  %5879 = vst.msk [vmem:[%s15529_s13 + $0x196] sm:$0x1] %vm1136_vm5, %v5810_v50  ;;  %5880 = vst.msk [vmem:[%s15529_s13 + $0x1a6] sm:$0x1] %vm1136_vm5, %v5818_v21 }
0x10bc   : > { %5882 = vst.msk [vmem:[%s15529_s13 + $0x1c6] sm:$0x1] %vm1136_vm5, %v5803_v0  ;;  %v5768_v31 = vrot.slane %v5740_v46, %v15818_v59  ;;  %v5770_v36 = vcombine.high %v5754_v24, %v5754_v24  ;;  %v5771_v62 = vcombine.high %v5761_v11, %v5761_v11  ;;  %5871 = vst.msk [vmem:[%s15529_s13 + $0x116] sm:$0x1] %vm1136_vm5, %v5761_v11  ;;  %v14410_v23 = vpop.f32.mrb[42].mxu0 }
0x10bd   : > { %5872 = vst.msk [vmem:[%s15529_s13 + $0x126] sm:$0x1] %vm1136_vm5, %v5769_v53  ;;  %5874 = vst.msk [vmem:[%s15529_s13 + $0x146] sm:$0x1] %vm1136_vm5, %v5754_v24  ;;  %v5821_v37 = vcombine.high %v5817_v38, %v5817_v38  ;;  %v5939_v41 = vcombine.high %v14407_v55, %v14407_v55  ;;  %v5946_v17 = vrot.slane %v14407_v55, %v15818_v59  ;;  %v5613_v28 = vpop.f32.mrb[43].mxu0 }
0x10be   : > { %5881 = vst.msk [vmem:[%s15529_s13 + $0x1b6] sm:$0x1] %vm1136_vm5, %v5820_v49  ;;  %5883 = vst.msk [vmem:[%s15529_s13 + $0x1d6] sm:$0x1] %vm1136_vm5, %v5817_v38  ;;  %v5772_v42 = vcombine.high %v5768_v31, %v5768_v31  ;;  %v5890_v44 = vcombine.high %v5603_v25, %v5603_v25  ;;  %v5897_v40 = vrot.slane %v5603_v25, %v15818_v59 }
0x10bf   : > { %5884 = vst.msk [vmem:[%s15529_s13 + $0x1e6] sm:$0x1] %vm1136_vm5, %v5819_v16  ;;  %5873 = vst.msk [vmem:[%s15529_s13 + $0x136] sm:$0x1] %vm1136_vm5, %v5771_v62  ;;  %v5953_v58 = vrot.slane %v5939_v41, %v15818_v59  ;;  %v5954_v9 = vcombine.high %v5946_v17, %v5946_v17  ;;  %v5962_v34 = vrot.slane %v5946_v17, %v15818_v59 }
0x10c0   : > { %5875 = vst.msk [vmem:[%s15529_s13 + $0x156] sm:$0x1] %vm1136_vm5, %v5768_v31  ;;  %5876 = vst.msk [vmem:[%s15529_s13 + $0x166] sm:$0x1] %vm1136_vm5, %v5770_v36  ;;  %v5904_v56 = vrot.slane %v5890_v44, %v15818_v59  ;;  %v5905_v51 = vcombine.high %v5897_v40, %v5897_v40  ;;  %v5913_v10 = vrot.slane %v5897_v40, %v15818_v59 }
0x10c1   : > { %5885 = vst.msk [vmem:[%s15529_s13 + $0x1f6] sm:$0x1] %vm1136_vm5, %v5821_v37  ;;  %5877 = vst.msk [vmem:[%s15529_s13 + $0x176] sm:$0x1] %vm1136_vm5, %v5772_v42  ;;  %v5955_v39 = vcombine.high %v5953_v58, %v5953_v58  ;;  %v5969_v43 = vrot.slane %v5953_v58, %v15818_v59  ;;  %v5976_v26 = vrot.slane %v5954_v9, %v15818_v59 }
0x10c2   : > { %v5984_v32 = vcombine.high %v5962_v34, %v5962_v34  ;;  %6126 = vst.msk [vmem:[%s15534_s16 + $0x86] sm:$0x1] %vm1401_vm6, %v5962_v34  ;;  %v5906_v14 = vcombine.high %v5904_v56, %v5904_v56  ;;  %v5920_v52 = vrot.slane %v5904_v56, %v15818_v59  ;;  %v5927_v12 = vrot.slane %v5905_v51, %v15818_v59 }
0x10c3   : > { %v5935_v60 = vcombine.high %v5913_v10, %v5913_v10  ;;  %6118 = vst.msk [vmem:[%s15534_s16 + $0x6] sm:$0x1] %vm1401_vm6, %v5913_v10  ;;  %v5983_v45 = vrot.slane %v5955_v39, %v15818_v59  ;;  %v5985_v63 = vcombine.high %v5969_v43, %v5969_v43  ;;  %v5986_v33 = vcombine.high %v5976_v26, %v5976_v26 }
0x10c4   : > { %6127 = vst.msk [vmem:[%s15534_s16 + $0x96] sm:$0x1] %vm1401_vm6, %v5976_v26  ;;  %6128 = vst.msk [vmem:[%s15534_s16 + $0xa6] sm:$0x1] %vm1401_vm6, %v5984_v32  ;;  %v6037_v0 = vcombine.high %v14410_v23, %v14410_v23  ;;  %v5934_v50 = vrot.slane %v5906_v14, %v15818_v59  ;;  %v5936_v21 = vcombine.high %v5920_v52, %v5920_v52  ;;  %v6170_v32 = vand.u32 65535, %v17430_v54 }
0x10c5   : > { %6130 = vst.msk [vmem:[%s15534_s16 + $0xc6] sm:$0x1] %vm1401_vm6, %v5969_v43  ;;  %v5937_v46 = vcombine.high %v5927_v12, %v5927_v12  ;;  %6119 = vst.msk [vmem:[%s15534_s16 + $0x16] sm:$0x1] %vm1401_vm6, %v5927_v12  ;;  %v6044_v24 = vrot.slane %v14410_v23, %v15818_v59  ;;  %v5987_v11 = vcombine.high %v5983_v45, %v5983_v45 }
0x10c6   : > { %6120 = vst.msk [vmem:[%s15534_s16 + $0x26] sm:$0x1] %vm1401_vm6, %v5935_v60  ;;  %6122 = vst.msk [vmem:[%s15534_s16 + $0x46] sm:$0x1] %vm1401_vm6, %v5920_v52  ;;  %v6051_v53 = vrot.slane %v6037_v0, %v15818_v59  ;;  %v5988_v38 = vcombine.high %v5613_v28, %v5613_v28  ;;  %v5995_v16 = vrot.slane %v5613_v28, %v15818_v59  ;;  %v6184_v28 = vand.u32 65535, %v17435_v48 }
0x10c7   : > { %6129 = vst.msk [vmem:[%s15534_s16 + $0xb6] sm:$0x1] %vm1401_vm6, %v5986_v33  ;;  %6131 = vst.msk [vmem:[%s15534_s16 + $0xd6] sm:$0x1] %vm1401_vm6, %v5983_v45  ;;  %v5938_v49 = vcombine.high %v5934_v50, %v5934_v50  ;;  %v6052_v31 = vcombine.high %v6044_v24, %v6044_v24  ;;  %v6060_v36 = vrot.slane %v6044_v24, %v15818_v59  ;;  %v6172_v14 = vcvt.s32.f32 %v6170_v32 }
0x10c8   : > { %6132 = vst.msk [vmem:[%s15534_s16 + $0xe6] sm:$0x1] %vm1401_vm6, %v5985_v63  ;;  %6121 = vst.msk [vmem:[%s15534_s16 + $0x36] sm:$0x1] %vm1401_vm6, %v5937_v46  ;;  %v6053_v62 = vcombine.high %v6051_v53, %v6051_v53  ;;  %v6067_v37 = vrot.slane %v6051_v53, %v15818_v59  ;;  %v6002_v42 = vrot.slane %v5988_v38, %v15818_v59  ;;  %v6186_v12 = vcvt.s32.f32 %v6184_v28 }
0x10c9   : > { %6123 = vst.msk [vmem:[%s15534_s16 + $0x56] sm:$0x1] %vm1401_vm6, %v5934_v50  ;;  %6124 = vst.msk [vmem:[%s15534_s16 + $0x66] sm:$0x1] %vm1401_vm6, %v5936_v21  ;;  %v6003_v55 = vcombine.high %v5995_v16, %v5995_v16  ;;  %v6074_v41 = vrot.slane %v6052_v31, %v15818_v59  ;;  %v6082_v17 = vcombine.high %v6060_v36, %v6060_v36  ;;  %v6212_v33 = vand.u32 65535, %v17446_v57 }
0x10ca   : > { %6133 = vst.msk [vmem:[%s15534_s16 + $0xf6] sm:$0x1] %vm1401_vm6, %v5987_v11  ;;  %6125 = vst.msk [vmem:[%s15534_s16 + $0x76] sm:$0x1] %vm1401_vm6, %v5938_v49  ;;  %v6011_v25 = vrot.slane %v5995_v16, %v15818_v59  ;;  %v6081_v44 = vrot.slane %v6053_v62, %v15818_v59  ;;  %v6083_v40 = vcombine.high %v6067_v37, %v6067_v37  ;;  %v6198_v48 = vand.u32 65535, %v17454_v13 }
0x10cb   : > { %6142 = vst.msk [vmem:[%s15534_s16 + $0x186] sm:$0x1] %vm1401_vm6, %v6060_v36  ;;  %6146 = vst.msk [vmem:[%s15534_s16 + $0x1c6] sm:$0x1] %vm1401_vm6, %v6067_v37  ;;  %v6004_v58 = vcombine.high %v6002_v42, %v6002_v42  ;;  %v6018_v9 = vrot.slane %v6002_v42, %v15818_v59  ;;  %v6084_v34 = vcombine.high %v6074_v41, %v6074_v41  ;;  %v6214_v0 = vcvt.s32.f32 %v6212_v33 }
0x10cc   : > { %6143 = vst.msk [vmem:[%s15534_s16 + $0x196] sm:$0x1] %vm1401_vm6, %v6074_v41  ;;  %6144 = vst.msk [vmem:[%s15534_s16 + $0x1a6] sm:$0x1] %vm1401_vm6, %v6082_v17  ;;  %v6025_v56 = vrot.slane %v6003_v55, %v15818_v59  ;;  %v6033_v51 = vcombine.high %v6011_v25, %v6011_v25  ;;  %v6085_v10 = vcombine.high %v6081_v44, %v6081_v44  ;;  %v6175_v52 = vpop.xlane.xlu1 %6174  ;;  %v6200_v21 = vcvt.s32.f32 %v6198_v48 }
0x10cd   : > { %6134 = vst.msk [vmem:[%s15534_s16 + $0x106] sm:$0x1] %vm1401_vm6, %v6011_v25  ;;  %6147 = vst.msk [vmem:[%s15534_s16 + $0x1d6] sm:$0x1] %vm1401_vm6, %v6081_v44  ;;  %v6032_v23 = vrot.slane %v6004_v58, %v15818_v59  ;;  %v6034_v39 = vcombine.high %v6018_v9, %v6018_v9  ;;  %v6189_v60 = vpop.xlane.xlu0 %6188  ;;  %vm6176_vm10 = vcmp.eq.f32.partialorder %v17438_v19, %v6175_v52 }
0x10ce   : > { %6148 = vst.msk [vmem:[%s15534_s16 + $0x1e6] sm:$0x1] %vm1401_vm6, %v6083_v40  ;;  %6138 = vst.msk [vmem:[%s15534_s16 + $0x146] sm:$0x1] %vm1401_vm6, %v6018_v9  ;;  %v6035_v43 = vcombine.high %v6025_v56, %v6025_v56  ;;  %v6177_v45 = vsel %vm6176_vm10, %v6172_v14, inf  ;;  %vm6190_vm11 = vcmp.eq.f32.partialorder %v17440_v18, %v6189_v60  ;;  %v6181_v18 = vcvt.f32.s32 %v6175_v52 }
0x10cf   : > { %6145 = vst.msk [vmem:[%s15534_s16 + $0x1b6] sm:$0x1] %vm1401_vm6, %v6084_v34  ;;  %6135 = vst.msk [vmem:[%s15534_s16 + $0x116] sm:$0x1] %vm1401_vm6, %v6025_v56  ;;  %v6036_v26 = vcombine.high %v6032_v23, %v6032_v23  ;;  %6178 = vmin.xlane.f32.xlu1 %v6177_v45  ;;  %v6191_v63 = vsel %vm6190_vm11, %v6186_v12, inf  ;;  %v6195_v24 = vcvt.f32.s32 %v6189_v60 }
0x10d0   : > { %6136 = vst.msk [vmem:[%s15534_s16 + $0x126] sm:$0x1] %vm1401_vm6, %v6033_v51  ;;  %6149 = vst.msk [vmem:[%s15534_s16 + $0x1f6] sm:$0x1] %vm1401_vm6, %v6085_v10  ;;  %6192 = vmin.xlane.f32.xlu0 %v6191_v63  ;;  %v6182_v53 = vshll.u32 %v6181_v18, 16 }
0x10d1   : > { %6139 = vst.msk [vmem:[%s15534_s16 + $0x156] sm:$0x1] %vm1401_vm6, %v6032_v23  ;;  %6140 = vst.msk [vmem:[%s15534_s16 + $0x166] sm:$0x1] %vm1401_vm6, %v6034_v39  ;;  %v6196_v16 = vshll.u32 %v6195_v24, 16 }
0x10d2   : > { %6137 = vst.msk [vmem:[%s15534_s16 + $0x136] sm:$0x1] %vm1401_vm6, %v6035_v43  ;;  %6141 = vst.msk [vmem:[%s15534_s16 + $0x176] sm:$0x1] %vm1401_vm6, %v6036_v26 }
0x10f8   : > { %v6217_v50 = vpop.xlane.xlu0 %6216 }
0x10f9   : > { %vm6218_vm12 = vcmp.eq.f32.partialorder %v17449_v30, %v6217_v50  ;;  %v6223_v36 = vcvt.f32.s32 %v6217_v50 }
0x10fa   : > { %v6219_v54 = vsel %vm6218_vm12, %v6214_v0, inf }
0x10fb   : > { %6220 = vmin.xlane.f32.xlu0 %v6219_v54  ;;  %v6224_v62 = vshll.u32 %v6223_v36, 16 }
0x1102   : > { %v6203_v46 = vpop.xlane.xlu1 %6202 }
0x1103   : > { %vm6204_vm13 = vcmp.eq.f32.partialorder %v17457_v20, %v6203_v46 }
0x1104   : > { %v6205_v19 = vsel %vm6204_vm13, %v6200_v21, inf }
0x1105   : > { %6206 = vmin.xlane.f32.xlu1 %v6205_v19 }
0x115c   : > { %v6179_v11 = vpop.xlane.xlu1 %6178 }
0x115d   : > { %v6180_v38 = vcvt.f32.s32 %v6179_v11  ;;  %v6193_v57 = vpop.xlane.xlu0 %6192 }
0x115e   : > { %v6194_v49 = vcvt.f32.s32 %v6193_v57 }
0x115f   : > { %v6183_v31 = vadd.s32 %v6182_v53, %v6180_v38 }
0x1160   : > { %v6197_v30 = vadd.s32 %v6196_v16, %v6194_v49 }
0x1161   : > { %vm6226_vm14 = vcmp.eq.s32.totalorder %v15496_v1, %v6183_v31 }
0x1162   : > { %vm6227_vm15 = vcmp.eq.s32.totalorder %v15496_v1, %v6197_v30  ;;  %14413 = vmatprep.mubr.msk.f32.mxu1 %vm6226_vm14, %v15455_v61  ;;  %v17652_v13 = vsel %vm6226_vm14, 3e+38, %v17372_v35 }
0x1163   : > { %6940 = vmin.xlane.f32.xlu1 %v17652_v13  ;;  %14414 = vmatmul.mubr.msk.f32.vlgmr.msra.gmra.mrb[20].mxu1 %vm6227_vm15, %v15455_v61  ;;  %v17661_v20 = vsel %vm6227_vm15, 3e+38, %v17381_v22  ;;  %v6209_v22 = vcvt.f32.s32 %v6203_v46 }
0x1164   : > { %15084 = vmatpush3.bf16.msra.mxu1 %v15649_v27  ;;  %6942 = vmin.xlane.f32.xlu0 %v17661_v20 }
0x1165   : > { %15086 = vmatprep.subr.bf16.mxu1 %v15657_v29  ;;  %v6210_v17 = vshll.u32 %v6209_v22, 16 }
0x1168   : > { %15088 = vmatpush3.bf16.msra.mxu1 %v15657_v29 }
0x1169   : > { %15090 = vmatprep.subr.bf16.mxu1 %v15663_v3 }
0x116c   : > { %15092 = vmatpush3.bf16.msra.mxu1 %v15663_v3 }
0x116d   : > { %15094 = vmatprep.subr.bf16.mxu1 %v15669_v4 }
0x1170   : > { %15096 = vmatpush3.bf16.msra.mxu1 %v15669_v4 }
0x1171   : > { %15098 = vmatprep.subr.bf16.mxu1 %v15675_v5 }
0x1174   : > { %15100 = vmatpush3.bf16.msra.mxu1 %v15675_v5 }
0x1175   : > { %15102 = vmatprep.subr.bf16.mxu1 %v15681_v6 }
0x1178   : > { %15104 = vmatpush3.bf16.msra.mxu1 %v15681_v6 }
0x1179   : > { %15106 = vmatprep.subr.bf16.mxu1 %v15686_v7 }
0x117c   : > { %15108 = vmatpush3.bf16.msra.mxu1 %v15686_v7 }
0x117d   : > { %15110 = vmatprep.subr.bf16.mxu1 %v15692_v8 }
0x1180   : > { %15112 = vmatpush3.bf16.msra.mxu1 %v15692_v8 }
0x1181   : > { %14503 = vmatprep.subr.mxu1 %v15504_v2 }
0x1188   : > { %v6221_v35 = vpop.xlane.xlu0 %6220 }
0x1189   : > { %v6222_v37 = vcvt.f32.s32 %v6221_v35 }
0x118b   : > { %v6225_v42 = vadd.s32 %v6224_v62, %v6222_v37 }
0x118d   : > { %vm6229_vm0 = vcmp.eq.s32.totalorder %v15496_v1, %v6225_v42 }
0x118e   : > { %v17673_v55 = vsel %vm6229_vm0, 3e+38, %v17393_v47 }
0x118f   : > { %6946 = vmin.xlane.f32.xlu0 %v17673_v55 }
0x1192   : > { %v6207_v41 = vpop.xlane.xlu1 %6206 }
0x1193   : > { %v6208_v25 = vcvt.f32.s32 %v6207_v41 }
0x1195   : > { %v6211_v44 = vadd.s32 %v6210_v17, %v6208_v25 }
0x1197   : > { %vm6228_vm1 = vcmp.eq.s32.totalorder %v15496_v1, %v6211_v44 }
0x1198   : > { %14416 = vmatprep.mubr.msk.f32.mxu1 %vm6228_vm1, %v15455_v61  ;;  %v17684_v47 = vsel %vm6228_vm1, 3e+38, %v17404_v15 }
0x1199   : > { %6944 = vmin.xlane.f32.xlu1 %v17684_v47  ;;  %14417 = vmatmul.mubr.msk.f32.gmra.mrb[22].mxu1 %vm6229_vm0, %v15455_v61 }
0x119a   : > { %14451 = vmatprep.mubr.msk.f32.mxu1 %vm6226_vm14, %v15455_v61 }
0x119d   : > { %14452 = vmatmul.mubr.msk.f32.vlgmr.msra.gmra.mrb[24].mxu1 %vm6227_vm15, %v15455_v61 }
0x119e   : > { %14454 = vmatprep.mubr.msk.f32.mxu1 %vm6228_vm1, %v15455_v61  ;;  %14504 = vmatpush3.xpose.msra.mxu1 %v15504_v2 }
0x119f   : > { %15146 = vmatprep.subr.bf16.mxu1 %v15649_v27 }
0x11a1   : > { %14455 = vmatmul.mubr.msk.f32.gmra.mrb[26].mxu1 %vm6229_vm0, %v15455_v61 }
0x11f0   : > { %v6941_v15 = vpop.xlane.xlu1 %6940 }
0x11f1   : > { %vm6948_vm2 = vcmp.le.f32.partialorder %v17652_v13, %v6941_v15  ;;  %v6943_v40 = vpop.xlane.xlu0 %6942 }
0x11f2   : > { %v17710_v58 = vsel %vm6948_vm2, %v15496_v1, 128  ;;  %vm6949_vm3 = vcmp.le.f32.partialorder %v17661_v20, %v6943_v40 }
0x11f3   : > { %v6957_v9 = vshra.s32 %v17710_v58, 16  ;;  %v17715_v34 = vsel %vm6949_vm3, %v15496_v1, 128 }
0x11f4   : > { %v6971_v56 = vshra.s32 %v17715_v34, 16 }
0x11f5   : > { %v17718_v51 = vcvt.s32.f32 %v6957_v9 }
0x11f6   : > { %v17720_v10 = vcvt.s32.f32 %v6971_v56 }
0x11f7   : > { %6960 = vmin.xlane.f32.xlu1 %v17718_v51 }
0x11f8   : > { %6974 = vmin.xlane.f32.xlu0 %v17720_v10 }
0x121c   : > { %v6947_v23 = vpop.xlane.xlu0 %6946 }
0x121d   : > { %vm6951_vm4 = vcmp.le.f32.partialorder %v17673_v55, %v6947_v23 }
0x121e   : > { %v17726_v39 = vsel %vm6951_vm4, %v15496_v1, 128 }
0x121f   : > { %v6999_v43 = vshra.s32 %v17726_v39, 16 }
0x1221   : > { %v17729_v26 = vcvt.s32.f32 %v6999_v43 }
0x1223   : > { %7002 = vmin.xlane.f32.xlu0 %v17729_v26 }
0x1226   : > { %v6945_v32 = vpop.xlane.xlu1 %6944 }
0x1227   : > { %vm6950_vm7 = vcmp.le.f32.partialorder %v17684_v47, %v6945_v32 }
0x1228   : > { %v17734_v28 = vsel %vm6950_vm7, %v15496_v1, 128 }
0x1229   : > { %v6985_v14 = vshra.s32 %v17734_v28, 16 }
0x122b   : > { %v17737_v52 = vcvt.s32.f32 %v6985_v14 }
0x122d   : > { %6988 = vmin.xlane.f32.xlu1 %v17737_v52 }
0x1236   : > { %v14415_v12 = vpop.f32.mrb[20].mxu1 }
0x1237   : > { %v6461_v60 = vcombine.high %v14415_v12, %v14415_v12  ;;  %v6468_v45 = vrot.slane %v14415_v12, %v15818_v59  ;;  %v6304_v63 = vpop.f32.mrb[21].mxu1 }
0x1238   : > { %v6412_v33 = vcombine.high %v6304_v63, %v6304_v63  ;;  %v6419_v0 = vrot.slane %v6304_v63, %v15818_v59 }
0x1239   : > { %v6475_v50 = vrot.slane %v6461_v60, %v15818_v59  ;;  %v6476_v54 = vcombine.high %v6468_v45, %v6468_v45  ;;  %v6484_v48 = vrot.slane %v6468_v45, %v15818_v59 }
0x123a   : > { %v6426_v21 = vrot.slane %v6412_v33, %v15818_v59  ;;  %v6427_v46 = vcombine.high %v6419_v0, %v6419_v0  ;;  %v6435_v19 = vrot.slane %v6419_v0, %v15818_v59 }
0x123b   : > { %v6477_v18 = vcombine.high %v6475_v50, %v6475_v50  ;;  %v6491_v24 = vrot.slane %v6475_v50, %v15818_v59  ;;  %v6498_v11 = vrot.slane %v6476_v54, %v15818_v59  ;;  %v6506_v53 = vcombine.high %v6484_v48, %v6484_v48  ;;  %6648 = vst.msk [vmem:[%s15529_s13 + $0x87] sm:$0x1] %vm1136_vm5, %v6484_v48 }
0x123c   : > { %v6428_v38 = vcombine.high %v6426_v21, %v6426_v21  ;;  %v6442_v57 = vrot.slane %v6426_v21, %v15818_v59  ;;  %v6449_v16 = vrot.slane %v6427_v46, %v15818_v59  ;;  %v6457_v49 = vcombine.high %v6435_v19, %v6435_v19  ;;  %6640 = vst.msk [vmem:[%s15529_s13 + $0x7] sm:$0x1] %vm1136_vm5, %v6435_v19 }
0x123d   : > { %v6505_v31 = vrot.slane %v6477_v18, %v15818_v59  ;;  %v6507_v30 = vcombine.high %v6491_v24, %v6491_v24  ;;  %v6508_v36 = vcombine.high %v6498_v11, %v6498_v11  ;;  %6649 = vst.msk [vmem:[%s15529_s13 + $0x97] sm:$0x1] %vm1136_vm5, %v6498_v11  ;;  %6650 = vst.msk [vmem:[%s15529_s13 + $0xa7] sm:$0x1] %vm1136_vm5, %v6506_v53 }
0x123e   : > { %6652 = vst.msk [vmem:[%s15529_s13 + $0xc7] sm:$0x1] %vm1136_vm5, %v6491_v24  ;;  %v6456_v35 = vrot.slane %v6428_v38, %v15818_v59  ;;  %v6458_v62 = vcombine.high %v6442_v57, %v6442_v57  ;;  %v6459_v37 = vcombine.high %v6449_v16, %v6449_v16  ;;  %6641 = vst.msk [vmem:[%s15529_s13 + $0x17] sm:$0x1] %vm1136_vm5, %v6449_v16 }
0x123f   : > { %6642 = vst.msk [vmem:[%s15529_s13 + $0x27] sm:$0x1] %vm1136_vm5, %v6457_v49  ;;  %6644 = vst.msk [vmem:[%s15529_s13 + $0x47] sm:$0x1] %vm1136_vm5, %v6442_v57  ;;  %v6509_v42 = vcombine.high %v6505_v31, %v6505_v31 }
0x1240   : > { %6651 = vst.msk [vmem:[%s15529_s13 + $0xb7] sm:$0x1] %vm1136_vm5, %v6508_v36  ;;  %6653 = vst.msk [vmem:[%s15529_s13 + $0xd7] sm:$0x1] %vm1136_vm5, %v6505_v31  ;;  %v6460_v22 = vcombine.high %v6456_v35, %v6456_v35 }
0x1241   : > { %6654 = vst.msk [vmem:[%s15529_s13 + $0xe7] sm:$0x1] %vm1136_vm5, %v6507_v30  ;;  %6643 = vst.msk [vmem:[%s15529_s13 + $0x37] sm:$0x1] %vm1136_vm5, %v6459_v37 }
0x1242   : > { %6645 = vst.msk [vmem:[%s15529_s13 + $0x57] sm:$0x1] %vm1136_vm5, %v6456_v35  ;;  %6646 = vst.msk [vmem:[%s15529_s13 + $0x67] sm:$0x1] %vm1136_vm5, %v6458_v62 }
0x1243   : > { %6655 = vst.msk [vmem:[%s15529_s13 + $0xf7] sm:$0x1] %vm1136_vm5, %v6509_v42  ;;  %6647 = vst.msk [vmem:[%s15529_s13 + $0x77] sm:$0x1] %vm1136_vm5, %v6460_v22 }
0x126c   : > { %v14418_v41 = vpop.f32.mrb[22].mxu1 }
0x126d   : > { %v6559_v17 = vcombine.high %v14418_v41, %v14418_v41  ;;  %v6566_v25 = vrot.slane %v14418_v41, %v15818_v59  ;;  %v6314_v44 = vpop.f32.mrb[23].mxu1 }
0x126e   : > { %v6510_v15 = vcombine.high %v6314_v44, %v6314_v44  ;;  %v6517_v40 = vrot.slane %v6314_v44, %v15818_v59 }
0x126f   : > { %v6573_v9 = vrot.slane %v6559_v17, %v15818_v59  ;;  %v6574_v56 = vcombine.high %v6566_v25, %v6566_v25  ;;  %v6582_v23 = vrot.slane %v6566_v25, %v15818_v59 }
0x1270   : > { %v6524_v43 = vrot.slane %v6510_v15, %v15818_v59  ;;  %v6525_v32 = vcombine.high %v6517_v40, %v6517_v40  ;;  %v6533_v14 = vrot.slane %v6517_v40, %v15818_v59  ;;  %v14453_v38 = vpop.f32.mrb[24].mxu1 }
0x1271   : > { %v6575_v12 = vcombine.high %v6573_v9, %v6573_v9  ;;  %v6589_v60 = vrot.slane %v6573_v9, %v15818_v59  ;;  %v6596_v45 = vrot.slane %v6574_v56, %v15818_v59  ;;  %v6604_v63 = vcombine.high %v6582_v23, %v6582_v23  ;;  %6664 = vst.msk [vmem:[%s15529_s13 + $0x187] sm:$0x1] %vm1136_vm5, %v6582_v23  ;;  %v6389_v49 = vpop.f32.mrb[25].mxu1 }
0x1272   : > { %v6526_v33 = vcombine.high %v6524_v43, %v6524_v43  ;;  %v6540_v0 = vrot.slane %v6524_v43, %v15818_v59  ;;  %v6547_v50 = vrot.slane %v6525_v32, %v15818_v59  ;;  %v6555_v54 = vcombine.high %v6533_v14, %v6533_v14  ;;  %6656 = vst.msk [vmem:[%s15529_s13 + $0x107] sm:$0x1] %vm1136_vm5, %v6533_v14 }
0x1273   : > { %v6603_v48 = vrot.slane %v6575_v12, %v15818_v59  ;;  %v6605_v21 = vcombine.high %v6589_v60, %v6589_v60  ;;  %v6606_v46 = vcombine.high %v6596_v45, %v6596_v45  ;;  %6665 = vst.msk [vmem:[%s15529_s13 + $0x197] sm:$0x1] %vm1136_vm5, %v6596_v45  ;;  %6666 = vst.msk [vmem:[%s15529_s13 + $0x1a7] sm:$0x1] %vm1136_vm5, %v6604_v63 }
0x1274   : > { %6668 = vst.msk [vmem:[%s15529_s13 + $0x1c7] sm:$0x1] %vm1136_vm5, %v6589_v60  ;;  %v6554_v19 = vrot.slane %v6526_v33, %v15818_v59  ;;  %v6556_v18 = vcombine.high %v6540_v0, %v6540_v0  ;;  %v6557_v24 = vcombine.high %v6547_v50, %v6547_v50  ;;  %6657 = vst.msk [vmem:[%s15529_s13 + $0x117] sm:$0x1] %vm1136_vm5, %v6547_v50  ;;  %v14456_v41 = vpop.f32.mrb[26].mxu1 }
0x1275   : > { %6658 = vst.msk [vmem:[%s15529_s13 + $0x127] sm:$0x1] %vm1136_vm5, %v6555_v54  ;;  %6660 = vst.msk [vmem:[%s15529_s13 + $0x147] sm:$0x1] %vm1136_vm5, %v6540_v0  ;;  %v6607_v11 = vcombine.high %v6603_v48, %v6603_v48  ;;  %v6725_v57 = vcombine.high %v14453_v38, %v14453_v38  ;;  %v6732_v16 = vrot.slane %v14453_v38, %v15818_v59  ;;  %v6399_v40 = vpop.f32.mrb[27].mxu1 }
0x1276   : > { %6667 = vst.msk [vmem:[%s15529_s13 + $0x1b7] sm:$0x1] %vm1136_vm5, %v6606_v46  ;;  %6669 = vst.msk [vmem:[%s15529_s13 + $0x1d7] sm:$0x1] %vm1136_vm5, %v6603_v48  ;;  %v6558_v53 = vcombine.high %v6554_v19, %v6554_v19  ;;  %v6676_v31 = vcombine.high %v6389_v49, %v6389_v49  ;;  %v6683_v30 = vrot.slane %v6389_v49, %v15818_v59 }
0x1277   : > { %6670 = vst.msk [vmem:[%s15529_s13 + $0x1e7] sm:$0x1] %vm1136_vm5, %v6605_v21  ;;  %6659 = vst.msk [vmem:[%s15529_s13 + $0x137] sm:$0x1] %vm1136_vm5, %v6557_v24  ;;  %v6739_v36 = vrot.slane %v6725_v57, %v15818_v59  ;;  %v6740_v35 = vcombine.high %v6732_v16, %v6732_v16  ;;  %v6748_v62 = vrot.slane %v6732_v16, %v15818_v59 }
0x1278   : > { %6661 = vst.msk [vmem:[%s15529_s13 + $0x157] sm:$0x1] %vm1136_vm5, %v6554_v19  ;;  %6662 = vst.msk [vmem:[%s15529_s13 + $0x167] sm:$0x1] %vm1136_vm5, %v6556_v18  ;;  %v6690_v37 = vrot.slane %v6676_v31, %v15818_v59  ;;  %v6691_v42 = vcombine.high %v6683_v30, %v6683_v30  ;;  %v6699_v22 = vrot.slane %v6683_v30, %v15818_v59 }
0x1279   : > { %6671 = vst.msk [vmem:[%s15529_s13 + $0x1f7] sm:$0x1] %vm1136_vm5, %v6607_v11  ;;  %6663 = vst.msk [vmem:[%s15529_s13 + $0x177] sm:$0x1] %vm1136_vm5, %v6558_v53  ;;  %v6741_v17 = vcombine.high %v6739_v36, %v6739_v36  ;;  %v6755_v25 = vrot.slane %v6739_v36, %v15818_v59  ;;  %v6762_v44 = vrot.slane %v6740_v35, %v15818_v59 }
0x127a   : > { %v6770_v15 = vcombine.high %v6748_v62, %v6748_v62  ;;  %6912 = vst.msk [vmem:[%s15534_s16 + $0x87] sm:$0x1] %vm1401_vm6, %v6748_v62  ;;  %v6692_v9 = vcombine.high %v6690_v37, %v6690_v37  ;;  %v6706_v56 = vrot.slane %v6690_v37, %v15818_v59  ;;  %v6713_v23 = vrot.slane %v6691_v42, %v15818_v59 }
0x127b   : > { %v6721_v43 = vcombine.high %v6699_v22, %v6699_v22  ;;  %6904 = vst.msk [vmem:[%s15534_s16 + $0x7] sm:$0x1] %vm1401_vm6, %v6699_v22  ;;  %v6769_v32 = vrot.slane %v6741_v17, %v15818_v59  ;;  %v6771_v14 = vcombine.high %v6755_v25, %v6755_v25  ;;  %v6772_v12 = vcombine.high %v6762_v44, %v6762_v44 }
0x127c   : > { %6913 = vst.msk [vmem:[%s15534_s16 + $0x97] sm:$0x1] %vm1401_vm6, %v6762_v44  ;;  %6914 = vst.msk [vmem:[%s15534_s16 + $0xa7] sm:$0x1] %vm1401_vm6, %v6770_v15  ;;  %v6823_v60 = vcombine.high %v14456_v41, %v14456_v41  ;;  %v6720_v45 = vrot.slane %v6692_v9, %v15818_v59  ;;  %v6722_v63 = vcombine.high %v6706_v56, %v6706_v56  ;;  %v6956_v15 = vand.u32 65535, %v17710_v58 }
0x127d   : > { %6916 = vst.msk [vmem:[%s15534_s16 + $0xc7] sm:$0x1] %vm1401_vm6, %v6755_v25  ;;  %v6723_v33 = vcombine.high %v6713_v23, %v6713_v23  ;;  %6905 = vst.msk [vmem:[%s15534_s16 + $0x17] sm:$0x1] %vm1401_vm6, %v6713_v23  ;;  %v6830_v0 = vrot.slane %v14456_v41, %v15818_v59  ;;  %v6773_v50 = vcombine.high %v6769_v32, %v6769_v32 }
0x127e   : > { %6906 = vst.msk [vmem:[%s15534_s16 + $0x27] sm:$0x1] %vm1401_vm6, %v6721_v43  ;;  %6908 = vst.msk [vmem:[%s15534_s16 + $0x47] sm:$0x1] %vm1401_vm6, %v6706_v56  ;;  %v6837_v54 = vrot.slane %v6823_v60, %v15818_v59  ;;  %v6774_v48 = vcombine.high %v6399_v40, %v6399_v40  ;;  %v6781_v21 = vrot.slane %v6399_v40, %v15818_v59  ;;  %v6970_v40 = vand.u32 65535, %v17715_v34 }
0x127f   : > { %6915 = vst.msk [vmem:[%s15534_s16 + $0xb7] sm:$0x1] %vm1401_vm6, %v6772_v12  ;;  %6917 = vst.msk [vmem:[%s15534_s16 + $0xd7] sm:$0x1] %vm1401_vm6, %v6769_v32  ;;  %v6724_v46 = vcombine.high %v6720_v45, %v6720_v45  ;;  %v6838_v19 = vcombine.high %v6830_v0, %v6830_v0  ;;  %v6846_v18 = vrot.slane %v6830_v0, %v15818_v59  ;;  %v6958_v9 = vcvt.s32.f32 %v6956_v15 }
0x1280   : > { %6918 = vst.msk [vmem:[%s15534_s16 + $0xe7] sm:$0x1] %vm1401_vm6, %v6771_v14  ;;  %6907 = vst.msk [vmem:[%s15534_s16 + $0x37] sm:$0x1] %vm1401_vm6, %v6723_v33  ;;  %v6839_v24 = vcombine.high %v6837_v54, %v6837_v54  ;;  %v6853_v11 = vrot.slane %v6837_v54, %v15818_v59  ;;  %v6788_v53 = vrot.slane %v6774_v48, %v15818_v59  ;;  %v6972_v23 = vcvt.s32.f32 %v6970_v40 }
0x1281   : > { %6909 = vst.msk [vmem:[%s15534_s16 + $0x57] sm:$0x1] %vm1401_vm6, %v6720_v45  ;;  %6910 = vst.msk [vmem:[%s15534_s16 + $0x67] sm:$0x1] %vm1401_vm6, %v6722_v63  ;;  %v6789_v38 = vcombine.high %v6781_v21, %v6781_v21  ;;  %v6860_v57 = vrot.slane %v6838_v19, %v15818_v59  ;;  %v6868_v16 = vcombine.high %v6846_v18, %v6846_v18  ;;  %v6998_v12 = vand.u32 65535, %v17726_v39 }
0x1282   : > { %6919 = vst.msk [vmem:[%s15534_s16 + $0xf7] sm:$0x1] %vm1401_vm6, %v6773_v50  ;;  %6911 = vst.msk [vmem:[%s15534_s16 + $0x77] sm:$0x1] %vm1401_vm6, %v6724_v46  ;;  %v6797_v49 = vrot.slane %v6781_v21, %v15818_v59  ;;  %v6867_v31 = vrot.slane %v6839_v24, %v15818_v59  ;;  %v6869_v30 = vcombine.high %v6853_v11, %v6853_v11  ;;  %v6984_v34 = vand.u32 65535, %v17734_v28 }
0x1283   : > { %6928 = vst.msk [vmem:[%s15534_s16 + $0x187] sm:$0x1] %vm1401_vm6, %v6846_v18  ;;  %6932 = vst.msk [vmem:[%s15534_s16 + $0x1c7] sm:$0x1] %vm1401_vm6, %v6853_v11  ;;  %v6790_v36 = vcombine.high %v6788_v53, %v6788_v53  ;;  %v6804_v35 = vrot.slane %v6788_v53, %v15818_v59  ;;  %v6870_v62 = vcombine.high %v6860_v57, %v6860_v57  ;;  %v7000_v60 = vcvt.s32.f32 %v6998_v12 }
0x1284   : > { %6929 = vst.msk [vmem:[%s15534_s16 + $0x197] sm:$0x1] %vm1401_vm6, %v6860_v57  ;;  %6930 = vst.msk [vmem:[%s15534_s16 + $0x1a7] sm:$0x1] %vm1401_vm6, %v6868_v16  ;;  %v6811_v37 = vrot.slane %v6789_v38, %v15818_v59  ;;  %v6819_v42 = vcombine.high %v6797_v49, %v6797_v49  ;;  %v6871_v22 = vcombine.high %v6867_v31, %v6867_v31  ;;  %v6961_v56 = vpop.xlane.xlu1 %6960  ;;  %v6986_v63 = vcvt.s32.f32 %v6984_v34 }
0x1285   : > { %6920 = vst.msk [vmem:[%s15534_s16 + $0x107] sm:$0x1] %vm1401_vm6, %v6797_v49  ;;  %6933 = vst.msk [vmem:[%s15534_s16 + $0x1d7] sm:$0x1] %vm1401_vm6, %v6867_v31  ;;  %v6818_v41 = vrot.slane %v6790_v36, %v15818_v59  ;;  %v6820_v17 = vcombine.high %v6804_v35, %v6804_v35  ;;  %vm6962_vm8 = vcmp.eq.f32.partialorder %v17718_v51, %v6961_v56  ;;  %v6975_v43 = vpop.xlane.xlu0 %6974 }
0x1286   : > { %6934 = vst.msk [vmem:[%s15534_s16 + $0x1e7] sm:$0x1] %vm1401_vm6, %v6869_v30  ;;  %6924 = vst.msk [vmem:[%s15534_s16 + $0x147] sm:$0x1] %vm1401_vm6, %v6804_v35  ;;  %v6821_v25 = vcombine.high %v6811_v37, %v6811_v37  ;;  %vm6976_vm9 = vcmp.eq.f32.partialorder %v17720_v10, %v6975_v43  ;;  %v6963_v32 = vsel %vm6962_vm8, %v6958_v9, inf  ;;  %v6967_v10 = vcvt.f32.s32 %v6961_v56 }
0x1287   : > { %6931 = vst.msk [vmem:[%s15534_s16 + $0x1b7] sm:$0x1] %vm1401_vm6, %v6870_v62  ;;  %6921 = vst.msk [vmem:[%s15534_s16 + $0x117] sm:$0x1] %vm1401_vm6, %v6811_v37  ;;  %v6822_v44 = vcombine.high %v6818_v41, %v6818_v41  ;;  %6964 = vmin.xlane.f32.xlu1 %v6963_v32  ;;  %v6977_v14 = vsel %vm6976_vm9, %v6972_v23, inf  ;;  %v6981_v0 = vcvt.f32.s32 %v6975_v43 }
0x1288   : > { %6922 = vst.msk [vmem:[%s15534_s16 + $0x127] sm:$0x1] %vm1401_vm6, %v6819_v42  ;;  %6935 = vst.msk [vmem:[%s15534_s16 + $0x1f7] sm:$0x1] %vm1401_vm6, %v6871_v22  ;;  %6978 = vmin.xlane.f32.xlu0 %v6977_v14  ;;  %v6968_v54 = vshll.u32 %v6967_v10, 16 }
0x1289   : > { %6925 = vst.msk [vmem:[%s15534_s16 + $0x157] sm:$0x1] %vm1401_vm6, %v6818_v41  ;;  %6926 = vst.msk [vmem:[%s15534_s16 + $0x167] sm:$0x1] %vm1401_vm6, %v6820_v17  ;;  %v6982_v21 = vshll.u32 %v6981_v0, 16 }
0x128a   : > { %6923 = vst.msk [vmem:[%s15534_s16 + $0x137] sm:$0x1] %vm1401_vm6, %v6821_v25  ;;  %6927 = vst.msk [vmem:[%s15534_s16 + $0x177] sm:$0x1] %vm1401_vm6, %v6822_v44 }
0x12b0   : > { %v7003_v45 = vpop.xlane.xlu0 %7002 }
0x12b1   : > { %vm7004_vm10 = vcmp.eq.f32.partialorder %v17729_v26, %v7003_v45  ;;  %v7009_v18 = vcvt.f32.s32 %v7003_v45 }
0x12b2   : > { %v7005_v58 = vsel %vm7004_vm10, %v7000_v60, inf }
0x12b3   : > { %7006 = vmin.xlane.f32.xlu0 %v7005_v58  ;;  %v7010_v24 = vshll.u32 %v7009_v18, 16 }
0x12ba   : > { %v6989_v33 = vpop.xlane.xlu1 %6988 }
0x12bb   : > { %vm6990_vm11 = vcmp.eq.f32.partialorder %v17737_v52, %v6989_v33 }
0x12bc   : > { %v6991_v51 = vsel %vm6990_vm11, %v6986_v63, inf }
0x12bd   : > { %6992 = vmin.xlane.f32.xlu1 %v6991_v51 }
0x1314   : > { %v6965_v50 = vpop.xlane.xlu1 %6964 }
0x1315   : > { %v6966_v48 = vcvt.f32.s32 %v6965_v50  ;;  %v6979_v39 = vpop.xlane.xlu0 %6978 }
0x1316   : > { %v6980_v46 = vcvt.f32.s32 %v6979_v39 }
0x1317   : > { %v6969_v19 = vadd.s32 %v6968_v54, %v6966_v48 }
0x1318   : > { %v6983_v26 = vadd.s32 %v6982_v21, %v6980_v46 }
0x1319   : > { %vm7012_vm12 = vcmp.eq.s32.totalorder %v15496_v1, %v6969_v19 }
0x131a   : > { %vm7013_vm13 = vcmp.eq.s32.totalorder %v15496_v1, %v6983_v26  ;;  %14459 = vmatprep.mubr.msk.f32.mxu0 %vm7012_vm12, %v15455_v61  ;;  %v17932_v28 = vsel %vm7012_vm12, 3e+38, %v17652_v13 }
0x131b   : > { %7726 = vmin.xlane.f32.xlu1 %v17932_v28  ;;  %14460 = vmatmul.mubr.msk.f32.vlgmr.msra.gmra.mrb[44].mxu0 %vm7013_vm13, %v15455_v61  ;;  %v17941_v52 = vsel %vm7013_vm13, 3e+38, %v17661_v20  ;;  %v6995_v20 = vcvt.f32.s32 %v6989_v33 }
0x131c   : > { %15116 = vmatpush3.bf16.msra.mxu0 %v15649_v27  ;;  %7728 = vmin.xlane.f32.xlu0 %v17941_v52 }
0x131d   : > { %15118 = vmatprep.subr.bf16.mxu0 %v15657_v29  ;;  %v6996_v16 = vshll.u32 %v6995_v20, 16 }
0x1320   : > { %15120 = vmatpush3.bf16.msra.mxu0 %v15657_v29 }
0x1321   : > { %15122 = vmatprep.subr.bf16.mxu0 %v15663_v3 }
0x1324   : > { %15124 = vmatpush3.bf16.msra.mxu0 %v15663_v3 }
0x1325   : > { %15126 = vmatprep.subr.bf16.mxu0 %v15669_v4 }
0x1328   : > { %15128 = vmatpush3.bf16.msra.mxu0 %v15669_v4 }
0x1329   : > { %15130 = vmatprep.subr.bf16.mxu0 %v15675_v5 }
0x132c   : > { %15132 = vmatpush3.bf16.msra.mxu0 %v15675_v5 }
0x132d   : > { %15134 = vmatprep.subr.bf16.mxu0 %v15681_v6 }
0x1330   : > { %15136 = vmatpush3.bf16.msra.mxu0 %v15681_v6 }
0x1331   : > { %15138 = vmatprep.subr.bf16.mxu0 %v15686_v7 }
0x1334   : > { %15140 = vmatpush3.bf16.msra.mxu0 %v15686_v7 }
0x1335   : > { %15142 = vmatprep.subr.bf16.mxu0 %v15692_v8 }
0x1338   : > { %15144 = vmatpush3.bf16.msra.mxu0 %v15692_v8 }
0x1339   : > { %14549 = vmatprep.subr.mxu0 %v15504_v2 }
0x1340   : > { %v7007_v13 = vpop.xlane.xlu0 %7006 }
0x1341   : > { %v7008_v11 = vcvt.f32.s32 %v7007_v13 }
0x1343   : > { %v7011_v53 = vadd.s32 %v7010_v24, %v7008_v11 }
0x1345   : > { %vm7015_vm14 = vcmp.eq.s32.totalorder %v15496_v1, %v7011_v53 }
0x1346   : > { %v17953_v38 = vsel %vm7015_vm14, 3e+38, %v17673_v55 }
0x1347   : > { %7732 = vmin.xlane.f32.xlu0 %v17953_v38 }
0x134a   : > { %v6993_v57 = vpop.xlane.xlu1 %6992 }
0x134b   : > { %v6994_v49 = vcvt.f32.s32 %v6993_v57 }
0x134d   : > { %v6997_v31 = vadd.s32 %v6996_v16, %v6994_v49 }
0x134f   : > { %vm7014_vm15 = vcmp.eq.s32.totalorder %v15496_v1, %v6997_v31 }
0x1350   : > { %14462 = vmatprep.mubr.msk.f32.mxu0 %vm7014_vm15, %v15455_v61  ;;  %v17964_v55 = vsel %vm7014_vm15, 3e+38, %v17684_v47 }
0x1351   : > { %7730 = vmin.xlane.f32.xlu1 %v17964_v55  ;;  %14463 = vmatmul.mubr.msk.f32.gmra.mrb[46].mxu0 %vm7015_vm14, %v15455_v61 }
0x1352   : > { %14497 = vmatprep.mubr.msk.f32.mxu0 %vm7012_vm12, %v15455_v61 }
0x1355   : > { %14498 = vmatmul.mubr.msk.f32.vlgmr.msra.gmra.mrb[48].mxu0 %vm7013_vm13, %v15455_v61 }
0x1356   : > { %14500 = vmatprep.mubr.msk.f32.mxu0 %vm7014_vm15, %v15455_v61  ;;  %14550 = vmatpush3.xpose.msra.mxu0 %v15504_v2 }
0x1357   : > { %15178 = vmatprep.subr.bf16.mxu0 %v15649_v27 }
0x1359   : > { %14501 = vmatmul.mubr.msk.f32.gmra.mrb[50].mxu0 %vm7015_vm14, %v15455_v61 }
0x13a8   : > { %v7727_v47 = vpop.xlane.xlu1 %7726 }
0x13a9   : > { %vm7734_vm0 = vcmp.le.f32.partialorder %v17932_v28, %v7727_v47  ;;  %v7729_v30 = vpop.xlane.xlu0 %7728 }
0x13aa   : > { %v17990_v36 = vsel %vm7734_vm0, %v15496_v1, 128  ;;  %vm7735_vm1 = vcmp.le.f32.partialorder %v17941_v52, %v7729_v30 }
0x13ab   : > { %v7743_v35 = vshra.s32 %v17990_v36, 16  ;;  %v17995_v62 = vsel %vm7735_vm1, %v15496_v1, 128 }
0x13ac   : > { %v7757_v37 = vshra.s32 %v17995_v62, 16 }
0x13ad   : > { %v17998_v42 = vcvt.s32.f32 %v7743_v35 }
0x13ae   : > { %v18000_v22 = vcvt.s32.f32 %v7757_v37 }
0x13af   : > { %7746 = vmin.xlane.f32.xlu1 %v17998_v42 }
0x13b0   : > { %7760 = vmin.xlane.f32.xlu0 %v18000_v22 }
0x13d4   : > { %v7733_v41 = vpop.xlane.xlu0 %7732 }
0x13d5   : > { %vm7737_vm2 = vcmp.le.f32.partialorder %v17953_v38, %v7733_v41 }
0x13d6   : > { %v18006_v17 = vsel %vm7737_vm2, %v15496_v1, 128 }
0x13d7   : > { %v7785_v25 = vshra.s32 %v18006_v17, 16 }
0x13d9   : > { %v18009_v44 = vcvt.s32.f32 %v7785_v25 }
0x13db   : > { %7788 = vmin.xlane.f32.xlu0 %v18009_v44 }
0x13de   : > { %v7731_v15 = vpop.xlane.xlu1 %7730 }
0x13df   : > { %vm7736_vm3 = vcmp.le.f32.partialorder %v17964_v55, %v7731_v15 }
0x13e0   : > { %v18014_v40 = vsel %vm7736_vm3, %v15496_v1, 128 }
0x13e1   : > { %v7771_v9 = vshra.s32 %v18014_v40, 16 }
0x13e3   : > { %v18017_v56 = vcvt.s32.f32 %v7771_v9 }
0x13e5   : > { %7774 = vmin.xlane.f32.xlu1 %v18017_v56 }
0x13ee   : > { %v14461_v23 = vpop.f32.mrb[44].mxu0 }
0x13ef   : > { %v7247_v43 = vcombine.high %v14461_v23, %v14461_v23  ;;  %v7254_v32 = vrot.slane %v14461_v23, %v15818_v59  ;;  %v7090_v14 = vpop.f32.mrb[45].mxu0 }
0x13f0   : > { %v7198_v12 = vcombine.high %v7090_v14, %v7090_v14  ;;  %v7205_v60 = vrot.slane %v7090_v14, %v15818_v59 }
0x13f1   : > { %v7261_v45 = vrot.slane %v7247_v43, %v15818_v59  ;;  %v7262_v58 = vcombine.high %v7254_v32, %v7254_v32  ;;  %v7270_v34 = vrot.slane %v7254_v32, %v15818_v59 }
0x13f2   : > { %v7212_v63 = vrot.slane %v7198_v12, %v15818_v59  ;;  %v7213_v33 = vcombine.high %v7205_v60, %v7205_v60  ;;  %v7221_v51 = vrot.slane %v7205_v60, %v15818_v59 }
0x13f3   : > { %v7263_v10 = vcombine.high %v7261_v45, %v7261_v45  ;;  %v7277_v0 = vrot.slane %v7261_v45, %v15818_v59  ;;  %v7284_v50 = vrot.slane %v7262_v58, %v15818_v59  ;;  %v7292_v54 = vcombine.high %v7270_v34, %v7270_v34  ;;  %7434 = vst.msk [vmem:[%s15529_s13 + $0x88] sm:$0x1] %vm1136_vm5, %v7270_v34 }
0x13f4   : > { %v7214_v48 = vcombine.high %v7212_v63, %v7212_v63  ;;  %v7228_v39 = vrot.slane %v7212_v63, %v15818_v59  ;;  %v7235_v21 = vrot.slane %v7213_v33, %v15818_v59  ;;  %v7243_v46 = vcombine.high %v7221_v51, %v7221_v51  ;;  %7426 = vst.msk [vmem:[%s15529_s13 + $0x8] sm:$0x1] %vm1136_vm5, %v7221_v51 }
0x13f5   : > { %v7291_v19 = vrot.slane %v7263_v10, %v15818_v59  ;;  %v7293_v26 = vcombine.high %v7277_v0, %v7277_v0  ;;  %v7294_v18 = vcombine.high %v7284_v50, %v7284_v50  ;;  %7435 = vst.msk [vmem:[%s15529_s13 + $0x98] sm:$0x1] %vm1136_vm5, %v7284_v50  ;;  %7436 = vst.msk [vmem:[%s15529_s13 + $0xa8] sm:$0x1] %vm1136_vm5, %v7292_v54 }
0x13f6   : > { %7438 = vst.msk [vmem:[%s15529_s13 + $0xc8] sm:$0x1] %vm1136_vm5, %v7277_v0  ;;  %v7242_v13 = vrot.slane %v7214_v48, %v15818_v59  ;;  %v7244_v24 = vcombine.high %v7228_v39, %v7228_v39  ;;  %v7245_v11 = vcombine.high %v7235_v21, %v7235_v21  ;;  %7427 = vst.msk [vmem:[%s15529_s13 + $0x18] sm:$0x1] %vm1136_vm5, %v7235_v21 }
0x13f7   : > { %7428 = vst.msk [vmem:[%s15529_s13 + $0x28] sm:$0x1] %vm1136_vm5, %v7243_v46  ;;  %7430 = vst.msk [vmem:[%s15529_s13 + $0x48] sm:$0x1] %vm1136_vm5, %v7228_v39  ;;  %v7295_v53 = vcombine.high %v7291_v19, %v7291_v19 }
0x13f8   : > { %7437 = vst.msk [vmem:[%s15529_s13 + $0xb8] sm:$0x1] %vm1136_vm5, %v7294_v18  ;;  %7439 = vst.msk [vmem:[%s15529_s13 + $0xd8] sm:$0x1] %vm1136_vm5, %v7291_v19  ;;  %v7246_v20 = vcombine.high %v7242_v13, %v7242_v13 }
0x13f9   : > { %7440 = vst.msk [vmem:[%s15529_s13 + $0xe8] sm:$0x1] %vm1136_vm5, %v7293_v26  ;;  %7429 = vst.msk [vmem:[%s15529_s13 + $0x38] sm:$0x1] %vm1136_vm5, %v7245_v11 }
0x13fa   : > { %7431 = vst.msk [vmem:[%s15529_s13 + $0x58] sm:$0x1] %vm1136_vm5, %v7242_v13  ;;  %7432 = vst.msk [vmem:[%s15529_s13 + $0x68] sm:$0x1] %vm1136_vm5, %v7244_v24 }
0x13fb   : > { %7441 = vst.msk [vmem:[%s15529_s13 + $0xf8] sm:$0x1] %vm1136_vm5, %v7295_v53  ;;  %7433 = vst.msk [vmem:[%s15529_s13 + $0x78] sm:$0x1] %vm1136_vm5, %v7246_v20 }
0x1424   : > { %v14464_v57 = vpop.f32.mrb[46].mxu0 }
0x1425   : > { %v7345_v16 = vcombine.high %v14464_v57, %v14464_v57  ;;  %v7352_v49 = vrot.slane %v14464_v57, %v15818_v59  ;;  %v7100_v31 = vpop.f32.mrb[47].mxu0 }
0x1426   : > { %v7296_v47 = vcombine.high %v7100_v31, %v7100_v31  ;;  %v7303_v30 = vrot.slane %v7100_v31, %v15818_v59 }
0x1427   : > { %v7359_v35 = vrot.slane %v7345_v16, %v15818_v59  ;;  %v7360_v37 = vcombine.high %v7352_v49, %v7352_v49  ;;  %v7368_v41 = vrot.slane %v7352_v49, %v15818_v59 }
0x1428   : > { %v7310_v25 = vrot.slane %v7296_v47, %v15818_v59  ;;  %v7311_v15 = vcombine.high %v7303_v30, %v7303_v30  ;;  %v7319_v9 = vrot.slane %v7303_v30, %v15818_v59  ;;  %v14499_v48 = vpop.f32.mrb[48].mxu0 }
0x1429   : > { %v7361_v23 = vcombine.high %v7359_v35, %v7359_v35  ;;  %v7375_v43 = vrot.slane %v7359_v35, %v15818_v59  ;;  %v7382_v32 = vrot.slane %v7360_v37, %v15818_v59  ;;  %v7390_v14 = vcombine.high %v7368_v41, %v7368_v41  ;;  %7450 = vst.msk [vmem:[%s15529_s13 + $0x188] sm:$0x1] %vm1136_vm5, %v7368_v41  ;;  %v7175_v46 = vpop.f32.mrb[49].mxu0 }
0x142a   : > { %v7312_v12 = vcombine.high %v7310_v25, %v7310_v25  ;;  %v7326_v60 = vrot.slane %v7310_v25, %v15818_v59  ;;  %v7333_v45 = vrot.slane %v7311_v15, %v15818_v59  ;;  %v7341_v58 = vcombine.high %v7319_v9, %v7319_v9  ;;  %7442 = vst.msk [vmem:[%s15529_s13 + $0x108] sm:$0x1] %vm1136_vm5, %v7319_v9 }
0x142b   : > { %v7389_v34 = vrot.slane %v7361_v23, %v15818_v59  ;;  %v7391_v63 = vcombine.high %v7375_v43, %v7375_v43  ;;  %v7392_v33 = vcombine.high %v7382_v32, %v7382_v32  ;;  %7451 = vst.msk [vmem:[%s15529_s13 + $0x198] sm:$0x1] %vm1136_vm5, %v7382_v32  ;;  %7452 = vst.msk [vmem:[%s15529_s13 + $0x1a8] sm:$0x1] %vm1136_vm5, %v7390_v14 }
0x142c   : > { %7454 = vst.msk [vmem:[%s15529_s13 + $0x1c8] sm:$0x1] %vm1136_vm5, %v7375_v43  ;;  %v7340_v51 = vrot.slane %v7312_v12, %v15818_v59  ;;  %v7342_v10 = vcombine.high %v7326_v60, %v7326_v60  ;;  %v7343_v0 = vcombine.high %v7333_v45, %v7333_v45  ;;  %7443 = vst.msk [vmem:[%s15529_s13 + $0x118] sm:$0x1] %vm1136_vm5, %v7333_v45  ;;  %v14502_v57 = vpop.f32.mrb[50].mxu0 }
0x142d   : > { %7444 = vst.msk [vmem:[%s15529_s13 + $0x128] sm:$0x1] %vm1136_vm5, %v7341_v58  ;;  %7446 = vst.msk [vmem:[%s15529_s13 + $0x148] sm:$0x1] %vm1136_vm5, %v7326_v60  ;;  %v7393_v50 = vcombine.high %v7389_v34, %v7389_v34  ;;  %v7511_v39 = vcombine.high %v14499_v48, %v14499_v48  ;;  %v7518_v21 = vrot.slane %v14499_v48, %v15818_v59  ;;  %v7185_v30 = vpop.f32.mrb[51].mxu0 }
0x142e   : > { %7453 = vst.msk [vmem:[%s15529_s13 + $0x1b8] sm:$0x1] %vm1136_vm5, %v7392_v33  ;;  %7455 = vst.msk [vmem:[%s15529_s13 + $0x1d8] sm:$0x1] %vm1136_vm5, %v7389_v34  ;;  %v7344_v54 = vcombine.high %v7340_v51, %v7340_v51  ;;  %v7462_v19 = vcombine.high %v7175_v46, %v7175_v46  ;;  %v7469_v26 = vrot.slane %v7175_v46, %v15818_v59 }
0x142f   : > { %7456 = vst.msk [vmem:[%s15529_s13 + $0x1e8] sm:$0x1] %vm1136_vm5, %v7391_v63  ;;  %7445 = vst.msk [vmem:[%s15529_s13 + $0x138] sm:$0x1] %vm1136_vm5, %v7343_v0  ;;  %v7525_v18 = vrot.slane %v7511_v39, %v15818_v59  ;;  %v7526_v13 = vcombine.high %v7518_v21, %v7518_v21  ;;  %v7534_v24 = vrot.slane %v7518_v21, %v15818_v59 }
0x1430   : > { %7447 = vst.msk [vmem:[%s15529_s13 + $0x158] sm:$0x1] %vm1136_vm5, %v7340_v51  ;;  %7448 = vst.msk [vmem:[%s15529_s13 + $0x168] sm:$0x1] %vm1136_vm5, %v7342_v10  ;;  %v7476_v11 = vrot.slane %v7462_v19, %v15818_v59  ;;  %v7477_v53 = vcombine.high %v7469_v26, %v7469_v26  ;;  %v7485_v20 = vrot.slane %v7469_v26, %v15818_v59 }
0x1431   : > { %7457 = vst.msk [vmem:[%s15529_s13 + $0x1f8] sm:$0x1] %vm1136_vm5, %v7393_v50  ;;  %7449 = vst.msk [vmem:[%s15529_s13 + $0x178] sm:$0x1] %vm1136_vm5, %v7344_v54  ;;  %v7527_v16 = vcombine.high %v7525_v18, %v7525_v18  ;;  %v7541_v49 = vrot.slane %v7525_v18, %v15818_v59  ;;  %v7548_v31 = vrot.slane %v7526_v13, %v15818_v59 }
0x1432   : > { %v7556_v47 = vcombine.high %v7534_v24, %v7534_v24  ;;  %7698 = vst.msk [vmem:[%s15534_s16 + $0x88] sm:$0x1] %vm1401_vm6, %v7534_v24  ;;  %v7478_v35 = vcombine.high %v7476_v11, %v7476_v11  ;;  %v7492_v37 = vrot.slane %v7476_v11, %v15818_v59  ;;  %v7499_v41 = vrot.slane %v7477_v53, %v15818_v59 }
0x1433   : > { %v7507_v25 = vcombine.high %v7485_v20, %v7485_v20  ;;  %7690 = vst.msk [vmem:[%s15534_s16 + $0x8] sm:$0x1] %vm1401_vm6, %v7485_v20  ;;  %v7555_v15 = vrot.slane %v7527_v16, %v15818_v59  ;;  %v7557_v9 = vcombine.high %v7541_v49, %v7541_v49  ;;  %v7558_v23 = vcombine.high %v7548_v31, %v7548_v31 }
0x1434   : > { %7699 = vst.msk [vmem:[%s15534_s16 + $0x98] sm:$0x1] %vm1401_vm6, %v7548_v31  ;;  %7700 = vst.msk [vmem:[%s15534_s16 + $0xa8] sm:$0x1] %vm1401_vm6, %v7556_v47  ;;  %v7609_v43 = vcombine.high %v14502_v57, %v14502_v57  ;;  %v7506_v32 = vrot.slane %v7478_v35, %v15818_v59  ;;  %v7508_v14 = vcombine.high %v7492_v37, %v7492_v37  ;;  %v7742_v47 = vand.u32 65535, %v17990_v36 }
0x1435   : > { %7702 = vst.msk [vmem:[%s15534_s16 + $0xc8] sm:$0x1] %vm1401_vm6, %v7541_v49  ;;  %v7509_v12 = vcombine.high %v7499_v41, %v7499_v41  ;;  %7691 = vst.msk [vmem:[%s15534_s16 + $0x18] sm:$0x1] %vm1401_vm6, %v7499_v41  ;;  %v7616_v60 = vrot.slane %v14502_v57, %v15818_v59  ;;  %v7559_v45 = vcombine.high %v7555_v15, %v7555_v15 }
0x1436   : > { %7692 = vst.msk [vmem:[%s15534_s16 + $0x28] sm:$0x1] %vm1401_vm6, %v7507_v25  ;;  %7694 = vst.msk [vmem:[%s15534_s16 + $0x48] sm:$0x1] %vm1401_vm6, %v7492_v37  ;;  %v7623_v58 = vrot.slane %v7609_v43, %v15818_v59  ;;  %v7560_v34 = vcombine.high %v7185_v30, %v7185_v30  ;;  %v7567_v63 = vrot.slane %v7185_v30, %v15818_v59  ;;  %v7756_v30 = vand.u32 65535, %v17995_v62 }
0x1437   : > { %7701 = vst.msk [vmem:[%s15534_s16 + $0xb8] sm:$0x1] %vm1401_vm6, %v7558_v23  ;;  %7703 = vst.msk [vmem:[%s15534_s16 + $0xd8] sm:$0x1] %vm1401_vm6, %v7555_v15  ;;  %v7510_v33 = vcombine.high %v7506_v32, %v7506_v32  ;;  %v7624_v51 = vcombine.high %v7616_v60, %v7616_v60  ;;  %v7632_v10 = vrot.slane %v7616_v60, %v15818_v59  ;;  %v7744_v35 = vcvt.s32.f32 %v7742_v47 }
0x1438   : > { %7704 = vst.msk [vmem:[%s15534_s16 + $0xe8] sm:$0x1] %vm1401_vm6, %v7557_v9  ;;  %7693 = vst.msk [vmem:[%s15534_s16 + $0x38] sm:$0x1] %vm1401_vm6, %v7509_v12  ;;  %v7625_v0 = vcombine.high %v7623_v58, %v7623_v58  ;;  %v7639_v50 = vrot.slane %v7623_v58, %v15818_v59  ;;  %v7574_v54 = vrot.slane %v7560_v34, %v15818_v59  ;;  %v7758_v41 = vcvt.s32.f32 %v7756_v30 }
0x1439   : > { %7695 = vst.msk [vmem:[%s15534_s16 + $0x58] sm:$0x1] %vm1401_vm6, %v7506_v32  ;;  %7696 = vst.msk [vmem:[%s15534_s16 + $0x68] sm:$0x1] %vm1401_vm6, %v7508_v14  ;;  %v7575_v48 = vcombine.high %v7567_v63, %v7567_v63  ;;  %v7646_v39 = vrot.slane %v7624_v51, %v15818_v59  ;;  %v7654_v21 = vcombine.high %v7632_v10, %v7632_v10  ;;  %v7784_v23 = vand.u32 65535, %v18006_v17 }
0x143a   : > { %7705 = vst.msk [vmem:[%s15534_s16 + $0xf8] sm:$0x1] %vm1401_vm6, %v7559_v45  ;;  %7697 = vst.msk [vmem:[%s15534_s16 + $0x78] sm:$0x1] %vm1401_vm6, %v7510_v33  ;;  %v7583_v46 = vrot.slane %v7567_v63, %v15818_v59  ;;  %v7653_v19 = vrot.slane %v7625_v0, %v15818_v59  ;;  %v7655_v26 = vcombine.high %v7639_v50, %v7639_v50  ;;  %v7770_v62 = vand.u32 65535, %v18014_v40 }
0x143b   : > { %7714 = vst.msk [vmem:[%s15534_s16 + $0x188] sm:$0x1] %vm1401_vm6, %v7632_v10  ;;  %7718 = vst.msk [vmem:[%s15534_s16 + $0x1c8] sm:$0x1] %vm1401_vm6, %v7639_v50  ;;  %v7576_v18 = vcombine.high %v7574_v54, %v7574_v54  ;;  %v7590_v13 = vrot.slane %v7574_v54, %v15818_v59  ;;  %v7656_v24 = vcombine.high %v7646_v39, %v7646_v39  ;;  %v7786_v43 = vcvt.s32.f32 %v7784_v23 }
0x143c   : > { %7715 = vst.msk [vmem:[%s15534_s16 + $0x198] sm:$0x1] %vm1401_vm6, %v7646_v39  ;;  %7716 = vst.msk [vmem:[%s15534_s16 + $0x1a8] sm:$0x1] %vm1401_vm6, %v7654_v21  ;;  %v7597_v11 = vrot.slane %v7575_v48, %v15818_v59  ;;  %v7605_v53 = vcombine.high %v7583_v46, %v7583_v46  ;;  %v7657_v20 = vcombine.high %v7653_v19, %v7653_v19  ;;  %v7747_v37 = vpop.xlane.xlu1 %7746  ;;  %v7772_v14 = vcvt.s32.f32 %v7770_v62 }
0x143d   : > { %7706 = vst.msk [vmem:[%s15534_s16 + $0x108] sm:$0x1] %vm1401_vm6, %v7583_v46  ;;  %7719 = vst.msk [vmem:[%s15534_s16 + $0x1d8] sm:$0x1] %vm1401_vm6, %v7653_v19  ;;  %v7604_v57 = vrot.slane %v7576_v18, %v15818_v59  ;;  %v7606_v16 = vcombine.high %v7590_v13, %v7590_v13  ;;  %vm7748_vm4 = vcmp.eq.f32.partialorder %v17998_v42, %v7747_v37  ;;  %v7761_v25 = vpop.xlane.xlu0 %7760 }
0x143e   : > { %7720 = vst.msk [vmem:[%s15534_s16 + $0x1e8] sm:$0x1] %vm1401_vm6, %v7655_v26  ;;  %7710 = vst.msk [vmem:[%s15534_s16 + $0x148] sm:$0x1] %vm1401_vm6, %v7590_v13  ;;  %v7607_v49 = vcombine.high %v7597_v11, %v7597_v11  ;;  %vm7762_vm7 = vcmp.eq.f32.partialorder %v18000_v22, %v7761_v25  ;;  %v7749_v15 = vsel %vm7748_vm4, %v7744_v35, inf  ;;  %v7753_v22 = vcvt.f32.s32 %v7747_v37 }
0x143f   : > { %7717 = vst.msk [vmem:[%s15534_s16 + $0x1b8] sm:$0x1] %vm1401_vm6, %v7656_v24  ;;  %7707 = vst.msk [vmem:[%s15534_s16 + $0x118] sm:$0x1] %vm1401_vm6, %v7597_v11  ;;  %v7608_v31 = vcombine.high %v7604_v57, %v7604_v57  ;;  %7750 = vmin.xlane.f32.xlu1 %v7749_v15  ;;  %v7763_v9 = vsel %vm7762_vm7, %v7758_v41, inf  ;;  %v7767_v60 = vcvt.f32.s32 %v7761_v25 }
0x1440   : > { %7708 = vst.msk [vmem:[%s15534_s16 + $0x128] sm:$0x1] %vm1401_vm6, %v7605_v53  ;;  %7721 = vst.msk [vmem:[%s15534_s16 + $0x1f8] sm:$0x1] %vm1401_vm6, %v7657_v20  ;;  %7764 = vmin.xlane.f32.xlu0 %v7763_v9  ;;  %v7754_v58 = vshll.u32 %v7753_v22, 16 }
0x1441   : > { %7711 = vst.msk [vmem:[%s15534_s16 + $0x158] sm:$0x1] %vm1401_vm6, %v7604_v57  ;;  %7712 = vst.msk [vmem:[%s15534_s16 + $0x168] sm:$0x1] %vm1401_vm6, %v7606_v16  ;;  %v7768_v63 = vshll.u32 %v7767_v60, 16 }
0x1442   : > { %7709 = vst.msk [vmem:[%s15534_s16 + $0x138] sm:$0x1] %vm1401_vm6, %v7607_v49  ;;  %7713 = vst.msk [vmem:[%s15534_s16 + $0x178] sm:$0x1] %vm1401_vm6, %v7608_v31 }
0x1468   : > { %v7789_v32 = vpop.xlane.xlu0 %7788 }
0x1469   : > { %vm7790_vm8 = vcmp.eq.f32.partialorder %v18009_v44, %v7789_v32  ;;  %v7795_v10 = vcvt.f32.s32 %v7789_v32 }
0x146a   : > { %v7791_v36 = vsel %vm7790_vm8, %v7786_v43, inf }
0x146b   : > { %7792 = vmin.xlane.f32.xlu0 %v7791_v36  ;;  %v7796_v0 = vshll.u32 %v7795_v10, 16 }
0x1472   : > { %v7775_v12 = vpop.xlane.xlu1 %7774 }
0x1473   : > { %vm7776_vm9 = vcmp.eq.f32.partialorder %v18017_v56, %v7775_v12 }
0x1474   : > { %v7777_v42 = vsel %vm7776_vm9, %v7772_v14, inf }
0x1475   : > { %7778 = vmin.xlane.f32.xlu1 %v7777_v42 }
0x14cc   : > { %v7751_v45 = vpop.xlane.xlu1 %7750 }
0x14cd   : > { %v7752_v34 = vcvt.f32.s32 %v7751_v45  ;;  %v7765_v17 = vpop.xlane.xlu0 %7764 }
0x14ce   : > { %v7766_v33 = vcvt.f32.s32 %v7765_v17 }
0x14cf   : > { %v7755_v51 = vadd.s32 %v7754_v58, %v7752_v34 }
0x14d0   : > { %v7769_v44 = vadd.s32 %v7768_v63, %v7766_v33 }
0x14d1   : > { %vm7798_vm10 = vcmp.eq.s32.totalorder %v15496_v1, %v7755_v51 }
0x14d2   : > { %vm7799_vm11 = vcmp.eq.s32.totalorder %v15496_v1, %v7769_v44  ;;  %14505 = vmatprep.mubr.msk.f32.mxu1 %vm7798_vm10, %v15455_v61  ;;  %v18212_v40 = vsel %vm7798_vm10, 3e+38, %v17932_v28 }
0x14d3   : > { %8512 = vmin.xlane.f32.xlu1 %v18212_v40  ;;  %14506 = vmatmul.mubr.msk.f32.vlgmr.msra.gmra.mrb[28].mxu1 %vm7799_vm11, %v15455_v61  ;;  %v18221_v56 = vsel %vm7799_vm11, 3e+38, %v17941_v52  ;;  %v7781_v52 = vcvt.f32.s32 %v7775_v12 }
0x14d4   : > { %15148 = vmatpush3.bf16.msra.mxu1 %v15649_v27  ;;  %8514 = vmin.xlane.f32.xlu0 %v18221_v56 }
0x14d5   : > { %15150 = vmatprep.subr.bf16.mxu1 %v15657_v29  ;;  %v7782_v21 = vshll.u32 %v7781_v52, 16 }
0x14d8   : > { %15152 = vmatpush3.bf16.msra.mxu1 %v15657_v29 }
0x14d9   : > { %15154 = vmatprep.subr.bf16.mxu1 %v15663_v3 }
0x14dc   : > { %15156 = vmatpush3.bf16.msra.mxu1 %v15663_v3 }
0x14dd   : > { %15158 = vmatprep.subr.bf16.mxu1 %v15669_v4 }
0x14e0   : > { %15160 = vmatpush3.bf16.msra.mxu1 %v15669_v4 }
0x14e1   : > { %15162 = vmatprep.subr.bf16.mxu1 %v15675_v5 }
0x14e4   : > { %15164 = vmatpush3.bf16.msra.mxu1 %v15675_v5 }
0x14e5   : > { %15166 = vmatprep.subr.bf16.mxu1 %v15681_v6 }
0x14e8   : > { %15168 = vmatpush3.bf16.msra.mxu1 %v15681_v6 }
0x14e9   : > { %15170 = vmatprep.subr.bf16.mxu1 %v15686_v7 }
0x14ec   : > { %15172 = vmatpush3.bf16.msra.mxu1 %v15686_v7 }
0x14ed   : > { %15174 = vmatprep.subr.bf16.mxu1 %v15692_v8 }
0x14f0   : > { %15176 = vmatpush3.bf16.msra.mxu1 %v15692_v8 }
0x14f1   : > { %14595 = vmatprep.subr.mxu1 %v15504_v2 }
0x14f8   : > { %v7793_v28 = vpop.xlane.xlu0 %7792 }
0x14f9   : > { %v7794_v50 = vcvt.f32.s32 %v7793_v28 }
0x14fb   : > { %v7797_v54 = vadd.s32 %v7796_v0, %v7794_v50 }
0x14fd   : > { %vm7801_vm12 = vcmp.eq.s32.totalorder %v15496_v1, %v7797_v54 }
0x14fe   : > { %v18233_v48 = vsel %vm7801_vm12, 3e+38, %v17953_v38 }
0x14ff   : > { %8518 = vmin.xlane.f32.xlu0 %v18233_v48 }
0x1502   : > { %v7779_v39 = vpop.xlane.xlu1 %7778 }
0x1503   : > { %v7780_v46 = vcvt.f32.s32 %v7779_v39 }
0x1505   : > { %v7783_v19 = vadd.s32 %v7782_v21, %v7780_v46 }
0x1507   : > { %vm7800_vm13 = vcmp.eq.s32.totalorder %v15496_v1, %v7783_v19 }
0x1508   : > { %14508 = vmatprep.mubr.msk.f32.mxu1 %vm7800_vm13, %v15455_v61  ;;  %v18244_v38 = vsel %vm7800_vm13, 3e+38, %v17964_v55 }
0x1509   : > { %8516 = vmin.xlane.f32.xlu1 %v18244_v38  ;;  %14509 = vmatmul.mubr.msk.f32.gmra.mrb[30].mxu1 %vm7801_vm12, %v15455_v61 }
0x150a   : > { %14543 = vmatprep.mubr.msk.f32.mxu1 %vm7798_vm10, %v15455_v61 }
0x150d   : > { %14544 = vmatmul.mubr.msk.f32.vlgmr.msra.gmra.mrb[32].mxu1 %vm7799_vm11, %v15455_v61 }
0x150e   : > { %14546 = vmatprep.mubr.msk.f32.mxu1 %vm7800_vm13, %v15455_v61  ;;  %14596 = vmatpush3.xpose.msra.mxu1 %v15504_v2 }
0x150f   : > { %15210 = vmatprep.subr.bf16.mxu1 %v15649_v27 }
0x1511   : > { %14547 = vmatmul.mubr.msk.f32.gmra.mrb[34].mxu1 %vm7801_vm12, %v15455_v61 }
0x1560   : > { %v8513_v55 = vpop.xlane.xlu1 %8512 }
0x1561   : > { %vm8520_vm14 = vcmp.le.f32.partialorder %v18212_v40, %v8513_v55  ;;  %v8515_v26 = vpop.xlane.xlu0 %8514 }
0x1562   : > { %v18270_v18 = vsel %vm8520_vm14, %v15496_v1, 128  ;;  %vm8521_vm15 = vcmp.le.f32.partialorder %v18221_v56, %v8515_v26 }
0x1563   : > { %v8529_v13 = vshra.s32 %v18270_v18, 16  ;;  %v18275_v24 = vsel %vm8521_vm15, %v15496_v1, 128 }
0x1564   : > { %v8543_v11 = vshra.s32 %v18275_v24, 16 }
0x1565   : > { %v18278_v53 = vcvt.s32.f32 %v8529_v13 }
0x1566   : > { %v18280_v20 = vcvt.s32.f32 %v8543_v11 }
0x1567   : > { %8532 = vmin.xlane.f32.xlu1 %v18278_v53 }
0x1568   : > { %8546 = vmin.xlane.f32.xlu0 %v18280_v20 }
0x158c   : > { %v8519_v57 = vpop.xlane.xlu0 %8518 }
0x158d   : > { %vm8523_vm0 = vcmp.le.f32.partialorder %v18233_v48, %v8519_v57 }
0x158e   : > { %v18286_v16 = vsel %vm8523_vm0, %v15496_v1, 128 }
0x158f   : > { %v8571_v49 = vshra.s32 %v18286_v16, 16 }
0x1591   : > { %v18289_v31 = vcvt.s32.f32 %v8571_v49 }
0x1593   : > { %8574 = vmin.xlane.f32.xlu0 %v18289_v31 }
0x1596   : > { %v8517_v47 = vpop.xlane.xlu1 %8516 }
0x1597   : > { %vm8522_vm1 = vcmp.le.f32.partialorder %v18244_v38, %v8517_v47 }
0x1598   : > { %v18294_v30 = vsel %vm8522_vm1, %v15496_v1, 128 }
0x1599   : > { %v8557_v35 = vshra.s32 %v18294_v30, 16 }
0x159b   : > { %v18297_v37 = vcvt.s32.f32 %v8557_v35 }
0x159d   : > { %8560 = vmin.xlane.f32.xlu1 %v18297_v37 }
0x15a6   : > { %v14507_v41 = vpop.f32.mrb[28].mxu1 }
0x15a7   : > { %v8033_v25 = vcombine.high %v14507_v41, %v14507_v41  ;;  %v8040_v15 = vrot.slane %v14507_v41, %v15818_v59  ;;  %v7876_v9 = vpop.f32.mrb[29].mxu1 }
0x15a8   : > { %v7984_v23 = vcombine.high %v7876_v9, %v7876_v9  ;;  %v7991_v43 = vrot.slane %v7876_v9, %v15818_v59 }
0x15a9   : > { %v8047_v32 = vrot.slane %v8033_v25, %v15818_v59  ;;  %v8048_v36 = vcombine.high %v8040_v15, %v8040_v15  ;;  %v8056_v62 = vrot.slane %v8040_v15, %v15818_v59 }
0x15aa   : > { %v7998_v14 = vrot.slane %v7984_v23, %v15818_v59  ;;  %v7999_v12 = vcombine.high %v7991_v43, %v7991_v43  ;;  %v8007_v42 = vrot.slane %v7991_v43, %v15818_v59 }
0x15ab   : > { %v8049_v22 = vcombine.high %v8047_v32, %v8047_v32  ;;  %v8063_v60 = vrot.slane %v8047_v32, %v15818_v59  ;;  %v8070_v45 = vrot.slane %v8048_v36, %v15818_v59  ;;  %v8078_v58 = vcombine.high %v8056_v62, %v8056_v62  ;;  %8220 = vst.msk [vmem:[%s15529_s13 + $0x89] sm:$0x1] %vm1136_vm5, %v8056_v62 }
0x15ac   : > { %v8000_v34 = vcombine.high %v7998_v14, %v7998_v14  ;;  %v8014_v17 = vrot.slane %v7998_v14, %v15818_v59  ;;  %v8021_v63 = vrot.slane %v7999_v12, %v15818_v59  ;;  %v8029_v33 = vcombine.high %v8007_v42, %v8007_v42  ;;  %8212 = vst.msk [vmem:[%s15529_s13 + $0x9] sm:$0x1] %vm1136_vm5, %v8007_v42 }
0x15ad   : > { %v8077_v51 = vrot.slane %v8049_v22, %v15818_v59  ;;  %v8079_v44 = vcombine.high %v8063_v60, %v8063_v60  ;;  %v8080_v10 = vcombine.high %v8070_v45, %v8070_v45  ;;  %8221 = vst.msk [vmem:[%s15529_s13 + $0x99] sm:$0x1] %vm1136_vm5, %v8070_v45  ;;  %8222 = vst.msk [vmem:[%s15529_s13 + $0xa9] sm:$0x1] %vm1136_vm5, %v8078_v58 }
0x15ae   : > { %8224 = vst.msk [vmem:[%s15529_s13 + $0xc9] sm:$0x1] %vm1136_vm5, %v8063_v60  ;;  %v8028_v28 = vrot.slane %v8000_v34, %v15818_v59  ;;  %v8030_v0 = vcombine.high %v8014_v17, %v8014_v17  ;;  %v8031_v50 = vcombine.high %v8021_v63, %v8021_v63  ;;  %8213 = vst.msk [vmem:[%s15529_s13 + $0x19] sm:$0x1] %vm1136_vm5, %v8021_v63 }
0x15af   : > { %8214 = vst.msk [vmem:[%s15529_s13 + $0x29] sm:$0x1] %vm1136_vm5, %v8029_v33  ;;  %8216 = vst.msk [vmem:[%s15529_s13 + $0x49] sm:$0x1] %vm1136_vm5, %v8014_v17  ;;  %v8081_v54 = vcombine.high %v8077_v51, %v8077_v51 }
0x15b0   : > { %8223 = vst.msk [vmem:[%s15529_s13 + $0xb9] sm:$0x1] %vm1136_vm5, %v8080_v10  ;;  %8225 = vst.msk [vmem:[%s15529_s13 + $0xd9] sm:$0x1] %vm1136_vm5, %v8077_v51  ;;  %v8032_v52 = vcombine.high %v8028_v28, %v8028_v28 }
0x15b1   : > { %8226 = vst.msk [vmem:[%s15529_s13 + $0xe9] sm:$0x1] %vm1136_vm5, %v8079_v44  ;;  %8215 = vst.msk [vmem:[%s15529_s13 + $0x39] sm:$0x1] %vm1136_vm5, %v8031_v50 }
0x15b2   : > { %8217 = vst.msk [vmem:[%s15529_s13 + $0x59] sm:$0x1] %vm1136_vm5, %v8028_v28  ;;  %8218 = vst.msk [vmem:[%s15529_s13 + $0x69] sm:$0x1] %vm1136_vm5, %v8030_v0 }
0x15b3   : > { %8227 = vst.msk [vmem:[%s15529_s13 + $0xf9] sm:$0x1] %vm1136_vm5, %v8081_v54  ;;  %8219 = vst.msk [vmem:[%s15529_s13 + $0x79] sm:$0x1] %vm1136_vm5, %v8032_v52 }
0x15dc   : > { %v14510_v39 = vpop.f32.mrb[30].mxu1 }
0x15dd   : > { %v8131_v21 = vcombine.high %v14510_v39, %v14510_v39  ;;  %v8138_v46 = vrot.slane %v14510_v39, %v15818_v59  ;;  %v7886_v19 = vpop.f32.mrb[31].mxu1 }
0x15de   : > { %v8082_v55 = vcombine.high %v7886_v19, %v7886_v19  ;;  %v8089_v26 = vrot.slane %v7886_v19, %v15818_v59 }
0x15df   : > { %v8145_v13 = vrot.slane %v8131_v21, %v15818_v59  ;;  %v8146_v11 = vcombine.high %v8138_v46, %v8138_v46  ;;  %v8154_v57 = vrot.slane %v8138_v46, %v15818_v59 }
0x15e0   : > { %v8096_v49 = vrot.slane %v8082_v55, %v15818_v59  ;;  %v8097_v47 = vcombine.high %v8089_v26, %v8089_v26  ;;  %v8105_v35 = vrot.slane %v8089_v26, %v15818_v59  ;;  %v14545_v34 = vpop.f32.mrb[32].mxu1 }
0x15e1   : > { %v8147_v41 = vcombine.high %v8145_v13, %v8145_v13  ;;  %v8161_v25 = vrot.slane %v8145_v13, %v15818_v59  ;;  %v8168_v15 = vrot.slane %v8146_v11, %v15818_v59  ;;  %v8176_v9 = vcombine.high %v8154_v57, %v8154_v57  ;;  %8236 = vst.msk [vmem:[%s15529_s13 + $0x189] sm:$0x1] %vm1136_vm5, %v8154_v57  ;;  %v7961_v33 = vpop.f32.mrb[33].mxu1 }
0x15e2   : > { %v8098_v23 = vcombine.high %v8096_v49, %v8096_v49  ;;  %v8112_v43 = vrot.slane %v8096_v49, %v15818_v59  ;;  %v8119_v32 = vrot.slane %v8097_v47, %v15818_v59  ;;  %v8127_v36 = vcombine.high %v8105_v35, %v8105_v35  ;;  %8228 = vst.msk [vmem:[%s15529_s13 + $0x109] sm:$0x1] %vm1136_vm5, %v8105_v35 }
0x15e3   : > { %v8175_v62 = vrot.slane %v8147_v41, %v15818_v59  ;;  %v8177_v14 = vcombine.high %v8161_v25, %v8161_v25  ;;  %v8178_v12 = vcombine.high %v8168_v15, %v8168_v15  ;;  %8237 = vst.msk [vmem:[%s15529_s13 + $0x199] sm:$0x1] %vm1136_vm5, %v8168_v15  ;;  %8238 = vst.msk [vmem:[%s15529_s13 + $0x1a9] sm:$0x1] %vm1136_vm5, %v8176_v9 }
0x15e4   : > { %8240 = vst.msk [vmem:[%s15529_s13 + $0x1c9] sm:$0x1] %vm1136_vm5, %v8161_v25  ;;  %v8126_v42 = vrot.slane %v8098_v23, %v15818_v59  ;;  %v8128_v22 = vcombine.high %v8112_v43, %v8112_v43  ;;  %v8129_v60 = vcombine.high %v8119_v32, %v8119_v32  ;;  %8229 = vst.msk [vmem:[%s15529_s13 + $0x119] sm:$0x1] %vm1136_vm5, %v8119_v32  ;;  %v14548_v39 = vpop.f32.mrb[34].mxu1 }
0x15e5   : > { %8230 = vst.msk [vmem:[%s15529_s13 + $0x129] sm:$0x1] %vm1136_vm5, %v8127_v36  ;;  %8232 = vst.msk [vmem:[%s15529_s13 + $0x149] sm:$0x1] %vm1136_vm5, %v8112_v43  ;;  %v8179_v45 = vcombine.high %v8175_v62, %v8175_v62  ;;  %v8297_v17 = vcombine.high %v14545_v34, %v14545_v34  ;;  %v8304_v63 = vrot.slane %v14545_v34, %v15818_v59  ;;  %v7971_v26 = vpop.f32.mrb[35].mxu1 }
0x15e6   : > { %8239 = vst.msk [vmem:[%s15529_s13 + $0x1b9] sm:$0x1] %vm1136_vm5, %v8178_v12  ;;  %8241 = vst.msk [vmem:[%s15529_s13 + $0x1d9] sm:$0x1] %vm1136_vm5, %v8175_v62  ;;  %v8130_v58 = vcombine.high %v8126_v42, %v8126_v42  ;;  %v8248_v51 = vcombine.high %v7961_v33, %v7961_v33  ;;  %v8255_v44 = vrot.slane %v7961_v33, %v15818_v59 }
0x15e7   : > { %8242 = vst.msk [vmem:[%s15529_s13 + $0x1e9] sm:$0x1] %vm1136_vm5, %v8177_v14  ;;  %8231 = vst.msk [vmem:[%s15529_s13 + $0x139] sm:$0x1] %vm1136_vm5, %v8129_v60  ;;  %v8311_v10 = vrot.slane %v8297_v17, %v15818_v59  ;;  %v8312_v28 = vcombine.high %v8304_v63, %v8304_v63  ;;  %v8320_v0 = vrot.slane %v8304_v63, %v15818_v59 }
0x15e8   : > { %8233 = vst.msk [vmem:[%s15529_s13 + $0x159] sm:$0x1] %vm1136_vm5, %v8126_v42  ;;  %8234 = vst.msk [vmem:[%s15529_s13 + $0x169] sm:$0x1] %vm1136_vm5, %v8128_v22  ;;  %v8262_v50 = vrot.slane %v8248_v51, %v15818_v59  ;;  %v8263_v54 = vcombine.high %v8255_v44, %v8255_v44  ;;  %v8271_v52 = vrot.slane %v8255_v44, %v15818_v59 }
0x15e9   : > { %8243 = vst.msk [vmem:[%s15529_s13 + $0x1f9] sm:$0x1] %vm1136_vm5, %v8179_v45  ;;  %8235 = vst.msk [vmem:[%s15529_s13 + $0x179] sm:$0x1] %vm1136_vm5, %v8130_v58  ;;  %v8313_v21 = vcombine.high %v8311_v10, %v8311_v10  ;;  %v8327_v46 = vrot.slane %v8311_v10, %v15818_v59  ;;  %v8334_v19 = vrot.slane %v8312_v28, %v15818_v59 }
0x15ea   : > { %v8342_v55 = vcombine.high %v8320_v0, %v8320_v0  ;;  %8484 = vst.msk [vmem:[%s15534_s16 + $0x89] sm:$0x1] %vm1401_vm6, %v8320_v0  ;;  %v8264_v13 = vcombine.high %v8262_v50, %v8262_v50  ;;  %v8278_v11 = vrot.slane %v8262_v50, %v15818_v59  ;;  %v8285_v57 = vrot.slane %v8263_v54, %v15818_v59 }
0x15eb   : > { %v8293_v49 = vcombine.high %v8271_v52, %v8271_v52  ;;  %8476 = vst.msk [vmem:[%s15534_s16 + $0x9] sm:$0x1] %vm1401_vm6, %v8271_v52  ;;  %v8341_v47 = vrot.slane %v8313_v21, %v15818_v59  ;;  %v8343_v35 = vcombine.high %v8327_v46, %v8327_v46  ;;  %v8344_v41 = vcombine.high %v8334_v19, %v8334_v19 }
0x15ec   : > { %8485 = vst.msk [vmem:[%s15534_s16 + $0x99] sm:$0x1] %vm1401_vm6, %v8334_v19  ;;  %8486 = vst.msk [vmem:[%s15534_s16 + $0xa9] sm:$0x1] %vm1401_vm6, %v8342_v55  ;;  %v8395_v25 = vcombine.high %v14548_v39, %v14548_v39  ;;  %v8292_v15 = vrot.slane %v8264_v13, %v15818_v59  ;;  %v8294_v9 = vcombine.high %v8278_v11, %v8278_v11  ;;  %v8528_v55 = vand.u32 65535, %v18270_v18 }
0x15ed   : > { %8488 = vst.msk [vmem:[%s15534_s16 + $0xc9] sm:$0x1] %vm1401_vm6, %v8327_v46  ;;  %v8295_v23 = vcombine.high %v8285_v57, %v8285_v57  ;;  %8477 = vst.msk [vmem:[%s15534_s16 + $0x19] sm:$0x1] %vm1401_vm6, %v8285_v57  ;;  %v8402_v43 = vrot.slane %v14548_v39, %v15818_v59  ;;  %v8345_v32 = vcombine.high %v8341_v47, %v8341_v47 }
0x15ee   : > { %8478 = vst.msk [vmem:[%s15534_s16 + $0x29] sm:$0x1] %vm1401_vm6, %v8293_v49  ;;  %8480 = vst.msk [vmem:[%s15534_s16 + $0x49] sm:$0x1] %vm1401_vm6, %v8278_v11  ;;  %v8409_v36 = vrot.slane %v8395_v25, %v15818_v59  ;;  %v8346_v62 = vcombine.high %v7971_v26, %v7971_v26  ;;  %v8353_v14 = vrot.slane %v7971_v26, %v15818_v59  ;;  %v8542_v26 = vand.u32 65535, %v18275_v24 }
0x15ef   : > { %8487 = vst.msk [vmem:[%s15534_s16 + $0xb9] sm:$0x1] %vm1401_vm6, %v8344_v41  ;;  %8489 = vst.msk [vmem:[%s15534_s16 + $0xd9] sm:$0x1] %vm1401_vm6, %v8341_v47  ;;  %v8296_v12 = vcombine.high %v8292_v15, %v8292_v15  ;;  %v8410_v42 = vcombine.high %v8402_v43, %v8402_v43  ;;  %v8418_v22 = vrot.slane %v8402_v43, %v15818_v59  ;;  %v8530_v13 = vcvt.s32.f32 %v8528_v55 }
0x15f0   : > { %8490 = vst.msk [vmem:[%s15534_s16 + $0xe9] sm:$0x1] %vm1401_vm6, %v8343_v35  ;;  %8479 = vst.msk [vmem:[%s15534_s16 + $0x39] sm:$0x1] %vm1401_vm6, %v8295_v23  ;;  %v8411_v60 = vcombine.high %v8409_v36, %v8409_v36  ;;  %v8425_v45 = vrot.slane %v8409_v36, %v15818_v59  ;;  %v8360_v58 = vrot.slane %v8346_v62, %v15818_v59  ;;  %v8544_v57 = vcvt.s32.f32 %v8542_v26 }
0x15f1   : > { %8481 = vst.msk [vmem:[%s15534_s16 + $0x59] sm:$0x1] %vm1401_vm6, %v8292_v15  ;;  %8482 = vst.msk [vmem:[%s15534_s16 + $0x69] sm:$0x1] %vm1401_vm6, %v8294_v9  ;;  %v8361_v34 = vcombine.high %v8353_v14, %v8353_v14  ;;  %v8432_v17 = vrot.slane %v8410_v42, %v15818_v59  ;;  %v8440_v63 = vcombine.high %v8418_v22, %v8418_v22  ;;  %v8570_v41 = vand.u32 65535, %v18286_v16 }
0x15f2   : > { %8491 = vst.msk [vmem:[%s15534_s16 + $0xf9] sm:$0x1] %vm1401_vm6, %v8345_v32  ;;  %8483 = vst.msk [vmem:[%s15534_s16 + $0x79] sm:$0x1] %vm1401_vm6, %v8296_v12  ;;  %v8369_v33 = vrot.slane %v8353_v14, %v15818_v59  ;;  %v8439_v51 = vrot.slane %v8411_v60, %v15818_v59  ;;  %v8441_v44 = vcombine.high %v8425_v45, %v8425_v45  ;;  %v8556_v24 = vand.u32 65535, %v18294_v30 }
0x15f3   : > { %8500 = vst.msk [vmem:[%s15534_s16 + $0x189] sm:$0x1] %vm1401_vm6, %v8418_v22  ;;  %8504 = vst.msk [vmem:[%s15534_s16 + $0x1c9] sm:$0x1] %vm1401_vm6, %v8425_v45  ;;  %v8362_v10 = vcombine.high %v8360_v58, %v8360_v58  ;;  %v8376_v28 = vrot.slane %v8360_v58, %v15818_v59  ;;  %v8442_v0 = vcombine.high %v8432_v17, %v8432_v17  ;;  %v8572_v25 = vcvt.s32.f32 %v8570_v41 }
0x15f4   : > { %8501 = vst.msk [vmem:[%s15534_s16 + $0x199] sm:$0x1] %vm1401_vm6, %v8432_v17  ;;  %8502 = vst.msk [vmem:[%s15534_s16 + $0x1a9] sm:$0x1] %vm1401_vm6, %v8440_v63  ;;  %v8383_v50 = vrot.slane %v8361_v34, %v15818_v59  ;;  %v8391_v54 = vcombine.high %v8369_v33, %v8369_v33  ;;  %v8443_v52 = vcombine.high %v8439_v51, %v8439_v51  ;;  %v8533_v11 = vpop.xlane.xlu1 %8532  ;;  %v8558_v9 = vcvt.s32.f32 %v8556_v24 }
0x15f5   : > { %8492 = vst.msk [vmem:[%s15534_s16 + $0x109] sm:$0x1] %vm1401_vm6, %v8369_v33  ;;  %8505 = vst.msk [vmem:[%s15534_s16 + $0x1d9] sm:$0x1] %vm1401_vm6, %v8439_v51  ;;  %v8390_v39 = vrot.slane %v8362_v10, %v15818_v59  ;;  %v8392_v21 = vcombine.high %v8376_v28, %v8376_v28  ;;  %vm8534_vm2 = vcmp.eq.f32.partialorder %v18278_v53, %v8533_v11  ;;  %v8547_v49 = vpop.xlane.xlu0 %8546 }
0x15f6   : > { %8506 = vst.msk [vmem:[%s15534_s16 + $0x1e9] sm:$0x1] %vm1401_vm6, %v8441_v44  ;;  %8496 = vst.msk [vmem:[%s15534_s16 + $0x149] sm:$0x1] %vm1401_vm6, %v8376_v28  ;;  %v8393_v46 = vcombine.high %v8383_v50, %v8383_v50  ;;  %vm8548_vm3 = vcmp.eq.f32.partialorder %v18280_v20, %v8547_v49  ;;  %v8535_v47 = vsel %vm8534_vm2, %v8530_v13, inf  ;;  %v8539_v20 = vcvt.f32.s32 %v8533_v11 }
0x15f7   : > { %8503 = vst.msk [vmem:[%s15534_s16 + $0x1b9] sm:$0x1] %vm1401_vm6, %v8442_v0  ;;  %8493 = vst.msk [vmem:[%s15534_s16 + $0x119] sm:$0x1] %vm1401_vm6, %v8383_v50  ;;  %v8394_v19 = vcombine.high %v8390_v39, %v8390_v39  ;;  %8536 = vmin.xlane.f32.xlu1 %v8535_v47  ;;  %v8549_v35 = vsel %vm8548_vm3, %v8544_v57, inf  ;;  %v8553_v43 = vcvt.f32.s32 %v8547_v49 }
0x15f8   : > { %8494 = vst.msk [vmem:[%s15534_s16 + $0x129] sm:$0x1] %vm1401_vm6, %v8391_v54  ;;  %8507 = vst.msk [vmem:[%s15534_s16 + $0x1f9] sm:$0x1] %vm1401_vm6, %v8443_v52  ;;  %8550 = vmin.xlane.f32.xlu0 %v8549_v35  ;;  %v8540_v36 = vshll.u32 %v8539_v20, 16 }
0x15f9   : > { %8497 = vst.msk [vmem:[%s15534_s16 + $0x159] sm:$0x1] %vm1401_vm6, %v8390_v39  ;;  %8498 = vst.msk [vmem:[%s15534_s16 + $0x169] sm:$0x1] %vm1401_vm6, %v8392_v21  ;;  %v8554_v14 = vshll.u32 %v8553_v43, 16 }
0x15fa   : > { %8495 = vst.msk [vmem:[%s15534_s16 + $0x139] sm:$0x1] %vm1401_vm6, %v8393_v46  ;;  %8499 = vst.msk [vmem:[%s15534_s16 + $0x179] sm:$0x1] %vm1401_vm6, %v8394_v19 }
0x1620   : > { %v8575_v15 = vpop.xlane.xlu0 %8574 }
0x1621   : > { %vm8576_vm4 = vcmp.eq.f32.partialorder %v18289_v31, %v8575_v15  ;;  %v8581_v22 = vcvt.f32.s32 %v8575_v15 }
0x1622   : > { %v8577_v18 = vsel %vm8576_vm4, %v8572_v25, inf }
0x1623   : > { %8578 = vmin.xlane.f32.xlu0 %v8577_v18  ;;  %v8582_v60 = vshll.u32 %v8581_v22, 16 }
0x162a   : > { %v8561_v23 = vpop.xlane.xlu1 %8560 }
0x162b   : > { %vm8562_vm7 = vcmp.eq.f32.partialorder %v18297_v37, %v8561_v23 }
0x162c   : > { %v8563_v53 = vsel %vm8562_vm7, %v8558_v9, inf }
0x162d   : > { %8564 = vmin.xlane.f32.xlu1 %v8563_v53 }
0x1684   : > { %v8537_v32 = vpop.xlane.xlu1 %8536 }
0x1685   : > { %v8538_v62 = vcvt.f32.s32 %v8537_v32  ;;  %v8551_v16 = vpop.xlane.xlu0 %8550 }
0x1686   : > { %v8552_v12 = vcvt.f32.s32 %v8551_v16 }
0x1687   : > { %v8541_v42 = vadd.s32 %v8540_v36, %v8538_v62 }
0x1688   : > { %v8555_v31 = vadd.s32 %v8554_v14, %v8552_v12 }
0x1689   : > { %vm8584_vm8 = vcmp.eq.s32.totalorder %v15496_v1, %v8541_v42 }
0x168a   : > { %vm8585_vm9 = vcmp.eq.s32.totalorder %v15496_v1, %v8555_v31  ;;  %14551 = vmatprep.mubr.msk.f32.mxu0 %vm8584_vm8, %v15455_v61  ;;  %v18492_v30 = vsel %vm8584_vm8, 3e+38, %v18212_v40 }
0x168b   : > { %9298 = vmin.xlane.f32.xlu1 %v18492_v30  ;;  %14552 = vmatmul.mubr.msk.f32.vlgmr.msra.gmra.mrb[52].mxu0 %vm8585_vm9, %v15455_v61  ;;  %v18501_v37 = vsel %vm8585_vm9, 3e+38, %v18221_v56  ;;  %v8567_v56 = vcvt.f32.s32 %v8561_v23 }
0x168c   : > { %15180 = vmatpush3.bf16.msra.mxu0 %v15649_v27  ;;  %9300 = vmin.xlane.f32.xlu0 %v18501_v37 }
0x168d   : > { %15182 = vmatprep.subr.bf16.mxu0 %v15657_v29  ;;  %v8568_v63 = vshll.u32 %v8567_v56, 16 }
0x1690   : > { %15184 = vmatpush3.bf16.msra.mxu0 %v15657_v29 }
0x1691   : > { %15186 = vmatprep.subr.bf16.mxu0 %v15663_v3 }
0x1694   : > { %15188 = vmatpush3.bf16.msra.mxu0 %v15663_v3 }
0x1695   : > { %15190 = vmatprep.subr.bf16.mxu0 %v15669_v4 }
0x1698   : > { %15192 = vmatpush3.bf16.msra.mxu0 %v15669_v4 }
0x1699   : > { %15194 = vmatprep.subr.bf16.mxu0 %v15675_v5 }
0x169c   : > { %15196 = vmatpush3.bf16.msra.mxu0 %v15675_v5 }
0x169d   : > { %15198 = vmatprep.subr.bf16.mxu0 %v15681_v6 }
0x16a0   : > { %15200 = vmatpush3.bf16.msra.mxu0 %v15681_v6 }
0x16a1   : > { %15202 = vmatprep.subr.bf16.mxu0 %v15686_v7 }
0x16a4   : > { %15204 = vmatpush3.bf16.msra.mxu0 %v15686_v7 }
0x16a5   : > { %15206 = vmatprep.subr.bf16.mxu0 %v15692_v8 }
0x16a8   : > { %15208 = vmatpush3.bf16.msra.mxu0 %v15692_v8 }
0x16a9   : > { %14641 = vmatprep.subr.mxu0 %v15504_v2 }
0x16b0   : > { %v8579_v40 = vpop.xlane.xlu0 %8578 }
0x16b1   : > { %v8580_v45 = vcvt.f32.s32 %v8579_v40 }
0x16b3   : > { %v8583_v58 = vadd.s32 %v8582_v60, %v8580_v45 }
0x16b5   : > { %vm8587_vm10 = vcmp.eq.s32.totalorder %v15496_v1, %v8583_v58 }
0x16b6   : > { %v18513_v34 = vsel %vm8587_vm10, 3e+38, %v18233_v48 }
0x16b7   : > { %9304 = vmin.xlane.f32.xlu0 %v18513_v34 }
0x16ba   : > { %v8565_v17 = vpop.xlane.xlu1 %8564 }
0x16bb   : > { %v8566_v33 = vcvt.f32.s32 %v8565_v17 }
0x16bd   : > { %v8569_v51 = vadd.s32 %v8568_v63, %v8566_v33 }
0x16bf   : > { %vm8586_vm11 = vcmp.eq.s32.totalorder %v15496_v1, %v8569_v51 }
0x16c0   : > { %14554 = vmatprep.mubr.msk.f32.mxu0 %vm8586_vm11, %v15455_v61  ;;  %v18524_v48 = vsel %vm8586_vm11, 3e+38, %v18244_v38 }
0x16c1   : > { %9302 = vmin.xlane.f32.xlu1 %v18524_v48  ;;  %14555 = vmatmul.mubr.msk.f32.gmra.mrb[54].mxu0 %vm8587_vm10, %v15455_v61 }
0x16c2   : > { %14589 = vmatprep.mubr.msk.f32.mxu0 %vm8584_vm8, %v15455_v61 }
0x16c5   : > { %14590 = vmatmul.mubr.msk.f32.vlgmr.msra.gmra.mrb[56].mxu0 %vm8585_vm9, %v15455_v61 }
0x16c6   : > { %14592 = vmatprep.mubr.msk.f32.mxu0 %vm8586_vm11, %v15455_v61  ;;  %14642 = vmatpush3.xpose.msra.mxu0 %v15504_v2 }
0x16c7   : > { %15242 = vmatprep.subr.bf16.mxu0 %v15649_v27 }
0x16c9   : > { %14593 = vmatmul.mubr.msk.f32.gmra.mrb[58].mxu0 %vm8587_vm10, %v15455_v61 }
0x1718   : > { %v9299_v38 = vpop.xlane.xlu1 %9298 }
0x1719   : > { %vm9306_vm12 = vcmp.le.f32.partialorder %v18492_v30, %v9299_v38  ;;  %v9301_v44 = vpop.xlane.xlu0 %9300 }
0x171a   : > { %v18550_v10 = vsel %vm9306_vm12, %v15496_v1, 128  ;;  %vm9307_vm13 = vcmp.le.f32.partialorder %v18501_v37, %v9301_v44 }
0x171b   : > { %v9315_v28 = vshra.s32 %v18550_v10, 16  ;;  %v18555_v0 = vsel %vm9307_vm13, %v15496_v1, 128 }
0x171c   : > { %v9329_v50 = vshra.s32 %v18555_v0, 16 }
0x171d   : > { %v18558_v54 = vcvt.s32.f32 %v9315_v28 }
0x171e   : > { %v18560_v52 = vcvt.s32.f32 %v9329_v50 }
0x171f   : > { %9318 = vmin.xlane.f32.xlu1 %v18558_v54 }
0x1720   : > { %9332 = vmin.xlane.f32.xlu0 %v18560_v52 }
0x1744   : > { %v9305_v39 = vpop.xlane.xlu0 %9304 }
0x1745   : > { %vm9309_vm14 = vcmp.le.f32.partialorder %v18513_v34, %v9305_v39 }
0x1746   : > { %v18566_v21 = vsel %vm9309_vm14, %v15496_v1, 128 }
0x1747   : > { %v9357_v46 = vshra.s32 %v18566_v21, 16 }
0x1749   : > { %v18569_v19 = vcvt.s32.f32 %v9357_v46 }
0x174b   : > { %9360 = vmin.xlane.f32.xlu0 %v18569_v19 }
0x174e   : > { %v9303_v55 = vpop.xlane.xlu1 %9302 }
0x174f   : > { %vm9308_vm15 = vcmp.le.f32.partialorder %v18524_v48, %v9303_v55 }
0x1750   : > { %v18574_v26 = vsel %vm9308_vm15, %v15496_v1, 128 }
0x1751   : > { %v9343_v13 = vshra.s32 %v18574_v26, 16 }
0x1753   : > { %v18577_v11 = vcvt.s32.f32 %v9343_v13 }
0x1755   : > { %9346 = vmin.xlane.f32.xlu1 %v18577_v11 }
0x175e   : > { %v14553_v57 = vpop.f32.mrb[52].mxu0 }
0x175f   : > { %v8819_v49 = vcombine.high %v14553_v57, %v14553_v57  ;;  %v8826_v47 = vrot.slane %v14553_v57, %v15818_v59  ;;  %v8662_v35 = vpop.f32.mrb[53].mxu0 }
0x1760   : > { %v8770_v41 = vcombine.high %v8662_v35, %v8662_v35  ;;  %v8777_v25 = vrot.slane %v8662_v35, %v15818_v59 }
0x1761   : > { %v8833_v15 = vrot.slane %v8819_v49, %v15818_v59  ;;  %v8834_v18 = vcombine.high %v8826_v47, %v8826_v47  ;;  %v8842_v24 = vrot.slane %v8826_v47, %v15818_v59 }
0x1762   : > { %v8784_v9 = vrot.slane %v8770_v41, %v15818_v59  ;;  %v8785_v23 = vcombine.high %v8777_v25, %v8777_v25  ;;  %v8793_v53 = vrot.slane %v8777_v25, %v15818_v59 }
0x1763   : > { %v8835_v20 = vcombine.high %v8833_v15, %v8833_v15  ;;  %v8849_v43 = vrot.slane %v8833_v15, %v15818_v59  ;;  %v8856_v32 = vrot.slane %v8834_v18, %v15818_v59  ;;  %v8864_v36 = vcombine.high %v8842_v24, %v8842_v24  ;;  %9006 = vst.msk [vmem:[%s15529_s13 + $0x8a] sm:$0x1] %vm1136_vm5, %v8842_v24 }
0x1764   : > { %v8786_v62 = vcombine.high %v8784_v9, %v8784_v9  ;;  %v8800_v16 = vrot.slane %v8784_v9, %v15818_v59  ;;  %v8807_v14 = vrot.slane %v8785_v23, %v15818_v59  ;;  %v8815_v12 = vcombine.high %v8793_v53, %v8793_v53  ;;  %8998 = vst.msk [vmem:[%s15529_s13 + $0xa] sm:$0x1] %vm1136_vm5, %v8793_v53 }
0x1765   : > { %v8863_v42 = vrot.slane %v8835_v20, %v15818_v59  ;;  %v8865_v31 = vcombine.high %v8849_v43, %v8849_v43  ;;  %v8866_v22 = vcombine.high %v8856_v32, %v8856_v32  ;;  %9007 = vst.msk [vmem:[%s15529_s13 + $0x9a] sm:$0x1] %vm1136_vm5, %v8856_v32  ;;  %9008 = vst.msk [vmem:[%s15529_s13 + $0xaa] sm:$0x1] %vm1136_vm5, %v8864_v36 }
0x1766   : > { %9010 = vst.msk [vmem:[%s15529_s13 + $0xca] sm:$0x1] %vm1136_vm5, %v8849_v43  ;;  %v8814_v40 = vrot.slane %v8786_v62, %v15818_v59  ;;  %v8816_v60 = vcombine.high %v8800_v16, %v8800_v16  ;;  %v8817_v45 = vcombine.high %v8807_v14, %v8807_v14  ;;  %8999 = vst.msk [vmem:[%s15529_s13 + $0x1a] sm:$0x1] %vm1136_vm5, %v8807_v14 }
0x1767   : > { %9000 = vst.msk [vmem:[%s15529_s13 + $0x2a] sm:$0x1] %vm1136_vm5, %v8815_v12  ;;  %9002 = vst.msk [vmem:[%s15529_s13 + $0x4a] sm:$0x1] %vm1136_vm5, %v8800_v16  ;;  %v8867_v58 = vcombine.high %v8863_v42, %v8863_v42 }
0x1768   : > { %9009 = vst.msk [vmem:[%s15529_s13 + $0xba] sm:$0x1] %vm1136_vm5, %v8866_v22  ;;  %9011 = vst.msk [vmem:[%s15529_s13 + $0xda] sm:$0x1] %vm1136_vm5, %v8863_v42  ;;  %v8818_v56 = vcombine.high %v8814_v40, %v8814_v40 }
0x1769   : > { %9012 = vst.msk [vmem:[%s15529_s13 + $0xea] sm:$0x1] %vm1136_vm5, %v8865_v31  ;;  %9001 = vst.msk [vmem:[%s15529_s13 + $0x3a] sm:$0x1] %vm1136_vm5, %v8817_v45 }
0x176a   : > { %9003 = vst.msk [vmem:[%s15529_s13 + $0x5a] sm:$0x1] %vm1136_vm5, %v8814_v40  ;;  %9004 = vst.msk [vmem:[%s15529_s13 + $0x6a] sm:$0x1] %vm1136_vm5, %v8816_v60 }
0x176b   : > { %9013 = vst.msk [vmem:[%s15529_s13 + $0xfa] sm:$0x1] %vm1136_vm5, %v8867_v58  ;;  %9005 = vst.msk [vmem:[%s15529_s13 + $0x7a] sm:$0x1] %vm1136_vm5, %v8818_v56 }
0x1794   : > { %v14556_v17 = vpop.f32.mrb[54].mxu0 }
0x1795   : > { %v8917_v63 = vcombine.high %v14556_v17, %v14556_v17  ;;  %v8924_v33 = vrot.slane %v14556_v17, %v15818_v59  ;;  %v8672_v51 = vpop.f32.mrb[55].mxu0 }
0x1796   : > { %v8868_v38 = vcombine.high %v8672_v51, %v8672_v51  ;;  %v8875_v44 = vrot.slane %v8672_v51, %v15818_v59 }
0x1797   : > { %v8931_v28 = vrot.slane %v8917_v63, %v15818_v59  ;;  %v8932_v50 = vcombine.high %v8924_v33, %v8924_v33  ;;  %v8940_v39 = vrot.slane %v8924_v33, %v15818_v59 }
0x1798   : > { %v8882_v46 = vrot.slane %v8868_v38, %v15818_v59  ;;  %v8883_v55 = vcombine.high %v8875_v44, %v8875_v44  ;;  %v8891_v13 = vrot.slane %v8875_v44, %v15818_v59  ;;  %v14591_v62 = vpop.f32.mrb[56].mxu0 }
0x1799   : > { %v8933_v57 = vcombine.high %v8931_v28, %v8931_v28  ;;  %v8947_v49 = vrot.slane %v8931_v28, %v15818_v59  ;;  %v8954_v47 = vrot.slane %v8932_v50, %v15818_v59  ;;  %v8962_v35 = vcombine.high %v8940_v39, %v8940_v39  ;;  %9022 = vst.msk [vmem:[%s15529_s13 + $0x18a] sm:$0x1] %vm1136_vm5, %v8940_v39  ;;  %v8747_v12 = vpop.f32.mrb[57].mxu0 }
0x179a   : > { %v8884_v41 = vcombine.high %v8882_v46, %v8882_v46  ;;  %v8898_v25 = vrot.slane %v8882_v46, %v15818_v59  ;;  %v8905_v15 = vrot.slane %v8883_v55, %v15818_v59  ;;  %v8913_v18 = vcombine.high %v8891_v13, %v8891_v13  ;;  %9014 = vst.msk [vmem:[%s15529_s13 + $0x10a] sm:$0x1] %vm1136_vm5, %v8891_v13 }
0x179b   : > { %v8961_v24 = vrot.slane %v8933_v57, %v15818_v59  ;;  %v8963_v9 = vcombine.high %v8947_v49, %v8947_v49  ;;  %v8964_v23 = vcombine.high %v8954_v47, %v8954_v47  ;;  %9023 = vst.msk [vmem:[%s15529_s13 + $0x19a] sm:$0x1] %vm1136_vm5, %v8954_v47  ;;  %9024 = vst.msk [vmem:[%s15529_s13 + $0x1aa] sm:$0x1] %vm1136_vm5, %v8962_v35 }
0x179c   : > { %9026 = vst.msk [vmem:[%s15529_s13 + $0x1ca] sm:$0x1] %vm1136_vm5, %v8947_v49  ;;  %v8912_v53 = vrot.slane %v8884_v41, %v15818_v59  ;;  %v8914_v20 = vcombine.high %v8898_v25, %v8898_v25  ;;  %v8915_v43 = vcombine.high %v8905_v15, %v8905_v15  ;;  %9015 = vst.msk [vmem:[%s15529_s13 + $0x11a] sm:$0x1] %vm1136_vm5, %v8905_v15  ;;  %v14594_v17 = vpop.f32.mrb[58].mxu0 }
0x179d   : > { %9016 = vst.msk [vmem:[%s15529_s13 + $0x12a] sm:$0x1] %vm1136_vm5, %v8913_v18  ;;  %9018 = vst.msk [vmem:[%s15529_s13 + $0x14a] sm:$0x1] %vm1136_vm5, %v8898_v25  ;;  %v8965_v32 = vcombine.high %v8961_v24, %v8961_v24  ;;  %v9083_v16 = vcombine.high %v14591_v62, %v14591_v62  ;;  %v9090_v14 = vrot.slane %v14591_v62, %v15818_v59  ;;  %v8757_v44 = vpop.f32.mrb[59].mxu0 }
0x179e   : > { %9025 = vst.msk [vmem:[%s15529_s13 + $0x1ba] sm:$0x1] %vm1136_vm5, %v8964_v23  ;;  %9027 = vst.msk [vmem:[%s15529_s13 + $0x1da] sm:$0x1] %vm1136_vm5, %v8961_v24  ;;  %v8916_v36 = vcombine.high %v8912_v53, %v8912_v53  ;;  %v9034_v42 = vcombine.high %v8747_v12, %v8747_v12  ;;  %v9041_v31 = vrot.slane %v8747_v12, %v15818_v59 }
0x179f   : > { %9028 = vst.msk [vmem:[%s15529_s13 + $0x1ea] sm:$0x1] %vm1136_vm5, %v8963_v9  ;;  %9017 = vst.msk [vmem:[%s15529_s13 + $0x13a] sm:$0x1] %vm1136_vm5, %v8915_v43  ;;  %v9097_v22 = vrot.slane %v9083_v16, %v15818_v59  ;;  %v9098_v40 = vcombine.high %v9090_v14, %v9090_v14  ;;  %v9106_v60 = vrot.slane %v9090_v14, %v15818_v59 }
0x17a0   : > { %9019 = vst.msk [vmem:[%s15529_s13 + $0x15a] sm:$0x1] %vm1136_vm5, %v8912_v53  ;;  %9020 = vst.msk [vmem:[%s15529_s13 + $0x16a] sm:$0x1] %vm1136_vm5, %v8914_v20  ;;  %v9048_v45 = vrot.slane %v9034_v42, %v15818_v59  ;;  %v9049_v58 = vcombine.high %v9041_v31, %v9041_v31  ;;  %v9057_v56 = vrot.slane %v9041_v31, %v15818_v59 }
0x17a1   : > { %9029 = vst.msk [vmem:[%s15529_s13 + $0x1fa] sm:$0x1] %vm1136_vm5, %v8965_v32  ;;  %9021 = vst.msk [vmem:[%s15529_s13 + $0x17a] sm:$0x1] %vm1136_vm5, %v8916_v36  ;;  %v9099_v63 = vcombine.high %v9097_v22, %v9097_v22  ;;  %v9113_v33 = vrot.slane %v9097_v22, %v15818_v59  ;;  %v9120_v51 = vrot.slane %v9098_v40, %v15818_v59 }
0x17a2   : > { %v9128_v38 = vcombine.high %v9106_v60, %v9106_v60  ;;  %9270 = vst.msk [vmem:[%s15534_s16 + $0x8a] sm:$0x1] %vm1401_vm6, %v9106_v60  ;;  %v9050_v28 = vcombine.high %v9048_v45, %v9048_v45  ;;  %v9064_v50 = vrot.slane %v9048_v45, %v15818_v59  ;;  %v9071_v39 = vrot.slane %v9049_v58, %v15818_v59 }
0x17a3   : > { %v9079_v46 = vcombine.high %v9057_v56, %v9057_v56  ;;  %9262 = vst.msk [vmem:[%s15534_s16 + $0xa] sm:$0x1] %vm1401_vm6, %v9057_v56  ;;  %v9127_v55 = vrot.slane %v9099_v63, %v15818_v59  ;;  %v9129_v13 = vcombine.high %v9113_v33, %v9113_v33  ;;  %v9130_v57 = vcombine.high %v9120_v51, %v9120_v51 }
0x17a4   : > { %9271 = vst.msk [vmem:[%s15534_s16 + $0x9a] sm:$0x1] %vm1401_vm6, %v9120_v51  ;;  %9272 = vst.msk [vmem:[%s15534_s16 + $0xaa] sm:$0x1] %vm1401_vm6, %v9128_v38  ;;  %v9181_v49 = vcombine.high %v14594_v17, %v14594_v17  ;;  %v9078_v47 = vrot.slane %v9050_v28, %v15818_v59  ;;  %v9080_v35 = vcombine.high %v9064_v50, %v9064_v50  ;;  %v9314_v38 = vand.u32 65535, %v18550_v10 }
0x17a5   : > { %9274 = vst.msk [vmem:[%s15534_s16 + $0xca] sm:$0x1] %vm1401_vm6, %v9113_v33  ;;  %v9081_v41 = vcombine.high %v9071_v39, %v9071_v39  ;;  %9263 = vst.msk [vmem:[%s15534_s16 + $0x1a] sm:$0x1] %vm1401_vm6, %v9071_v39  ;;  %v9188_v25 = vrot.slane %v14594_v17, %v15818_v59  ;;  %v9131_v15 = vcombine.high %v9127_v55, %v9127_v55 }
0x17a6   : > { %9264 = vst.msk [vmem:[%s15534_s16 + $0x2a] sm:$0x1] %vm1401_vm6, %v9079_v46  ;;  %9266 = vst.msk [vmem:[%s15534_s16 + $0x4a] sm:$0x1] %vm1401_vm6, %v9064_v50  ;;  %v9195_v18 = vrot.slane %v9181_v49, %v15818_v59  ;;  %v9132_v24 = vcombine.high %v8757_v44, %v8757_v44  ;;  %v9139_v9 = vrot.slane %v8757_v44, %v15818_v59  ;;  %v9328_v44 = vand.u32 65535, %v18555_v0 }
0x17a7   : > { %9273 = vst.msk [vmem:[%s15534_s16 + $0xba] sm:$0x1] %vm1401_vm6, %v9130_v57  ;;  %9275 = vst.msk [vmem:[%s15534_s16 + $0xda] sm:$0x1] %vm1401_vm6, %v9127_v55  ;;  %v9082_v23 = vcombine.high %v9078_v47, %v9078_v47  ;;  %v9196_v53 = vcombine.high %v9188_v25, %v9188_v25  ;;  %v9204_v20 = vrot.slane %v9188_v25, %v15818_v59  ;;  %v9316_v28 = vcvt.s32.f32 %v9314_v38 }
0x17a8   : > { %9276 = vst.msk [vmem:[%s15534_s16 + $0xea] sm:$0x1] %vm1401_vm6, %v9129_v13  ;;  %9265 = vst.msk [vmem:[%s15534_s16 + $0x3a] sm:$0x1] %vm1401_vm6, %v9081_v41  ;;  %v9197_v43 = vcombine.high %v9195_v18, %v9195_v18  ;;  %v9211_v32 = vrot.slane %v9195_v18, %v15818_v59  ;;  %v9146_v36 = vrot.slane %v9132_v24, %v15818_v59  ;;  %v9330_v39 = vcvt.s32.f32 %v9328_v44 }
0x17a9   : > { %9267 = vst.msk [vmem:[%s15534_s16 + $0x5a] sm:$0x1] %vm1401_vm6, %v9078_v47  ;;  %9268 = vst.msk [vmem:[%s15534_s16 + $0x6a] sm:$0x1] %vm1401_vm6, %v9080_v35  ;;  %v9147_v62 = vcombine.high %v9139_v9, %v9139_v9  ;;  %v9218_v16 = vrot.slane %v9196_v53, %v15818_v59  ;;  %v9226_v14 = vcombine.high %v9204_v20, %v9204_v20  ;;  %v9356_v57 = vand.u32 65535, %v18566_v21 }
0x17aa   : > { %9277 = vst.msk [vmem:[%s15534_s16 + $0xfa] sm:$0x1] %vm1401_vm6, %v9131_v15  ;;  %9269 = vst.msk [vmem:[%s15534_s16 + $0x7a] sm:$0x1] %vm1401_vm6, %v9082_v23  ;;  %v9155_v12 = vrot.slane %v9139_v9, %v15818_v59  ;;  %v9225_v42 = vrot.slane %v9197_v43, %v15818_v59  ;;  %v9227_v31 = vcombine.high %v9211_v32, %v9211_v32  ;;  %v9342_v0 = vand.u32 65535, %v18574_v26 }
0x17ab   : > { %9286 = vst.msk [vmem:[%s15534_s16 + $0x18a] sm:$0x1] %vm1401_vm6, %v9204_v20  ;;  %9290 = vst.msk [vmem:[%s15534_s16 + $0x1ca] sm:$0x1] %vm1401_vm6, %v9211_v32  ;;  %v9148_v22 = vcombine.high %v9146_v36, %v9146_v36  ;;  %v9162_v40 = vrot.slane %v9146_v36, %v15818_v59  ;;  %v9228_v60 = vcombine.high %v9218_v16, %v9218_v16  ;;  %v9358_v49 = vcvt.s32.f32 %v9356_v57 }
0x17ac   : > { %9287 = vst.msk [vmem:[%s15534_s16 + $0x19a] sm:$0x1] %vm1401_vm6, %v9218_v16  ;;  %9288 = vst.msk [vmem:[%s15534_s16 + $0x1aa] sm:$0x1] %vm1401_vm6, %v9226_v14  ;;  %v9169_v45 = vrot.slane %v9147_v62, %v15818_v59  ;;  %v9177_v58 = vcombine.high %v9155_v12, %v9155_v12  ;;  %v9229_v56 = vcombine.high %v9225_v42, %v9225_v42  ;;  %v9319_v50 = vpop.xlane.xlu1 %9318  ;;  %v9344_v35 = vcvt.s32.f32 %v9342_v0 }
0x17ad   : > { %9278 = vst.msk [vmem:[%s15534_s16 + $0x10a] sm:$0x1] %vm1401_vm6, %v9155_v12  ;;  %9291 = vst.msk [vmem:[%s15534_s16 + $0x1da] sm:$0x1] %vm1401_vm6, %v9225_v42  ;;  %v9176_v17 = vrot.slane %v9148_v22, %v15818_v59  ;;  %v9178_v63 = vcombine.high %v9162_v40, %v9162_v40  ;;  %vm9320_vm0 = vcmp.eq.f32.partialorder %v18558_v54, %v9319_v50  ;;  %v9333_v46 = vpop.xlane.xlu0 %9332 }
0x17ae   : > { %9292 = vst.msk [vmem:[%s15534_s16 + $0x1ea] sm:$0x1] %vm1401_vm6, %v9227_v31  ;;  %9282 = vst.msk [vmem:[%s15534_s16 + $0x14a] sm:$0x1] %vm1401_vm6, %v9162_v40  ;;  %v9179_v33 = vcombine.high %v9169_v45, %v9169_v45  ;;  %vm9334_vm1 = vcmp.eq.f32.partialorder %v18560_v52, %v9333_v46  ;;  %v9321_v55 = vsel %vm9320_vm0, %v9316_v28, inf  ;;  %v9325_v52 = vcvt.f32.s32 %v9319_v50 }
0x17af   : > { %9289 = vst.msk [vmem:[%s15534_s16 + $0x1ba] sm:$0x1] %vm1401_vm6, %v9228_v60  ;;  %9279 = vst.msk [vmem:[%s15534_s16 + $0x11a] sm:$0x1] %vm1401_vm6, %v9169_v45  ;;  %v9180_v51 = vcombine.high %v9176_v17, %v9176_v17  ;;  %9322 = vmin.xlane.f32.xlu1 %v9321_v55  ;;  %v9335_v13 = vsel %vm9334_vm1, %v9330_v39, inf  ;;  %v9339_v25 = vcvt.f32.s32 %v9333_v46 }
0x17b0   : > { %9280 = vst.msk [vmem:[%s15534_s16 + $0x12a] sm:$0x1] %vm1401_vm6, %v9177_v58  ;;  %9293 = vst.msk [vmem:[%s15534_s16 + $0x1fa] sm:$0x1] %vm1401_vm6, %v9229_v56  ;;  %9336 = vmin.xlane.f32.xlu0 %v9335_v13  ;;  %v9326_v18 = vshll.u32 %v9325_v52, 16 }
0x17b1   : > { %9283 = vst.msk [vmem:[%s15534_s16 + $0x15a] sm:$0x1] %vm1401_vm6, %v9176_v17  ;;  %9284 = vst.msk [vmem:[%s15534_s16 + $0x16a] sm:$0x1] %vm1401_vm6, %v9178_v63  ;;  %v9340_v9 = vshll.u32 %v9339_v25, 16 }
0x17b2   : > { %9281 = vst.msk [vmem:[%s15534_s16 + $0x13a] sm:$0x1] %vm1401_vm6, %v9179_v33  ;;  %9285 = vst.msk [vmem:[%s15534_s16 + $0x17a] sm:$0x1] %vm1401_vm6, %v9180_v51 }
0x17d8   : > { %v9361_v47 = vpop.xlane.xlu0 %9360 }
0x17d9   : > { %vm9362_vm2 = vcmp.eq.f32.partialorder %v18569_v19, %v9361_v47  ;;  %v9367_v20 = vcvt.f32.s32 %v9361_v47 }
0x17da   : > { %v9363_v10 = vsel %vm9362_vm2, %v9358_v49, inf }
0x17db   : > { %9364 = vmin.xlane.f32.xlu0 %v9363_v10  ;;  %v9368_v43 = vshll.u32 %v9367_v20, 16 }
0x17e2   : > { %v9347_v41 = vpop.xlane.xlu1 %9346 }
0x17e3   : > { %vm9348_vm3 = vcmp.eq.f32.partialorder %v18577_v11, %v9347_v41 }
0x17e4   : > { %v9349_v54 = vsel %vm9348_vm3, %v9344_v35, inf }
0x17e5   : > { %9350 = vmin.xlane.f32.xlu1 %v9349_v54 }
0x183c   : > { %v9323_v15 = vpop.xlane.xlu1 %9322 }
0x183d   : > { %v9324_v24 = vcvt.f32.s32 %v9323_v15  ;;  %v9337_v21 = vpop.xlane.xlu0 %9336 }
0x183e   : > { %v9338_v23 = vcvt.f32.s32 %v9337_v21 }
0x183f   : > { %v9327_v53 = vadd.s32 %v9326_v18, %v9324_v24 }
0x1840   : > { %v9341_v19 = vadd.s32 %v9340_v9, %v9338_v23 }
0x1841   : > { %vm9370_vm4 = vcmp.eq.s32.totalorder %v15496_v1, %v9327_v53 }
0x1842   : > { %vm9371_vm7 = vcmp.eq.s32.totalorder %v15496_v1, %v9341_v19  ;;  %14597 = vmatprep.mubr.msk.f32.mxu1 %vm9370_vm4, %v15455_v61  ;;  %v18772_v26 = vsel %vm9370_vm4, 3e+38, %v18492_v30 }
0x1843   : > { %10084 = vmin.xlane.f32.xlu1 %v18772_v26  ;;  %14598 = vmatmul.mubr.msk.f32.vlgmr.msra.gmra.mrb[36].mxu1 %vm9371_vm7, %v15455_v61  ;;  %v18781_v11 = vsel %vm9371_vm7, 3e+38, %v18501_v37  ;;  %v9353_v37 = vcvt.f32.s32 %v9347_v41 }
0x1844   : > { %15212 = vmatpush3.bf16.msra.mxu1 %v15649_v27  ;;  %10086 = vmin.xlane.f32.xlu0 %v18781_v11 }
0x1845   : > { %15214 = vmatprep.subr.bf16.mxu1 %v15657_v29  ;;  %v9354_v14 = vshll.u32 %v9353_v37, 16 }
0x1848   : > { %15216 = vmatpush3.bf16.msra.mxu1 %v15657_v29 }
0x1849   : > { %15218 = vmatprep.subr.bf16.mxu1 %v15663_v3 }
0x184c   : > { %15220 = vmatpush3.bf16.msra.mxu1 %v15663_v3 }
0x184d   : > { %15222 = vmatprep.subr.bf16.mxu1 %v15669_v4 }
0x1850   : > { %15224 = vmatpush3.bf16.msra.mxu1 %v15669_v4 }
0x1851   : > { %15226 = vmatprep.subr.bf16.mxu1 %v15675_v5 }
0x1854   : > { %15228 = vmatpush3.bf16.msra.mxu1 %v15675_v5 }
0x1855   : > { %15230 = vmatprep.subr.bf16.mxu1 %v15681_v6 }
0x1858   : > { %15232 = vmatpush3.bf16.msra.mxu1 %v15681_v6 }
0x1859   : > { %15234 = vmatprep.subr.bf16.mxu1 %v15686_v7 }
0x185c   : > { %15236 = vmatpush3.bf16.msra.mxu1 %v15686_v7 }
0x185d   : > { %15238 = vmatprep.subr.bf16.mxu1 %v15692_v8 }
0x1860   : > { %15240 = vmatpush3.bf16.msra.mxu1 %v15692_v8 }
0x1861   : > { %14687 = vmatprep.subr.mxu1 %v15504_v2 }
0x1868   : > { %v9365_v30 = vpop.xlane.xlu0 %9364 }
0x1869   : > { %v9366_v32 = vcvt.f32.s32 %v9365_v30 }
0x186b   : > { %v9369_v36 = vadd.s32 %v9368_v43, %v9366_v32 }
0x186d   : > { %vm9373_vm8 = vcmp.eq.s32.totalorder %v15496_v1, %v9369_v36 }
0x186e   : > { %v18793_v62 = vsel %vm9373_vm8, 3e+38, %v18513_v34 }
0x186f   : > { %10090 = vmin.xlane.f32.xlu0 %v18793_v62 }
0x1872   : > { %v9351_v16 = vpop.xlane.xlu1 %9350 }
0x1873   : > { %v9352_v12 = vcvt.f32.s32 %v9351_v16 }
0x1875   : > { %v9355_v42 = vadd.s32 %v9354_v14, %v9352_v12 }
0x1877   : > { %vm9372_vm9 = vcmp.eq.s32.totalorder %v15496_v1, %v9355_v42 }
0x1878   : > { %14600 = vmatprep.mubr.msk.f32.mxu1 %vm9372_vm9, %v15455_v61  ;;  %v18804_v34 = vsel %vm9372_vm9, 3e+38, %v18524_v48 }
0x1879   : > { %10088 = vmin.xlane.f32.xlu1 %v18804_v34  ;;  %14601 = vmatmul.mubr.msk.f32.gmra.mrb[38].mxu1 %vm9373_vm8, %v15455_v61 }
0x187a   : > { %14635 = vmatprep.mubr.msk.f32.mxu1 %vm9370_vm4, %v15455_v61 }
0x187d   : > { %14636 = vmatmul.mubr.msk.f32.vlgmr.msra.gmra.mrb[40].mxu1 %vm9371_vm7, %v15455_v61 }
0x187e   : > { %14638 = vmatprep.mubr.msk.f32.mxu1 %vm9372_vm9, %v15455_v61  ;;  %14688 = vmatpush3.xpose.msra.mxu1 %v15504_v2 }
0x187f   : > { %15274 = vmatprep.subr.bf16.mxu1 %v15649_v27 }
0x1881   : > { %14639 = vmatmul.mubr.msk.f32.gmra.mrb[42].mxu1 %vm9373_vm8, %v15455_v61 }
0x18d0   : > { %v10085_v48 = vpop.xlane.xlu1 %10084 }
0x18d1   : > { %vm10092_vm10 = vcmp.le.f32.partialorder %v18772_v26, %v10085_v48  ;;  %v10087_v31 = vpop.xlane.xlu0 %10086 }
0x18d2   : > { %v18830_v22 = vsel %vm10092_vm10, %v15496_v1, 128  ;;  %vm10093_vm11 = vcmp.le.f32.partialorder %v18781_v11, %v10087_v31 }
0x18d3   : > { %v10101_v40 = vshra.s32 %v18830_v22, 16  ;;  %v18835_v60 = vsel %vm10093_vm11, %v15496_v1, 128 }
0x18d4   : > { %v10115_v45 = vshra.s32 %v18835_v60, 16 }
0x18d5   : > { %v18838_v58 = vcvt.s32.f32 %v10101_v40 }
0x18d6   : > { %v18840_v56 = vcvt.s32.f32 %v10115_v45 }
0x18d7   : > { %10104 = vmin.xlane.f32.xlu1 %v18838_v58 }
0x18d8   : > { %10118 = vmin.xlane.f32.xlu0 %v18840_v56 }
0x18fc   : > { %v10091_v17 = vpop.xlane.xlu0 %10090 }
0x18fd   : > { %vm10095_vm12 = vcmp.le.f32.partialorder %v18793_v62, %v10091_v17 }
0x18fe   : > { %v18846_v63 = vsel %vm10095_vm12, %v15496_v1, 128 }
0x18ff   : > { %v10143_v33 = vshra.s32 %v18846_v63, 16 }
0x1901   : > { %v18849_v51 = vcvt.s32.f32 %v10143_v33 }
0x1903   : > { %10146 = vmin.xlane.f32.xlu0 %v18849_v51 }
0x1906   : > { %v10089_v38 = vpop.xlane.xlu1 %10088 }
0x1907   : > { %vm10094_vm13 = vcmp.le.f32.partialorder %v18804_v34, %v10089_v38 }
0x1908   : > { %v18854_v44 = vsel %vm10094_vm13, %v15496_v1, 128 }
0x1909   : > { %v10129_v28 = vshra.s32 %v18854_v44, 16 }
0x190b   : > { %v18857_v50 = vcvt.s32.f32 %v10129_v28 }
0x190d   : > { %10132 = vmin.xlane.f32.xlu1 %v18857_v50 }
0x1916   : > { %v14599_v39 = vpop.f32.mrb[36].mxu1 }
0x1917   : > { %v9605_v46 = vcombine.high %v14599_v39, %v14599_v39  ;;  %v9612_v55 = vrot.slane %v14599_v39, %v15818_v59  ;;  %v9448_v13 = vpop.f32.mrb[37].mxu1 }
0x1918   : > { %v9556_v57 = vcombine.high %v9448_v13, %v9448_v13  ;;  %v9563_v49 = vrot.slane %v9448_v13, %v15818_v59 }
0x1919   : > { %v9619_v47 = vrot.slane %v9605_v46, %v15818_v59  ;;  %v9620_v10 = vcombine.high %v9612_v55, %v9612_v55  ;;  %v9628_v0 = vrot.slane %v9612_v55, %v15818_v59 }
0x191a   : > { %v9570_v35 = vrot.slane %v9556_v57, %v15818_v59  ;;  %v9571_v41 = vcombine.high %v9563_v49, %v9563_v49  ;;  %v9579_v54 = vrot.slane %v9563_v49, %v15818_v59 }
0x191b   : > { %v9621_v52 = vcombine.high %v9619_v47, %v9619_v47  ;;  %v9635_v25 = vrot.slane %v9619_v47, %v15818_v59  ;;  %v9642_v15 = vrot.slane %v9620_v10, %v15818_v59  ;;  %v9650_v18 = vcombine.high %v9628_v0, %v9628_v0  ;;  %9792 = vst.msk [vmem:[%s15529_s13 + $0x8b] sm:$0x1] %vm1136_vm5, %v9628_v0 }
0x191c   : > { %v9572_v24 = vcombine.high %v9570_v35, %v9570_v35  ;;  %v9586_v21 = vrot.slane %v9570_v35, %v15818_v59  ;;  %v9593_v9 = vrot.slane %v9571_v41, %v15818_v59  ;;  %v9601_v23 = vcombine.high %v9579_v54, %v9579_v54  ;;  %9784 = vst.msk [vmem:[%s15529_s13 + $0xb] sm:$0x1] %vm1136_vm5, %v9579_v54 }
0x191d   : > { %v9649_v53 = vrot.slane %v9621_v52, %v15818_v59  ;;  %v9651_v19 = vcombine.high %v9635_v25, %v9635_v25  ;;  %v9652_v20 = vcombine.high %v9642_v15, %v9642_v15  ;;  %9793 = vst.msk [vmem:[%s15529_s13 + $0x9b] sm:$0x1] %vm1136_vm5, %v9642_v15  ;;  %9794 = vst.msk [vmem:[%s15529_s13 + $0xab] sm:$0x1] %vm1136_vm5, %v9650_v18 }
0x191e   : > { %9796 = vst.msk [vmem:[%s15529_s13 + $0xcb] sm:$0x1] %vm1136_vm5, %v9635_v25  ;;  %v9600_v30 = vrot.slane %v9572_v24, %v15818_v59  ;;  %v9602_v43 = vcombine.high %v9586_v21, %v9586_v21  ;;  %v9603_v32 = vcombine.high %v9593_v9, %v9593_v9  ;;  %9785 = vst.msk [vmem:[%s15529_s13 + $0x1b] sm:$0x1] %vm1136_vm5, %v9593_v9 }
0x191f   : > { %9786 = vst.msk [vmem:[%s15529_s13 + $0x2b] sm:$0x1] %vm1136_vm5, %v9601_v23  ;;  %9788 = vst.msk [vmem:[%s15529_s13 + $0x4b] sm:$0x1] %vm1136_vm5, %v9586_v21  ;;  %v9653_v36 = vcombine.high %v9649_v53, %v9649_v53 }
0x1920   : > { %9795 = vst.msk [vmem:[%s15529_s13 + $0xbb] sm:$0x1] %vm1136_vm5, %v9652_v20  ;;  %9797 = vst.msk [vmem:[%s15529_s13 + $0xdb] sm:$0x1] %vm1136_vm5, %v9649_v53  ;;  %v9604_v37 = vcombine.high %v9600_v30, %v9600_v30 }
0x1921   : > { %9798 = vst.msk [vmem:[%s15529_s13 + $0xeb] sm:$0x1] %vm1136_vm5, %v9651_v19  ;;  %9787 = vst.msk [vmem:[%s15529_s13 + $0x3b] sm:$0x1] %vm1136_vm5, %v9603_v32 }
0x1922   : > { %9789 = vst.msk [vmem:[%s15529_s13 + $0x5b] sm:$0x1] %vm1136_vm5, %v9600_v30  ;;  %9790 = vst.msk [vmem:[%s15529_s13 + $0x6b] sm:$0x1] %vm1136_vm5, %v9602_v43 }
0x1923   : > { %9799 = vst.msk [vmem:[%s15529_s13 + $0xfb] sm:$0x1] %vm1136_vm5, %v9653_v36  ;;  %9791 = vst.msk [vmem:[%s15529_s13 + $0x7b] sm:$0x1] %vm1136_vm5, %v9604_v37 }
0x194c   : > { %v14602_v16 = vpop.f32.mrb[38].mxu1 }
0x194d   : > { %v9703_v14 = vcombine.high %v14602_v16, %v14602_v16  ;;  %v9710_v12 = vrot.slane %v14602_v16, %v15818_v59  ;;  %v9458_v42 = vpop.f32.mrb[39].mxu1 }
0x194e   : > { %v9654_v48 = vcombine.high %v9458_v42, %v9458_v42  ;;  %v9661_v31 = vrot.slane %v9458_v42, %v15818_v59 }
0x194f   : > { %v9717_v40 = vrot.slane %v9703_v14, %v15818_v59  ;;  %v9718_v45 = vcombine.high %v9710_v12, %v9710_v12  ;;  %v9726_v17 = vrot.slane %v9710_v12, %v15818_v59 }
0x1950   : > { %v9668_v33 = vrot.slane %v9654_v48, %v15818_v59  ;;  %v9669_v38 = vcombine.high %v9661_v31, %v9661_v31  ;;  %v9677_v28 = vrot.slane %v9661_v31, %v15818_v59  ;;  %v14637_v24 = vpop.f32.mrb[40].mxu1 }
0x1951   : > { %v9719_v39 = vcombine.high %v9717_v40, %v9717_v40  ;;  %v9733_v46 = vrot.slane %v9717_v40, %v15818_v59  ;;  %v9740_v55 = vrot.slane %v9718_v45, %v15818_v59  ;;  %v9748_v13 = vcombine.high %v9726_v17, %v9726_v17  ;;  %9808 = vst.msk [vmem:[%s15529_s13 + $0x18b] sm:$0x1] %vm1136_vm5, %v9726_v17  ;;  %v9533_v23 = vpop.f32.mrb[41].mxu1 }
0x1952   : > { %v9670_v57 = vcombine.high %v9668_v33, %v9668_v33  ;;  %v9684_v49 = vrot.slane %v9668_v33, %v15818_v59  ;;  %v9691_v47 = vrot.slane %v9669_v38, %v15818_v59  ;;  %v9699_v10 = vcombine.high %v9677_v28, %v9677_v28  ;;  %9800 = vst.msk [vmem:[%s15529_s13 + $0x10b] sm:$0x1] %vm1136_vm5, %v9677_v28 }
0x1953   : > { %v9747_v0 = vrot.slane %v9719_v39, %v15818_v59  ;;  %v9749_v35 = vcombine.high %v9733_v46, %v9733_v46  ;;  %v9750_v41 = vcombine.high %v9740_v55, %v9740_v55  ;;  %9809 = vst.msk [vmem:[%s15529_s13 + $0x19b] sm:$0x1] %vm1136_vm5, %v9740_v55  ;;  %9810 = vst.msk [vmem:[%s15529_s13 + $0x1ab] sm:$0x1] %vm1136_vm5, %v9748_v13 }
0x1954   : > { %9812 = vst.msk [vmem:[%s15529_s13 + $0x1cb] sm:$0x1] %vm1136_vm5, %v9733_v46  ;;  %v9698_v54 = vrot.slane %v9670_v57, %v15818_v59  ;;  %v9700_v52 = vcombine.high %v9684_v49, %v9684_v49  ;;  %v9701_v25 = vcombine.high %v9691_v47, %v9691_v47  ;;  %9801 = vst.msk [vmem:[%s15529_s13 + $0x11b] sm:$0x1] %vm1136_vm5, %v9691_v47  ;;  %v14640_v16 = vpop.f32.mrb[42].mxu1 }
0x1955   : > { %9802 = vst.msk [vmem:[%s15529_s13 + $0x12b] sm:$0x1] %vm1136_vm5, %v9699_v10  ;;  %9804 = vst.msk [vmem:[%s15529_s13 + $0x14b] sm:$0x1] %vm1136_vm5, %v9684_v49  ;;  %v9751_v15 = vcombine.high %v9747_v0, %v9747_v0  ;;  %v9869_v21 = vcombine.high %v14637_v24, %v14637_v24  ;;  %v9876_v9 = vrot.slane %v14637_v24, %v15818_v59  ;;  %v9543_v31 = vpop.f32.mrb[43].mxu1 }
0x1956   : > { %9811 = vst.msk [vmem:[%s15529_s13 + $0x1bb] sm:$0x1] %vm1136_vm5, %v9750_v41  ;;  %9813 = vst.msk [vmem:[%s15529_s13 + $0x1db] sm:$0x1] %vm1136_vm5, %v9747_v0  ;;  %v9702_v18 = vcombine.high %v9698_v54, %v9698_v54  ;;  %v9820_v53 = vcombine.high %v9533_v23, %v9533_v23  ;;  %v9827_v19 = vrot.slane %v9533_v23, %v15818_v59 }
0x1957   : > { %9814 = vst.msk [vmem:[%s15529_s13 + $0x1eb] sm:$0x1] %vm1136_vm5, %v9749_v35  ;;  %9803 = vst.msk [vmem:[%s15529_s13 + $0x13b] sm:$0x1] %vm1136_vm5, %v9701_v25  ;;  %v9883_v20 = vrot.slane %v9869_v21, %v15818_v59  ;;  %v9884_v30 = vcombine.high %v9876_v9, %v9876_v9  ;;  %v9892_v43 = vrot.slane %v9876_v9, %v15818_v59 }
0x1958   : > { %9805 = vst.msk [vmem:[%s15529_s13 + $0x15b] sm:$0x1] %vm1136_vm5, %v9698_v54  ;;  %9806 = vst.msk [vmem:[%s15529_s13 + $0x16b] sm:$0x1] %vm1136_vm5, %v9700_v52  ;;  %v9834_v32 = vrot.slane %v9820_v53, %v15818_v59  ;;  %v9835_v36 = vcombine.high %v9827_v19, %v9827_v19  ;;  %v9843_v37 = vrot.slane %v9827_v19, %v15818_v59 }
0x1959   : > { %9815 = vst.msk [vmem:[%s15529_s13 + $0x1fb] sm:$0x1] %vm1136_vm5, %v9751_v15  ;;  %9807 = vst.msk [vmem:[%s15529_s13 + $0x17b] sm:$0x1] %vm1136_vm5, %v9702_v18  ;;  %v9885_v14 = vcombine.high %v9883_v20, %v9883_v20  ;;  %v9899_v12 = vrot.slane %v9883_v20, %v15818_v59  ;;  %v9906_v42 = vrot.slane %v9884_v30, %v15818_v59 }
0x195a   : > { %v9914_v48 = vcombine.high %v9892_v43, %v9892_v43  ;;  %10056 = vst.msk [vmem:[%s15534_s16 + $0x8b] sm:$0x1] %vm1401_vm6, %v9892_v43  ;;  %v9836_v40 = vcombine.high %v9834_v32, %v9834_v32  ;;  %v9850_v45 = vrot.slane %v9834_v32, %v15818_v59  ;;  %v9857_v17 = vrot.slane %v9835_v36, %v15818_v59 }
0x195b   : > { %v9865_v33 = vcombine.high %v9843_v37, %v9843_v37  ;;  %10048 = vst.msk [vmem:[%s15534_s16 + $0xb] sm:$0x1] %vm1401_vm6, %v9843_v37  ;;  %v9913_v38 = vrot.slane %v9885_v14, %v15818_v59  ;;  %v9915_v28 = vcombine.high %v9899_v12, %v9899_v12  ;;  %v9916_v39 = vcombine.high %v9906_v42, %v9906_v42 }
0x195c   : > { %10057 = vst.msk [vmem:[%s15534_s16 + $0x9b] sm:$0x1] %vm1401_vm6, %v9906_v42  ;;  %10058 = vst.msk [vmem:[%s15534_s16 + $0xab] sm:$0x1] %vm1401_vm6, %v9914_v48  ;;  %v9967_v46 = vcombine.high %v14640_v16, %v14640_v16  ;;  %v9864_v55 = vrot.slane %v9836_v40, %v15818_v59  ;;  %v9866_v13 = vcombine.high %v9850_v45, %v9850_v45  ;;  %v10100_v48 = vand.u32 65535, %v18830_v22 }
0x195d   : > { %10060 = vst.msk [vmem:[%s15534_s16 + $0xcb] sm:$0x1] %vm1401_vm6, %v9899_v12  ;;  %v9867_v57 = vcombine.high %v9857_v17, %v9857_v17  ;;  %10049 = vst.msk [vmem:[%s15534_s16 + $0x1b] sm:$0x1] %vm1401_vm6, %v9857_v17  ;;  %v9974_v49 = vrot.slane %v14640_v16, %v15818_v59  ;;  %v9917_v47 = vcombine.high %v9913_v38, %v9913_v38 }
0x195e   : > { %10050 = vst.msk [vmem:[%s15534_s16 + $0x2b] sm:$0x1] %vm1401_vm6, %v9865_v33  ;;  %10052 = vst.msk [vmem:[%s15534_s16 + $0x4b] sm:$0x1] %vm1401_vm6, %v9850_v45  ;;  %v9981_v10 = vrot.slane %v9967_v46, %v15818_v59  ;;  %v9918_v0 = vcombine.high %v9543_v31, %v9543_v31  ;;  %v9925_v35 = vrot.slane %v9543_v31, %v15818_v59  ;;  %v10114_v31 = vand.u32 65535, %v18835_v60 }
0x195f   : > { %10059 = vst.msk [vmem:[%s15534_s16 + $0xbb] sm:$0x1] %vm1401_vm6, %v9916_v39  ;;  %10061 = vst.msk [vmem:[%s15534_s16 + $0xdb] sm:$0x1] %vm1401_vm6, %v9913_v38  ;;  %v9868_v41 = vcombine.high %v9864_v55, %v9864_v55  ;;  %v9982_v54 = vcombine.high %v9974_v49, %v9974_v49  ;;  %v9990_v52 = vrot.slane %v9974_v49, %v15818_v59  ;;  %v10102_v40 = vcvt.s32.f32 %v10100_v48 }
0x1960   : > { %10062 = vst.msk [vmem:[%s15534_s16 + $0xeb] sm:$0x1] %vm1401_vm6, %v9915_v28  ;;  %10051 = vst.msk [vmem:[%s15534_s16 + $0x3b] sm:$0x1] %vm1401_vm6, %v9867_v57  ;;  %v9983_v25 = vcombine.high %v9981_v10, %v9981_v10  ;;  %v9997_v15 = vrot.slane %v9981_v10, %v15818_v59  ;;  %v9932_v18 = vrot.slane %v9918_v0, %v15818_v59  ;;  %v10116_v17 = vcvt.s32.f32 %v10114_v31 }
0x1961   : > { %10053 = vst.msk [vmem:[%s15534_s16 + $0x5b] sm:$0x1] %vm1401_vm6, %v9864_v55  ;;  %10054 = vst.msk [vmem:[%s15534_s16 + $0x6b] sm:$0x1] %vm1401_vm6, %v9866_v13  ;;  %v9933_v24 = vcombine.high %v9925_v35, %v9925_v35  ;;  %v10004_v21 = vrot.slane %v9982_v54, %v15818_v59  ;;  %v10012_v9 = vcombine.high %v9990_v52, %v9990_v52  ;;  %v10142_v39 = vand.u32 65535, %v18846_v63 }
0x1962   : > { %10063 = vst.msk [vmem:[%s15534_s16 + $0xfb] sm:$0x1] %vm1401_vm6, %v9917_v47  ;;  %10055 = vst.msk [vmem:[%s15534_s16 + $0x7b] sm:$0x1] %vm1401_vm6, %v9868_v41  ;;  %v9941_v23 = vrot.slane %v9925_v35, %v15818_v59  ;;  %v10011_v53 = vrot.slane %v9983_v25, %v15818_v59  ;;  %v10013_v19 = vcombine.high %v9997_v15, %v9997_v15  ;;  %v10128_v60 = vand.u32 65535, %v18854_v44 }
0x1963   : > { %10072 = vst.msk [vmem:[%s15534_s16 + $0x18b] sm:$0x1] %vm1401_vm6, %v9990_v52  ;;  %10076 = vst.msk [vmem:[%s15534_s16 + $0x1cb] sm:$0x1] %vm1401_vm6, %v9997_v15  ;;  %v9934_v20 = vcombine.high %v9932_v18, %v9932_v18  ;;  %v9948_v30 = vrot.slane %v9932_v18, %v15818_v59  ;;  %v10014_v43 = vcombine.high %v10004_v21, %v10004_v21  ;;  %v10144_v46 = vcvt.s32.f32 %v10142_v39 }
0x1964   : > { %10073 = vst.msk [vmem:[%s15534_s16 + $0x19b] sm:$0x1] %vm1401_vm6, %v10004_v21  ;;  %10074 = vst.msk [vmem:[%s15534_s16 + $0x1ab] sm:$0x1] %vm1401_vm6, %v10012_v9  ;;  %v9955_v32 = vrot.slane %v9933_v24, %v15818_v59  ;;  %v9963_v36 = vcombine.high %v9941_v23, %v9941_v23  ;;  %v10015_v37 = vcombine.high %v10011_v53, %v10011_v53  ;;  %v10105_v45 = vpop.xlane.xlu1 %10104  ;;  %v10130_v13 = vcvt.s32.f32 %v10128_v60 }
0x1965   : > { %10064 = vst.msk [vmem:[%s15534_s16 + $0x10b] sm:$0x1] %vm1401_vm6, %v9941_v23  ;;  %10077 = vst.msk [vmem:[%s15534_s16 + $0x1db] sm:$0x1] %vm1401_vm6, %v10011_v53  ;;  %v9962_v16 = vrot.slane %v9934_v20, %v15818_v59  ;;  %v9964_v14 = vcombine.high %v9948_v30, %v9948_v30  ;;  %vm10106_vm14 = vcmp.eq.f32.partialorder %v18838_v58, %v10105_v45  ;;  %v10119_v33 = vpop.xlane.xlu0 %10118 }
0x1966   : > { %10078 = vst.msk [vmem:[%s15534_s16 + $0x1eb] sm:$0x1] %vm1401_vm6, %v10013_v19  ;;  %10068 = vst.msk [vmem:[%s15534_s16 + $0x14b] sm:$0x1] %vm1401_vm6, %v9948_v30  ;;  %v9965_v12 = vcombine.high %v9955_v32, %v9955_v32  ;;  %vm10120_vm15 = vcmp.eq.f32.partialorder %v18840_v56, %v10119_v33  ;;  %v10107_v38 = vsel %vm10106_vm14, %v10102_v40, inf  ;;  %v10111_v56 = vcvt.f32.s32 %v10105_v45 }
0x1967   : > { %10075 = vst.msk [vmem:[%s15534_s16 + $0x1bb] sm:$0x1] %vm1401_vm6, %v10014_v43  ;;  %10065 = vst.msk [vmem:[%s15534_s16 + $0x11b] sm:$0x1] %vm1401_vm6, %v9955_v32  ;;  %v9966_v42 = vcombine.high %v9962_v16, %v9962_v16  ;;  %10108 = vmin.xlane.f32.xlu1 %v10107_v38  ;;  %v10121_v28 = vsel %vm10120_vm15, %v10116_v17, inf  ;;  %v10125_v49 = vcvt.f32.s32 %v10119_v33 }
0x1968   : > { %10066 = vst.msk [vmem:[%s15534_s16 + $0x12b] sm:$0x1] %vm1401_vm6, %v9963_v36  ;;  %10079 = vst.msk [vmem:[%s15534_s16 + $0x1fb] sm:$0x1] %vm1401_vm6, %v10015_v37  ;;  %10122 = vmin.xlane.f32.xlu0 %v10121_v28  ;;  %v10112_v10 = vshll.u32 %v10111_v56, 16 }
0x1969   : > { %10069 = vst.msk [vmem:[%s15534_s16 + $0x15b] sm:$0x1] %vm1401_vm6, %v9962_v16  ;;  %10070 = vst.msk [vmem:[%s15534_s16 + $0x16b] sm:$0x1] %vm1401_vm6, %v9964_v14  ;;  %v10126_v35 = vshll.u32 %v10125_v49, 16 }
0x196a   : > { %10067 = vst.msk [vmem:[%s15534_s16 + $0x13b] sm:$0x1] %vm1401_vm6, %v9965_v12  ;;  %10071 = vst.msk [vmem:[%s15534_s16 + $0x17b] sm:$0x1] %vm1401_vm6, %v9966_v42 }
0x1990   : > { %v10147_v55 = vpop.xlane.xlu0 %10146 }
0x1991   : > { %vm10148_vm0 = vcmp.eq.f32.partialorder %v18849_v51, %v10147_v55  ;;  %v10153_v52 = vcvt.f32.s32 %v10147_v55 }
0x1992   : > { %v10149_v22 = vsel %vm10148_vm0, %v10144_v46, inf }
0x1993   : > { %10150 = vmin.xlane.f32.xlu0 %v10149_v22  ;;  %v10154_v25 = vshll.u32 %v10153_v52, 16 }
0x199a   : > { %v10133_v57 = vpop.xlane.xlu1 %10132 }
0x199b   : > { %vm10134_vm1 = vcmp.eq.f32.partialorder %v18857_v50, %v10133_v57 }
0x199c   : > { %v10135_v58 = vsel %vm10134_vm1, %v10130_v13, inf }
0x199d   : > { %10136 = vmin.xlane.f32.xlu1 %v10135_v58 }
0x19f4   : > { %v10109_v47 = vpop.xlane.xlu1 %10108 }
0x19f5   : > { %v10110_v0 = vcvt.f32.s32 %v10109_v47  ;;  %v10123_v63 = vpop.xlane.xlu0 %10122 }
0x19f6   : > { %v10124_v41 = vcvt.f32.s32 %v10123_v63 }
0x19f7   : > { %v10113_v54 = vadd.s32 %v10112_v10, %v10110_v0 }
0x19f8   : > { %v10127_v51 = vadd.s32 %v10126_v35, %v10124_v41 }
0x19f9   : > { %vm10156_vm2 = vcmp.eq.s32.totalorder %v15496_v1, %v10113_v54 }
0x19fa   : > { %vm10157_vm3 = vcmp.eq.s32.totalorder %v15496_v1, %v10127_v51  ;;  %14643 = vmatprep.mubr.msk.f32.mxu0 %vm10156_vm2, %v15455_v61  ;;  %v19052_v44 = vsel %vm10156_vm2, 3e+38, %v18772_v26 }
0x19fb   : > { %10870 = vmin.xlane.f32.xlu1 %v19052_v44  ;;  %14644 = vmatmul.mubr.msk.f32.vlgmr.msra.gmra.mrb[60].mxu0 %vm10157_vm3, %v15455_v61  ;;  %v19061_v50 = vsel %vm10157_vm3, 3e+38, %v18781_v11  ;;  %v10139_v11 = vcvt.f32.s32 %v10133_v57 }
0x19fc   : > { %15244 = vmatpush3.bf16.msra.mxu0 %v15649_v27  ;;  %10872 = vmin.xlane.f32.xlu0 %v19061_v50 }
0x19fd   : > { %15246 = vmatprep.subr.bf16.mxu0 %v15657_v29  ;;  %v10140_v9 = vshll.u32 %v10139_v11, 16 }
0x1a00   : > { %15248 = vmatpush3.bf16.msra.mxu0 %v15657_v29 }
0x1a01   : > { %15250 = vmatprep.subr.bf16.mxu0 %v15663_v3 }
0x1a04   : > { %15252 = vmatpush3.bf16.msra.mxu0 %v15663_v3 }
0x1a05   : > { %15254 = vmatprep.subr.bf16.mxu0 %v15669_v4 }
0x1a08   : > { %15256 = vmatpush3.bf16.msra.mxu0 %v15669_v4 }
0x1a09   : > { %15258 = vmatprep.subr.bf16.mxu0 %v15675_v5 }
0x1a0c   : > { %15260 = vmatpush3.bf16.msra.mxu0 %v15675_v5 }
0x1a0d   : > { %15262 = vmatprep.subr.bf16.mxu0 %v15681_v6 }
0x1a10   : > { %15264 = vmatpush3.bf16.msra.mxu0 %v15681_v6 }
0x1a11   : > { %15266 = vmatprep.subr.bf16.mxu0 %v15686_v7 }
0x1a14   : > { %15268 = vmatpush3.bf16.msra.mxu0 %v15686_v7 }
0x1a15   : > { %15270 = vmatprep.subr.bf16.mxu0 %v15692_v8 }
0x1a18   : > { %15272 = vmatpush3.bf16.msra.mxu0 %v15692_v8 }
0x1a19   : > { %14733 = vmatprep.subr.mxu0 %v15504_v2 }
0x1a20   : > { %v10151_v26 = vpop.xlane.xlu0 %10150 }
0x1a21   : > { %v10152_v15 = vcvt.f32.s32 %v10151_v26 }
0x1a23   : > { %v10155_v18 = vadd.s32 %v10154_v25, %v10152_v15 }
0x1a25   : > { %vm10159_vm4 = vcmp.eq.s32.totalorder %v15496_v1, %v10155_v18 }
0x1a26   : > { %v19073_v24 = vsel %vm10159_vm4, 3e+38, %v18793_v62 }
0x1a27   : > { %10876 = vmin.xlane.f32.xlu0 %v19073_v24 }
0x1a2a   : > { %v10137_v21 = vpop.xlane.xlu1 %10136 }
0x1a2b   : > { %v10138_v23 = vcvt.f32.s32 %v10137_v21 }
0x1a2d   : > { %v10141_v53 = vadd.s32 %v10140_v9, %v10138_v23 }
0x1a2f   : > { %vm10158_vm7 = vcmp.eq.s32.totalorder %v15496_v1, %v10141_v53 }
0x1a30   : > { %14646 = vmatprep.mubr.msk.f32.mxu0 %vm10158_vm7, %v15455_v61  ;;  %v19084_v62 = vsel %vm10158_vm7, 3e+38, %v18804_v34 }
0x1a31   : > { %10874 = vmin.xlane.f32.xlu1 %v19084_v62  ;;  %14647 = vmatmul.mubr.msk.f32.gmra.mrb[62].mxu0 %vm10159_vm4, %v15455_v61 }
0x1a32   : > { %14681 = vmatprep.mubr.msk.f32.mxu0 %vm10156_vm2, %v15455_v61 }
0x1a35   : > { %14682 = vmatmul.mubr.msk.f32.vlgmr.msra.gmra.mrb[64].mxu0 %vm10157_vm3, %v15455_v61 }
0x1a36   : > { %14684 = vmatprep.mubr.msk.f32.mxu0 %vm10158_vm7, %v15455_v61  ;;  %14734 = vmatpush3.xpose.msra.mxu0 %v15504_v2 }
0x1a37   : > { %15306 = vmatprep.subr.bf16.mxu0 %v15649_v27 }
0x1a39   : > { %14685 = vmatmul.mubr.msk.f32.gmra.mrb[66].mxu0 %vm10159_vm4, %v15455_v61 }
0x1a88   : > { %v10871_v34 = vpop.xlane.xlu1 %10870 }
0x1a89   : > { %vm10878_vm8 = vcmp.le.f32.partialorder %v19052_v44, %v10871_v34  ;;  %v10873_v19 = vpop.xlane.xlu0 %10872 }
0x1a8a   : > { %v19110_v20 = vsel %vm10878_vm8, %v15496_v1, 128  ;;  %vm10879_vm9 = vcmp.le.f32.partialorder %v19061_v50, %v10873_v19 }
0x1a8b   : > { %v10887_v30 = vshra.s32 %v19110_v20, 16  ;;  %v19115_v43 = vsel %vm10879_vm9, %v15496_v1, 128 }
0x1a8c   : > { %v10901_v32 = vshra.s32 %v19115_v43, 16 }
0x1a8d   : > { %v19118_v36 = vcvt.s32.f32 %v10887_v30 }
0x1a8e   : > { %v19120_v37 = vcvt.s32.f32 %v10901_v32 }
0x1a8f   : > { %10890 = vmin.xlane.f32.xlu1 %v19118_v36 }
0x1a90   : > { %10904 = vmin.xlane.f32.xlu0 %v19120_v37 }
0x1ab4   : > { %v10877_v16 = vpop.xlane.xlu0 %10876 }
0x1ab5   : > { %vm10881_vm10 = vcmp.le.f32.partialorder %v19073_v24, %v10877_v16 }
0x1ab6   : > { %v19126_v14 = vsel %vm10881_vm10, %v15496_v1, 128 }
0x1ab7   : > { %v10929_v12 = vshra.s32 %v19126_v14, 16 }
0x1ab9   : > { %v19129_v42 = vcvt.s32.f32 %v10929_v12 }
0x1abb   : > { %10932 = vmin.xlane.f32.xlu0 %v19129_v42 }
0x1abe   : > { %v10875_v48 = vpop.xlane.xlu1 %10874 }
0x1abf   : > { %vm10880_vm11 = vcmp.le.f32.partialorder %v19084_v62, %v10875_v48 }
0x1ac0   : > { %v19134_v31 = vsel %vm10880_vm11, %v15496_v1, 128 }
0x1ac1   : > { %v10915_v40 = vshra.s32 %v19134_v31, 16 }
0x1ac3   : > { %v19137_v45 = vcvt.s32.f32 %v10915_v40 }
0x1ac5   : > { %10918 = vmin.xlane.f32.xlu1 %v19137_v45 }
0x1ace   : > { %v14645_v17 = vpop.f32.mrb[60].mxu0 }
0x1acf   : > { %v10391_v33 = vcombine.high %v14645_v17, %v14645_v17  ;;  %v10398_v38 = vrot.slane %v14645_v17, %v15818_v59  ;;  %v10234_v28 = vpop.f32.mrb[61].mxu0 }
0x1ad0   : > { %v10342_v39 = vcombine.high %v10234_v28, %v10234_v28  ;;  %v10349_v46 = vrot.slane %v10234_v28, %v15818_v59 }
0x1ad1   : > { %v10405_v55 = vrot.slane %v10391_v33, %v15818_v59  ;;  %v10406_v22 = vcombine.high %v10398_v38, %v10398_v38  ;;  %v10414_v60 = vrot.slane %v10398_v38, %v15818_v59 }
0x1ad2   : > { %v10356_v13 = vrot.slane %v10342_v39, %v15818_v59  ;;  %v10357_v57 = vcombine.high %v10349_v46, %v10349_v46  ;;  %v10365_v58 = vrot.slane %v10349_v46, %v15818_v59 }
0x1ad3   : > { %v10407_v56 = vcombine.high %v10405_v55, %v10405_v55  ;;  %v10421_v49 = vrot.slane %v10405_v55, %v15818_v59  ;;  %v10428_v47 = vrot.slane %v10406_v22, %v15818_v59  ;;  %v10436_v10 = vcombine.high %v10414_v60, %v10414_v60  ;;  %10578 = vst.msk [vmem:[%s15529_s13 + $0x8c] sm:$0x1] %vm1136_vm5, %v10414_v60 }
0x1ad4   : > { %v10358_v0 = vcombine.high %v10356_v13, %v10356_v13  ;;  %v10372_v63 = vrot.slane %v10356_v13, %v15818_v59  ;;  %v10379_v35 = vrot.slane %v10357_v57, %v15818_v59  ;;  %v10387_v41 = vcombine.high %v10365_v58, %v10365_v58  ;;  %10570 = vst.msk [vmem:[%s15529_s13 + $0xc] sm:$0x1] %vm1136_vm5, %v10365_v58 }
0x1ad5   : > { %v10435_v54 = vrot.slane %v10407_v56, %v15818_v59  ;;  %v10437_v51 = vcombine.high %v10421_v49, %v10421_v49  ;;  %v10438_v52 = vcombine.high %v10428_v47, %v10428_v47  ;;  %10579 = vst.msk [vmem:[%s15529_s13 + $0x9c] sm:$0x1] %vm1136_vm5, %v10428_v47  ;;  %10580 = vst.msk [vmem:[%s15529_s13 + $0xac] sm:$0x1] %vm1136_vm5, %v10436_v10 }
0x1ad6   : > { %10582 = vst.msk [vmem:[%s15529_s13 + $0xcc] sm:$0x1] %vm1136_vm5, %v10421_v49  ;;  %v10386_v26 = vrot.slane %v10358_v0, %v15818_v59  ;;  %v10388_v25 = vcombine.high %v10372_v63, %v10372_v63  ;;  %v10389_v15 = vcombine.high %v10379_v35, %v10379_v35  ;;  %10571 = vst.msk [vmem:[%s15529_s13 + $0x1c] sm:$0x1] %vm1136_vm5, %v10379_v35 }
0x1ad7   : > { %10572 = vst.msk [vmem:[%s15529_s13 + $0x2c] sm:$0x1] %vm1136_vm5, %v10387_v41  ;;  %10574 = vst.msk [vmem:[%s15529_s13 + $0x4c] sm:$0x1] %vm1136_vm5, %v10372_v63  ;;  %v10439_v18 = vcombine.high %v10435_v54, %v10435_v54 }
0x1ad8   : > { %10581 = vst.msk [vmem:[%s15529_s13 + $0xbc] sm:$0x1] %vm1136_vm5, %v10438_v52  ;;  %10583 = vst.msk [vmem:[%s15529_s13 + $0xdc] sm:$0x1] %vm1136_vm5, %v10435_v54  ;;  %v10390_v11 = vcombine.high %v10386_v26, %v10386_v26 }
0x1ad9   : > { %10584 = vst.msk [vmem:[%s15529_s13 + $0xec] sm:$0x1] %vm1136_vm5, %v10437_v51  ;;  %10573 = vst.msk [vmem:[%s15529_s13 + $0x3c] sm:$0x1] %vm1136_vm5, %v10389_v15 }
0x1ada   : > { %10575 = vst.msk [vmem:[%s15529_s13 + $0x5c] sm:$0x1] %vm1136_vm5, %v10386_v26  ;;  %10576 = vst.msk [vmem:[%s15529_s13 + $0x6c] sm:$0x1] %vm1136_vm5, %v10388_v25 }
0x1adb   : > { %10585 = vst.msk [vmem:[%s15529_s13 + $0xfc] sm:$0x1] %vm1136_vm5, %v10439_v18  ;;  %10577 = vst.msk [vmem:[%s15529_s13 + $0x7c] sm:$0x1] %vm1136_vm5, %v10390_v11 }
0x1b04   : > { %v14648_v21 = vpop.f32.mrb[62].mxu0 }
0x1b05   : > { %v10489_v9 = vcombine.high %v14648_v21, %v14648_v21  ;;  %v10496_v23 = vrot.slane %v14648_v21, %v15818_v59  ;;  %v10244_v53 = vpop.f32.mrb[63].mxu0 }
0x1b06   : > { %v10440_v34 = vcombine.high %v10244_v53, %v10244_v53  ;;  %v10447_v19 = vrot.slane %v10244_v53, %v15818_v59 }
0x1b07   : > { %v10503_v30 = vrot.slane %v10489_v9, %v15818_v59  ;;  %v10504_v32 = vcombine.high %v10496_v23, %v10496_v23  ;;  %v10512_v16 = vrot.slane %v10496_v23, %v15818_v59 }
0x1b08   : > { %v10454_v12 = vrot.slane %v10440_v34, %v15818_v59  ;;  %v10455_v48 = vcombine.high %v10447_v19, %v10447_v19  ;;  %v10463_v40 = vrot.slane %v10447_v19, %v15818_v59  ;;  %v14683_v0 = vpop.f32.mrb[64].mxu0 }
0x1b09   : > { %v10505_v17 = vcombine.high %v10503_v30, %v10503_v30  ;;  %v10519_v33 = vrot.slane %v10503_v30, %v15818_v59  ;;  %v10526_v38 = vrot.slane %v10504_v32, %v15818_v59  ;;  %v10534_v28 = vcombine.high %v10512_v16, %v10512_v16  ;;  %10594 = vst.msk [vmem:[%s15529_s13 + $0x18c] sm:$0x1] %vm1136_vm5, %v10512_v16  ;;  %v10319_v41 = vpop.f32.mrb[65].mxu0 }
0x1b0a   : > { %v10456_v39 = vcombine.high %v10454_v12, %v10454_v12  ;;  %v10470_v46 = vrot.slane %v10454_v12, %v15818_v59  ;;  %v10477_v55 = vrot.slane %v10455_v48, %v15818_v59  ;;  %v10485_v22 = vcombine.high %v10463_v40, %v10463_v40  ;;  %10586 = vst.msk [vmem:[%s15529_s13 + $0x10c] sm:$0x1] %vm1136_vm5, %v10463_v40 }
0x1b0b   : > { %v10533_v60 = vrot.slane %v10505_v17, %v15818_v59  ;;  %v10535_v13 = vcombine.high %v10519_v33, %v10519_v33  ;;  %v10536_v57 = vcombine.high %v10526_v38, %v10526_v38  ;;  %10595 = vst.msk [vmem:[%s15529_s13 + $0x19c] sm:$0x1] %vm1136_vm5, %v10526_v38  ;;  %10596 = vst.msk [vmem:[%s15529_s13 + $0x1ac] sm:$0x1] %vm1136_vm5, %v10534_v28 }
0x1b0c   : > { %10598 = vst.msk [vmem:[%s15529_s13 + $0x1cc] sm:$0x1] %vm1136_vm5, %v10519_v33  ;;  %v10484_v58 = vrot.slane %v10456_v39, %v15818_v59  ;;  %v10486_v56 = vcombine.high %v10470_v46, %v10470_v46  ;;  %v10487_v49 = vcombine.high %v10477_v55, %v10477_v55  ;;  %10587 = vst.msk [vmem:[%s15529_s13 + $0x11c] sm:$0x1] %vm1136_vm5, %v10477_v55  ;;  %v14686_v21 = vpop.f32.mrb[66].mxu0 }
0x1b0d   : > { %10588 = vst.msk [vmem:[%s15529_s13 + $0x12c] sm:$0x1] %vm1136_vm5, %v10485_v22  ;;  %10590 = vst.msk [vmem:[%s15529_s13 + $0x14c] sm:$0x1] %vm1136_vm5, %v10470_v46  ;;  %v10537_v47 = vcombine.high %v10533_v60, %v10533_v60  ;;  %v10655_v63 = vcombine.high %v14683_v0, %v14683_v0  ;;  %v10662_v35 = vrot.slane %v14683_v0, %v15818_v59  ;;  %v10329_v19 = vpop.f32.mrb[67].mxu0 }
0x1b0e   : > { %10597 = vst.msk [vmem:[%s15529_s13 + $0x1bc] sm:$0x1] %vm1136_vm5, %v10536_v57  ;;  %10599 = vst.msk [vmem:[%s15529_s13 + $0x1dc] sm:$0x1] %vm1136_vm5, %v10533_v60  ;;  %v10488_v10 = vcombine.high %v10484_v58, %v10484_v58  ;;  %v10606_v54 = vcombine.high %v10319_v41, %v10319_v41  ;;  %v10613_v51 = vrot.slane %v10319_v41, %v15818_v59 }
0x1b0f   : > { %10600 = vst.msk [vmem:[%s15529_s13 + $0x1ec] sm:$0x1] %vm1136_vm5, %v10535_v13  ;;  %10589 = vst.msk [vmem:[%s15529_s13 + $0x13c] sm:$0x1] %vm1136_vm5, %v10487_v49  ;;  %v10669_v52 = vrot.slane %v10655_v63, %v15818_v59  ;;  %v10670_v26 = vcombine.high %v10662_v35, %v10662_v35  ;;  %v10678_v25 = vrot.slane %v10662_v35, %v15818_v59 }
0x1b10   : > { %10591 = vst.msk [vmem:[%s15529_s13 + $0x15c] sm:$0x1] %vm1136_vm5, %v10484_v58  ;;  %10592 = vst.msk [vmem:[%s15529_s13 + $0x16c] sm:$0x1] %vm1136_vm5, %v10486_v56  ;;  %v10620_v15 = vrot.slane %v10606_v54, %v15818_v59  ;;  %v10621_v18 = vcombine.high %v10613_v51, %v10613_v51  ;;  %v10629_v11 = vrot.slane %v10613_v51, %v15818_v59 }
0x1b11   : > { %10601 = vst.msk [vmem:[%s15529_s13 + $0x1fc] sm:$0x1] %vm1136_vm5, %v10537_v47  ;;  %10593 = vst.msk [vmem:[%s15529_s13 + $0x17c] sm:$0x1] %vm1136_vm5, %v10488_v10  ;;  %v10671_v9 = vcombine.high %v10669_v52, %v10669_v52  ;;  %v10685_v23 = vrot.slane %v10669_v52, %v15818_v59  ;;  %v10692_v53 = vrot.slane %v10670_v26, %v15818_v59 }
0x1b12   : > { %v10700_v34 = vcombine.high %v10678_v25, %v10678_v25  ;;  %10842 = vst.msk [vmem:[%s15534_s16 + $0x8c] sm:$0x1] %vm1401_vm6, %v10678_v25  ;;  %v10622_v30 = vcombine.high %v10620_v15, %v10620_v15  ;;  %v10636_v32 = vrot.slane %v10620_v15, %v15818_v59  ;;  %v10643_v16 = vrot.slane %v10621_v18, %v15818_v59 }
0x1b13   : > { %v10651_v12 = vcombine.high %v10629_v11, %v10629_v11  ;;  %10834 = vst.msk [vmem:[%s15534_s16 + $0xc] sm:$0x1] %vm1401_vm6, %v10629_v11  ;;  %v10699_v48 = vrot.slane %v10671_v9, %v15818_v59  ;;  %v10701_v40 = vcombine.high %v10685_v23, %v10685_v23  ;;  %v10702_v17 = vcombine.high %v10692_v53, %v10692_v53 }
0x1b14   : > { %10843 = vst.msk [vmem:[%s15534_s16 + $0x9c] sm:$0x1] %vm1401_vm6, %v10692_v53  ;;  %10844 = vst.msk [vmem:[%s15534_s16 + $0xac] sm:$0x1] %vm1401_vm6, %v10700_v34  ;;  %v10753_v33 = vcombine.high %v14686_v21, %v14686_v21  ;;  %v10650_v38 = vrot.slane %v10622_v30, %v15818_v59  ;;  %v10652_v28 = vcombine.high %v10636_v32, %v10636_v32  ;;  %v10886_v34 = vand.u32 65535, %v19110_v20 }
0x1b15   : > { %10846 = vst.msk [vmem:[%s15534_s16 + $0xcc] sm:$0x1] %vm1401_vm6, %v10685_v23  ;;  %v10653_v39 = vcombine.high %v10643_v16, %v10643_v16  ;;  %10835 = vst.msk [vmem:[%s15534_s16 + $0x1c] sm:$0x1] %vm1401_vm6, %v10643_v16  ;;  %v10760_v46 = vrot.slane %v14686_v21, %v15818_v59  ;;  %v10703_v55 = vcombine.high %v10699_v48, %v10699_v48 }
0x1b16   : > { %10836 = vst.msk [vmem:[%s15534_s16 + $0x2c] sm:$0x1] %vm1401_vm6, %v10651_v12  ;;  %10838 = vst.msk [vmem:[%s15534_s16 + $0x4c] sm:$0x1] %vm1401_vm6, %v10636_v32  ;;  %v10767_v22 = vrot.slane %v10753_v33, %v15818_v59  ;;  %v10704_v60 = vcombine.high %v10329_v19, %v10329_v19  ;;  %v10711_v13 = vrot.slane %v10329_v19, %v15818_v59  ;;  %v10900_v19 = vand.u32 65535, %v19115_v43 }
0x1b17   : > { %10845 = vst.msk [vmem:[%s15534_s16 + $0xbc] sm:$0x1] %vm1401_vm6, %v10702_v17  ;;  %10847 = vst.msk [vmem:[%s15534_s16 + $0xdc] sm:$0x1] %vm1401_vm6, %v10699_v48  ;;  %v10654_v57 = vcombine.high %v10650_v38, %v10650_v38  ;;  %v10768_v58 = vcombine.high %v10760_v46, %v10760_v46  ;;  %v10776_v56 = vrot.slane %v10760_v46, %v15818_v59  ;;  %v10888_v30 = vcvt.s32.f32 %v10886_v34 }
0x1b18   : > { %10848 = vst.msk [vmem:[%s15534_s16 + $0xec] sm:$0x1] %vm1401_vm6, %v10701_v40  ;;  %10837 = vst.msk [vmem:[%s15534_s16 + $0x3c] sm:$0x1] %vm1401_vm6, %v10653_v39  ;;  %v10769_v49 = vcombine.high %v10767_v22, %v10767_v22  ;;  %v10783_v47 = vrot.slane %v10767_v22, %v15818_v59  ;;  %v10718_v10 = vrot.slane %v10704_v60, %v15818_v59  ;;  %v10902_v16 = vcvt.s32.f32 %v10900_v19 }
0x1b19   : > { %10839 = vst.msk [vmem:[%s15534_s16 + $0x5c] sm:$0x1] %vm1401_vm6, %v10650_v38  ;;  %10840 = vst.msk [vmem:[%s15534_s16 + $0x6c] sm:$0x1] %vm1401_vm6, %v10652_v28  ;;  %v10719_v0 = vcombine.high %v10711_v13, %v10711_v13  ;;  %v10790_v63 = vrot.slane %v10768_v58, %v15818_v59  ;;  %v10798_v35 = vcombine.high %v10776_v56, %v10776_v56  ;;  %v10928_v17 = vand.u32 65535, %v19126_v14 }
0x1b1a   : > { %10849 = vst.msk [vmem:[%s15534_s16 + $0xfc] sm:$0x1] %vm1401_vm6, %v10703_v55  ;;  %10841 = vst.msk [vmem:[%s15534_s16 + $0x7c] sm:$0x1] %vm1401_vm6, %v10654_v57  ;;  %v10727_v41 = vrot.slane %v10711_v13, %v15818_v59  ;;  %v10797_v54 = vrot.slane %v10769_v49, %v15818_v59  ;;  %v10799_v51 = vcombine.high %v10783_v47, %v10783_v47  ;;  %v10914_v43 = vand.u32 65535, %v19134_v31 }
0x1b1b   : > { %10858 = vst.msk [vmem:[%s15534_s16 + $0x18c] sm:$0x1] %vm1401_vm6, %v10776_v56  ;;  %10862 = vst.msk [vmem:[%s15534_s16 + $0x1cc] sm:$0x1] %vm1401_vm6, %v10783_v47  ;;  %v10720_v52 = vcombine.high %v10718_v10, %v10718_v10  ;;  %v10734_v26 = vrot.slane %v10718_v10, %v15818_v59  ;;  %v10800_v25 = vcombine.high %v10790_v63, %v10790_v63  ;;  %v10930_v33 = vcvt.s32.f32 %v10928_v17 }
0x1b1c   : > { %10859 = vst.msk [vmem:[%s15534_s16 + $0x19c] sm:$0x1] %vm1401_vm6, %v10790_v63  ;;  %10860 = vst.msk [vmem:[%s15534_s16 + $0x1ac] sm:$0x1] %vm1401_vm6, %v10798_v35  ;;  %v10741_v15 = vrot.slane %v10719_v0, %v15818_v59  ;;  %v10749_v18 = vcombine.high %v10727_v41, %v10727_v41  ;;  %v10801_v11 = vcombine.high %v10797_v54, %v10797_v54  ;;  %v10891_v32 = vpop.xlane.xlu1 %10890  ;;  %v10916_v28 = vcvt.s32.f32 %v10914_v43 }
0x1b1d   : > { %10850 = vst.msk [vmem:[%s15534_s16 + $0x10c] sm:$0x1] %vm1401_vm6, %v10727_v41  ;;  %10863 = vst.msk [vmem:[%s15534_s16 + $0x1dc] sm:$0x1] %vm1401_vm6, %v10797_v54  ;;  %v10748_v21 = vrot.slane %v10720_v52, %v15818_v59  ;;  %v10750_v9 = vcombine.high %v10734_v26, %v10734_v26  ;;  %vm10892_vm12 = vcmp.eq.f32.partialorder %v19118_v36, %v10891_v32  ;;  %v10905_v12 = vpop.xlane.xlu0 %10904 }
0x1b1e   : > { %10864 = vst.msk [vmem:[%s15534_s16 + $0x1ec] sm:$0x1] %vm1401_vm6, %v10799_v51  ;;  %10854 = vst.msk [vmem:[%s15534_s16 + $0x14c] sm:$0x1] %vm1401_vm6, %v10734_v26  ;;  %v10751_v23 = vcombine.high %v10741_v15, %v10741_v15  ;;  %vm10906_vm13 = vcmp.eq.f32.partialorder %v19120_v37, %v10905_v12  ;;  %v10893_v48 = vsel %vm10892_vm12, %v10888_v30, inf  ;;  %v10897_v37 = vcvt.f32.s32 %v10891_v32 }
0x1b1f   : > { %10861 = vst.msk [vmem:[%s15534_s16 + $0x1bc] sm:$0x1] %vm1401_vm6, %v10800_v25  ;;  %10851 = vst.msk [vmem:[%s15534_s16 + $0x11c] sm:$0x1] %vm1401_vm6, %v10741_v15  ;;  %v10752_v53 = vcombine.high %v10748_v21, %v10748_v21  ;;  %10894 = vmin.xlane.f32.xlu1 %v10893_v48  ;;  %v10907_v40 = vsel %vm10906_vm13, %v10902_v16, inf  ;;  %v10911_v46 = vcvt.f32.s32 %v10905_v12 }
0x1b20   : > { %10852 = vst.msk [vmem:[%s15534_s16 + $0x12c] sm:$0x1] %vm1401_vm6, %v10749_v18  ;;  %10865 = vst.msk [vmem:[%s15534_s16 + $0x1fc] sm:$0x1] %vm1401_vm6, %v10801_v11  ;;  %10908 = vmin.xlane.f32.xlu0 %v10907_v40  ;;  %v10898_v22 = vshll.u32 %v10897_v37, 16 }
0x1b21   : > { %10855 = vst.msk [vmem:[%s15534_s16 + $0x15c] sm:$0x1] %vm1401_vm6, %v10748_v21  ;;  %10856 = vst.msk [vmem:[%s15534_s16 + $0x16c] sm:$0x1] %vm1401_vm6, %v10750_v9  ;;  %v10912_v13 = vshll.u32 %v10911_v46, 16 }
0x1b22   : > { %10853 = vst.msk [vmem:[%s15534_s16 + $0x13c] sm:$0x1] %vm1401_vm6, %v10751_v23  ;;  %10857 = vst.msk [vmem:[%s15534_s16 + $0x17c] sm:$0x1] %vm1401_vm6, %v10752_v53 }
0x1b48   : > { %v10933_v38 = vpop.xlane.xlu0 %10932 }
0x1b49   : > { %vm10934_vm14 = vcmp.eq.f32.partialorder %v19129_v42, %v10933_v38  ;;  %v10939_v56 = vcvt.f32.s32 %v10933_v38 }
0x1b4a   : > { %v10935_v20 = vsel %vm10934_vm14, %v10930_v33, inf }
0x1b4b   : > { %10936 = vmin.xlane.f32.xlu0 %v10935_v20  ;;  %v10940_v49 = vshll.u32 %v10939_v56, 16 }
0x1b52   : > { %v10919_v39 = vpop.xlane.xlu1 %10918 }
0x1b53   : > { %vm10920_vm15 = vcmp.eq.f32.partialorder %v19137_v45, %v10919_v39 }
0x1b54   : > { %v10921_v36 = vsel %vm10920_vm15, %v10916_v28, inf }
0x1b55   : > { %10922 = vmin.xlane.f32.xlu1 %v10921_v36 }
0x1bac   : > { %v10895_v55 = vpop.xlane.xlu1 %10894 }
0x1bad   : > { %v10896_v60 = vcvt.f32.s32 %v10895_v55  ;;  %v10909_v14 = vpop.xlane.xlu0 %10908 }
0x1bae   : > { %v10910_v57 = vcvt.f32.s32 %v10909_v14 }
0x1baf   : > { %v10899_v58 = vadd.s32 %v10898_v22, %v10896_v60 }
0x1bb0   : > { %v10913_v42 = vadd.s32 %v10912_v13, %v10910_v57 }
0x1bb1   : > { %vm10942_vm0 = vcmp.eq.s32.totalorder %v15496_v1, %v10899_v58 }
0x1bb2   : > { %vm10943_vm1 = vcmp.eq.s32.totalorder %v15496_v1, %v10913_v42  ;;  %14689 = vmatprep.mubr.msk.f32.mxu1 %vm10942_vm0, %v15455_v61  ;;  %v19332_v31 = vsel %vm10942_vm0, 3e+38, %v19052_v44 }
0x1bb3   : > { %11656 = vmin.xlane.f32.xlu1 %v19332_v31  ;;  %14690 = vmatmul.mubr.msk.f32.vlgmr.msra.gmra.mrb[44].mxu1 %vm10943_vm1, %v15455_v61  ;;  %v19341_v45 = vsel %vm10943_vm1, 3e+38, %v19061_v50  ;;  %v10925_v50 = vcvt.f32.s32 %v10919_v39 }
0x1bb4   : > { %15276 = vmatpush3.bf16.msra.mxu1 %v15649_v27  ;;  %11658 = vmin.xlane.f32.xlu0 %v19341_v45 }
0x1bb5   : > { %15278 = vmatprep.subr.bf16.mxu1 %v15657_v29  ;;  %v10926_v35 = vshll.u32 %v10925_v50, 16 }
0x1bb8   : > { %15280 = vmatpush3.bf16.msra.mxu1 %v15657_v29 }
0x1bb9   : > { %15282 = vmatprep.subr.bf16.mxu1 %v15663_v3 }
0x1bbc   : > { %15284 = vmatpush3.bf16.msra.mxu1 %v15663_v3 }
0x1bbd   : > { %15286 = vmatprep.subr.bf16.mxu1 %v15669_v4 }
0x1bc0   : > { %15288 = vmatpush3.bf16.msra.mxu1 %v15669_v4 }
0x1bc1   : > { %15290 = vmatprep.subr.bf16.mxu1 %v15675_v5 }
0x1bc4   : > { %15292 = vmatpush3.bf16.msra.mxu1 %v15675_v5 }
0x1bc5   : > { %15294 = vmatprep.subr.bf16.mxu1 %v15681_v6 }
0x1bc8   : > { %15296 = vmatpush3.bf16.msra.mxu1 %v15681_v6 }
0x1bc9   : > { %15298 = vmatprep.subr.bf16.mxu1 %v15686_v7 }
0x1bcc   : > { %15300 = vmatpush3.bf16.msra.mxu1 %v15686_v7 }
0x1bcd   : > { %15302 = vmatprep.subr.bf16.mxu1 %v15692_v8 }
0x1bd0   : > { %15304 = vmatpush3.bf16.msra.mxu1 %v15692_v8 }
0x1bd1   : > { %14779 = vmatprep.subr.mxu1 %v15504_v2 }
0x1bd8   : > { %v10937_v44 = vpop.xlane.xlu0 %10936 }
0x1bd9   : > { %v10938_v47 = vcvt.f32.s32 %v10937_v44 }
0x1bdb   : > { %v10941_v10 = vadd.s32 %v10940_v49, %v10938_v47 }
0x1bdd   : > { %vm10945_vm2 = vcmp.eq.s32.totalorder %v15496_v1, %v10941_v10 }
0x1bde   : > { %v19353_v0 = vsel %vm10945_vm2, 3e+38, %v19073_v24 }
0x1bdf   : > { %11662 = vmin.xlane.f32.xlu0 %v19353_v0 }
0x1be2   : > { %v10923_v63 = vpop.xlane.xlu1 %10922 }
0x1be3   : > { %v10924_v41 = vcvt.f32.s32 %v10923_v63 }
0x1be5   : > { %v10927_v54 = vadd.s32 %v10926_v35, %v10924_v41 }
0x1be7   : > { %vm10944_vm3 = vcmp.eq.s32.totalorder %v15496_v1, %v10927_v54 }
0x1be8   : > { %14692 = vmatprep.mubr.msk.f32.mxu1 %vm10944_vm3, %v15455_v61  ;;  %v19364_v24 = vsel %vm10944_vm3, 3e+38, %v19084_v62 }
0x1be9   : > { %11660 = vmin.xlane.f32.xlu1 %v19364_v24  ;;  %14693 = vmatmul.mubr.msk.f32.gmra.mrb[46].mxu1 %vm10945_vm2, %v15455_v61 }
0x1bea   : > { %14727 = vmatprep.mubr.msk.f32.mxu1 %vm10942_vm0, %v15455_v61 }
0x1bed   : > { %14728 = vmatmul.mubr.msk.f32.vlgmr.msra.gmra.mrb[48].mxu1 %vm10943_vm1, %v15455_v61 }
0x1bee   : > { %14730 = vmatprep.mubr.msk.f32.mxu1 %vm10944_vm3, %v15455_v61  ;;  %14780 = vmatpush3.xpose.msra.mxu1 %v15504_v2 }
0x1bef   : > { %15338 = vmatprep.subr.bf16.mxu1 %v15649_v27 }
0x1bf1   : > { %14731 = vmatmul.mubr.msk.f32.gmra.mrb[50].mxu1 %vm10945_vm2, %v15455_v61 }
0x1c40   : > { %v11657_v62 = vpop.xlane.xlu1 %11656 }
0x1c41   : > { %vm11664_vm4 = vcmp.le.f32.partialorder %v19332_v31, %v11657_v62  ;;  %v11659_v51 = vpop.xlane.xlu0 %11658 }
0x1c42   : > { %v19390_v52 = vsel %vm11664_vm4, %v15496_v1, 128  ;;  %vm11665_vm7 = vcmp.le.f32.partialorder %v19341_v45, %v11659_v51 }
0x1c43   : > { %v11673_v26 = vshra.s32 %v19390_v52, 16  ;;  %v19395_v25 = vsel %vm11665_vm7, %v15496_v1, 128 }
0x1c44   : > { %v11687_v15 = vshra.s32 %v19395_v25, 16 }
0x1c45   : > { %v19398_v18 = vcvt.s32.f32 %v11673_v26 }
0x1c46   : > { %v19400_v2 = vcvt.s32.f32 %v11687_v15 }
0x1c47   : > { %11676 = vmin.xlane.f32.xlu1 %v19398_v18 }
0x1c48   : > { %11690 = vmin.xlane.f32.xlu0 %v19400_v2 }
0x1c6c   : > { %v11663_v11 = vpop.xlane.xlu0 %11662 }
0x1c6d   : > { %vm11667_vm8 = vcmp.le.f32.partialorder %v19353_v0, %v11663_v11 }
0x1c6e   : > { %v19406_v21 = vsel %vm11667_vm8, %v15496_v1, 128 }
0x1c6f   : > { %v11715_v9 = vshra.s32 %v19406_v21, 16 }
0x1c71   : > { %v19409_v23 = vcvt.s32.f32 %v11715_v9 }
0x1c73   : > { %11718 = vmin.xlane.f32.xlu0 %v19409_v23 }
0x1c76   : > { %v11661_v53 = vpop.xlane.xlu1 %11660 }
0x1c77   : > { %vm11666_vm9 = vcmp.le.f32.partialorder %v19364_v24, %v11661_v53 }
0x1c78   : > { %v19414_v34 = vsel %vm11666_vm9, %v15496_v1, 128 }
0x1c79   : > { %v11701_v19 = vshra.s32 %v19414_v34, 16 }
0x1c7b   : > { %v19417_v30 = vcvt.s32.f32 %v11701_v19 }
0x1c7d   : > { %11704 = vmin.xlane.f32.xlu1 %v19417_v30 }
0x1c86   : > { %v14691_v32 = vpop.f32.mrb[44].mxu1 }
0x1c87   : > { %v11177_v16 = vcombine.high %v14691_v32, %v14691_v32  ;;  %v11184_v12 = vrot.slane %v14691_v32, %v15818_v59  ;;  %v11020_v48 = vpop.f32.mrb[45].mxu1 }
0x1c88   : > { %v11128_v40 = vcombine.high %v11020_v48, %v11020_v48  ;;  %v11135_v17 = vrot.slane %v11020_v48, %v15818_v59 }
0x1c89   : > { %v11191_v33 = vrot.slane %v11177_v16, %v15818_v59  ;;  %v11192_v38 = vcombine.high %v11184_v12, %v11184_v12  ;;  %v11200_v20 = vrot.slane %v11184_v12, %v15818_v59 }
0x1c8a   : > { %v11142_v43 = vrot.slane %v11128_v40, %v15818_v59  ;;  %v11143_v28 = vcombine.high %v11135_v17, %v11135_v17  ;;  %v11151_v39 = vrot.slane %v11135_v17, %v15818_v59 }
0x1c8b   : > { %v11193_v36 = vcombine.high %v11191_v33, %v11191_v33  ;;  %v11207_v37 = vrot.slane %v11191_v33, %v15818_v59  ;;  %v11214_v46 = vrot.slane %v11192_v38, %v15818_v59  ;;  %v11222_v55 = vcombine.high %v11200_v20, %v11200_v20  ;;  %11364 = vst.msk [vmem:[%s15529_s13 + $0x8d] sm:$0x1] %vm1136_vm5, %v11200_v20 }
0x1c8c   : > { %v11144_v22 = vcombine.high %v11142_v43, %v11142_v43  ;;  %v11158_v60 = vrot.slane %v11142_v43, %v15818_v59  ;;  %v11165_v14 = vrot.slane %v11143_v28, %v15818_v59  ;;  %v11173_v13 = vcombine.high %v11151_v39, %v11151_v39  ;;  %11356 = vst.msk [vmem:[%s15529_s13 + $0xd] sm:$0x1] %vm1136_vm5, %v11151_v39 }
0x1c8d   : > { %v11221_v57 = vrot.slane %v11193_v36, %v15818_v59  ;;  %v11223_v58 = vcombine.high %v11207_v37, %v11207_v37  ;;  %v11224_v42 = vcombine.high %v11214_v46, %v11214_v46  ;;  %11365 = vst.msk [vmem:[%s15529_s13 + $0x9d] sm:$0x1] %vm1136_vm5, %v11214_v46  ;;  %11366 = vst.msk [vmem:[%s15529_s13 + $0xad] sm:$0x1] %vm1136_vm5, %v11222_v55 }
0x1c8e   : > { %11368 = vst.msk [vmem:[%s15529_s13 + $0xcd] sm:$0x1] %vm1136_vm5, %v11207_v37  ;;  %v11172_v56 = vrot.slane %v11144_v22, %v15818_v59  ;;  %v11174_v44 = vcombine.high %v11158_v60, %v11158_v60  ;;  %v11175_v49 = vcombine.high %v11165_v14, %v11165_v14  ;;  %11357 = vst.msk [vmem:[%s15529_s13 + $0x1d] sm:$0x1] %vm1136_vm5, %v11165_v14 }
0x1c8f   : > { %11358 = vst.msk [vmem:[%s15529_s13 + $0x2d] sm:$0x1] %vm1136_vm5, %v11173_v13  ;;  %11360 = vst.msk [vmem:[%s15529_s13 + $0x4d] sm:$0x1] %vm1136_vm5, %v11158_v60  ;;  %v11225_v47 = vcombine.high %v11221_v57, %v11221_v57 }
0x1c90   : > { %11367 = vst.msk [vmem:[%s15529_s13 + $0xbd] sm:$0x1] %vm1136_vm5, %v11224_v42  ;;  %11369 = vst.msk [vmem:[%s15529_s13 + $0xdd] sm:$0x1] %vm1136_vm5, %v11221_v57  ;;  %v11176_v10 = vcombine.high %v11172_v56, %v11172_v56 }
0x1c91   : > { %11370 = vst.msk [vmem:[%s15529_s13 + $0xed] sm:$0x1] %vm1136_vm5, %v11223_v58  ;;  %11359 = vst.msk [vmem:[%s15529_s13 + $0x3d] sm:$0x1] %vm1136_vm5, %v11175_v49 }
0x1c92   : > { %11361 = vst.msk [vmem:[%s15529_s13 + $0x5d] sm:$0x1] %vm1136_vm5, %v11172_v56  ;;  %11362 = vst.msk [vmem:[%s15529_s13 + $0x6d] sm:$0x1] %vm1136_vm5, %v11174_v44 }
0x1c93   : > { %11371 = vst.msk [vmem:[%s15529_s13 + $0xfd] sm:$0x1] %vm1136_vm5, %v11225_v47  ;;  %11363 = vst.msk [vmem:[%s15529_s13 + $0x7d] sm:$0x1] %vm1136_vm5, %v11176_v10 }
0x1cbc   : > { %v14694_v50 = vpop.f32.mrb[46].mxu1 }
0x1cbd   : > { %v11275_v63 = vcombine.high %v14694_v50, %v14694_v50  ;;  %v11282_v35 = vrot.slane %v14694_v50, %v15818_v59  ;;  %v11030_v41 = vpop.f32.mrb[47].mxu1 }
0x1cbe   : > { %v11226_v54 = vcombine.high %v11030_v41, %v11030_v41  ;;  %v11233_v62 = vrot.slane %v11030_v41, %v15818_v59 }
0x1cbf   : > { %v11289_v51 = vrot.slane %v11275_v63, %v15818_v59  ;;  %v11290_v26 = vcombine.high %v11282_v35, %v11282_v35  ;;  %v11298_v15 = vrot.slane %v11282_v35, %v15818_v59 }
0x1cc0   : > { %v11240_v11 = vrot.slane %v11226_v54, %v15818_v59  ;;  %v11241_v9 = vcombine.high %v11233_v62, %v11233_v62  ;;  %v11249_v53 = vrot.slane %v11233_v62, %v15818_v59  ;;  %v14729_v55 = vpop.f32.mrb[48].mxu1 }
0x1cc1   : > { %v11291_v19 = vcombine.high %v11289_v51, %v11289_v51  ;;  %v11305_v32 = vrot.slane %v11289_v51, %v15818_v59  ;;  %v11312_v16 = vrot.slane %v11290_v26, %v15818_v59  ;;  %v11320_v12 = vcombine.high %v11298_v15, %v11298_v15  ;;  %11380 = vst.msk [vmem:[%s15529_s13 + $0x18d] sm:$0x1] %vm1136_vm5, %v11298_v15  ;;  %v11105_v14 = vpop.f32.mrb[49].mxu1 }
0x1cc2   : > { %v11242_v48 = vcombine.high %v11240_v11, %v11240_v11  ;;  %v11256_v40 = vrot.slane %v11240_v11, %v15818_v59  ;;  %v11263_v17 = vrot.slane %v11241_v9, %v15818_v59  ;;  %v11271_v33 = vcombine.high %v11249_v53, %v11249_v53  ;;  %11372 = vst.msk [vmem:[%s15529_s13 + $0x10d] sm:$0x1] %vm1136_vm5, %v11249_v53 }
0x1cc3   : > { %v11319_v38 = vrot.slane %v11291_v19, %v15818_v59  ;;  %v11321_v20 = vcombine.high %v11305_v32, %v11305_v32  ;;  %v11322_v43 = vcombine.high %v11312_v16, %v11312_v16  ;;  %11381 = vst.msk [vmem:[%s15529_s13 + $0x19d] sm:$0x1] %vm1136_vm5, %v11312_v16  ;;  %11382 = vst.msk [vmem:[%s15529_s13 + $0x1ad] sm:$0x1] %vm1136_vm5, %v11320_v12 }
0x1cc4   : > { %11384 = vst.msk [vmem:[%s15529_s13 + $0x1cd] sm:$0x1] %vm1136_vm5, %v11305_v32  ;;  %v11270_v28 = vrot.slane %v11242_v48, %v15818_v59  ;;  %v11272_v39 = vcombine.high %v11256_v40, %v11256_v40  ;;  %v11273_v36 = vcombine.high %v11263_v17, %v11263_v17  ;;  %11373 = vst.msk [vmem:[%s15529_s13 + $0x11d] sm:$0x1] %vm1136_vm5, %v11263_v17  ;;  %v14732_v10 = vpop.f32.mrb[50].mxu1 }
0x1cc5   : > { %11374 = vst.msk [vmem:[%s15529_s13 + $0x12d] sm:$0x1] %vm1136_vm5, %v11271_v33  ;;  %11376 = vst.msk [vmem:[%s15529_s13 + $0x14d] sm:$0x1] %vm1136_vm5, %v11256_v40  ;;  %v11323_v37 = vcombine.high %v11319_v38, %v11319_v38  ;;  %v11441_v22 = vcombine.high %v14729_v55, %v14729_v55  ;;  %v11448_v60 = vrot.slane %v14729_v55, %v15818_v59  ;;  %v11115_v54 = vpop.f32.mrb[51].mxu1 }
0x1cc6   : > { %11383 = vst.msk [vmem:[%s15529_s13 + $0x1bd] sm:$0x1] %vm1136_vm5, %v11322_v43  ;;  %11385 = vst.msk [vmem:[%s15529_s13 + $0x1dd] sm:$0x1] %vm1136_vm5, %v11319_v38  ;;  %v11274_v46 = vcombine.high %v11270_v28, %v11270_v28  ;;  %v11392_v13 = vcombine.high %v11105_v14, %v11105_v14  ;;  %v11399_v57 = vrot.slane %v11105_v14, %v15818_v59 }
0x1cc7   : > { %11386 = vst.msk [vmem:[%s15529_s13 + $0x1ed] sm:$0x1] %vm1136_vm5, %v11321_v20  ;;  %11375 = vst.msk [vmem:[%s15529_s13 + $0x13d] sm:$0x1] %vm1136_vm5, %v11273_v36  ;;  %v11455_v58 = vrot.slane %v11441_v22, %v15818_v59  ;;  %v11456_v42 = vcombine.high %v11448_v60, %v11448_v60  ;;  %v11464_v56 = vrot.slane %v11448_v60, %v15818_v59 }
0x1cc8   : > { %11377 = vst.msk [vmem:[%s15529_s13 + $0x15d] sm:$0x1] %vm1136_vm5, %v11270_v28  ;;  %11378 = vst.msk [vmem:[%s15529_s13 + $0x16d] sm:$0x1] %vm1136_vm5, %v11272_v39  ;;  %v11406_v44 = vrot.slane %v11392_v13, %v15818_v59  ;;  %v11407_v49 = vcombine.high %v11399_v57, %v11399_v57  ;;  %v11415_v47 = vrot.slane %v11399_v57, %v15818_v59 }
0x1cc9   : > { %11387 = vst.msk [vmem:[%s15529_s13 + $0x1fd] sm:$0x1] %vm1136_vm5, %v11323_v37  ;;  %11379 = vst.msk [vmem:[%s15529_s13 + $0x17d] sm:$0x1] %vm1136_vm5, %v11274_v46  ;;  %v11457_v50 = vcombine.high %v11455_v58, %v11455_v58  ;;  %v11471_v63 = vrot.slane %v11455_v58, %v15818_v59  ;;  %v11478_v35 = vrot.slane %v11456_v42, %v15818_v59 }
0x1cca   : > { %v11486_v41 = vcombine.high %v11464_v56, %v11464_v56  ;;  %11628 = vst.msk [vmem:[%s15534_s16 + $0x8d] sm:$0x1] %vm1401_vm6, %v11464_v56  ;;  %v11408_v62 = vcombine.high %v11406_v44, %v11406_v44  ;;  %v11422_v51 = vrot.slane %v11406_v44, %v15818_v59  ;;  %v11429_v26 = vrot.slane %v11407_v49, %v15818_v59 }
0x1ccb   : > { %v11437_v15 = vcombine.high %v11415_v47, %v11415_v47  ;;  %11620 = vst.msk [vmem:[%s15534_s16 + $0xd] sm:$0x1] %vm1401_vm6, %v11415_v47  ;;  %v11485_v11 = vrot.slane %v11457_v50, %v15818_v59  ;;  %v11487_v9 = vcombine.high %v11471_v63, %v11471_v63  ;;  %v11488_v53 = vcombine.high %v11478_v35, %v11478_v35 }
0x1ccc   : > { %11629 = vst.msk [vmem:[%s15534_s16 + $0x9d] sm:$0x1] %vm1401_vm6, %v11478_v35  ;;  %11630 = vst.msk [vmem:[%s15534_s16 + $0xad] sm:$0x1] %vm1401_vm6, %v11486_v41  ;;  %v11539_v19 = vcombine.high %v14732_v10, %v14732_v10  ;;  %v11436_v32 = vrot.slane %v11408_v62, %v15818_v59  ;;  %v11438_v16 = vcombine.high %v11422_v51, %v11422_v51  ;;  %v11672_v35 = vand.u32 65535, %v19390_v52 }
0x1ccd   : > { %11632 = vst.msk [vmem:[%s15534_s16 + $0xcd] sm:$0x1] %vm1401_vm6, %v11471_v63  ;;  %v11439_v12 = vcombine.high %v11429_v26, %v11429_v26  ;;  %11621 = vst.msk [vmem:[%s15534_s16 + $0x1d] sm:$0x1] %vm1401_vm6, %v11429_v26  ;;  %v11546_v48 = vrot.slane %v14732_v10, %v15818_v59  ;;  %v11489_v40 = vcombine.high %v11485_v11, %v11485_v11  ;;  %v11686_v41 = vand.u32 65535, %v19395_v25 }
0x1cce   : > { %11622 = vst.msk [vmem:[%s15534_s16 + $0x2d] sm:$0x1] %vm1401_vm6, %v11437_v15  ;;  %11624 = vst.msk [vmem:[%s15534_s16 + $0x4d] sm:$0x1] %vm1401_vm6, %v11422_v51  ;;  %v11553_v17 = vrot.slane %v11539_v19, %v15818_v59  ;;  %v11490_v33 = vcombine.high %v11115_v54, %v11115_v54  ;;  %v11497_v38 = vrot.slane %v11115_v54, %v15818_v59  ;;  %v11674_v54 = vcvt.s32.f32 %v11672_v35 }
0x1ccf   : > { %11631 = vst.msk [vmem:[%s15534_s16 + $0xbd] sm:$0x1] %vm1401_vm6, %v11488_v53  ;;  %11633 = vst.msk [vmem:[%s15534_s16 + $0xdd] sm:$0x1] %vm1401_vm6, %v11485_v11  ;;  %v11440_v20 = vcombine.high %v11436_v32, %v11436_v32  ;;  %v11554_v43 = vcombine.high %v11546_v48, %v11546_v48  ;;  %v11562_v28 = vrot.slane %v11546_v48, %v15818_v59  ;;  %v11688_v51 = vcvt.s32.f32 %v11686_v41 }
0x1cd0   : > { %11634 = vst.msk [vmem:[%s15534_s16 + $0xed] sm:$0x1] %vm1401_vm6, %v11487_v9  ;;  %11623 = vst.msk [vmem:[%s15534_s16 + $0x3d] sm:$0x1] %vm1401_vm6, %v11439_v12  ;;  %v11555_v39 = vcombine.high %v11553_v17, %v11553_v17  ;;  %v11569_v36 = vrot.slane %v11553_v17, %v15818_v59  ;;  %v11504_v37 = vrot.slane %v11490_v33, %v15818_v59  ;;  %v11714_v9 = vand.u32 65535, %v19406_v21 }
0x1cd1   : > { %11625 = vst.msk [vmem:[%s15534_s16 + $0x5d] sm:$0x1] %vm1401_vm6, %v11436_v32  ;;  %11626 = vst.msk [vmem:[%s15534_s16 + $0x6d] sm:$0x1] %vm1401_vm6, %v11438_v16  ;;  %v11505_v46 = vcombine.high %v11497_v38, %v11497_v38  ;;  %v11576_v55 = vrot.slane %v11554_v43, %v15818_v59  ;;  %v11584_v22 = vcombine.high %v11562_v28, %v11562_v28  ;;  %v11700_v25 = vand.u32 65535, %v19414_v34 }
0x1cd2   : > { %11635 = vst.msk [vmem:[%s15534_s16 + $0xfd] sm:$0x1] %vm1401_vm6, %v11489_v40  ;;  %11627 = vst.msk [vmem:[%s15534_s16 + $0x7d] sm:$0x1] %vm1401_vm6, %v11440_v20  ;;  %v11513_v60 = vrot.slane %v11497_v38, %v15818_v59  ;;  %v11583_v14 = vrot.slane %v11555_v39, %v15818_v59  ;;  %v11585_v13 = vcombine.high %v11569_v36, %v11569_v36  ;;  %v11716_v53 = vcvt.s32.f32 %v11714_v9 }
0x1cd3   : > { %11644 = vst.msk [vmem:[%s15534_s16 + $0x18d] sm:$0x1] %vm1401_vm6, %v11562_v28  ;;  %11648 = vst.msk [vmem:[%s15534_s16 + $0x1cd] sm:$0x1] %vm1401_vm6, %v11569_v36  ;;  %v11506_v57 = vcombine.high %v11504_v37, %v11504_v37  ;;  %v11520_v58 = vrot.slane %v11504_v37, %v15818_v59  ;;  %v11586_v42 = vcombine.high %v11576_v55, %v11576_v55  ;;  %v11702_v32 = vcvt.s32.f32 %v11700_v25 }
0x1cd4   : > { %11645 = vst.msk [vmem:[%s15534_s16 + $0x19d] sm:$0x1] %vm1401_vm6, %v11576_v55  ;;  %11646 = vst.msk [vmem:[%s15534_s16 + $0x1ad] sm:$0x1] %vm1401_vm6, %v11584_v22  ;;  %v11527_v56 = vrot.slane %v11505_v46, %v15818_v59  ;;  %v11535_v44 = vcombine.high %v11513_v60, %v11513_v60  ;;  %v11587_v49 = vcombine.high %v11583_v14, %v11583_v14  ;;  %v11677_v62 = vpop.xlane.xlu1 %11676 }
0x1cd5   : > { %11636 = vst.msk [vmem:[%s15534_s16 + $0x10d] sm:$0x1] %vm1401_vm6, %v11513_v60  ;;  %11649 = vst.msk [vmem:[%s15534_s16 + $0x1dd] sm:$0x1] %vm1401_vm6, %v11583_v14  ;;  %v11534_v47 = vrot.slane %v11506_v57, %v15818_v59  ;;  %v11536_v10 = vcombine.high %v11520_v58, %v11520_v58  ;;  %vm11678_vm10 = vcmp.eq.f32.partialorder %v19398_v18, %v11677_v62  ;;  %v11691_v26 = vpop.xlane.xlu0 %11690 }
0x1cd6   : > { %11650 = vst.msk [vmem:[%s15534_s16 + $0x1ed] sm:$0x1] %vm1401_vm6, %v11585_v13  ;;  %11640 = vst.msk [vmem:[%s15534_s16 + $0x14d] sm:$0x1] %vm1401_vm6, %v11520_v58  ;;  %v11537_v50 = vcombine.high %v11527_v56, %v11527_v56  ;;  %vm11692_vm11 = vcmp.eq.f32.partialorder %v19400_v2, %v11691_v26  ;;  %v11679_v15 = vsel %vm11678_vm10, %v11674_v54, inf  ;;  %v11683_v2 = vcvt.f32.s32 %v11677_v62 }
0x1cd7   : > { %11647 = vst.msk [vmem:[%s15534_s16 + $0x1bd] sm:$0x1] %vm1401_vm6, %v11586_v42  ;;  %11637 = vst.msk [vmem:[%s15534_s16 + $0x11d] sm:$0x1] %vm1401_vm6, %v11527_v56  ;;  %v11538_v63 = vcombine.high %v11534_v47, %v11534_v47  ;;  %11680 = vmin.xlane.f32.xlu1 %v11679_v15  ;;  %v11693_v11 = vsel %vm11692_vm11, %v11688_v51, inf  ;;  %v11697_v12 = vcvt.f32.s32 %v11691_v26 }
0x1cd8   : > { %11638 = vst.msk [vmem:[%s15534_s16 + $0x12d] sm:$0x1] %vm1401_vm6, %v11535_v44  ;;  %11651 = vst.msk [vmem:[%s15534_s16 + $0x1fd] sm:$0x1] %vm1401_vm6, %v11587_v49  ;;  %11694 = vmin.xlane.f32.xlu0 %v11693_v11  ;;  %v11684_v40 = vshll.u32 %v11683_v2, 16 }
0x1cd9   : > { %11641 = vst.msk [vmem:[%s15534_s16 + $0x15d] sm:$0x1] %vm1401_vm6, %v11534_v47  ;;  %11642 = vst.msk [vmem:[%s15534_s16 + $0x16d] sm:$0x1] %vm1401_vm6, %v11536_v10  ;;  %v11698_v33 = vshll.u32 %v11697_v12, 16 }
0x1cda   : > { %11639 = vst.msk [vmem:[%s15534_s16 + $0x13d] sm:$0x1] %vm1401_vm6, %v11537_v50  ;;  %11643 = vst.msk [vmem:[%s15534_s16 + $0x17d] sm:$0x1] %vm1401_vm6, %v11538_v63 }
0x1d00   : > { %v11719_v19 = vpop.xlane.xlu0 %11718 }
0x1d01   : > { %vm11720_vm12 = vcmp.eq.f32.partialorder %v19409_v23, %v11719_v19  ;;  %v11725_v43 = vcvt.f32.s32 %v11719_v19 }
0x1d02   : > { %v11721_v52 = vsel %vm11720_vm12, %v11716_v53, inf }
0x1d03   : > { %11722 = vmin.xlane.f32.xlu0 %v11721_v52  ;;  %v11726_v39 = vshll.u32 %v11725_v43, 16 }
0x1d0a   : > { %v11705_v16 = vpop.xlane.xlu1 %11704 }
0x1d0b   : > { %vm11706_vm13 = vcmp.eq.f32.partialorder %v19417_v30, %v11705_v16  ;;  %v11711_v37 = vcvt.f32.s32 %v11705_v16 }
0x1d0c   : > { %v11707_v18 = vsel %vm11706_vm13, %v11702_v32, inf }
0x1d0d   : > { %11708 = vmin.xlane.f32.xlu1 %v11707_v18  ;;  %v11712_v55 = vshll.u32 %v11711_v37, 16 }
0x1d64   : > { %v11681_v48 = vpop.xlane.xlu1 %11680 }
0x1d65   : > { %v11682_v17 = vcvt.f32.s32 %v11681_v48  ;;  %v11695_v21 = vpop.xlane.xlu0 %11694 }
0x1d66   : > { %v11696_v38 = vcvt.f32.s32 %v11695_v21 }
0x1d67   : > { %v11685_v20 = vadd.s32 %v11684_v40, %v11682_v17 }
0x1d68   : > { %v11699_v23 = vadd.s32 %v11698_v33, %v11696_v38 }
0x1d69   : > { %vm11728_vm14 = vcmp.eq.s32.totalorder %v15496_v1, %v11685_v20 }
0x1d6a   : > { %vm11729_vm15 = vcmp.eq.s32.totalorder %v15496_v1, %v11699_v23  ;;  %14735 = vmatprep.mubr.msk.f32.mxu0 %vm11728_vm14, %v15455_v61  ;;  %v12438_v34 = vsel %vm11728_vm14, 3e+38, %v19332_v31 }
0x1d6b   : > { %12442 = vmin.xlane.f32.xlu1 %v12438_v34  ;;  %14736 = vmatmul.mubr.msk.f32.vlgmr.msra.gmra.mrb[68].mxu0 %vm11729_vm15, %v15455_v61  ;;  %v12439_v30 = vsel %vm11729_vm15, 3e+38, %v19341_v45 }
0x1d6c   : > { %15308 = vmatpush3.bf16.msra.mxu0 %v15649_v27  ;;  %12444 = vmin.xlane.f32.xlu0 %v12439_v30 }
0x1d6d   : > { %15310 = vmatprep.subr.bf16.mxu0 %v15657_v29 }
0x1d70   : > { %15312 = vmatpush3.bf16.msra.mxu0 %v15657_v29 }
0x1d71   : > { %15314 = vmatprep.subr.bf16.mxu0 %v15663_v3 }
0x1d74   : > { %15316 = vmatpush3.bf16.msra.mxu0 %v15663_v3 }
0x1d75   : > { %15318 = vmatprep.subr.bf16.mxu0 %v15669_v4 }
0x1d78   : > { %15320 = vmatpush3.bf16.msra.mxu0 %v15669_v4 }
0x1d79   : > { %15322 = vmatprep.subr.bf16.mxu0 %v15675_v5 }
0x1d7c   : > { %15324 = vmatpush3.bf16.msra.mxu0 %v15675_v5 }
0x1d7d   : > { %15326 = vmatprep.subr.bf16.mxu0 %v15681_v6 }
0x1d80   : > { %15328 = vmatpush3.bf16.msra.mxu0 %v15681_v6 }
0x1d81   : > { %15330 = vmatprep.subr.bf16.mxu0 %v15686_v7 }
0x1d84   : > { %15332 = vmatpush3.bf16.msra.mxu0 %v15686_v7 }
0x1d85   : > { %15334 = vmatprep.subr.bf16.mxu0 %v15692_v8 }
0x1d88   : > { %15336 = vmatpush3.bf16.msra.mxu0 %v15692_v8 }
0x1d90   : > { %v11723_v28 = vpop.xlane.xlu0 %11722 }
0x1d91   : > { %v11724_v36 = vcvt.f32.s32 %v11723_v28 }
0x1d93   : > { %v11727_v31 = vadd.s32 %v11726_v39, %v11724_v36 }
0x1d95   : > { %vm11731_vm0 = vcmp.eq.s32.totalorder %v15496_v1, %v11727_v31 }
0x1d96   : > { %v12441_v45 = vsel %vm11731_vm0, 3e+38, %v19353_v0 }
0x1d97   : > { %12448 = vmin.xlane.f32.xlu0 %v12441_v45 }
0x1d9a   : > { %v11709_v46 = vpop.xlane.xlu1 %11708 }
0x1d9b   : > { %v11710_v22 = vcvt.f32.s32 %v11709_v46 }
0x1d9d   : > { %v11713_v60 = vadd.s32 %v11712_v55, %v11710_v22 }
0x1d9f   : > { %vm11730_vm1 = vcmp.eq.s32.totalorder %v15496_v1, %v11713_v60 }
0x1da0   : > { %14738 = vmatprep.mubr.msk.f32.mxu0 %vm11730_vm1, %v15455_v61  ;;  %v12440_v0 = vsel %vm11730_vm1, 3e+38, %v19364_v24 }
0x1da1   : > { %12446 = vmin.xlane.f32.xlu1 %v12440_v0  ;;  %14739 = vmatmul.mubr.msk.f32.gmra.mrb[70].mxu0 %vm11731_vm0, %v15455_v61 }
0x1da2   : > { %14773 = vmatprep.mubr.msk.f32.mxu0 %vm11728_vm14, %v15455_v61 }
0x1da5   : > { %14774 = vmatmul.mubr.msk.f32.vlgmr.msra.gmra.mrb[72].mxu0 %vm11729_vm15, %v15455_v61 }
0x1da6   : > { %14776 = vmatprep.mubr.msk.f32.mxu0 %vm11730_vm1, %v15455_v61 }
0x1da9   : > { %14777 = vmatmul.mubr.msk.f32.gmra.mrb[74].mxu0 %vm11731_vm0, %v15455_v61 }
0x1df8   : > { %v12443_v24 = vpop.xlane.xlu1 %12442 }
0x1df9   : > { %vm12450_vm2 = vcmp.le.f32.partialorder %v12438_v34, %v12443_v24  ;;  %v12445_v14 = vpop.xlane.xlu0 %12444 }
0x1dfa   : > { %v19654_v13 = vsel %vm12450_vm2, %v15496_v1, 128  ;;  %vm12451_vm3 = vcmp.le.f32.partialorder %v12439_v30, %v12445_v14 }
0x1dfb   : > { %v12459_v57 = vshra.s32 %v19654_v13, 16  ;;  %v19658_v58 = vsel %vm12451_vm3, %v15496_v1, 128 }
0x1dfc   : > { %v12473_v42 = vshra.s32 %v19658_v58, 16 }
0x1dfd   : > { %v19661_v56 = vcvt.s32.f32 %v12459_v57 }
0x1dfe   : > { %v19663_v44 = vcvt.s32.f32 %v12473_v42 }
0x1dff   : > { %12462 = vmin.xlane.f32.xlu1 %v19661_v56 }
0x1e00   : > { %12476 = vmin.xlane.f32.xlu0 %v19663_v44 }
0x1e24   : > { %v12449_v49 = vpop.xlane.xlu0 %12448 }
0x1e25   : > { %vm12453_vm4 = vcmp.le.f32.partialorder %v12441_v45, %v12449_v49 }
0x1e26   : > { %v19668_v47 = vsel %vm12453_vm4, %v15496_v1, 128 }
0x1e27   : > { %v12501_v10 = vshra.s32 %v19668_v47, 16 }
0x1e29   : > { %v19671_v50 = vcvt.s32.f32 %v12501_v10 }
0x1e2b   : > { %12504 = vmin.xlane.f32.xlu0 %v19671_v50 }
0x1e2e   : > { %v12447_v63 = vpop.xlane.xlu1 %12446 }
0x1e2f   : > { %vm12452_vm7 = vcmp.le.f32.partialorder %v12440_v0, %v12447_v63 }
0x1e30   : > { %v19675_v35 = vsel %vm12452_vm7, %v15496_v1, 128 }
0x1e31   : > { %v12487_v41 = vshra.s32 %v19675_v35, 16 }
0x1e33   : > { %v19678_v54 = vcvt.s32.f32 %v12487_v41 }
0x1e35   : > { %12490 = vmin.xlane.f32.xlu1 %v19678_v54 }
0x1e3e   : > { %v14737_v62 = vpop.f32.mrb[68].mxu0 }
0x1e3f   : > { %v11963_v51 = vcombine.high %v14737_v62, %v14737_v62  ;;  %v11970_v26 = vrot.slane %v14737_v62, %v15818_v59  ;;  %v11806_v15 = vpop.f32.mrb[69].mxu0 }
0x1e40   : > { %v11914_v11 = vcombine.high %v11806_v15, %v11806_v15  ;;  %v11921_v9 = vrot.slane %v11806_v15, %v15818_v59 }
0x1e41   : > { %v11977_v53 = vrot.slane %v11963_v51, %v15818_v59  ;;  %v11978_v19 = vcombine.high %v11970_v26, %v11970_v26  ;;  %v11986_v52 = vrot.slane %v11970_v26, %v15818_v59 }
0x1e42   : > { %v11928_v25 = vrot.slane %v11914_v11, %v15818_v59  ;;  %v11929_v32 = vcombine.high %v11921_v9, %v11921_v9  ;;  %v11937_v16 = vrot.slane %v11921_v9, %v15818_v59 }
0x1e43   : > { %v11979_v18 = vcombine.high %v11977_v53, %v11977_v53  ;;  %v11993_v2 = vrot.slane %v11977_v53, %v15818_v59  ;;  %v12000_v12 = vrot.slane %v11978_v19, %v15818_v59  ;;  %v12008_v48 = vcombine.high %v11986_v52, %v11986_v52  ;;  %12150 = vst.msk [vmem:[%s15529_s13 + $0x8e] sm:$0x1] %vm1136_vm5, %v11986_v52 }
0x1e44   : > { %v11930_v40 = vcombine.high %v11928_v25, %v11928_v25  ;;  %v11944_v17 = vrot.slane %v11928_v25, %v15818_v59  ;;  %v11951_v21 = vrot.slane %v11929_v32, %v15818_v59  ;;  %v11959_v33 = vcombine.high %v11937_v16, %v11937_v16  ;;  %12142 = vst.msk [vmem:[%s15529_s13 + $0xe] sm:$0x1] %vm1136_vm5, %v11937_v16 }
0x1e45   : > { %v12007_v38 = vrot.slane %v11979_v18, %v15818_v59  ;;  %v12009_v20 = vcombine.high %v11993_v2, %v11993_v2  ;;  %v12010_v23 = vcombine.high %v12000_v12, %v12000_v12  ;;  %12151 = vst.msk [vmem:[%s15529_s13 + $0x9e] sm:$0x1] %vm1136_vm5, %v12000_v12  ;;  %12152 = vst.msk [vmem:[%s15529_s13 + $0xae] sm:$0x1] %vm1136_vm5, %v12008_v48 }
0x1e46   : > { %12154 = vst.msk [vmem:[%s15529_s13 + $0xce] sm:$0x1] %vm1136_vm5, %v11993_v2  ;;  %v11958_v34 = vrot.slane %v11930_v40, %v15818_v59  ;;  %v11960_v30 = vcombine.high %v11944_v17, %v11944_v17  ;;  %v11961_v43 = vcombine.high %v11951_v21, %v11951_v21  ;;  %12143 = vst.msk [vmem:[%s15529_s13 + $0x1e] sm:$0x1] %vm1136_vm5, %v11951_v21 }
0x1e47   : > { %12144 = vst.msk [vmem:[%s15529_s13 + $0x2e] sm:$0x1] %vm1136_vm5, %v11959_v33  ;;  %12146 = vst.msk [vmem:[%s15529_s13 + $0x4e] sm:$0x1] %vm1136_vm5, %v11944_v17  ;;  %v12011_v28 = vcombine.high %v12007_v38, %v12007_v38 }
0x1e48   : > { %12153 = vst.msk [vmem:[%s15529_s13 + $0xbe] sm:$0x1] %vm1136_vm5, %v12010_v23  ;;  %12155 = vst.msk [vmem:[%s15529_s13 + $0xde] sm:$0x1] %vm1136_vm5, %v12007_v38  ;;  %v11962_v39 = vcombine.high %v11958_v34, %v11958_v34 }
0x1e49   : > { %12156 = vst.msk [vmem:[%s15529_s13 + $0xee] sm:$0x1] %vm1136_vm5, %v12009_v20  ;;  %12145 = vst.msk [vmem:[%s15529_s13 + $0x3e] sm:$0x1] %vm1136_vm5, %v11961_v43 }
0x1e4a   : > { %12147 = vst.msk [vmem:[%s15529_s13 + $0x5e] sm:$0x1] %vm1136_vm5, %v11958_v34  ;;  %12148 = vst.msk [vmem:[%s15529_s13 + $0x6e] sm:$0x1] %vm1136_vm5, %v11960_v30 }
0x1e4b   : > { %12157 = vst.msk [vmem:[%s15529_s13 + $0xfe] sm:$0x1] %vm1136_vm5, %v12011_v28  ;;  %12149 = vst.msk [vmem:[%s15529_s13 + $0x7e] sm:$0x1] %vm1136_vm5, %v11962_v39 }
0x1e74   : > { %v14740_v36 = vpop.f32.mrb[70].mxu0 }
0x1e75   : > { %v12061_v31 = vcombine.high %v14740_v36, %v14740_v36  ;;  %v12068_v37 = vrot.slane %v14740_v36, %v15818_v59  ;;  %v11816_v45 = vpop.f32.mrb[71].mxu0 }
0x1e76   : > { %v12012_v46 = vcombine.high %v11816_v45, %v11816_v45  ;;  %v12019_v55 = vrot.slane %v11816_v45, %v15818_v59 }
0x1e77   : > { %v12075_v22 = vrot.slane %v12061_v31, %v15818_v59  ;;  %v12076_v60 = vcombine.high %v12068_v37, %v12068_v37  ;;  %v12084_v0 = vrot.slane %v12068_v37, %v15818_v59 }
0x1e78   : > { %v12026_v24 = vrot.slane %v12012_v46, %v15818_v59  ;;  %v12027_v14 = vcombine.high %v12019_v55, %v12019_v55  ;;  %v12035_v57 = vrot.slane %v12019_v55, %v15818_v59  ;;  %v14775_v16 = vpop.f32.mrb[72].mxu0 }
0x1e79   : > { %v12077_v42 = vcombine.high %v12075_v22, %v12075_v22  ;;  %v12091_v49 = vrot.slane %v12075_v22, %v15818_v59  ;;  %v12098_v10 = vrot.slane %v12076_v60, %v15818_v59  ;;  %v12106_v63 = vcombine.high %v12084_v0, %v12084_v0  ;;  %12166 = vst.msk [vmem:[%s15529_s13 + $0x18e] sm:$0x1] %vm1136_vm5, %v12084_v0  ;;  %v11891_v12 = vpop.f32.mrb[73].mxu0 }
0x1e7a   : > { %v12028_v41 = vcombine.high %v12026_v24, %v12026_v24  ;;  %v12042_v62 = vrot.slane %v12026_v24, %v15818_v59  ;;  %v12049_v51 = vrot.slane %v12027_v14, %v15818_v59  ;;  %v12057_v26 = vcombine.high %v12035_v57, %v12035_v57  ;;  %12158 = vst.msk [vmem:[%s15529_s13 + $0x10e] sm:$0x1] %vm1136_vm5, %v12035_v57 }
0x1e7b   : > { %v12105_v15 = vrot.slane %v12077_v42, %v15818_v59  ;;  %v12107_v11 = vcombine.high %v12091_v49, %v12091_v49  ;;  %v12108_v9 = vcombine.high %v12098_v10, %v12098_v10  ;;  %12167 = vst.msk [vmem:[%s15529_s13 + $0x19e] sm:$0x1] %vm1136_vm5, %v12098_v10  ;;  %12168 = vst.msk [vmem:[%s15529_s13 + $0x1ae] sm:$0x1] %vm1136_vm5, %v12106_v63 }
0x1e7c   : > { %12170 = vst.msk [vmem:[%s15529_s13 + $0x1ce] sm:$0x1] %vm1136_vm5, %v12091_v49  ;;  %v12056_v53 = vrot.slane %v12028_v41, %v15818_v59  ;;  %v12058_v19 = vcombine.high %v12042_v62, %v12042_v62  ;;  %v12059_v52 = vcombine.high %v12049_v51, %v12049_v51  ;;  %12159 = vst.msk [vmem:[%s15529_s13 + $0x11e] sm:$0x1] %vm1136_vm5, %v12049_v51  ;;  %v14778_v34 = vpop.f32.mrb[74].mxu0 }
0x1e7d   : > { %12160 = vst.msk [vmem:[%s15529_s13 + $0x12e] sm:$0x1] %vm1136_vm5, %v12057_v26  ;;  %12162 = vst.msk [vmem:[%s15529_s13 + $0x14e] sm:$0x1] %vm1136_vm5, %v12042_v62  ;;  %v12109_v25 = vcombine.high %v12105_v15, %v12105_v15  ;;  %v12227_v18 = vcombine.high %v14775_v16, %v14775_v16  ;;  %v12234_v2 = vrot.slane %v14775_v16, %v15818_v59  ;;  %v11901_v36 = vpop.f32.mrb[75].mxu0 }
0x1e7e   : > { %12169 = vst.msk [vmem:[%s15529_s13 + $0x1be] sm:$0x1] %vm1136_vm5, %v12108_v9  ;;  %12171 = vst.msk [vmem:[%s15529_s13 + $0x1de] sm:$0x1] %vm1136_vm5, %v12105_v15  ;;  %v12060_v32 = vcombine.high %v12056_v53, %v12056_v53  ;;  %v12178_v48 = vcombine.high %v11891_v12, %v11891_v12  ;;  %v12185_v40 = vrot.slane %v11891_v12, %v15818_v59 }
0x1e7f   : > { %12172 = vst.msk [vmem:[%s15529_s13 + $0x1ee] sm:$0x1] %vm1136_vm5, %v12107_v11  ;;  %12161 = vst.msk [vmem:[%s15529_s13 + $0x13e] sm:$0x1] %vm1136_vm5, %v12059_v52  ;;  %v12241_v17 = vrot.slane %v12227_v18, %v15818_v59  ;;  %v12242_v21 = vcombine.high %v12234_v2, %v12234_v2  ;;  %v12250_v33 = vrot.slane %v12234_v2, %v15818_v59 }
0x1e80   : > { %12163 = vst.msk [vmem:[%s15529_s13 + $0x15e] sm:$0x1] %vm1136_vm5, %v12056_v53  ;;  %12164 = vst.msk [vmem:[%s15529_s13 + $0x16e] sm:$0x1] %vm1136_vm5, %v12058_v19  ;;  %v12192_v38 = vrot.slane %v12178_v48, %v15818_v59  ;;  %v12193_v20 = vcombine.high %v12185_v40, %v12185_v40  ;;  %v12201_v23 = vrot.slane %v12185_v40, %v15818_v59 }
0x1e81   : > { %12173 = vst.msk [vmem:[%s15529_s13 + $0x1fe] sm:$0x1] %vm1136_vm5, %v12109_v25  ;;  %12165 = vst.msk [vmem:[%s15529_s13 + $0x17e] sm:$0x1] %vm1136_vm5, %v12060_v32  ;;  %v12243_v30 = vcombine.high %v12241_v17, %v12241_v17  ;;  %v12257_v43 = vrot.slane %v12241_v17, %v15818_v59  ;;  %v12264_v28 = vrot.slane %v12242_v21, %v15818_v59 }
0x1e82   : > { %v12272_v39 = vcombine.high %v12250_v33, %v12250_v33  ;;  %12414 = vst.msk [vmem:[%s15534_s16 + $0x8e] sm:$0x1] %vm1401_vm6, %v12250_v33  ;;  %v12194_v31 = vcombine.high %v12192_v38, %v12192_v38  ;;  %v12208_v37 = vrot.slane %v12192_v38, %v15818_v59  ;;  %v12215_v45 = vrot.slane %v12193_v20, %v15818_v59 }
0x1e83   : > { %v12223_v46 = vcombine.high %v12201_v23, %v12201_v23  ;;  %12406 = vst.msk [vmem:[%s15534_s16 + $0xe] sm:$0x1] %vm1401_vm6, %v12201_v23  ;;  %v12271_v55 = vrot.slane %v12243_v30, %v15818_v59  ;;  %v12273_v22 = vcombine.high %v12257_v43, %v12257_v43  ;;  %v12274_v60 = vcombine.high %v12264_v28, %v12264_v28 }
0x1e84   : > { %12415 = vst.msk [vmem:[%s15534_s16 + $0x9e] sm:$0x1] %vm1401_vm6, %v12264_v28  ;;  %12416 = vst.msk [vmem:[%s15534_s16 + $0xae] sm:$0x1] %vm1401_vm6, %v12272_v39  ;;  %v12325_v0 = vcombine.high %v14778_v34, %v14778_v34  ;;  %v12222_v24 = vrot.slane %v12194_v31, %v15818_v59  ;;  %v12224_v14 = vcombine.high %v12208_v37, %v12208_v37  ;;  %v12458_v23 = vand.u32 65535, %v19654_v13 }
0x1e85   : > { %12418 = vst.msk [vmem:[%s15534_s16 + $0xce] sm:$0x1] %vm1401_vm6, %v12257_v43  ;;  %v12225_v57 = vcombine.high %v12215_v45, %v12215_v45  ;;  %12407 = vst.msk [vmem:[%s15534_s16 + $0x1e] sm:$0x1] %vm1401_vm6, %v12215_v45  ;;  %v12332_v42 = vrot.slane %v14778_v34, %v15818_v59  ;;  %v12275_v49 = vcombine.high %v12271_v55, %v12271_v55  ;;  %v12472_v34 = vand.u32 65535, %v19658_v58 }
0x1e86   : > { %12408 = vst.msk [vmem:[%s15534_s16 + $0x2e] sm:$0x1] %vm1401_vm6, %v12223_v46  ;;  %12410 = vst.msk [vmem:[%s15534_s16 + $0x4e] sm:$0x1] %vm1401_vm6, %v12208_v37  ;;  %v12339_v10 = vrot.slane %v12325_v0, %v15818_v59  ;;  %v12276_v63 = vcombine.high %v11901_v36, %v11901_v36  ;;  %v12283_v41 = vrot.slane %v11901_v36, %v15818_v59  ;;  %v12460_v30 = vcvt.s32.f32 %v12458_v23 }
0x1e87   : > { %12417 = vst.msk [vmem:[%s15534_s16 + $0xbe] sm:$0x1] %vm1401_vm6, %v12274_v60  ;;  %12419 = vst.msk [vmem:[%s15534_s16 + $0xde] sm:$0x1] %vm1401_vm6, %v12271_v55  ;;  %v12226_v62 = vcombine.high %v12222_v24, %v12222_v24  ;;  %v12340_v51 = vcombine.high %v12332_v42, %v12332_v42  ;;  %v12348_v26 = vrot.slane %v12332_v42, %v15818_v59  ;;  %v12474_v28 = vcvt.s32.f32 %v12472_v34 }
0x1e88   : > { %12420 = vst.msk [vmem:[%s15534_s16 + $0xee] sm:$0x1] %vm1401_vm6, %v12273_v22  ;;  %12409 = vst.msk [vmem:[%s15534_s16 + $0x3e] sm:$0x1] %vm1401_vm6, %v12225_v57  ;;  %v12341_v15 = vcombine.high %v12339_v10, %v12339_v10  ;;  %v12355_v11 = vrot.slane %v12339_v10, %v15818_v59  ;;  %v12290_v9 = vrot.slane %v12276_v63, %v15818_v59  ;;  %v12500_v37 = vand.u32 65535, %v19668_v47 }
0x1e89   : > { %12411 = vst.msk [vmem:[%s15534_s16 + $0x5e] sm:$0x1] %vm1401_vm6, %v12222_v24  ;;  %12412 = vst.msk [vmem:[%s15534_s16 + $0x6e] sm:$0x1] %vm1401_vm6, %v12224_v14  ;;  %v12291_v53 = vcombine.high %v12283_v41, %v12283_v41  ;;  %v12362_v19 = vrot.slane %v12340_v51, %v15818_v59  ;;  %v12370_v52 = vcombine.high %v12348_v26, %v12348_v26  ;;  %v12486_v58 = vand.u32 65535, %v19675_v35 }
0x1e8a   : > { %12421 = vst.msk [vmem:[%s15534_s16 + $0xfe] sm:$0x1] %vm1401_vm6, %v12275_v49  ;;  %12413 = vst.msk [vmem:[%s15534_s16 + $0x7e] sm:$0x1] %vm1401_vm6, %v12226_v62  ;;  %v12299_v25 = vrot.slane %v12283_v41, %v15818_v59  ;;  %v12369_v32 = vrot.slane %v12341_v15, %v15818_v59  ;;  %v12371_v16 = vcombine.high %v12355_v11, %v12355_v11  ;;  %v12502_v45 = vcvt.s32.f32 %v12500_v37 }
0x1e8b   : > { %12430 = vst.msk [vmem:[%s15534_s16 + $0x18e] sm:$0x1] %vm1401_vm6, %v12348_v26  ;;  %12434 = vst.msk [vmem:[%s15534_s16 + $0x1ce] sm:$0x1] %vm1401_vm6, %v12355_v11  ;;  %v12292_v18 = vcombine.high %v12290_v9, %v12290_v9  ;;  %v12306_v2 = vrot.slane %v12290_v9, %v15818_v59  ;;  %v12372_v12 = vcombine.high %v12362_v19, %v12362_v19  ;;  %v12488_v55 = vcvt.s32.f32 %v12486_v58 }
0x1e8c   : > { %12431 = vst.msk [vmem:[%s15534_s16 + $0x19e] sm:$0x1] %vm1401_vm6, %v12362_v19  ;;  %12432 = vst.msk [vmem:[%s15534_s16 + $0x1ae] sm:$0x1] %vm1401_vm6, %v12370_v52  ;;  %v12313_v48 = vrot.slane %v12291_v53, %v15818_v59  ;;  %v12321_v40 = vcombine.high %v12299_v25, %v12299_v25  ;;  %v12373_v17 = vcombine.high %v12369_v32, %v12369_v32  ;;  %v12463_v43 = vpop.xlane.xlu1 %12462 }
0x1e8d   : > { %12422 = vst.msk [vmem:[%s15534_s16 + $0x10e] sm:$0x1] %vm1401_vm6, %v12299_v25  ;;  %12435 = vst.msk [vmem:[%s15534_s16 + $0x1de] sm:$0x1] %vm1401_vm6, %v12369_v32  ;;  %v12320_v21 = vrot.slane %v12292_v18, %v15818_v59  ;;  %v12322_v33 = vcombine.high %v12306_v2, %v12306_v2  ;;  %vm12464_vm8 = vcmp.eq.f32.partialorder %v19661_v56, %v12463_v43  ;;  %v12477_v39 = vpop.xlane.xlu0 %12476 }
0x1e8e   : > { %12436 = vst.msk [vmem:[%s15534_s16 + $0x1ee] sm:$0x1] %vm1401_vm6, %v12371_v16  ;;  %12426 = vst.msk [vmem:[%s15534_s16 + $0x14e] sm:$0x1] %vm1401_vm6, %v12306_v2  ;;  %v12323_v38 = vcombine.high %v12313_v48, %v12313_v48  ;;  %vm12478_vm9 = vcmp.eq.f32.partialorder %v19663_v44, %v12477_v39  ;;  %v12465_v36 = vsel %vm12464_vm8, %v12460_v30, inf  ;;  %v12469_v44 = vcvt.f32.s32 %v12463_v43 }
0x1e8f   : > { %12433 = vst.msk [vmem:[%s15534_s16 + $0x1be] sm:$0x1] %vm1401_vm6, %v12372_v12  ;;  %12423 = vst.msk [vmem:[%s15534_s16 + $0x11e] sm:$0x1] %vm1401_vm6, %v12313_v48  ;;  %v12324_v20 = vcombine.high %v12320_v21, %v12320_v21  ;;  %12466 = vmin.xlane.f32.xlu1 %v12465_v36  ;;  %v12479_v31 = vsel %vm12478_vm9, %v12474_v28, inf  ;;  %v12483_v60 = vcvt.f32.s32 %v12477_v39 }
0x1e90   : > { %12424 = vst.msk [vmem:[%s15534_s16 + $0x12e] sm:$0x1] %vm1401_vm6, %v12321_v40  ;;  %12437 = vst.msk [vmem:[%s15534_s16 + $0x1fe] sm:$0x1] %vm1401_vm6, %v12373_v17  ;;  %12480 = vmin.xlane.f32.xlu0 %v12479_v31  ;;  %v12470_v24 = vshll.u32 %v12469_v44, 16 }
0x1e91   : > { %12427 = vst.msk [vmem:[%s15534_s16 + $0x15e] sm:$0x1] %vm1401_vm6, %v12320_v21  ;;  %12428 = vst.msk [vmem:[%s15534_s16 + $0x16e] sm:$0x1] %vm1401_vm6, %v12322_v33  ;;  %v12484_v57 = vshll.u32 %v12483_v60, 16 }
0x1e92   : > { %12425 = vst.msk [vmem:[%s15534_s16 + $0x13e] sm:$0x1] %vm1401_vm6, %v12323_v38  ;;  %12429 = vst.msk [vmem:[%s15534_s16 + $0x17e] sm:$0x1] %vm1401_vm6, %v12324_v20 }
0x1eb8   : > { %v12505_v46 = vpop.xlane.xlu0 %12504 }
0x1eb9   : > { %vm12506_vm10 = vcmp.eq.f32.partialorder %v19671_v50, %v12505_v46 }
0x1eba   : > { %v12507_v13 = vsel %vm12506_vm10, %v12502_v45, inf }
0x1ebb   : > { %12508 = vmin.xlane.f32.xlu0 %v12507_v13 }
0x1ec2   : > { %v12491_v22 = vpop.xlane.xlu1 %12490 }
0x1ec3   : > { %vm12492_vm11 = vcmp.eq.f32.partialorder %v19678_v54, %v12491_v22  ;;  %v12511_v54 = vcvt.f32.s32 %v12505_v46  ;;  %v12497_v10 = vcvt.f32.s32 %v12491_v22 }
0x1ec4   : > { %v12493_v56 = vsel %vm12492_vm11, %v12488_v55, inf }
0x1ec5   : > { %12494 = vmin.xlane.f32.xlu1 %v12493_v56  ;;  %v12512_v41 = vshll.u32 %v12511_v54, 16  ;;  %v12498_v51 = vshll.u32 %v12497_v10, 16 }
0x1f1c   : > { %v12467_v0 = vpop.xlane.xlu1 %12466 }
0x1f1d   : > { %v12468_v14 = vcvt.f32.s32 %v12467_v0  ;;  %v12481_v47 = vpop.xlane.xlu0 %12480 }
0x1f1e   : > { %v12482_v42 = vcvt.f32.s32 %v12481_v47 }
0x1f1f   : > { %v12471_v49 = vadd.s32 %v12470_v24, %v12468_v14 }
0x1f20   : > { %v12485_v50 = vadd.s32 %v12484_v57, %v12482_v42 }
0x1f21   : > { %vm12514_vm12 = vcmp.eq.s32.totalorder %v15496_v1, %v12471_v49 }
0x1f22   : > { %vm12515_vm13 = vcmp.eq.s32.totalorder %v15496_v1, %v12485_v50  ;;  %14781 = vmatprep.mubr.msk.f32.mxu1 %vm12514_vm12, %v15455_v61 }
0x1f23   : > { %14782 = vmatmul.mubr.msk.f32.vlgmr.msra.gmra.mrb[52].mxu1 %vm12515_vm13, %v15455_v61 }
0x1f24   : > { %15340 = vmatpush3.bf16.msra.mxu1 %v15649_v27 }
0x1f25   : > { %15342 = vmatprep.subr.bf16.mxu1 %v15657_v29 }
0x1f28   : > { %15344 = vmatpush3.bf16.msra.mxu1 %v15657_v29 }
0x1f29   : > { %15346 = vmatprep.subr.bf16.mxu1 %v15663_v3 }
0x1f2c   : > { %15348 = vmatpush3.bf16.msra.mxu1 %v15663_v3 }
0x1f2d   : > { %15350 = vmatprep.subr.bf16.mxu1 %v15669_v4 }
0x1f30   : > { %15352 = vmatpush3.bf16.msra.mxu1 %v15669_v4 }
0x1f31   : > { %15354 = vmatprep.subr.bf16.mxu1 %v15675_v5 }
0x1f34   : > { %15356 = vmatpush3.bf16.msra.mxu1 %v15675_v5 }
0x1f35   : > { %15358 = vmatprep.subr.bf16.mxu1 %v15681_v6 }
0x1f38   : > { %15360 = vmatpush3.bf16.msra.mxu1 %v15681_v6 }
0x1f39   : > { %15362 = vmatprep.subr.bf16.mxu1 %v15686_v7 }
0x1f3c   : > { %15364 = vmatpush3.bf16.msra.mxu1 %v15686_v7 }
0x1f3d   : > { %15366 = vmatprep.subr.bf16.mxu1 %v15692_v8 }
0x1f40   : > { %15368 = vmatpush3.bf16.msra.mxu1 %v15692_v8 }
0x1f48   : > { %v12509_v35 = vpop.xlane.xlu0 %12508 }
0x1f49   : > { %v12510_v63 = vcvt.f32.s32 %v12509_v35 }
0x1f4b   : > { %v12513_v26 = vadd.s32 %v12512_v41, %v12510_v63 }
0x1f4d   : > { %vm12517_vm15 = vcmp.eq.s32.totalorder %v15496_v1, %v12513_v26 }
0x1f52   : > { %v12495_v62 = vpop.xlane.xlu1 %12494 }
0x1f53   : > { %v12496_v27 = vcvt.f32.s32 %v12495_v62 }
0x1f55   : > { %v12499_v29 = vadd.s32 %v12498_v51, %v12496_v27 }
0x1f57   : > { %vm12516_vm14 = vcmp.eq.s32.totalorder %v15496_v1, %v12499_v29 }
0x1f58   : > { %14784 = vmatprep.mubr.msk.f32.mxu1 %vm12516_vm14, %v15455_v61 }
0x1f59   : > { %14785 = vmatmul.mubr.msk.f32.gmra.mrb[54].mxu1 %vm12517_vm15, %v15455_v61 }
0x1f5a   : > { %14819 = vmatprep.mubr.msk.f32.mxu1 %vm12514_vm12, %v15455_v61 }
0x1f5d   : > { %14820 = vmatmul.mubr.msk.f32.vlgmr.msra.gmra.mrb[56].mxu1 %vm12515_vm13, %v15455_v61 }
0x1f5e   : > { %14822 = vmatprep.mubr.msk.f32.mxu1 %vm12516_vm14, %v15455_v61 }
0x1f61   : > { %14823 = vmatmul.mubr.msk.f32.gmra.mrb[58].mxu1 %vm12517_vm15, %v15455_v61 }
0x1ff6   : > { %v14783_v3 = vpop.f32.mrb[52].mxu1 }
0x1ff7   : > { %v12749_v4 = vcombine.high %v14783_v3, %v14783_v3  ;;  %v12756_v5 = vrot.slane %v14783_v3, %v15818_v59  ;;  %v12592_v6 = vpop.f32.mrb[53].mxu1 }
0x1ff8   : > { %v12700_v15 = vcombine.high %v12592_v6, %v12592_v6  ;;  %v12707_v7 = vrot.slane %v12592_v6, %v15818_v59 }
0x1ff9   : > { %v12763_v8 = vrot.slane %v12749_v4, %v15818_v59  ;;  %v12764_v11 = vcombine.high %v12756_v5, %v12756_v5  ;;  %v12772_v1 = vrot.slane %v12756_v5, %v15818_v59 }
0x1ffa   : > { %v12714_v9 = vrot.slane %v12700_v15, %v15818_v59  ;;  %v12715_v53 = vcombine.high %v12707_v7, %v12707_v7  ;;  %v12723_v61 = vrot.slane %v12707_v7, %v15818_v59 }
0x1ffb   : > { %v12765_v19 = vcombine.high %v12763_v8, %v12763_v8  ;;  %v12779_v52 = vrot.slane %v12763_v8, %v15818_v59  ;;  %v12786_v25 = vrot.slane %v12764_v11, %v15818_v59  ;;  %v12794_v32 = vcombine.high %v12772_v1, %v12772_v1  ;;  %12936 = vst.msk [vmem:[%s15529_s13 + $0x8f] sm:$0x1] %vm1136_vm5, %v12772_v1 }
0x1ffc   : > { %v12716_v16 = vcombine.high %v12714_v9, %v12714_v9  ;;  %v12730_v18 = vrot.slane %v12714_v9, %v15818_v59  ;;  %v12737_v2 = vrot.slane %v12715_v53, %v15818_v59  ;;  %v12745_v12 = vcombine.high %v12723_v61, %v12723_v61  ;;  %12928 = vst.msk [vmem:[%s15529_s13 + $0xf] sm:$0x1] %vm1136_vm5, %v12723_v61 }
0x1ffd   : > { %v12793_v48 = vrot.slane %v12765_v19, %v15818_v59  ;;  %v12795_v40 = vcombine.high %v12779_v52, %v12779_v52  ;;  %v12796_v17 = vcombine.high %v12786_v25, %v12786_v25  ;;  %12937 = vst.msk [vmem:[%s15529_s13 + $0x9f] sm:$0x1] %vm1136_vm5, %v12786_v25  ;;  %12938 = vst.msk [vmem:[%s15529_s13 + $0xaf] sm:$0x1] %vm1136_vm5, %v12794_v32 }
0x1ffe   : > { %12940 = vst.msk [vmem:[%s15529_s13 + $0xcf] sm:$0x1] %vm1136_vm5, %v12779_v52  ;;  %v12744_v21 = vrot.slane %v12716_v16, %v15818_v59  ;;  %v12746_v33 = vcombine.high %v12730_v18, %v12730_v18  ;;  %v12747_v38 = vcombine.high %v12737_v2, %v12737_v2  ;;  %12929 = vst.msk [vmem:[%s15529_s13 + $0x1f] sm:$0x1] %vm1136_vm5, %v12737_v2 }
0x1fff   : > { %12930 = vst.msk [vmem:[%s15529_s13 + $0x2f] sm:$0x1] %vm1136_vm5, %v12745_v12  ;;  %12932 = vst.msk [vmem:[%s15529_s13 + $0x4f] sm:$0x1] %vm1136_vm5, %v12730_v18  ;;  %v12797_v20 = vcombine.high %v12793_v48, %v12793_v48 }
0x2000   : > { %12939 = vst.msk [vmem:[%s15529_s13 + $0xbf] sm:$0x1] %vm1136_vm5, %v12796_v17  ;;  %12941 = vst.msk [vmem:[%s15529_s13 + $0xdf] sm:$0x1] %vm1136_vm5, %v12793_v48  ;;  %v12748_v23 = vcombine.high %v12744_v21, %v12744_v21 }
0x2001   : > { %12942 = vst.msk [vmem:[%s15529_s13 + $0xef] sm:$0x1] %vm1136_vm5, %v12795_v40  ;;  %12931 = vst.msk [vmem:[%s15529_s13 + $0x3f] sm:$0x1] %vm1136_vm5, %v12747_v38 }
0x2002   : > { %12933 = vst.msk [vmem:[%s15529_s13 + $0x5f] sm:$0x1] %vm1136_vm5, %v12744_v21  ;;  %12934 = vst.msk [vmem:[%s15529_s13 + $0x6f] sm:$0x1] %vm1136_vm5, %v12746_v33 }
0x2003   : > { %12943 = vst.msk [vmem:[%s15529_s13 + $0xff] sm:$0x1] %vm1136_vm5, %v12797_v20  ;;  %12935 = vst.msk [vmem:[%s15529_s13 + $0x7f] sm:$0x1] %vm1136_vm5, %v12748_v23 }
0x202c   : > { %v14786_v34 = vpop.f32.mrb[54].mxu1 }
0x202d   : > { %v12847_v30 = vcombine.high %v14786_v34, %v14786_v34  ;;  %v12854_v43 = vrot.slane %v14786_v34, %v15818_v59  ;;  %v12602_v28 = vpop.f32.mrb[55].mxu1 }
0x202e   : > { %v12798_v39 = vcombine.high %v12602_v28, %v12602_v28  ;;  %v12805_v36 = vrot.slane %v12602_v28, %v15818_v59 }
0x202f   : > { %v12861_v31 = vrot.slane %v12847_v30, %v15818_v59  ;;  %v12862_v37 = vcombine.high %v12854_v43, %v12854_v43  ;;  %v12870_v45 = vrot.slane %v12854_v43, %v15818_v59 }
0x2030   : > { %v12812_v46 = vrot.slane %v12798_v39, %v15818_v59  ;;  %v12813_v13 = vcombine.high %v12805_v36, %v12805_v36  ;;  %v12821_v58 = vrot.slane %v12805_v36, %v15818_v59  ;;  %v14821_v63 = vpop.f32.mrb[56].mxu1 }
0x2031   : > { %v12863_v55 = vcombine.high %v12861_v31, %v12861_v31  ;;  %v12877_v22 = vrot.slane %v12861_v31, %v15818_v59  ;;  %v12884_v56 = vrot.slane %v12862_v37, %v15818_v59  ;;  %v12892_v44 = vcombine.high %v12870_v45, %v12870_v45  ;;  %12952 = vst.msk [vmem:[%s15529_s13 + $0x18f] sm:$0x1] %vm1136_vm5, %v12870_v45  ;;  %v12677_v51 = vpop.f32.mrb[57].mxu1 }
0x2032   : > { %v12814_v60 = vcombine.high %v12812_v46, %v12812_v46  ;;  %v12828_v0 = vrot.slane %v12812_v46, %v15818_v59  ;;  %v12835_v24 = vrot.slane %v12813_v13, %v15818_v59  ;;  %v12843_v14 = vcombine.high %v12821_v58, %v12821_v58  ;;  %12944 = vst.msk [vmem:[%s15529_s13 + $0x10f] sm:$0x1] %vm1136_vm5, %v12821_v58 }
0x2033   : > { %v12891_v47 = vrot.slane %v12863_v55, %v15818_v59  ;;  %v12893_v57 = vcombine.high %v12877_v22, %v12877_v22  ;;  %v12894_v42 = vcombine.high %v12884_v56, %v12884_v56  ;;  %12953 = vst.msk [vmem:[%s15529_s13 + $0x19f] sm:$0x1] %vm1136_vm5, %v12884_v56  ;;  %12954 = vst.msk [vmem:[%s15529_s13 + $0x1af] sm:$0x1] %vm1136_vm5, %v12892_v44 }
0x2034   : > { %12956 = vst.msk [vmem:[%s15529_s13 + $0x1cf] sm:$0x1] %vm1136_vm5, %v12877_v22  ;;  %v12842_v49 = vrot.slane %v12814_v60, %v15818_v59  ;;  %v12844_v50 = vcombine.high %v12828_v0, %v12828_v0  ;;  %v12845_v35 = vcombine.high %v12835_v24, %v12835_v24  ;;  %12945 = vst.msk [vmem:[%s15529_s13 + $0x11f] sm:$0x1] %vm1136_vm5, %v12835_v24  ;;  %v14824_v7 = vpop.f32.mrb[58].mxu1 }
0x2035   : > { %12946 = vst.msk [vmem:[%s15529_s13 + $0x12f] sm:$0x1] %vm1136_vm5, %v12843_v14  ;;  %12948 = vst.msk [vmem:[%s15529_s13 + $0x14f] sm:$0x1] %vm1136_vm5, %v12828_v0  ;;  %v12895_v54 = vcombine.high %v12891_v47, %v12891_v47  ;;  %v13013_v41 = vcombine.high %v14821_v63, %v14821_v63  ;;  %v13020_v62 = vrot.slane %v14821_v63, %v15818_v59  ;;  %v12687_v53 = vpop.f32.mrb[59].mxu1 }
0x2036   : > { %12955 = vst.msk [vmem:[%s15529_s13 + $0x1bf] sm:$0x1] %vm1136_vm5, %v12894_v42  ;;  %12957 = vst.msk [vmem:[%s15529_s13 + $0x1df] sm:$0x1] %vm1136_vm5, %v12891_v47  ;;  %v12846_v10 = vcombine.high %v12842_v49, %v12842_v49  ;;  %v12964_v27 = vcombine.high %v12677_v51, %v12677_v51  ;;  %v12971_v26 = vrot.slane %v12677_v51, %v15818_v59 }
0x2037   : > { %12958 = vst.msk [vmem:[%s15529_s13 + $0x1ef] sm:$0x1] %vm1136_vm5, %v12893_v57  ;;  %12947 = vst.msk [vmem:[%s15529_s13 + $0x13f] sm:$0x1] %vm1136_vm5, %v12845_v35  ;;  %v13027_v29 = vrot.slane %v13013_v41, %v15818_v59  ;;  %v13028_v3 = vcombine.high %v13020_v62, %v13020_v62  ;;  %v13036_v4 = vrot.slane %v13020_v62, %v15818_v59 }
0x2038   : > { %12949 = vst.msk [vmem:[%s15529_s13 + $0x15f] sm:$0x1] %vm1136_vm5, %v12842_v49  ;;  %12950 = vst.msk [vmem:[%s15529_s13 + $0x16f] sm:$0x1] %vm1136_vm5, %v12844_v50  ;;  %v12978_v5 = vrot.slane %v12964_v27, %v15818_v59  ;;  %v12979_v6 = vcombine.high %v12971_v26, %v12971_v26  ;;  %v12987_v15 = vrot.slane %v12971_v26, %v15818_v59 }
0x2039   : > { %12959 = vst.msk [vmem:[%s15529_s13 + $0x1ff] sm:$0x1] %vm1136_vm5, %v12895_v54  ;;  %12951 = vst.msk [vmem:[%s15529_s13 + $0x17f] sm:$0x1] %vm1136_vm5, %v12846_v10  ;;  %v13029_v8 = vcombine.high %v13027_v29, %v13027_v29  ;;  %v13043_v11 = vrot.slane %v13027_v29, %v15818_v59  ;;  %v13050_v1 = vrot.slane %v13028_v3, %v15818_v59 }
0x203a   : > { %v13058_v9 = vcombine.high %v13036_v4, %v13036_v4  ;;  %13200 = vst.msk [vmem:[%s15534_s16 + $0x8f] sm:$0x1] %vm1401_vm6, %v13036_v4  ;;  %v12980_v61 = vcombine.high %v12978_v5, %v12978_v5  ;;  %v12994_v19 = vrot.slane %v12978_v5, %v15818_v59  ;;  %v13001_v52 = vrot.slane %v12979_v6, %v15818_v59 }
0x203b   : > { %v13009_v25 = vcombine.high %v12987_v15, %v12987_v15  ;;  %13192 = vst.msk [vmem:[%s15534_s16 + $0xf] sm:$0x1] %vm1401_vm6, %v12987_v15  ;;  %v13057_v32 = vrot.slane %v13029_v8, %v15818_v59  ;;  %v13059_v16 = vcombine.high %v13043_v11, %v13043_v11  ;;  %v13060_v18 = vcombine.high %v13050_v1, %v13050_v1 }
0x203c   : > { %13201 = vst.msk [vmem:[%s15534_s16 + $0x9f] sm:$0x1] %vm1401_vm6, %v13050_v1  ;;  %13202 = vst.msk [vmem:[%s15534_s16 + $0xaf] sm:$0x1] %vm1401_vm6, %v13058_v9  ;;  %v13111_v2 = vcombine.high %v14824_v7, %v14824_v7  ;;  %v13008_v12 = vrot.slane %v12980_v61, %v15818_v59  ;;  %v13010_v48 = vcombine.high %v12994_v19, %v12994_v19 }
0x203d   : > { %13204 = vst.msk [vmem:[%s15534_s16 + $0xcf] sm:$0x1] %vm1401_vm6, %v13043_v11  ;;  %v13011_v40 = vcombine.high %v13001_v52, %v13001_v52  ;;  %13193 = vst.msk [vmem:[%s15534_s16 + $0x1f] sm:$0x1] %vm1401_vm6, %v13001_v52  ;;  %v13118_v17 = vrot.slane %v14824_v7, %v15818_v59  ;;  %v13061_v21 = vcombine.high %v13057_v32, %v13057_v32 }
0x203e   : > { %13194 = vst.msk [vmem:[%s15534_s16 + $0x2f] sm:$0x1] %vm1401_vm6, %v13009_v25  ;;  %13196 = vst.msk [vmem:[%s15534_s16 + $0x4f] sm:$0x1] %vm1401_vm6, %v12994_v19  ;;  %v13125_v33 = vrot.slane %v13111_v2, %v15818_v59  ;;  %v13062_v38 = vcombine.high %v12687_v53, %v12687_v53  ;;  %v13069_v20 = vrot.slane %v12687_v53, %v15818_v59 }
0x203f   : > { %13203 = vst.msk [vmem:[%s15534_s16 + $0xbf] sm:$0x1] %vm1401_vm6, %v13060_v18  ;;  %13205 = vst.msk [vmem:[%s15534_s16 + $0xdf] sm:$0x1] %vm1401_vm6, %v13057_v32  ;;  %v13012_v23 = vcombine.high %v13008_v12, %v13008_v12  ;;  %v13126_v34 = vcombine.high %v13118_v17, %v13118_v17  ;;  %v13134_v30 = vrot.slane %v13118_v17, %v15818_v59 }
0x2040   : > { %13206 = vst.msk [vmem:[%s15534_s16 + $0xef] sm:$0x1] %vm1401_vm6, %v13059_v16  ;;  %13195 = vst.msk [vmem:[%s15534_s16 + $0x3f] sm:$0x1] %vm1401_vm6, %v13011_v40  ;;  %v13127_v43 = vcombine.high %v13125_v33, %v13125_v33  ;;  %v13141_v28 = vrot.slane %v13125_v33, %v15818_v59  ;;  %v13076_v39 = vrot.slane %v13062_v38, %v15818_v59 }
0x2041   : > { %13197 = vst.msk [vmem:[%s15534_s16 + $0x5f] sm:$0x1] %vm1401_vm6, %v13008_v12  ;;  %13198 = vst.msk [vmem:[%s15534_s16 + $0x6f] sm:$0x1] %vm1401_vm6, %v13010_v48  ;;  %v13077_v36 = vcombine.high %v13069_v20, %v13069_v20  ;;  %v13148_v31 = vrot.slane %v13126_v34, %v15818_v59  ;;  %v13156_v37 = vcombine.high %v13134_v30, %v13134_v30 }
0x2042   : > { %13207 = vst.msk [vmem:[%s15534_s16 + $0xff] sm:$0x1] %vm1401_vm6, %v13061_v21  ;;  %13199 = vst.msk [vmem:[%s15534_s16 + $0x7f] sm:$0x1] %vm1401_vm6, %v13012_v23  ;;  %v13085_v45 = vrot.slane %v13069_v20, %v15818_v59  ;;  %v13155_v46 = vrot.slane %v13127_v43, %v15818_v59  ;;  %v13157_v13 = vcombine.high %v13141_v28, %v13141_v28 }
0x2043   : > { %13216 = vst.msk [vmem:[%s15534_s16 + $0x18f] sm:$0x1] %vm1401_vm6, %v13134_v30  ;;  %13220 = vst.msk [vmem:[%s15534_s16 + $0x1cf] sm:$0x1] %vm1401_vm6, %v13141_v28  ;;  %v13078_v58 = vcombine.high %v13076_v39, %v13076_v39  ;;  %v13092_v55 = vrot.slane %v13076_v39, %v15818_v59  ;;  %v13158_v22 = vcombine.high %v13148_v31, %v13148_v31 }
0x2044   : > { %13217 = vst.msk [vmem:[%s15534_s16 + $0x19f] sm:$0x1] %vm1401_vm6, %v13148_v31  ;;  %13218 = vst.msk [vmem:[%s15534_s16 + $0x1af] sm:$0x1] %vm1401_vm6, %v13156_v37  ;;  %v13099_v56 = vrot.slane %v13077_v36, %v15818_v59  ;;  %v13107_v44 = vcombine.high %v13085_v45, %v13085_v45  ;;  %v13159_v60 = vcombine.high %v13155_v46, %v13155_v46 }
0x2045   : > { %13208 = vst.msk [vmem:[%s15534_s16 + $0x10f] sm:$0x1] %vm1401_vm6, %v13085_v45  ;;  %13221 = vst.msk [vmem:[%s15534_s16 + $0x1df] sm:$0x1] %vm1401_vm6, %v13155_v46  ;;  %v13106_v0 = vrot.slane %v13078_v58, %v15818_v59  ;;  %v13108_v24 = vcombine.high %v13092_v55, %v13092_v55 }
0x2046   : > { %13222 = vst.msk [vmem:[%s15534_s16 + $0x1ef] sm:$0x1] %vm1401_vm6, %v13157_v13  ;;  %13212 = vst.msk [vmem:[%s15534_s16 + $0x14f] sm:$0x1] %vm1401_vm6, %v13092_v55  ;;  %v13109_v14 = vcombine.high %v13099_v56, %v13099_v56 }
0x2047   : > { %13219 = vst.msk [vmem:[%s15534_s16 + $0x1bf] sm:$0x1] %vm1401_vm6, %v13158_v22  ;;  %13209 = vst.msk [vmem:[%s15534_s16 + $0x11f] sm:$0x1] %vm1401_vm6, %v13099_v56  ;;  %v13110_v47 = vcombine.high %v13106_v0, %v13106_v0 }
0x2048   : > { %13210 = vst.msk [vmem:[%s15534_s16 + $0x12f] sm:$0x1] %vm1401_vm6, %v13107_v44  ;;  %13223 = vst.msk [vmem:[%s15534_s16 + $0x1ff] sm:$0x1] %vm1401_vm6, %v13159_v60 }
0x2049   : > { %13213 = vst.msk [vmem:[%s15534_s16 + $0x15f] sm:$0x1] %vm1401_vm6, %v13106_v0  ;;  %13214 = vst.msk [vmem:[%s15534_s16 + $0x16f] sm:$0x1] %vm1401_vm6, %v13108_v24 }
0x204a   : > { %13211 = vst.msk [vmem:[%s15534_s16 + $0x13f] sm:$0x1] %vm1401_vm6, %v13109_v14  ;;  %13215 = vst.msk [vmem:[%s15534_s16 + $0x17f] sm:$0x1] %vm1401_vm6, %v13110_v47 }
0x204b PF: > { %s16_s18 = sadd.s32 1, %s15437_s18  }
0x204c   : > { %p13_p5 = scmp.ge.s32.totalorder %s16_s18, 4  }
0x204e   :  { %15 = sbr.rel (!%p13_p5) target bundleno = 1 (0x1), region = 116 }

</bundles_post_ra>
